<compile_context>
chip_gen: v7x
topology: tpu7x:2x2x1
jax: 0.10.0
libtpu: 0.0.40
codegen_flags: <defaults>
</compile_context>

<pallas_src>
import functools

import jax
import jax.numpy as jnp
from jax import lax
from jax.experimental import pallas as pl
from jax.experimental.pallas import tpu as pltpu

# ----------------------------- model config -----------------------------------
BATCH = 2
HORIZON = 4                                # == frame_count
FRAME_COUNT = 4
IMG_C, IMG_H, IMG_W = 3, 16, 16
IMG_FLAT = IMG_C * IMG_H * IMG_W           # 768
NUM_FEATURE = 32
DEPTH = 2
NUM_HEADS = 4
HEAD_DIM = 8
INNER_DIM = NUM_HEADS * HEAD_DIM           # 32
MLP_DIM = 2048                             # hardcoded in CSGO_model
INV_DYN_DIM = 32
NUM_OUT_HEADS = 26
HEADS_WIDTH = NUM_OUT_HEADS * INV_DYN_DIM  # 832
LN_EPS = 1e-5


# ----------------------------- helpers -----------------------------------------
def _gelu_tanh(x):
    # tanh GELU (runs on the EUP slot instead of a 12-op VALU erf polynomial).
    c = 0.7978845608028654  # sqrt(2/pi)
    return 0.5 * x * (1.0 + jnp.tanh(c * (x + 0.044715 * (x * x * x))))


# ----------------------------- fused forward kernel ----------------------------
def _fused_forward_kernel(x_ref, enc_w_ref, enc_b_ref,
                          ln_g_ref, ln_b_ref,
                          wq_ref, wk_ref, wv_ref, wo_ref, bo_ref,
                          wff1_ref, bff1_ref, wff2_ref, bff2_ref,
                          hW1_ref, hb1_ref, hW2_ref, hb2_ref, hW3_ref, hb3_ref,
                          o_ref, *, depth, heads, head_dim, frame_count, scale):
    # ---------------- encoder fc head: (HZ, CHW) @ (CHW, D) + b ------------------
    x = x_ref[0]                                                        # (HZ, CHW)
    tok = (jnp.dot(x, enc_w_ref[...], preferred_element_type=jnp.float32)
           + enc_b_ref[...])                                            # (HZ, D)

    # ---------------- transformer: PreNorm(Attn) + x ; FF(x) + x -----------------
    for d in range(depth):
        # LayerNorm (biased variance, eps=1e-5) -- PreNorm of the attention block.
        mean = jnp.mean(tok, axis=-1, keepdims=True)
        var = jnp.mean((tok - mean) ** 2, axis=-1, keepdims=True)
        xn = (tok - mean) * lax.rsqrt(var + LN_EPS)
        xn = xn * ln_g_ref[d] + ln_b_ref[d]

        # Multi-head self-attention over this batch element's HZ tokens.
        acc = None
        for h in range(heads):                       # static unroll, heads = 4
            q = jnp.dot(xn, wq_ref[d, h], preferred_element_type=jnp.float32)
            k = jnp.dot(xn, wk_ref[d, h], preferred_element_type=jnp.float32)
            v = jnp.dot(xn, wv_ref[d, h], preferred_element_type=jnp.float32)
            dots = lax.dot_general(q, k, (((1,), (1,)), ((), ())),
                                   preferred_element_type=jnp.float32) * scale
            dots = dots - jnp.max(dots, axis=-1, keepdims=True)
            e = jnp.exp(dots)
            attn = e / jnp.sum(e, axis=-1, keepdims=True)
            o_h = jnp.dot(attn, v, preferred_element_type=jnp.float32)   # (HZ, hd)
            # accumulate the output projection per head (no concat / lane slicing)
            contrib = jnp.dot(o_h, wo_ref[d, h], preferred_element_type=jnp.float32)
            acc = contrib if acc is None else acc + contrib
        x1 = tok + acc + bo_ref[d]                    # residual 1 (+ to_out bias)

        # FeedForward (no norm in layer_norm_cfg=1): Linear -> GELU -> Linear.
        h1 = (jnp.dot(x1, wff1_ref[d], preferred_element_type=jnp.float32)
              + bff1_ref[d])                          # (HZ, MLP_DIM)
        h1 = _gelu_tanh(h1)
        ff = (jnp.dot(h1, wff2_ref[d], preferred_element_type=jnp.float32)
              + bff2_ref[d])                          # (HZ, D)
        tok = x1 + ff                                 # residual 2

    # ---------------- 26 fused InvDynamic heads ----------------------------------
    # x_comb = concat of the first frame_count token rows; layer 1 is computed as a
    # sum of per-frame weight blocks so no in-kernel reshape/concat is needed.
    y1 = hb1_ref[...]                                 # (1, 26*inv)
    for i in range(frame_count):                      # static unroll, 4 frames
        y1 = y1 + jnp.dot(tok[i:i + 1, :], hW1_ref[i],
                          preferred_element_type=jnp.float32)
    y1 = jnp.maximum(y1, 0.0)
    y2 = jnp.maximum(jnp.dot(y1, hW2_ref[...],        # block-diagonal (832, 832)
                             preferred_element_type=jnp.float32) + hb2_ref[...], 0.0)
    y3 = (jnp.dot(y2, hW3_ref[...],                   # (832, 26) select + weight
                  preferred_element_type=jnp.float32) + hb3_ref[...])   # (1, 26)
    o_ref[0] = y3                                     # single lane-dense store


# ----------------------------- host-side wrapper --------------------------------
def csgo_forward(x, params):
    b, hz, c, hh, ww = x.shape
    x3 = x.reshape(b, hz, c * hh * ww).astype(jnp.float32)   # (B, HZ, CHW)

    kern = functools.partial(
        _fused_forward_kernel,
        depth=DEPTH, heads=NUM_HEADS, head_dim=HEAD_DIM,
        frame_count=FRAME_COUNT, scale=HEAD_DIM ** -0.5)

    operands = (
        x3, params["enc_w"], params["enc_b"],
        params["ln_g"], params["ln_b"],
        params["wq"], params["wk"], params["wv"], params["wo"], params["bo"],
        params["wff1"], params["bff1"], params["wff2"], params["bff2"],
        params["hW1"], params["hb1"], params["hW2bd"], params["hb2"],
        params["hW3sel"], params["hb3"],
    )

    def _full(a):   # whole array resident in VMEM, same block for every grid step
        return pl.BlockSpec(a.shape, lambda i: (0,) * a.ndim)

    in_specs = [pl.BlockSpec((1, hz, c * hh * ww), lambda i: (i, 0, 0))]
    in_specs += [_full(a) for a in operands[1:]]

    out = pl.pallas_call(
        kern,
        grid=(b,),
        in_specs=in_specs,
        out_specs=pl.BlockSpec((1, 1, NUM_OUT_HEADS), lambda i: (i, 0, 0)),
        out_shape=jax.ShapeDtypeStruct((b, 1, NUM_OUT_HEADS), jnp.float32),
        compiler_params=pltpu.CompilerParams(
            dimension_semantics=("parallel",)),      # 2nd TensorCore on v7x
    )(*operands)
    return out.reshape(b, NUM_OUT_HEADS, 1)          # lane-dense kernel out -> (B, 26, 1)


# ----------------------------- parameter init -----------------------------------
def init_params(key):
    ks = iter(jax.random.split(key, 16))

    def nrm(shape, scale=0.02):
        return scale * jax.random.normal(next(ks), shape, dtype=jnp.float32)

    # encoder fc head (stand-in for the ResNet-50 fc replacement)
    enc_w = nrm((IMG_FLAT, NUM_FEATURE))
    enc_b = jnp.zeros((1, NUM_FEATURE), jnp.float32)

    # transformer (weights in math layout (in, out); heads split host-side)
    ln_g = jnp.ones((DEPTH, 1, NUM_FEATURE), jnp.float32)
    ln_b = jnp.zeros((DEPTH, 1, NUM_FEATURE), jnp.float32)
    w_qkv = nrm((DEPTH, NUM_FEATURE, 3 * INNER_DIM))          # [Q|K|V], heads packed (h d)

    def split_heads(block):                                   # (L, D, inner) -> (L, H, D, hd)
        return block.reshape(DEPTH, NUM_FEATURE, NUM_HEADS, HEAD_DIM).transpose(0, 2, 1, 3)

    wq = split_heads(w_qkv[:, :, :INNER_DIM])
    wk = split_heads(w_qkv[:, :, INNER_DIM:2 * INNER_DIM])
    wv = split_heads(w_qkv[:, :, 2 * INNER_DIM:])
    w_out = nrm((DEPTH, INNER_DIM, NUM_FEATURE))
    wo = w_out.reshape(DEPTH, NUM_HEADS, HEAD_DIM, NUM_FEATURE)
    bo = jnp.zeros((DEPTH, 1, NUM_FEATURE), jnp.float32)
    wff1 = nrm((DEPTH, NUM_FEATURE, MLP_DIM))
    bff1 = jnp.zeros((DEPTH, 1, MLP_DIM), jnp.float32)
    wff2 = nrm((DEPTH, MLP_DIM, NUM_FEATURE))
    bff2 = jnp.zeros((DEPTH, 1, NUM_FEATURE), jnp.float32)

    # 26 InvDynamic heads: natural per-head weights -> fused lane-dense layouts.
    W1 = nrm((NUM_OUT_HEADS, FRAME_COUNT * NUM_FEATURE, INV_DYN_DIM))
    hW1 = (W1.reshape(NUM_OUT_HEADS, FRAME_COUNT, NUM_FEATURE, INV_DYN_DIM)
             .transpose(1, 2, 0, 3)
             .reshape(FRAME_COUNT, NUM_FEATURE, HEADS_WIDTH))     # per-frame blocks
    hb1 = jnp.zeros((1, HEADS_WIDTH), jnp.float32)

    W2 = nrm((NUM_OUT_HEADS, INV_DYN_DIM, INV_DYN_DIM))
    hW2bd = jnp.zeros((HEADS_WIDTH, HEADS_WIDTH), jnp.float32)    # block-diagonal
    for h in range(NUM_OUT_HEADS):
        lo = h * INV_DYN_DIM
        hW2bd = hW2bd.at[lo:lo + INV_DYN_DIM, lo:lo + INV_DYN_DIM].set(W2[h])
    hb2 = jnp.zeros((1, HEADS_WIDTH), jnp.float32)

    W3 = nrm((NUM_OUT_HEADS, INV_DYN_DIM))                        # Linear(inv, 1) per head
    hW3sel = jnp.zeros((HEADS_WIDTH, NUM_OUT_HEADS), jnp.float32)
    for h in range(NUM_OUT_HEADS):
        lo = h * INV_DYN_DIM
        hW3sel = hW3sel.at[lo:lo + INV_DYN_DIM, h].set(W3[h])
    hb3 = jnp.zeros((1, NUM_OUT_HEADS), jnp.float32)

    return {
        "enc_w": enc_w, "enc_b": enc_b,
        "ln_g": ln_g, "ln_b": ln_b,
        "wq": wq, "wk": wk, "wv": wv, "wo": wo, "bo": bo,
        "wff1": wff1, "bff1": bff1, "wff2": wff2, "bff2": bff2,
        "hW1": hW1, "hb1": hb1, "hW2bd": hW2bd, "hb2": hb2,
        "hW3sel": hW3sel, "hb3": hb3,
    }


# ----------------------------- main ----------------------------------------------
if __name__ == "__main__":
    key = jax.random.PRNGKey(0)
    pkey, xkey = jax.random.split(key)
    params = init_params(pkey)
    x = jax.random.normal(xkey, (BATCH, HORIZON, IMG_C, IMG_H, IMG_W), dtype=jnp.float32)

    out = jax.jit(csgo_forward)(x, params)
    out = jax.block_until_ready(out)
    assert out.shape == (BATCH, NUM_OUT_HEADS, 1), out.shape
    assert out.dtype == jnp.float32
    assert bool(jnp.all(jnp.isfinite(out)))
    print("KERNEL_OK")
</pallas_src>

<mosaic_0001>
module attributes {stable_mosaic.version = 11 : i64} {
  func.func @_fused_forward_kernel(%arg0: i32, %arg1: memref<1x4x768xf32, #tpu.memory_space<vmem>>, %arg2: memref<768x32xf32, #tpu.memory_space<vmem>>, %arg3: memref<1x32xf32, #tpu.memory_space<vmem>>, %arg4: memref<2x1x32xf32, #tpu.memory_space<vmem>>, %arg5: memref<2x1x32xf32, #tpu.memory_space<vmem>>, %arg6: memref<2x4x32x8xf32, #tpu.memory_space<vmem>>, %arg7: memref<2x4x32x8xf32, #tpu.memory_space<vmem>>, %arg8: memref<2x4x32x8xf32, #tpu.memory_space<vmem>>, %arg9: memref<2x4x8x32xf32, #tpu.memory_space<vmem>>, %arg10: memref<2x1x32xf32, #tpu.memory_space<vmem>>, %arg11: memref<2x32x2048xf32, #tpu.memory_space<vmem>>, %arg12: memref<2x1x2048xf32, #tpu.memory_space<vmem>>, %arg13: memref<2x2048x32xf32, #tpu.memory_space<vmem>>, %arg14: memref<2x1x32xf32, #tpu.memory_space<vmem>>, %arg15: memref<4x32x832xf32, #tpu.memory_space<vmem>>, %arg16: memref<1x832xf32, #tpu.memory_space<vmem>>, %arg17: memref<832x832xf32, #tpu.memory_space<vmem>>, %arg18: memref<1x832xf32, #tpu.memory_space<vmem>>, %arg19: memref<832x26xf32, #tpu.memory_space<vmem>>, %arg20: memref<1x26xf32, #tpu.memory_space<vmem>>, %arg21: memref<1x1x26xf32, #tpu.memory_space<vmem>>) attributes {dimension_semantics = [#tpu.dimension_semantics<parallel>], iteration_bounds = array<i64: 2>, scalar_prefetch = 0 : i64, scratch_operands = 0 : i64, tpu.core_type = #tpu.core_type<tc>, window_params = [{transform_indices = @transform_0, window_bounds = array<i64: 1, 4, 768>}, {pipeline_mode = #tpu.pipeline_mode<synchronous>, transform_indices = @transform_1, window_bounds = array<i64: 768, 32>}, {pipeline_mode = #tpu.pipeline_mode<synchronous>, transform_indices = @transform_2, window_bounds = array<i64: 1, 32>}, {pipeline_mode = #tpu.pipeline_mode<synchronous>, transform_indices = @transform_3, window_bounds = array<i64: 2, 1, 32>}, {pipeline_mode = #tpu.pipeline_mode<synchronous>, transform_indices = @transform_4, window_bounds = array<i64: 2, 1, 32>}, {pipeline_mode = #tpu.pipeline_mode<synchronous>, transform_indices = @transform_5, window_bounds = array<i64: 2, 4, 32, 8>}, {pipeline_mode = #tpu.pipeline_mode<synchronous>, transform_indices = @transform_6, window_bounds = array<i64: 2, 4, 32, 8>}, {pipeline_mode = #tpu.pipeline_mode<synchronous>, transform_indices = @transform_7, window_bounds = array<i64: 2, 4, 32, 8>}, {pipeline_mode = #tpu.pipeline_mode<synchronous>, transform_indices = @transform_8, window_bounds = array<i64: 2, 4, 8, 32>}, {pipeline_mode = #tpu.pipeline_mode<synchronous>, transform_indices = @transform_9, window_bounds = array<i64: 2, 1, 32>}, {pipeline_mode = #tpu.pipeline_mode<synchronous>, transform_indices = @transform_10, window_bounds = array<i64: 2, 32, 2048>}, {pipeline_mode = #tpu.pipeline_mode<synchronous>, transform_indices = @transform_11, window_bounds = array<i64: 2, 1, 2048>}, {pipeline_mode = #tpu.pipeline_mode<synchronous>, transform_indices = @transform_12, window_bounds = array<i64: 2, 2048, 32>}, {pipeline_mode = #tpu.pipeline_mode<synchronous>, transform_indices = @transform_13, window_bounds = array<i64: 2, 1, 32>}, {pipeline_mode = #tpu.pipeline_mode<synchronous>, transform_indices = @transform_14, window_bounds = array<i64: 4, 32, 832>}, {pipeline_mode = #tpu.pipeline_mode<synchronous>, transform_indices = @transform_15, window_bounds = array<i64: 1, 832>}, {pipeline_mode = #tpu.pipeline_mode<synchronous>, transform_indices = @transform_16, window_bounds = array<i64: 832, 832>}, {pipeline_mode = #tpu.pipeline_mode<synchronous>, transform_indices = @transform_17, window_bounds = array<i64: 1, 832>}, {pipeline_mode = #tpu.pipeline_mode<synchronous>, transform_indices = @transform_18, window_bounds = array<i64: 832, 26>}, {pipeline_mode = #tpu.pipeline_mode<synchronous>, transform_indices = @transform_19, window_bounds = array<i64: 1, 26>}, {transform_indices = @transform_20, window_bounds = array<i64: 1, 1, 26>}]} {
    %c0 = arith.constant 0 : index
    %c0_0 = arith.constant 0 : index
    %c0_1 = arith.constant 0 : index
    %0 = vector.load %arg1[%c0, %c0_0, %c0_1] : memref<1x4x768xf32, #tpu.memory_space<vmem>>, vector<1x4x768xf32>
    %1 = vector.shape_cast %0 : vector<1x4x768xf32> to vector<4x768xf32>
    %c0_2 = arith.constant 0 : index
    %c0_3 = arith.constant 0 : index
    %2 = vector.load %arg2[%c0_2, %c0_3] : memref<768x32xf32, #tpu.memory_space<vmem>>, vector<768x32xf32>
    %cst = arith.constant dense<0.000000e+00> : vector<4x32xf32>
    %3 = tpu.matmul %1, %2, %cst {dimension_numbers = #tpu.dot_dimension_numbers<[1], [0], [0], [1], [0, 0, 1, 1], [], []>} : vector<4x768xf32>, vector<768x32xf32>, vector<4x32xf32> -> vector<4x32xf32>
    %c0_4 = arith.constant 0 : index
    %c0_5 = arith.constant 0 : index
    %4 = vector.load %arg3[%c0_4, %c0_5] : memref<1x32xf32, #tpu.memory_space<vmem>>, vector<1x32xf32>
    %5 = vector.broadcast %4 : vector<1x32xf32> to vector<4x32xf32>
    %6 = arith.addf %3, %5 : vector<4x32xf32>
    %cst_6 = arith.constant dense<0.000000e+00> : vector<4xf32>
    %7 = vector.multi_reduction <add>, %6, %cst_6 [1] : vector<4x32xf32> to vector<4xf32>
    %8 = vector.shape_cast %7 : vector<4xf32> to vector<4x1xf32>
    %cst_7 = arith.constant 3.200000e+01 : f32
    %9 = vector.broadcast %cst_7 : f32 to vector<4x1xf32>
    %10 = arith.divf %8, %9 : vector<4x1xf32>
    %11 = vector.broadcast %10 : vector<4x1xf32> to vector<4x32xf32>
    %12 = arith.subf %6, %11 : vector<4x32xf32>
    %13 = arith.mulf %12, %12 : vector<4x32xf32>
    %cst_8 = arith.constant dense<0.000000e+00> : vector<4xf32>
    %14 = vector.multi_reduction <add>, %13, %cst_8 [1] : vector<4x32xf32> to vector<4xf32>
    %15 = vector.shape_cast %14 : vector<4xf32> to vector<4x1xf32>
    %cst_9 = arith.constant 3.200000e+01 : f32
    %16 = vector.broadcast %cst_9 : f32 to vector<4x1xf32>
    %17 = arith.divf %15, %16 : vector<4x1xf32>
    %18 = vector.broadcast %10 : vector<4x1xf32> to vector<4x32xf32>
    %19 = arith.subf %6, %18 : vector<4x32xf32>
    %cst_10 = arith.constant 9.99999974E-6 : f32
    %20 = vector.broadcast %cst_10 : f32 to vector<4x1xf32>
    %21 = arith.addf %17, %20 : vector<4x1xf32>
    %22 = math.rsqrt %21 : vector<4x1xf32>
    %23 = vector.broadcast %22 : vector<4x1xf32> to vector<4x32xf32>
    %24 = arith.mulf %19, %23 : vector<4x32xf32>
    %c0_11 = arith.constant 0 : index
    %c0_12 = arith.constant 0 : index
    %c0_13 = arith.constant 0 : index
    %25 = vector.load %arg4[%c0_11, %c0_12, %c0_13] : memref<2x1x32xf32, #tpu.memory_space<vmem>>, vector<1x1x32xf32>
    %26 = vector.shape_cast %25 : vector<1x1x32xf32> to vector<1x32xf32>
    %27 = vector.broadcast %26 : vector<1x32xf32> to vector<4x32xf32>
    %28 = arith.mulf %24, %27 : vector<4x32xf32>
    %c0_14 = arith.constant 0 : index
    %c0_15 = arith.constant 0 : index
    %c0_16 = arith.constant 0 : index
    %29 = vector.load %arg5[%c0_14, %c0_15, %c0_16] : memref<2x1x32xf32, #tpu.memory_space<vmem>>, vector<1x1x32xf32>
    %30 = vector.shape_cast %29 : vector<1x1x32xf32> to vector<1x32xf32>
    %31 = vector.broadcast %30 : vector<1x32xf32> to vector<4x32xf32>
    %32 = arith.addf %28, %31 : vector<4x32xf32>
    %c0_17 = arith.constant 0 : index
    %c0_18 = arith.constant 0 : index
    %c0_19 = arith.constant 0 : index
    %c0_20 = arith.constant 0 : index
    %33 = vector.load %arg6[%c0_17, %c0_18, %c0_19, %c0_20] : memref<2x4x32x8xf32, #tpu.memory_space<vmem>>, vector<1x1x32x8xf32>
    %34 = vector.shape_cast %33 : vector<1x1x32x8xf32> to vector<32x8xf32>
    %cst_21 = arith.constant dense<0.000000e+00> : vector<4x8xf32>
    %35 = tpu.matmul %32, %34, %cst_21 {dimension_numbers = #tpu.dot_dimension_numbers<[1], [0], [0], [1], [0, 0, 1, 1], [], []>} : vector<4x32xf32>, vector<32x8xf32>, vector<4x8xf32> -> vector<4x8xf32>
    %c0_22 = arith.constant 0 : index
    %c0_23 = arith.constant 0 : index
    %c0_24 = arith.constant 0 : index
    %c0_25 = arith.constant 0 : index
    %36 = vector.load %arg7[%c0_22, %c0_23, %c0_24, %c0_25] : memref<2x4x32x8xf32, #tpu.memory_space<vmem>>, vector<1x1x32x8xf32>
    %37 = vector.shape_cast %36 : vector<1x1x32x8xf32> to vector<32x8xf32>
    %cst_26 = arith.constant dense<0.000000e+00> : vector<4x8xf32>
    %38 = tpu.matmul %32, %37, %cst_26 {dimension_numbers = #tpu.dot_dimension_numbers<[1], [0], [0], [1], [0, 0, 1, 1], [], []>} : vector<4x32xf32>, vector<32x8xf32>, vector<4x8xf32> -> vector<4x8xf32>
    %c0_27 = arith.constant 0 : index
    %c0_28 = arith.constant 0 : index
    %c0_29 = arith.constant 0 : index
    %c0_30 = arith.constant 0 : index
    %39 = vector.load %arg8[%c0_27, %c0_28, %c0_29, %c0_30] : memref<2x4x32x8xf32, #tpu.memory_space<vmem>>, vector<1x1x32x8xf32>
    %40 = vector.shape_cast %39 : vector<1x1x32x8xf32> to vector<32x8xf32>
    %cst_31 = arith.constant dense<0.000000e+00> : vector<4x8xf32>
    %41 = tpu.matmul %32, %40, %cst_31 {dimension_numbers = #tpu.dot_dimension_numbers<[1], [0], [0], [1], [0, 0, 1, 1], [], []>} : vector<4x32xf32>, vector<32x8xf32>, vector<4x8xf32> -> vector<4x8xf32>
    %cst_32 = arith.constant dense<0.000000e+00> : vector<4x4xf32>
    %42 = tpu.matmul %35, %38, %cst_32 {dimension_numbers = #tpu.dot_dimension_numbers<[1], [1], [0], [0], [0, 0, 1, 0], [], []>} : vector<4x8xf32>, vector<4x8xf32>, vector<4x4xf32> -> vector<4x4xf32>
    %cst_33 = arith.constant 0.353553385 : f32
    %43 = vector.broadcast %cst_33 : f32 to vector<4x4xf32>
    %44 = arith.mulf %42, %43 : vector<4x4xf32>
    %cst_34 = arith.constant dense<0xFF800000> : vector<4xf32>
    %45 = vector.multi_reduction <maximumf>, %44, %cst_34 [1] : vector<4x4xf32> to vector<4xf32>
    %46 = vector.shape_cast %45 : vector<4xf32> to vector<4x1xf32>
    %47 = vector.broadcast %46 : vector<4x1xf32> to vector<4x4xf32>
    %48 = arith.subf %44, %47 : vector<4x4xf32>
    %49 = math.exp %48 : vector<4x4xf32>
    %cst_35 = arith.constant dense<0.000000e+00> : vector<4xf32>
    %50 = vector.multi_reduction <add>, %49, %cst_35 [1] : vector<4x4xf32> to vector<4xf32>
    %51 = vector.shape_cast %50 : vector<4xf32> to vector<4x1xf32>
    %52 = vector.broadcast %51 : vector<4x1xf32> to vector<4x4xf32>
    %53 = arith.divf %49, %52 : vector<4x4xf32>
    %cst_36 = arith.constant dense<0.000000e+00> : vector<4x8xf32>
    %54 = tpu.matmul %53, %41, %cst_36 {dimension_numbers = #tpu.dot_dimension_numbers<[1], [0], [0], [1], [0, 0, 1, 1], [], []>} : vector<4x4xf32>, vector<4x8xf32>, vector<4x8xf32> -> vector<4x8xf32>
    %c0_37 = arith.constant 0 : index
    %c0_38 = arith.constant 0 : index
    %c0_39 = arith.constant 0 : index
    %c0_40 = arith.constant 0 : index
    %55 = vector.load %arg9[%c0_37, %c0_38, %c0_39, %c0_40] : memref<2x4x8x32xf32, #tpu.memory_space<vmem>>, vector<1x1x8x32xf32>
    %56 = vector.shape_cast %55 : vector<1x1x8x32xf32> to vector<8x32xf32>
    %cst_41 = arith.constant dense<0.000000e+00> : vector<4x32xf32>
    %57 = tpu.matmul %54, %56, %cst_41 {dimension_numbers = #tpu.dot_dimension_numbers<[1], [0], [0], [1], [0, 0, 1, 1], [], []>} : vector<4x8xf32>, vector<8x32xf32>, vector<4x32xf32> -> vector<4x32xf32>
    %c0_42 = arith.constant 0 : index
    %c1 = arith.constant 1 : index
    %c0_43 = arith.constant 0 : index
    %c0_44 = arith.constant 0 : index
    %58 = vector.load %arg6[%c0_42, %c1, %c0_43, %c0_44] : memref<2x4x32x8xf32, #tpu.memory_space<vmem>>, vector<1x1x32x8xf32>
    %59 = vector.shape_cast %58 : vector<1x1x32x8xf32> to vector<32x8xf32>
    %cst_45 = arith.constant dense<0.000000e+00> : vector<4x8xf32>
    %60 = tpu.matmul %32, %59, %cst_45 {dimension_numbers = #tpu.dot_dimension_numbers<[1], [0], [0], [1], [0, 0, 1, 1], [], []>} : vector<4x32xf32>, vector<32x8xf32>, vector<4x8xf32> -> vector<4x8xf32>
    %c0_46 = arith.constant 0 : index
    %c1_47 = arith.constant 1 : index
    %c0_48 = arith.constant 0 : index
    %c0_49 = arith.constant 0 : index
    %61 = vector.load %arg7[%c0_46, %c1_47, %c0_48, %c0_49] : memref<2x4x32x8xf32, #tpu.memory_space<vmem>>, vector<1x1x32x8xf32>
    %62 = vector.shape_cast %61 : vector<1x1x32x8xf32> to vector<32x8xf32>
    %cst_50 = arith.constant dense<0.000000e+00> : vector<4x8xf32>
    %63 = tpu.matmul %32, %62, %cst_50 {dimension_numbers = #tpu.dot_dimension_numbers<[1], [0], [0], [1], [0, 0, 1, 1], [], []>} : vector<4x32xf32>, vector<32x8xf32>, vector<4x8xf32> -> vector<4x8xf32>
    %c0_51 = arith.constant 0 : index
    %c1_52 = arith.constant 1 : index
    %c0_53 = arith.constant 0 : index
    %c0_54 = arith.constant 0 : index
    %64 = vector.load %arg8[%c0_51, %c1_52, %c0_53, %c0_54] : memref<2x4x32x8xf32, #tpu.memory_space<vmem>>, vector<1x1x32x8xf32>
    %65 = vector.shape_cast %64 : vector<1x1x32x8xf32> to vector<32x8xf32>
    %cst_55 = arith.constant dense<0.000000e+00> : vector<4x8xf32>
    %66 = tpu.matmul %32, %65, %cst_55 {dimension_numbers = #tpu.dot_dimension_numbers<[1], [0], [0], [1], [0, 0, 1, 1], [], []>} : vector<4x32xf32>, vector<32x8xf32>, vector<4x8xf32> -> vector<4x8xf32>
    %cst_56 = arith.constant dense<0.000000e+00> : vector<4x4xf32>
    %67 = tpu.matmul %60, %63, %cst_56 {dimension_numbers = #tpu.dot_dimension_numbers<[1], [1], [0], [0], [0, 0, 1, 0], [], []>} : vector<4x8xf32>, vector<4x8xf32>, vector<4x4xf32> -> vector<4x4xf32>
    %cst_57 = arith.constant 0.353553385 : f32
    %68 = vector.broadcast %cst_57 : f32 to vector<4x4xf32>
    %69 = arith.mulf %67, %68 : vector<4x4xf32>
    %cst_58 = arith.constant dense<0xFF800000> : vector<4xf32>
    %70 = vector.multi_reduction <maximumf>, %69, %cst_58 [1] : vector<4x4xf32> to vector<4xf32>
    %71 = vector.shape_cast %70 : vector<4xf32> to vector<4x1xf32>
    %72 = vector.broadcast %71 : vector<4x1xf32> to vector<4x4xf32>
    %73 = arith.subf %69, %72 : vector<4x4xf32>
    %74 = math.exp %73 : vector<4x4xf32>
    %cst_59 = arith.constant dense<0.000000e+00> : vector<4xf32>
    %75 = vector.multi_reduction <add>, %74, %cst_59 [1] : vector<4x4xf32> to vector<4xf32>
    %76 = vector.shape_cast %75 : vector<4xf32> to vector<4x1xf32>
    %77 = vector.broadcast %76 : vector<4x1xf32> to vector<4x4xf32>
    %78 = arith.divf %74, %77 : vector<4x4xf32>
    %cst_60 = arith.constant dense<0.000000e+00> : vector<4x8xf32>
    %79 = tpu.matmul %78, %66, %cst_60 {dimension_numbers = #tpu.dot_dimension_numbers<[1], [0], [0], [1], [0, 0, 1, 1], [], []>} : vector<4x4xf32>, vector<4x8xf32>, vector<4x8xf32> -> vector<4x8xf32>
    %c0_61 = arith.constant 0 : index
    %c1_62 = arith.constant 1 : index
    %c0_63 = arith.constant 0 : index
    %c0_64 = arith.constant 0 : index
    %80 = vector.load %arg9[%c0_61, %c1_62, %c0_63, %c0_64] : memref<2x4x8x32xf32, #tpu.memory_space<vmem>>, vector<1x1x8x32xf32>
    %81 = vector.shape_cast %80 : vector<1x1x8x32xf32> to vector<8x32xf32>
    %cst_65 = arith.constant dense<0.000000e+00> : vector<4x32xf32>
    %82 = tpu.matmul %79, %81, %cst_65 {dimension_numbers = #tpu.dot_dimension_numbers<[1], [0], [0], [1], [0, 0, 1, 1], [], []>} : vector<4x8xf32>, vector<8x32xf32>, vector<4x32xf32> -> vector<4x32xf32>
    %83 = arith.addf %57, %82 : vector<4x32xf32>
    %c0_66 = arith.constant 0 : index
    %c2 = arith.constant 2 : index
    %c0_67 = arith.constant 0 : index
    %c0_68 = arith.constant 0 : index
    %84 = vector.load %arg6[%c0_66, %c2, %c0_67, %c0_68] : memref<2x4x32x8xf32, #tpu.memory_space<vmem>>, vector<1x1x32x8xf32>
    %85 = vector.shape_cast %84 : vector<1x1x32x8xf32> to vector<32x8xf32>
    %cst_69 = arith.constant dense<0.000000e+00> : vector<4x8xf32>
    %86 = tpu.matmul %32, %85, %cst_69 {dimension_numbers = #tpu.dot_dimension_numbers<[1], [0], [0], [1], [0, 0, 1, 1], [], []>} : vector<4x32xf32>, vector<32x8xf32>, vector<4x8xf32> -> vector<4x8xf32>
    %c0_70 = arith.constant 0 : index
    %c2_71 = arith.constant 2 : index
    %c0_72 = arith.constant 0 : index
    %c0_73 = arith.constant 0 : index
    %87 = vector.load %arg7[%c0_70, %c2_71, %c0_72, %c0_73] : memref<2x4x32x8xf32, #tpu.memory_space<vmem>>, vector<1x1x32x8xf32>
    %88 = vector.shape_cast %87 : vector<1x1x32x8xf32> to vector<32x8xf32>
    %cst_74 = arith.constant dense<0.000000e+00> : vector<4x8xf32>
    %89 = tpu.matmul %32, %88, %cst_74 {dimension_numbers = #tpu.dot_dimension_numbers<[1], [0], [0], [1], [0, 0, 1, 1], [], []>} : vector<4x32xf32>, vector<32x8xf32>, vector<4x8xf32> -> vector<4x8xf32>
    %c0_75 = arith.constant 0 : index
    %c2_76 = arith.constant 2 : index
    %c0_77 = arith.constant 0 : index
    %c0_78 = arith.constant 0 : index
    %90 = vector.load %arg8[%c0_75, %c2_76, %c0_77, %c0_78] : memref<2x4x32x8xf32, #tpu.memory_space<vmem>>, vector<1x1x32x8xf32>
    %91 = vector.shape_cast %90 : vector<1x1x32x8xf32> to vector<32x8xf32>
    %cst_79 = arith.constant dense<0.000000e+00> : vector<4x8xf32>
    %92 = tpu.matmul %32, %91, %cst_79 {dimension_numbers = #tpu.dot_dimension_numbers<[1], [0], [0], [1], [0, 0, 1, 1], [], []>} : vector<4x32xf32>, vector<32x8xf32>, vector<4x8xf32> -> vector<4x8xf32>
    %cst_80 = arith.constant dense<0.000000e+00> : vector<4x4xf32>
    %93 = tpu.matmul %86, %89, %cst_80 {dimension_numbers = #tpu.dot_dimension_numbers<[1], [1], [0], [0], [0, 0, 1, 0], [], []>} : vector<4x8xf32>, vector<4x8xf32>, vector<4x4xf32> -> vector<4x4xf32>
    %cst_81 = arith.constant 0.353553385 : f32
    %94 = vector.broadcast %cst_81 : f32 to vector<4x4xf32>
    %95 = arith.mulf %93, %94 : vector<4x4xf32>
    %cst_82 = arith.constant dense<0xFF800000> : vector<4xf32>
    %96 = vector.multi_reduction <maximumf>, %95, %cst_82 [1] : vector<4x4xf32> to vector<4xf32>
    %97 = vector.shape_cast %96 : vector<4xf32> to vector<4x1xf32>
    %98 = vector.broadcast %97 : vector<4x1xf32> to vector<4x4xf32>
    %99 = arith.subf %95, %98 : vector<4x4xf32>
    %100 = math.exp %99 : vector<4x4xf32>
    %cst_83 = arith.constant dense<0.000000e+00> : vector<4xf32>
    %101 = vector.multi_reduction <add>, %100, %cst_83 [1] : vector<4x4xf32> to vector<4xf32>
    %102 = vector.shape_cast %101 : vector<4xf32> to vector<4x1xf32>
    %103 = vector.broadcast %102 : vector<4x1xf32> to vector<4x4xf32>
    %104 = arith.divf %100, %103 : vector<4x4xf32>
    %cst_84 = arith.constant dense<0.000000e+00> : vector<4x8xf32>
    %105 = tpu.matmul %104, %92, %cst_84 {dimension_numbers = #tpu.dot_dimension_numbers<[1], [0], [0], [1], [0, 0, 1, 1], [], []>} : vector<4x4xf32>, vector<4x8xf32>, vector<4x8xf32> -> vector<4x8xf32>
    %c0_85 = arith.constant 0 : index
    %c2_86 = arith.constant 2 : index
    %c0_87 = arith.constant 0 : index
    %c0_88 = arith.constant 0 : index
    %106 = vector.load %arg9[%c0_85, %c2_86, %c0_87, %c0_88] : memref<2x4x8x32xf32, #tpu.memory_space<vmem>>, vector<1x1x8x32xf32>
    %107 = vector.shape_cast %106 : vector<1x1x8x32xf32> to vector<8x32xf32>
    %cst_89 = arith.constant dense<0.000000e+00> : vector<4x32xf32>
    %108 = tpu.matmul %105, %107, %cst_89 {dimension_numbers = #tpu.dot_dimension_numbers<[1], [0], [0], [1], [0, 0, 1, 1], [], []>} : vector<4x8xf32>, vector<8x32xf32>, vector<4x32xf32> -> vector<4x32xf32>
    %109 = arith.addf %83, %108 : vector<4x32xf32>
    %c0_90 = arith.constant 0 : index
    %c3 = arith.constant 3 : index
    %c0_91 = arith.constant 0 : index
    %c0_92 = arith.constant 0 : index
    %110 = vector.load %arg6[%c0_90, %c3, %c0_91, %c0_92] : memref<2x4x32x8xf32, #tpu.memory_space<vmem>>, vector<1x1x32x8xf32>
    %111 = vector.shape_cast %110 : vector<1x1x32x8xf32> to vector<32x8xf32>
    %cst_93 = arith.constant dense<0.000000e+00> : vector<4x8xf32>
    %112 = tpu.matmul %32, %111, %cst_93 {dimension_numbers = #tpu.dot_dimension_numbers<[1], [0], [0], [1], [0, 0, 1, 1], [], []>} : vector<4x32xf32>, vector<32x8xf32>, vector<4x8xf32> -> vector<4x8xf32>
    %c0_94 = arith.constant 0 : index
    %c3_95 = arith.constant 3 : index
    %c0_96 = arith.constant 0 : index
    %c0_97 = arith.constant 0 : index
    %113 = vector.load %arg7[%c0_94, %c3_95, %c0_96, %c0_97] : memref<2x4x32x8xf32, #tpu.memory_space<vmem>>, vector<1x1x32x8xf32>
    %114 = vector.shape_cast %113 : vector<1x1x32x8xf32> to vector<32x8xf32>
    %cst_98 = arith.constant dense<0.000000e+00> : vector<4x8xf32>
    %115 = tpu.matmul %32, %114, %cst_98 {dimension_numbers = #tpu.dot_dimension_numbers<[1], [0], [0], [1], [0, 0, 1, 1], [], []>} : vector<4x32xf32>, vector<32x8xf32>, vector<4x8xf32> -> vector<4x8xf32>
    %c0_99 = arith.constant 0 : index
    %c3_100 = arith.constant 3 : index
    %c0_101 = arith.constant 0 : index
    %c0_102 = arith.constant 0 : index
    %116 = vector.load %arg8[%c0_99, %c3_100, %c0_101, %c0_102] : memref<2x4x32x8xf32, #tpu.memory_space<vmem>>, vector<1x1x32x8xf32>
    %117 = vector.shape_cast %116 : vector<1x1x32x8xf32> to vector<32x8xf32>
    %cst_103 = arith.constant dense<0.000000e+00> : vector<4x8xf32>
    %118 = tpu.matmul %32, %117, %cst_103 {dimension_numbers = #tpu.dot_dimension_numbers<[1], [0], [0], [1], [0, 0, 1, 1], [], []>} : vector<4x32xf32>, vector<32x8xf32>, vector<4x8xf32> -> vector<4x8xf32>
    %cst_104 = arith.constant dense<0.000000e+00> : vector<4x4xf32>
    %119 = tpu.matmul %112, %115, %cst_104 {dimension_numbers = #tpu.dot_dimension_numbers<[1], [1], [0], [0], [0, 0, 1, 0], [], []>} : vector<4x8xf32>, vector<4x8xf32>, vector<4x4xf32> -> vector<4x4xf32>
    %cst_105 = arith.constant 0.353553385 : f32
    %120 = vector.broadcast %cst_105 : f32 to vector<4x4xf32>
    %121 = arith.mulf %119, %120 : vector<4x4xf32>
    %cst_106 = arith.constant dense<0xFF800000> : vector<4xf32>
    %122 = vector.multi_reduction <maximumf>, %121, %cst_106 [1] : vector<4x4xf32> to vector<4xf32>
    %123 = vector.shape_cast %122 : vector<4xf32> to vector<4x1xf32>
    %124 = vector.broadcast %123 : vector<4x1xf32> to vector<4x4xf32>
    %125 = arith.subf %121, %124 : vector<4x4xf32>
    %126 = math.exp %125 : vector<4x4xf32>
    %cst_107 = arith.constant dense<0.000000e+00> : vector<4xf32>
    %127 = vector.multi_reduction <add>, %126, %cst_107 [1] : vector<4x4xf32> to vector<4xf32>
    %128 = vector.shape_cast %127 : vector<4xf32> to vector<4x1xf32>
    %129 = vector.broadcast %128 : vector<4x1xf32> to vector<4x4xf32>
    %130 = arith.divf %126, %129 : vector<4x4xf32>
    %cst_108 = arith.constant dense<0.000000e+00> : vector<4x8xf32>
    %131 = tpu.matmul %130, %118, %cst_108 {dimension_numbers = #tpu.dot_dimension_numbers<[1], [0], [0], [1], [0, 0, 1, 1], [], []>} : vector<4x4xf32>, vector<4x8xf32>, vector<4x8xf32> -> vector<4x8xf32>
    %c0_109 = arith.constant 0 : index
    %c3_110 = arith.constant 3 : index
    %c0_111 = arith.constant 0 : index
    %c0_112 = arith.constant 0 : index
    %132 = vector.load %arg9[%c0_109, %c3_110, %c0_111, %c0_112] : memref<2x4x8x32xf32, #tpu.memory_space<vmem>>, vector<1x1x8x32xf32>
    %133 = vector.shape_cast %132 : vector<1x1x8x32xf32> to vector<8x32xf32>
    %cst_113 = arith.constant dense<0.000000e+00> : vector<4x32xf32>
    %134 = tpu.matmul %131, %133, %cst_113 {dimension_numbers = #tpu.dot_dimension_numbers<[1], [0], [0], [1], [0, 0, 1, 1], [], []>} : vector<4x8xf32>, vector<8x32xf32>, vector<4x32xf32> -> vector<4x32xf32>
    %135 = arith.addf %109, %134 : vector<4x32xf32>
    %136 = arith.addf %6, %135 : vector<4x32xf32>
    %c0_114 = arith.constant 0 : index
    %c0_115 = arith.constant 0 : index
    %c0_116 = arith.constant 0 : index
    %137 = vector.load %arg10[%c0_114, %c0_115, %c0_116] : memref<2x1x32xf32, #tpu.memory_space<vmem>>, vector<1x1x32xf32>
    %138 = vector.shape_cast %137 : vector<1x1x32xf32> to vector<1x32xf32>
    %139 = vector.broadcast %138 : vector<1x32xf32> to vector<4x32xf32>
    %140 = arith.addf %136, %139 : vector<4x32xf32>
    %c0_117 = arith.constant 0 : index
    %c0_118 = arith.constant 0 : index
    %c0_119 = arith.constant 0 : index
    %141 = vector.load %arg11[%c0_117, %c0_118, %c0_119] : memref<2x32x2048xf32, #tpu.memory_space<vmem>>, vector<1x32x2048xf32>
    %142 = vector.shape_cast %141 : vector<1x32x2048xf32> to vector<32x2048xf32>
    %cst_120 = arith.constant dense<0.000000e+00> : vector<4x2048xf32>
    %143 = tpu.matmul %140, %142, %cst_120 {dimension_numbers = #tpu.dot_dimension_numbers<[1], [0], [0], [1], [0, 0, 1, 1], [], []>} : vector<4x32xf32>, vector<32x2048xf32>, vector<4x2048xf32> -> vector<4x2048xf32>
    %c0_121 = arith.constant 0 : index
    %c0_122 = arith.constant 0 : index
    %c0_123 = arith.constant 0 : index
    %144 = vector.load %arg12[%c0_121, %c0_122, %c0_123] : memref<2x1x2048xf32, #tpu.memory_space<vmem>>, vector<1x1x2048xf32>
    %145 = vector.shape_cast %144 : vector<1x1x2048xf32> to vector<1x2048xf32>
    %146 = vector.broadcast %145 : vector<1x2048xf32> to vector<4x2048xf32>
    %147 = arith.addf %143, %146 : vector<4x2048xf32>
    %cst_124 = arith.constant 5.000000e-01 : f32
    %148 = vector.broadcast %cst_124 : f32 to vector<4x2048xf32>
    %149 = arith.mulf %148, %147 : vector<4x2048xf32>
    %150 = arith.mulf %147, %147 : vector<4x2048xf32>
    %151 = arith.mulf %150, %147 : vector<4x2048xf32>
    %cst_125 = arith.constant 4.471500e-02 : f32
    %152 = vector.broadcast %cst_125 : f32 to vector<4x2048xf32>
    %153 = arith.mulf %152, %151 : vector<4x2048xf32>
    %154 = arith.addf %147, %153 : vector<4x2048xf32>
    %cst_126 = arith.constant 0.797884583 : f32
    %155 = vector.broadcast %cst_126 : f32 to vector<4x2048xf32>
    %156 = arith.mulf %155, %154 : vector<4x2048xf32>
    %157 = math.tanh %156 : vector<4x2048xf32>
    %cst_127 = arith.constant 1.000000e+00 : f32
    %158 = vector.broadcast %cst_127 : f32 to vector<4x2048xf32>
    %159 = arith.addf %158, %157 : vector<4x2048xf32>
    %160 = arith.mulf %149, %159 : vector<4x2048xf32>
    %c0_128 = arith.constant 0 : index
    %c0_129 = arith.constant 0 : index
    %c0_130 = arith.constant 0 : index
    %161 = vector.load %arg13[%c0_128, %c0_129, %c0_130] : memref<2x2048x32xf32, #tpu.memory_space<vmem>>, vector<1x2048x32xf32>
    %162 = vector.shape_cast %161 : vector<1x2048x32xf32> to vector<2048x32xf32>
    %cst_131 = arith.constant dense<0.000000e+00> : vector<4x32xf32>
    %163 = tpu.matmul %160, %162, %cst_131 {dimension_numbers = #tpu.dot_dimension_numbers<[1], [0], [0], [1], [0, 0, 1, 1], [], []>} : vector<4x2048xf32>, vector<2048x32xf32>, vector<4x32xf32> -> vector<4x32xf32>
    %c0_132 = arith.constant 0 : index
    %c0_133 = arith.constant 0 : index
    %c0_134 = arith.constant 0 : index
    %164 = vector.load %arg14[%c0_132, %c0_133, %c0_134] : memref<2x1x32xf32, #tpu.memory_space<vmem>>, vector<1x1x32xf32>
    %165 = vector.shape_cast %164 : vector<1x1x32xf32> to vector<1x32xf32>
    %166 = vector.broadcast %165 : vector<1x32xf32> to vector<4x32xf32>
    %167 = arith.addf %163, %166 : vector<4x32xf32>
    %168 = arith.addf %140, %167 : vector<4x32xf32>
    %cst_135 = arith.constant dense<0.000000e+00> : vector<4xf32>
    %169 = vector.multi_reduction <add>, %168, %cst_135 [1] : vector<4x32xf32> to vector<4xf32>
    %170 = vector.shape_cast %169 : vector<4xf32> to vector<4x1xf32>
    %cst_136 = arith.constant 3.200000e+01 : f32
    %171 = vector.broadcast %cst_136 : f32 to vector<4x1xf32>
    %172 = arith.divf %170, %171 : vector<4x1xf32>
    %173 = vector.broadcast %172 : vector<4x1xf32> to vector<4x32xf32>
    %174 = arith.subf %168, %173 : vector<4x32xf32>
    %175 = arith.mulf %174, %174 : vector<4x32xf32>
    %cst_137 = arith.constant dense<0.000000e+00> : vector<4xf32>
    %176 = vector.multi_reduction <add>, %175, %cst_137 [1] : vector<4x32xf32> to vector<4xf32>
    %177 = vector.shape_cast %176 : vector<4xf32> to vector<4x1xf32>
    %cst_138 = arith.constant 3.200000e+01 : f32
    %178 = vector.broadcast %cst_138 : f32 to vector<4x1xf32>
    %179 = arith.divf %177, %178 : vector<4x1xf32>
    %180 = vector.broadcast %172 : vector<4x1xf32> to vector<4x32xf32>
    %181 = arith.subf %168, %180 : vector<4x32xf32>
    %cst_139 = arith.constant 9.99999974E-6 : f32
    %182 = vector.broadcast %cst_139 : f32 to vector<4x1xf32>
    %183 = arith.addf %179, %182 : vector<4x1xf32>
    %184 = math.rsqrt %183 : vector<4x1xf32>
    %185 = vector.broadcast %184 : vector<4x1xf32> to vector<4x32xf32>
    %186 = arith.mulf %181, %185 : vector<4x32xf32>
    %c1_140 = arith.constant 1 : index
    %c0_141 = arith.constant 0 : index
    %c0_142 = arith.constant 0 : index
    %187 = vector.load %arg4[%c1_140, %c0_141, %c0_142] : memref<2x1x32xf32, #tpu.memory_space<vmem>>, vector<1x1x32xf32>
    %188 = vector.shape_cast %187 : vector<1x1x32xf32> to vector<1x32xf32>
    %189 = vector.broadcast %188 : vector<1x32xf32> to vector<4x32xf32>
    %190 = arith.mulf %186, %189 : vector<4x32xf32>
    %c1_143 = arith.constant 1 : index
    %c0_144 = arith.constant 0 : index
    %c0_145 = arith.constant 0 : index
    %191 = vector.load %arg5[%c1_143, %c0_144, %c0_145] : memref<2x1x32xf32, #tpu.memory_space<vmem>>, vector<1x1x32xf32>
    %192 = vector.shape_cast %191 : vector<1x1x32xf32> to vector<1x32xf32>
    %193 = vector.broadcast %192 : vector<1x32xf32> to vector<4x32xf32>
    %194 = arith.addf %190, %193 : vector<4x32xf32>
    %c1_146 = arith.constant 1 : index
    %c0_147 = arith.constant 0 : index
    %c0_148 = arith.constant 0 : index
    %c0_149 = arith.constant 0 : index
    %195 = vector.load %arg6[%c1_146, %c0_147, %c0_148, %c0_149] : memref<2x4x32x8xf32, #tpu.memory_space<vmem>>, vector<1x1x32x8xf32>
    %196 = vector.shape_cast %195 : vector<1x1x32x8xf32> to vector<32x8xf32>
    %cst_150 = arith.constant dense<0.000000e+00> : vector<4x8xf32>
    %197 = tpu.matmul %194, %196, %cst_150 {dimension_numbers = #tpu.dot_dimension_numbers<[1], [0], [0], [1], [0, 0, 1, 1], [], []>} : vector<4x32xf32>, vector<32x8xf32>, vector<4x8xf32> -> vector<4x8xf32>
    %c1_151 = arith.constant 1 : index
    %c0_152 = arith.constant 0 : index
    %c0_153 = arith.constant 0 : index
    %c0_154 = arith.constant 0 : index
    %198 = vector.load %arg7[%c1_151, %c0_152, %c0_153, %c0_154] : memref<2x4x32x8xf32, #tpu.memory_space<vmem>>, vector<1x1x32x8xf32>
    %199 = vector.shape_cast %198 : vector<1x1x32x8xf32> to vector<32x8xf32>
    %cst_155 = arith.constant dense<0.000000e+00> : vector<4x8xf32>
    %200 = tpu.matmul %194, %199, %cst_155 {dimension_numbers = #tpu.dot_dimension_numbers<[1], [0], [0], [1], [0, 0, 1, 1], [], []>} : vector<4x32xf32>, vector<32x8xf32>, vector<4x8xf32> -> vector<4x8xf32>
    %c1_156 = arith.constant 1 : index
    %c0_157 = arith.constant 0 : index
    %c0_158 = arith.constant 0 : index
    %c0_159 = arith.constant 0 : index
    %201 = vector.load %arg8[%c1_156, %c0_157, %c0_158, %c0_159] : memref<2x4x32x8xf32, #tpu.memory_space<vmem>>, vector<1x1x32x8xf32>
    %202 = vector.shape_cast %201 : vector<1x1x32x8xf32> to vector<32x8xf32>
    %cst_160 = arith.constant dense<0.000000e+00> : vector<4x8xf32>
    %203 = tpu.matmul %194, %202, %cst_160 {dimension_numbers = #tpu.dot_dimension_numbers<[1], [0], [0], [1], [0, 0, 1, 1], [], []>} : vector<4x32xf32>, vector<32x8xf32>, vector<4x8xf32> -> vector<4x8xf32>
    %cst_161 = arith.constant dense<0.000000e+00> : vector<4x4xf32>
    %204 = tpu.matmul %197, %200, %cst_161 {dimension_numbers = #tpu.dot_dimension_numbers<[1], [1], [0], [0], [0, 0, 1, 0], [], []>} : vector<4x8xf32>, vector<4x8xf32>, vector<4x4xf32> -> vector<4x4xf32>
    %cst_162 = arith.constant 0.353553385 : f32
    %205 = vector.broadcast %cst_162 : f32 to vector<4x4xf32>
    %206 = arith.mulf %204, %205 : vector<4x4xf32>
    %cst_163 = arith.constant dense<0xFF800000> : vector<4xf32>
    %207 = vector.multi_reduction <maximumf>, %206, %cst_163 [1] : vector<4x4xf32> to vector<4xf32>
    %208 = vector.shape_cast %207 : vector<4xf32> to vector<4x1xf32>
    %209 = vector.broadcast %208 : vector<4x1xf32> to vector<4x4xf32>
    %210 = arith.subf %206, %209 : vector<4x4xf32>
    %211 = math.exp %210 : vector<4x4xf32>
    %cst_164 = arith.constant dense<0.000000e+00> : vector<4xf32>
    %212 = vector.multi_reduction <add>, %211, %cst_164 [1] : vector<4x4xf32> to vector<4xf32>
    %213 = vector.shape_cast %212 : vector<4xf32> to vector<4x1xf32>
    %214 = vector.broadcast %213 : vector<4x1xf32> to vector<4x4xf32>
    %215 = arith.divf %211, %214 : vector<4x4xf32>
    %cst_165 = arith.constant dense<0.000000e+00> : vector<4x8xf32>
    %216 = tpu.matmul %215, %203, %cst_165 {dimension_numbers = #tpu.dot_dimension_numbers<[1], [0], [0], [1], [0, 0, 1, 1], [], []>} : vector<4x4xf32>, vector<4x8xf32>, vector<4x8xf32> -> vector<4x8xf32>
    %c1_166 = arith.constant 1 : index
    %c0_167 = arith.constant 0 : index
    %c0_168 = arith.constant 0 : index
    %c0_169 = arith.constant 0 : index
    %217 = vector.load %arg9[%c1_166, %c0_167, %c0_168, %c0_169] : memref<2x4x8x32xf32, #tpu.memory_space<vmem>>, vector<1x1x8x32xf32>
    %218 = vector.shape_cast %217 : vector<1x1x8x32xf32> to vector<8x32xf32>
    %cst_170 = arith.constant dense<0.000000e+00> : vector<4x32xf32>
    %219 = tpu.matmul %216, %218, %cst_170 {dimension_numbers = #tpu.dot_dimension_numbers<[1], [0], [0], [1], [0, 0, 1, 1], [], []>} : vector<4x8xf32>, vector<8x32xf32>, vector<4x32xf32> -> vector<4x32xf32>
    %c1_171 = arith.constant 1 : index
    %c1_172 = arith.constant 1 : index
    %c0_173 = arith.constant 0 : index
    %c0_174 = arith.constant 0 : index
    %220 = vector.load %arg6[%c1_171, %c1_172, %c0_173, %c0_174] : memref<2x4x32x8xf32, #tpu.memory_space<vmem>>, vector<1x1x32x8xf32>
    %221 = vector.shape_cast %220 : vector<1x1x32x8xf32> to vector<32x8xf32>
    %cst_175 = arith.constant dense<0.000000e+00> : vector<4x8xf32>
    %222 = tpu.matmul %194, %221, %cst_175 {dimension_numbers = #tpu.dot_dimension_numbers<[1], [0], [0], [1], [0, 0, 1, 1], [], []>} : vector<4x32xf32>, vector<32x8xf32>, vector<4x8xf32> -> vector<4x8xf32>
    %c1_176 = arith.constant 1 : index
    %c1_177 = arith.constant 1 : index
    %c0_178 = arith.constant 0 : index
    %c0_179 = arith.constant 0 : index
    %223 = vector.load %arg7[%c1_176, %c1_177, %c0_178, %c0_179] : memref<2x4x32x8xf32, #tpu.memory_space<vmem>>, vector<1x1x32x8xf32>
    %224 = vector.shape_cast %223 : vector<1x1x32x8xf32> to vector<32x8xf32>
    %cst_180 = arith.constant dense<0.000000e+00> : vector<4x8xf32>
    %225 = tpu.matmul %194, %224, %cst_180 {dimension_numbers = #tpu.dot_dimension_numbers<[1], [0], [0], [1], [0, 0, 1, 1], [], []>} : vector<4x32xf32>, vector<32x8xf32>, vector<4x8xf32> -> vector<4x8xf32>
    %c1_181 = arith.constant 1 : index
    %c1_182 = arith.constant 1 : index
    %c0_183 = arith.constant 0 : index
    %c0_184 = arith.constant 0 : index
    %226 = vector.load %arg8[%c1_181, %c1_182, %c0_183, %c0_184] : memref<2x4x32x8xf32, #tpu.memory_space<vmem>>, vector<1x1x32x8xf32>
    %227 = vector.shape_cast %226 : vector<1x1x32x8xf32> to vector<32x8xf32>
    %cst_185 = arith.constant dense<0.000000e+00> : vector<4x8xf32>
    %228 = tpu.matmul %194, %227, %cst_185 {dimension_numbers = #tpu.dot_dimension_numbers<[1], [0], [0], [1], [0, 0, 1, 1], [], []>} : vector<4x32xf32>, vector<32x8xf32>, vector<4x8xf32> -> vector<4x8xf32>
    %cst_186 = arith.constant dense<0.000000e+00> : vector<4x4xf32>
    %229 = tpu.matmul %222, %225, %cst_186 {dimension_numbers = #tpu.dot_dimension_numbers<[1], [1], [0], [0], [0, 0, 1, 0], [], []>} : vector<4x8xf32>, vector<4x8xf32>, vector<4x4xf32> -> vector<4x4xf32>
    %cst_187 = arith.constant 0.353553385 : f32
    %230 = vector.broadcast %cst_187 : f32 to vector<4x4xf32>
    %231 = arith.mulf %229, %230 : vector<4x4xf32>
    %cst_188 = arith.constant dense<0xFF800000> : vector<4xf32>
    %232 = vector.multi_reduction <maximumf>, %231, %cst_188 [1] : vector<4x4xf32> to vector<4xf32>
    %233 = vector.shape_cast %232 : vector<4xf32> to vector<4x1xf32>
    %234 = vector.broadcast %233 : vector<4x1xf32> to vector<4x4xf32>
    %235 = arith.subf %231, %234 : vector<4x4xf32>
    %236 = math.exp %235 : vector<4x4xf32>
    %cst_189 = arith.constant dense<0.000000e+00> : vector<4xf32>
    %237 = vector.multi_reduction <add>, %236, %cst_189 [1] : vector<4x4xf32> to vector<4xf32>
    %238 = vector.shape_cast %237 : vector<4xf32> to vector<4x1xf32>
    %239 = vector.broadcast %238 : vector<4x1xf32> to vector<4x4xf32>
    %240 = arith.divf %236, %239 : vector<4x4xf32>
    %cst_190 = arith.constant dense<0.000000e+00> : vector<4x8xf32>
    %241 = tpu.matmul %240, %228, %cst_190 {dimension_numbers = #tpu.dot_dimension_numbers<[1], [0], [0], [1], [0, 0, 1, 1], [], []>} : vector<4x4xf32>, vector<4x8xf32>, vector<4x8xf32> -> vector<4x8xf32>
    %c1_191 = arith.constant 1 : index
    %c1_192 = arith.constant 1 : index
    %c0_193 = arith.constant 0 : index
    %c0_194 = arith.constant 0 : index
    %242 = vector.load %arg9[%c1_191, %c1_192, %c0_193, %c0_194] : memref<2x4x8x32xf32, #tpu.memory_space<vmem>>, vector<1x1x8x32xf32>
    %243 = vector.shape_cast %242 : vector<1x1x8x32xf32> to vector<8x32xf32>
    %cst_195 = arith.constant dense<0.000000e+00> : vector<4x32xf32>
    %244 = tpu.matmul %241, %243, %cst_195 {dimension_numbers = #tpu.dot_dimension_numbers<[1], [0], [0], [1], [0, 0, 1, 1], [], []>} : vector<4x8xf32>, vector<8x32xf32>, vector<4x32xf32> -> vector<4x32xf32>
    %245 = arith.addf %219, %244 : vector<4x32xf32>
    %c1_196 = arith.constant 1 : index
    %c2_197 = arith.constant 2 : index
    %c0_198 = arith.constant 0 : index
    %c0_199 = arith.constant 0 : index
    %246 = vector.load %arg6[%c1_196, %c2_197, %c0_198, %c0_199] : memref<2x4x32x8xf32, #tpu.memory_space<vmem>>, vector<1x1x32x8xf32>
    %247 = vector.shape_cast %246 : vector<1x1x32x8xf32> to vector<32x8xf32>
    %cst_200 = arith.constant dense<0.000000e+00> : vector<4x8xf32>
    %248 = tpu.matmul %194, %247, %cst_200 {dimension_numbers = #tpu.dot_dimension_numbers<[1], [0], [0], [1], [0, 0, 1, 1], [], []>} : vector<4x32xf32>, vector<32x8xf32>, vector<4x8xf32> -> vector<4x8xf32>
    %c1_201 = arith.constant 1 : index
    %c2_202 = arith.constant 2 : index
    %c0_203 = arith.constant 0 : index
    %c0_204 = arith.constant 0 : index
    %249 = vector.load %arg7[%c1_201, %c2_202, %c0_203, %c0_204] : memref<2x4x32x8xf32, #tpu.memory_space<vmem>>, vector<1x1x32x8xf32>
    %250 = vector.shape_cast %249 : vector<1x1x32x8xf32> to vector<32x8xf32>
    %cst_205 = arith.constant dense<0.000000e+00> : vector<4x8xf32>
    %251 = tpu.matmul %194, %250, %cst_205 {dimension_numbers = #tpu.dot_dimension_numbers<[1], [0], [0], [1], [0, 0, 1, 1], [], []>} : vector<4x32xf32>, vector<32x8xf32>, vector<4x8xf32> -> vector<4x8xf32>
    %c1_206 = arith.constant 1 : index
    %c2_207 = arith.constant 2 : index
    %c0_208 = arith.constant 0 : index
    %c0_209 = arith.constant 0 : index
    %252 = vector.load %arg8[%c1_206, %c2_207, %c0_208, %c0_209] : memref<2x4x32x8xf32, #tpu.memory_space<vmem>>, vector<1x1x32x8xf32>
    %253 = vector.shape_cast %252 : vector<1x1x32x8xf32> to vector<32x8xf32>
    %cst_210 = arith.constant dense<0.000000e+00> : vector<4x8xf32>
    %254 = tpu.matmul %194, %253, %cst_210 {dimension_numbers = #tpu.dot_dimension_numbers<[1], [0], [0], [1], [0, 0, 1, 1], [], []>} : vector<4x32xf32>, vector<32x8xf32>, vector<4x8xf32> -> vector<4x8xf32>
    %cst_211 = arith.constant dense<0.000000e+00> : vector<4x4xf32>
    %255 = tpu.matmul %248, %251, %cst_211 {dimension_numbers = #tpu.dot_dimension_numbers<[1], [1], [0], [0], [0, 0, 1, 0], [], []>} : vector<4x8xf32>, vector<4x8xf32>, vector<4x4xf32> -> vector<4x4xf32>
    %cst_212 = arith.constant 0.353553385 : f32
    %256 = vector.broadcast %cst_212 : f32 to vector<4x4xf32>
    %257 = arith.mulf %255, %256 : vector<4x4xf32>
    %cst_213 = arith.constant dense<0xFF800000> : vector<4xf32>
    %258 = vector.multi_reduction <maximumf>, %257, %cst_213 [1] : vector<4x4xf32> to vector<4xf32>
    %259 = vector.shape_cast %258 : vector<4xf32> to vector<4x1xf32>
    %260 = vector.broadcast %259 : vector<4x1xf32> to vector<4x4xf32>
    %261 = arith.subf %257, %260 : vector<4x4xf32>
    %262 = math.exp %261 : vector<4x4xf32>
    %cst_214 = arith.constant dense<0.000000e+00> : vector<4xf32>
    %263 = vector.multi_reduction <add>, %262, %cst_214 [1] : vector<4x4xf32> to vector<4xf32>
    %264 = vector.shape_cast %263 : vector<4xf32> to vector<4x1xf32>
    %265 = vector.broadcast %264 : vector<4x1xf32> to vector<4x4xf32>
    %266 = arith.divf %262, %265 : vector<4x4xf32>
    %cst_215 = arith.constant dense<0.000000e+00> : vector<4x8xf32>
    %267 = tpu.matmul %266, %254, %cst_215 {dimension_numbers = #tpu.dot_dimension_numbers<[1], [0], [0], [1], [0, 0, 1, 1], [], []>} : vector<4x4xf32>, vector<4x8xf32>, vector<4x8xf32> -> vector<4x8xf32>
    %c1_216 = arith.constant 1 : index
    %c2_217 = arith.constant 2 : index
    %c0_218 = arith.constant 0 : index
    %c0_219 = arith.constant 0 : index
    %268 = vector.load %arg9[%c1_216, %c2_217, %c0_218, %c0_219] : memref<2x4x8x32xf32, #tpu.memory_space<vmem>>, vector<1x1x8x32xf32>
    %269 = vector.shape_cast %268 : vector<1x1x8x32xf32> to vector<8x32xf32>
    %cst_220 = arith.constant dense<0.000000e+00> : vector<4x32xf32>
    %270 = tpu.matmul %267, %269, %cst_220 {dimension_numbers = #tpu.dot_dimension_numbers<[1], [0], [0], [1], [0, 0, 1, 1], [], []>} : vector<4x8xf32>, vector<8x32xf32>, vector<4x32xf32> -> vector<4x32xf32>
    %271 = arith.addf %245, %270 : vector<4x32xf32>
    %c1_221 = arith.constant 1 : index
    %c3_222 = arith.constant 3 : index
    %c0_223 = arith.constant 0 : index
    %c0_224 = arith.constant 0 : index
    %272 = vector.load %arg6[%c1_221, %c3_222, %c0_223, %c0_224] : memref<2x4x32x8xf32, #tpu.memory_space<vmem>>, vector<1x1x32x8xf32>
    %273 = vector.shape_cast %272 : vector<1x1x32x8xf32> to vector<32x8xf32>
    %cst_225 = arith.constant dense<0.000000e+00> : vector<4x8xf32>
    %274 = tpu.matmul %194, %273, %cst_225 {dimension_numbers = #tpu.dot_dimension_numbers<[1], [0], [0], [1], [0, 0, 1, 1], [], []>} : vector<4x32xf32>, vector<32x8xf32>, vector<4x8xf32> -> vector<4x8xf32>
    %c1_226 = arith.constant 1 : index
    %c3_227 = arith.constant 3 : index
    %c0_228 = arith.constant 0 : index
    %c0_229 = arith.constant 0 : index
    %275 = vector.load %arg7[%c1_226, %c3_227, %c0_228, %c0_229] : memref<2x4x32x8xf32, #tpu.memory_space<vmem>>, vector<1x1x32x8xf32>
    %276 = vector.shape_cast %275 : vector<1x1x32x8xf32> to vector<32x8xf32>
    %cst_230 = arith.constant dense<0.000000e+00> : vector<4x8xf32>
    %277 = tpu.matmul %194, %276, %cst_230 {dimension_numbers = #tpu.dot_dimension_numbers<[1], [0], [0], [1], [0, 0, 1, 1], [], []>} : vector<4x32xf32>, vector<32x8xf32>, vector<4x8xf32> -> vector<4x8xf32>
    %c1_231 = arith.constant 1 : index
    %c3_232 = arith.constant 3 : index
    %c0_233 = arith.constant 0 : index
    %c0_234 = arith.constant 0 : index
    %278 = vector.load %arg8[%c1_231, %c3_232, %c0_233, %c0_234] : memref<2x4x32x8xf32, #tpu.memory_space<vmem>>, vector<1x1x32x8xf32>
    %279 = vector.shape_cast %278 : vector<1x1x32x8xf32> to vector<32x8xf32>
    %cst_235 = arith.constant dense<0.000000e+00> : vector<4x8xf32>
    %280 = tpu.matmul %194, %279, %cst_235 {dimension_numbers = #tpu.dot_dimension_numbers<[1], [0], [0], [1], [0, 0, 1, 1], [], []>} : vector<4x32xf32>, vector<32x8xf32>, vector<4x8xf32> -> vector<4x8xf32>
    %cst_236 = arith.constant dense<0.000000e+00> : vector<4x4xf32>
    %281 = tpu.matmul %274, %277, %cst_236 {dimension_numbers = #tpu.dot_dimension_numbers<[1], [1], [0], [0], [0, 0, 1, 0], [], []>} : vector<4x8xf32>, vector<4x8xf32>, vector<4x4xf32> -> vector<4x4xf32>
    %cst_237 = arith.constant 0.353553385 : f32
    %282 = vector.broadcast %cst_237 : f32 to vector<4x4xf32>
    %283 = arith.mulf %281, %282 : vector<4x4xf32>
    %cst_238 = arith.constant dense<0xFF800000> : vector<4xf32>
    %284 = vector.multi_reduction <maximumf>, %283, %cst_238 [1] : vector<4x4xf32> to vector<4xf32>
    %285 = vector.shape_cast %284 : vector<4xf32> to vector<4x1xf32>
    %286 = vector.broadcast %285 : vector<4x1xf32> to vector<4x4xf32>
    %287 = arith.subf %283, %286 : vector<4x4xf32>
    %288 = math.exp %287 : vector<4x4xf32>
    %cst_239 = arith.constant dense<0.000000e+00> : vector<4xf32>
    %289 = vector.multi_reduction <add>, %288, %cst_239 [1] : vector<4x4xf32> to vector<4xf32>
    %290 = vector.shape_cast %289 : vector<4xf32> to vector<4x1xf32>
    %291 = vector.broadcast %290 : vector<4x1xf32> to vector<4x4xf32>
    %292 = arith.divf %288, %291 : vector<4x4xf32>
    %cst_240 = arith.constant dense<0.000000e+00> : vector<4x8xf32>
    %293 = tpu.matmul %292, %280, %cst_240 {dimension_numbers = #tpu.dot_dimension_numbers<[1], [0], [0], [1], [0, 0, 1, 1], [], []>} : vector<4x4xf32>, vector<4x8xf32>, vector<4x8xf32> -> vector<4x8xf32>
    %c1_241 = arith.constant 1 : index
    %c3_242 = arith.constant 3 : index
    %c0_243 = arith.constant 0 : index
    %c0_244 = arith.constant 0 : index
    %294 = vector.load %arg9[%c1_241, %c3_242, %c0_243, %c0_244] : memref<2x4x8x32xf32, #tpu.memory_space<vmem>>, vector<1x1x8x32xf32>
    %295 = vector.shape_cast %294 : vector<1x1x8x32xf32> to vector<8x32xf32>
    %cst_245 = arith.constant dense<0.000000e+00> : vector<4x32xf32>
    %296 = tpu.matmul %293, %295, %cst_245 {dimension_numbers = #tpu.dot_dimension_numbers<[1], [0], [0], [1], [0, 0, 1, 1], [], []>} : vector<4x8xf32>, vector<8x32xf32>, vector<4x32xf32> -> vector<4x32xf32>
    %297 = arith.addf %271, %296 : vector<4x32xf32>
    %298 = arith.addf %168, %297 : vector<4x32xf32>
    %c1_246 = arith.constant 1 : index
    %c0_247 = arith.constant 0 : index
    %c0_248 = arith.constant 0 : index
    %299 = vector.load %arg10[%c1_246, %c0_247, %c0_248] : memref<2x1x32xf32, #tpu.memory_space<vmem>>, vector<1x1x32xf32>
    %300 = vector.shape_cast %299 : vector<1x1x32xf32> to vector<1x32xf32>
    %301 = vector.broadcast %300 : vector<1x32xf32> to vector<4x32xf32>
    %302 = arith.addf %298, %301 : vector<4x32xf32>
    %c1_249 = arith.constant 1 : index
    %c0_250 = arith.constant 0 : index
    %c0_251 = arith.constant 0 : index
    %303 = vector.load %arg11[%c1_249, %c0_250, %c0_251] : memref<2x32x2048xf32, #tpu.memory_space<vmem>>, vector<1x32x2048xf32>
    %304 = vector.shape_cast %303 : vector<1x32x2048xf32> to vector<32x2048xf32>
    %cst_252 = arith.constant dense<0.000000e+00> : vector<4x2048xf32>
    %305 = tpu.matmul %302, %304, %cst_252 {dimension_numbers = #tpu.dot_dimension_numbers<[1], [0], [0], [1], [0, 0, 1, 1], [], []>} : vector<4x32xf32>, vector<32x2048xf32>, vector<4x2048xf32> -> vector<4x2048xf32>
    %c1_253 = arith.constant 1 : index
    %c0_254 = arith.constant 0 : index
    %c0_255 = arith.constant 0 : index
    %306 = vector.load %arg12[%c1_253, %c0_254, %c0_255] : memref<2x1x2048xf32, #tpu.memory_space<vmem>>, vector<1x1x2048xf32>
    %307 = vector.shape_cast %306 : vector<1x1x2048xf32> to vector<1x2048xf32>
    %308 = vector.broadcast %307 : vector<1x2048xf32> to vector<4x2048xf32>
    %309 = arith.addf %305, %308 : vector<4x2048xf32>
    %cst_256 = arith.constant 5.000000e-01 : f32
    %310 = vector.broadcast %cst_256 : f32 to vector<4x2048xf32>
    %311 = arith.mulf %310, %309 : vector<4x2048xf32>
    %312 = arith.mulf %309, %309 : vector<4x2048xf32>
    %313 = arith.mulf %312, %309 : vector<4x2048xf32>
    %cst_257 = arith.constant 4.471500e-02 : f32
    %314 = vector.broadcast %cst_257 : f32 to vector<4x2048xf32>
    %315 = arith.mulf %314, %313 : vector<4x2048xf32>
    %316 = arith.addf %309, %315 : vector<4x2048xf32>
    %cst_258 = arith.constant 0.797884583 : f32
    %317 = vector.broadcast %cst_258 : f32 to vector<4x2048xf32>
    %318 = arith.mulf %317, %316 : vector<4x2048xf32>
    %319 = math.tanh %318 : vector<4x2048xf32>
    %cst_259 = arith.constant 1.000000e+00 : f32
    %320 = vector.broadcast %cst_259 : f32 to vector<4x2048xf32>
    %321 = arith.addf %320, %319 : vector<4x2048xf32>
    %322 = arith.mulf %311, %321 : vector<4x2048xf32>
    %c1_260 = arith.constant 1 : index
    %c0_261 = arith.constant 0 : index
    %c0_262 = arith.constant 0 : index
    %323 = vector.load %arg13[%c1_260, %c0_261, %c0_262] : memref<2x2048x32xf32, #tpu.memory_space<vmem>>, vector<1x2048x32xf32>
    %324 = vector.shape_cast %323 : vector<1x2048x32xf32> to vector<2048x32xf32>
    %cst_263 = arith.constant dense<0.000000e+00> : vector<4x32xf32>
    %325 = tpu.matmul %322, %324, %cst_263 {dimension_numbers = #tpu.dot_dimension_numbers<[1], [0], [0], [1], [0, 0, 1, 1], [], []>} : vector<4x2048xf32>, vector<2048x32xf32>, vector<4x32xf32> -> vector<4x32xf32>
    %c1_264 = arith.constant 1 : index
    %c0_265 = arith.constant 0 : index
    %c0_266 = arith.constant 0 : index
    %326 = vector.load %arg14[%c1_264, %c0_265, %c0_266] : memref<2x1x32xf32, #tpu.memory_space<vmem>>, vector<1x1x32xf32>
    %327 = vector.shape_cast %326 : vector<1x1x32xf32> to vector<1x32xf32>
    %328 = vector.broadcast %327 : vector<1x32xf32> to vector<4x32xf32>
    %329 = arith.addf %325, %328 : vector<4x32xf32>
    %330 = arith.addf %302, %329 : vector<4x32xf32>
    %c0_267 = arith.constant 0 : index
    %c0_268 = arith.constant 0 : index
    %331 = vector.load %arg16[%c0_267, %c0_268] : memref<1x832xf32, #tpu.memory_space<vmem>>, vector<1x832xf32>
    %332 = vector.extract_strided_slice %330 {offsets = [0, 0], sizes = [1, 32], strides = [1, 1]} : vector<4x32xf32> to vector<1x32xf32>
    %c0_269 = arith.constant 0 : index
    %c0_270 = arith.constant 0 : index
    %c0_271 = arith.constant 0 : index
    %333 = vector.load %arg15[%c0_269, %c0_270, %c0_271] : memref<4x32x832xf32, #tpu.memory_space<vmem>>, vector<1x32x832xf32>
    %334 = vector.shape_cast %333 : vector<1x32x832xf32> to vector<32x832xf32>
    %cst_272 = arith.constant dense<0.000000e+00> : vector<1x832xf32>
    %335 = tpu.matmul %332, %334, %cst_272 {dimension_numbers = #tpu.dot_dimension_numbers<[1], [0], [0], [1], [0, 0, 1, 1], [], []>} : vector<1x32xf32>, vector<32x832xf32>, vector<1x832xf32> -> vector<1x832xf32>
    %336 = arith.addf %331, %335 : vector<1x832xf32>
    %337 = vector.extract_strided_slice %330 {offsets = [1, 0], sizes = [1, 32], strides = [1, 1]} : vector<4x32xf32> to vector<1x32xf32>
    %c1_273 = arith.constant 1 : index
    %c0_274 = arith.constant 0 : index
    %c0_275 = arith.constant 0 : index
    %338 = vector.load %arg15[%c1_273, %c0_274, %c0_275] : memref<4x32x832xf32, #tpu.memory_space<vmem>>, vector<1x32x832xf32>
    %339 = vector.shape_cast %338 : vector<1x32x832xf32> to vector<32x832xf32>
    %cst_276 = arith.constant dense<0.000000e+00> : vector<1x832xf32>
    %340 = tpu.matmul %337, %339, %cst_276 {dimension_numbers = #tpu.dot_dimension_numbers<[1], [0], [0], [1], [0, 0, 1, 1], [], []>} : vector<1x32xf32>, vector<32x832xf32>, vector<1x832xf32> -> vector<1x832xf32>
    %341 = arith.addf %336, %340 : vector<1x832xf32>
    %342 = vector.extract_strided_slice %330 {offsets = [2, 0], sizes = [1, 32], strides = [1, 1]} : vector<4x32xf32> to vector<1x32xf32>
    %c2_277 = arith.constant 2 : index
    %c0_278 = arith.constant 0 : index
    %c0_279 = arith.constant 0 : index
    %343 = vector.load %arg15[%c2_277, %c0_278, %c0_279] : memref<4x32x832xf32, #tpu.memory_space<vmem>>, vector<1x32x832xf32>
    %344 = vector.shape_cast %343 : vector<1x32x832xf32> to vector<32x832xf32>
    %cst_280 = arith.constant dense<0.000000e+00> : vector<1x832xf32>
    %345 = tpu.matmul %342, %344, %cst_280 {dimension_numbers = #tpu.dot_dimension_numbers<[1], [0], [0], [1], [0, 0, 1, 1], [], []>} : vector<1x32xf32>, vector<32x832xf32>, vector<1x832xf32> -> vector<1x832xf32>
    %346 = arith.addf %341, %345 : vector<1x832xf32>
    %347 = vector.extract_strided_slice %330 {offsets = [3, 0], sizes = [1, 32], strides = [1, 1]} : vector<4x32xf32> to vector<1x32xf32>
    %c3_281 = arith.constant 3 : index
    %c0_282 = arith.constant 0 : index
    %c0_283 = arith.constant 0 : index
    %348 = vector.load %arg15[%c3_281, %c0_282, %c0_283] : memref<4x32x832xf32, #tpu.memory_space<vmem>>, vector<1x32x832xf32>
    %349 = vector.shape_cast %348 : vector<1x32x832xf32> to vector<32x832xf32>
    %cst_284 = arith.constant dense<0.000000e+00> : vector<1x832xf32>
    %350 = tpu.matmul %347, %349, %cst_284 {dimension_numbers = #tpu.dot_dimension_numbers<[1], [0], [0], [1], [0, 0, 1, 1], [], []>} : vector<1x32xf32>, vector<32x832xf32>, vector<1x832xf32> -> vector<1x832xf32>
    %351 = arith.addf %346, %350 : vector<1x832xf32>
    %cst_285 = arith.constant 0.000000e+00 : f32
    %352 = vector.broadcast %cst_285 : f32 to vector<1x832xf32>
    %353 = arith.maximumf %351, %352 : vector<1x832xf32>
    %c0_286 = arith.constant 0 : index
    %c0_287 = arith.constant 0 : index
    %354 = vector.load %arg17[%c0_286, %c0_287] : memref<832x832xf32, #tpu.memory_space<vmem>>, vector<832x832xf32>
    %cst_288 = arith.constant dense<0.000000e+00> : vector<1x832xf32>
    %355 = tpu.matmul %353, %354, %cst_288 {dimension_numbers = #tpu.dot_dimension_numbers<[1], [0], [0], [1], [0, 0, 1, 1], [], []>} : vector<1x832xf32>, vector<832x832xf32>, vector<1x832xf32> -> vector<1x832xf32>
    %c0_289 = arith.constant 0 : index
    %c0_290 = arith.constant 0 : index
    %356 = vector.load %arg18[%c0_289, %c0_290] : memref<1x832xf32, #tpu.memory_space<vmem>>, vector<1x832xf32>
    %357 = arith.addf %355, %356 : vector<1x832xf32>
    %cst_291 = arith.constant 0.000000e+00 : f32
    %358 = vector.broadcast %cst_291 : f32 to vector<1x832xf32>
    %359 = arith.maximumf %357, %358 : vector<1x832xf32>
    %c0_292 = arith.constant 0 : index
    %c0_293 = arith.constant 0 : index
    %360 = vector.load %arg19[%c0_292, %c0_293] : memref<832x26xf32, #tpu.memory_space<vmem>>, vector<832x26xf32>
    %cst_294 = arith.constant dense<0.000000e+00> : vector<1x26xf32>
    %361 = tpu.matmul %359, %360, %cst_294 {dimension_numbers = #tpu.dot_dimension_numbers<[1], [0], [0], [1], [0, 0, 1, 1], [], []>} : vector<1x832xf32>, vector<832x26xf32>, vector<1x26xf32> -> vector<1x26xf32>
    %c0_295 = arith.constant 0 : index
    %c0_296 = arith.constant 0 : index
    %362 = vector.load %arg20[%c0_295, %c0_296] : memref<1x26xf32, #tpu.memory_space<vmem>>, vector<1x26xf32>
    %363 = arith.addf %361, %362 : vector<1x26xf32>
    %c0_297 = arith.constant 0 : index
    %c0_298 = arith.constant 0 : index
    %c0_299 = arith.constant 0 : index
    %364 = vector.load %arg21[%c0_297, %c0_298, %c0_299] : memref<1x1x26xf32, #tpu.memory_space<vmem>>, vector<1x1x26xf32>
    %365 = vector.shape_cast %364 : vector<1x1x26xf32> to vector<1x26xf32>
    %366 = vector.shape_cast %363 : vector<1x26xf32> to vector<1x1x26xf32>
    tpu.vector_store %arg21[%c0_297, %c0_298, %c0_299], %366 {strides = array<i32>} : memref<1x1x26xf32, #tpu.memory_space<vmem>>, vector<1x1x26xf32>,
    return
  }
  func.func @transform_0(%arg0: i32) -> (i32, i32, i32) {
    %c0_i32 = arith.constant 0 : i32
    %c0_i32_0 = arith.constant 0 : i32
    %c0_i32_1 = arith.constant 0 : i32
    return %arg0, %c0_i32, %c0_i32_0 : i32, i32, i32
  }
  func.func @transform_1(%arg0: i32) -> (i32, i32) {
    %c0_i32 = arith.constant 0 : i32
    %c0_i32_0 = arith.constant 0 : i32
    %c0_i32_1 = arith.constant 0 : i32
    return %c0_i32, %c0_i32_0 : i32, i32
  }
  func.func @transform_2(%arg0: i32) -> (i32, i32) {
    %c0_i32 = arith.constant 0 : i32
    %c0_i32_0 = arith.constant 0 : i32
    %c0_i32_1 = arith.constant 0 : i32
    return %c0_i32, %c0_i32_0 : i32, i32
  }
  func.func @transform_3(%arg0: i32) -> (i32, i32, i32) {
    %c0_i32 = arith.constant 0 : i32
    %c0_i32_0 = arith.constant 0 : i32
    %c0_i32_1 = arith.constant 0 : i32
    %c0_i32_2 = arith.constant 0 : i32
    return %c0_i32, %c0_i32_0, %c0_i32_1 : i32, i32, i32
  }
  func.func @transform_4(%arg0: i32) -> (i32, i32, i32) {
    %c0_i32 = arith.constant 0 : i32
    %c0_i32_0 = arith.constant 0 : i32
    %c0_i32_1 = arith.constant 0 : i32
    %c0_i32_2 = arith.constant 0 : i32
    return %c0_i32, %c0_i32_0, %c0_i32_1 : i32, i32, i32
  }
  func.func @transform_5(%arg0: i32) -> (i32, i32, i32, i32) {
    %c0_i32 = arith.constant 0 : i32
    %c0_i32_0 = arith.constant 0 : i32
    %c0_i32_1 = arith.constant 0 : i32
    %c0_i32_2 = arith.constant 0 : i32
    %c0_i32_3 = arith.constant 0 : i32
    return %c0_i32, %c0_i32_0, %c0_i32_1, %c0_i32_2 : i32, i32, i32, i32
  }
  func.func @transform_6(%arg0: i32) -> (i32, i32, i32, i32) {
    %c0_i32 = arith.constant 0 : i32
    %c0_i32_0 = arith.constant 0 : i32
    %c0_i32_1 = arith.constant 0 : i32
    %c0_i32_2 = arith.constant 0 : i32
    %c0_i32_3 = arith.constant 0 : i32
    return %c0_i32, %c0_i32_0, %c0_i32_1, %c0_i32_2 : i32, i32, i32, i32
  }
  func.func @transform_7(%arg0: i32) -> (i32, i32, i32, i32) {
    %c0_i32 = arith.constant 0 : i32
    %c0_i32_0 = arith.constant 0 : i32
    %c0_i32_1 = arith.constant 0 : i32
    %c0_i32_2 = arith.constant 0 : i32
    %c0_i32_3 = arith.constant 0 : i32
    return %c0_i32, %c0_i32_0, %c0_i32_1, %c0_i32_2 : i32, i32, i32, i32
  }
  func.func @transform_8(%arg0: i32) -> (i32, i32, i32, i32) {
    %c0_i32 = arith.constant 0 : i32
    %c0_i32_0 = arith.constant 0 : i32
    %c0_i32_1 = arith.constant 0 : i32
    %c0_i32_2 = arith.constant 0 : i32
    %c0_i32_3 = arith.constant 0 : i32
    return %c0_i32, %c0_i32_0, %c0_i32_1, %c0_i32_2 : i32, i32, i32, i32
  }
  func.func @transform_9(%arg0: i32) -> (i32, i32, i32) {
    %c0_i32 = arith.constant 0 : i32
    %c0_i32_0 = arith.constant 0 : i32
    %c0_i32_1 = arith.constant 0 : i32
    %c0_i32_2 = arith.constant 0 : i32
    return %c0_i32, %c0_i32_0, %c0_i32_1 : i32, i32, i32
  }
  func.func @transform_10(%arg0: i32) -> (i32, i32, i32) {
    %c0_i32 = arith.constant 0 : i32
    %c0_i32_0 = arith.constant 0 : i32
    %c0_i32_1 = arith.constant 0 : i32
    %c0_i32_2 = arith.constant 0 : i32
    return %c0_i32, %c0_i32_0, %c0_i32_1 : i32, i32, i32
  }
  func.func @transform_11(%arg0: i32) -> (i32, i32, i32) {
    %c0_i32 = arith.constant 0 : i32
    %c0_i32_0 = arith.constant 0 : i32
    %c0_i32_1 = arith.constant 0 : i32
    %c0_i32_2 = arith.constant 0 : i32
    return %c0_i32, %c0_i32_0, %c0_i32_1 : i32, i32, i32
  }
  func.func @transform_12(%arg0: i32) -> (i32, i32, i32) {
    %c0_i32 = arith.constant 0 : i32
    %c0_i32_0 = arith.constant 0 : i32
    %c0_i32_1 = arith.constant 0 : i32
    %c0_i32_2 = arith.constant 0 : i32
    return %c0_i32, %c0_i32_0, %c0_i32_1 : i32, i32, i32
  }
  func.func @transform_13(%arg0: i32) -> (i32, i32, i32) {
    %c0_i32 = arith.constant 0 : i32
    %c0_i32_0 = arith.constant 0 : i32
    %c0_i32_1 = arith.constant 0 : i32
    %c0_i32_2 = arith.constant 0 : i32
    return %c0_i32, %c0_i32_0, %c0_i32_1 : i32, i32, i32
  }
  func.func @transform_14(%arg0: i32) -> (i32, i32, i32) {
    %c0_i32 = arith.constant 0 : i32
    %c0_i32_0 = arith.constant 0 : i32
    %c0_i32_1 = arith.constant 0 : i32
    %c0_i32_2 = arith.constant 0 : i32
    return %c0_i32, %c0_i32_0, %c0_i32_1 : i32, i32, i32
  }
  func.func @transform_15(%arg0: i32) -> (i32, i32) {
    %c0_i32 = arith.constant 0 : i32
    %c0_i32_0 = arith.constant 0 : i32
    %c0_i32_1 = arith.constant 0 : i32
    return %c0_i32, %c0_i32_0 : i32, i32
  }
  func.func @transform_16(%arg0: i32) -> (i32, i32) {
    %c0_i32 = arith.constant 0 : i32
    %c0_i32_0 = arith.constant 0 : i32
    %c0_i32_1 = arith.constant 0 : i32
    return %c0_i32, %c0_i32_0 : i32, i32
  }
  func.func @transform_17(%arg0: i32) -> (i32, i32) {
    %c0_i32 = arith.constant 0 : i32
    %c0_i32_0 = arith.constant 0 : i32
    %c0_i32_1 = arith.constant 0 : i32
    return %c0_i32, %c0_i32_0 : i32, i32
  }
  func.func @transform_18(%arg0: i32) -> (i32, i32) {
    %c0_i32 = arith.constant 0 : i32
    %c0_i32_0 = arith.constant 0 : i32
    %c0_i32_1 = arith.constant 0 : i32
    return %c0_i32, %c0_i32_0 : i32, i32
  }
  func.func @transform_19(%arg0: i32) -> (i32, i32) {
    %c0_i32 = arith.constant 0 : i32
    %c0_i32_0 = arith.constant 0 : i32
    %c0_i32_1 = arith.constant 0 : i32
    return %c0_i32, %c0_i32_0 : i32, i32
  }
  func.func @transform_20(%arg0: i32) -> (i32, i32, i32) {
    %c0_i32 = arith.constant 0 : i32
    %c0_i32_0 = arith.constant 0 : i32
    %c0_i32_1 = arith.constant 0 : i32
    return %arg0, %c0_i32, %c0_i32_0 : i32, i32, i32
  }
}

</mosaic_0001>

<bundles_post_ra>
// kernel: csgo_forward.1
= control target key start
LH: loop header
LB: loop body
LE: loop exit
PB: predicated region body
PF: predicated region fallthrough
CT: control target
= control target key end

     0   :  { %s22772_s0 = inlined_call_operand.vmem [shape: f32[2,4,768], index: 0, kind: input, shape index: {}]   ;;  %s22773_s1 = inlined_call_operand.vmem [shape: f32[768,32], index: 1, kind: input, shape index: {}]   ;;  %s22774_s2 = inlined_call_operand.vmem [shape: f32[1,32], index: 2, kind: input, shape index: {}]   ;;  %s22775_s3 = inlined_call_operand.vmem [shape: f32[2,1,32], index: 3, kind: input, shape index: {}]   ;;  %s22776_s4 = inlined_call_operand.vmem [shape: f32[2,1,32], index: 4, kind: input, shape index: {}]   ;;  %s22777_s5 = inlined_call_operand.vmem [shape: f32[2,4,32,8], index: 5, kind: input, shape index: {}]   ;;  %s22778_s6 = inlined_call_operand.vmem [shape: f32[2,4,32,8], index: 6, kind: input, shape index: {}]   ;;  %s22779_s7 = inlined_call_operand.vmem [shape: f32[2,4,32,8], index: 7, kind: input, shape index: {}]   ;;  %s22780_s8 = inlined_call_operand.vmem [shape: f32[2,4,8,32], index: 8, kind: input, shape index: {}]   ;;  %s22781_s9 = inlined_call_operand.vmem [shape: f32[2,1,32], index: 9, kind: input, shape index: {}]   ;;  %s22782_s10 = inlined_call_operand.vmem [shape: f32[2,32,2048], index: 10, kind: input, shape index: {}]   ;;  %s22783_s11 = inlined_call_operand.vmem [shape: f32[2,1,2048], index: 11, kind: input, shape index: {}]   ;;  %s22784_s12 = inlined_call_operand.vmem [shape: f32[2,2048,32], index: 12, kind: input, shape index: {}]   ;;  %s22785_s13 = inlined_call_operand.vmem [shape: f32[2,1,32], index: 13, kind: input, shape index: {}]   ;;  %s22786_s14 = inlined_call_operand.vmem [shape: f32[4,32,832], index: 14, kind: input, shape index: {}]   ;;  %s22787_s15 = inlined_call_operand.vmem [shape: f32[1,832], index: 15, kind: input, shape index: {}]   ;;  %s22788_s16 = inlined_call_operand.vmem [shape: f32[832,832], index: 16, kind: input, shape index: {}]   ;;  %s22789_s17 = inlined_call_operand.vmem [shape: f32[1,832], index: 17, kind: input, shape index: {}]   ;;  %s22790_s18 = inlined_call_operand.vmem [shape: f32[832,26], index: 18, kind: input, shape index: {}]   ;;  %s22791_s19 = inlined_call_operand.vmem [shape: f32[1,26], index: 19, kind: input, shape index: {}]   ;;  %s22792_s20 = inlined_call_operand.hbm [shape: f32[2,1,26], index: 20, kind: output, shape index: {}]  }
   0x1   :  { %22807 = sst [smem:[#allocation12_spill]] %s22772_s0 }
   0x2   :  { %22808 = sst [smem:[#allocation13_spill]] %s22773_s1 }
   0x3   :  { %22809 = sst [smem:[#allocation14_spill]] %s22774_s2 }
   0x4   :  { %22810 = sst [smem:[#allocation15_spill]] %s22775_s3 }
   0x5   :  { %22811 = sst [smem:[#allocation16_spill]] %s22776_s4 }
   0x6   :  { %22812 = sst [smem:[#allocation17_spill]] %s22792_s20 }
   0x7   :  { %25 = vsyncpa [#allocation3], 0 }
   0x8   :  { %27 = vsyncpa [#allocation3 + $0x1], 0  ;;  %s16374_s1 = smov 0   ;;  %s16376_s22 = smov 0  }
   0x9   :  { %s16378_s23 = smov 0   ;;  %s16380_s24 = smov 0  }
   0xa LB: > { %22813 = sst [smem:[#allocation5_spill]] %s16250_s1  ;;  %s16395_s2 = sadd.s32 4294967295, %s16262_s24   ;;  %s16262_s24 = sphi %s16380_s24, %s22832_s24   ;;  %s16258_s23 = sphi %s16378_s23, %s22834_s23   ;;  %s16254_s22 = sphi %s16376_s22, %s22836_s22   ;;  %s16250_s1 = sphi %s16374_s1, %s22835_s1  }
   0xb   : > { %22814 = sst [smem:[#allocation6_spill]] %s16258_s23  ;;  %s12023_s25 = sadd.s32 4294967294, %s16262_s24  }
   0xc   : > { %22815 = sst [smem:[#allocation7_spill]] %s16262_s24  ;;  %s16399_s3 = sadd.s32 1, %s16262_s24  }
   0xd   : > { %22816 = sst [smem:[#allocation8_spill]] %s16399_s3  ;;  %s465_s26 = sadd.s32 1, %s16258_s23 }
   0xe   : > { %s462_s27 = ssub.s32 %s16262_s24, %s16399_s3  ;;  %p475_p0 = scmp.ne.s32.totalorder %s16258_s23, %s16254_s22 }
   0xf   : > { %p463_p1 = scmp.eq.s32.totalorder %s462_s27, 0  ;;  %p476_p2 = scmp.eq.s32.totalorder %s16395_s2, 1 }
  0x10   : > { %p481_p3 = scmp.ne.s32.totalorder %s16254_s22, %s16250_s1  ;;  %p482_p4 = scmp.eq.s32.totalorder %s12023_s25, 1 }
  0x11   : > { %s16410_s28 = scalar_select %p463_p1, %s16258_s23, %s465_s26  }
  0x12   : > { %p16412_p5 = por %p476_p2, %p475_p0  ;;  %p16416_p6 = por %p482_p4, %p481_p3 }
  0x13   : > { %22817 = sst [smem:[#allocation9_spill]] %s16410_s28  ;;  %p12026_p7 = scmp.ge.s32.totalorder %s16262_s24, 1 }
  0x14   : > { %s22818_s4 = scalar_select %p16412_p5, 1, 0 }
  0x15   : > { %s22820_s29 = scalar_select %p16416_p6, 1, 0 }
  0x16   : > { %22819 = sst [smem:[#allocation10_spill]] %s22818_s4  ;;  %p565_p8 = scmp.lt.s32.totalorder %s16262_s24, 3 }
  0x17   : > { %22821 = sst [smem:[#allocation11_spill]] %s22820_s29 }
  0x18   : > { %p566_p9 = pnand %p12026_p7, %p565_p8 }
  0x19   : > { %s22822_s21 = sld [smem:[#allocation13_spill]] (!%p566_p9)  ;;  %p622_p10 = scmp.lt.s32.totalorder (!%p566_p9), %s16395_s2, 1  ;;  %vm952_vm0 = vcmask (!%p566_p9), 257024   ;;  %vm16265_vm1 = vmmov (!%p566_p9), 0   ;;  %vm987_vm2 = vcmask (!%p566_p9), 261120   ;;  %vm1209_vm3 = vcmask (!%p566_p9), 64512  }
  0x1a   : > { %569 = sbr.rel (%p566_p9) target bundleno = 10860 (0x2a6c), region = 100  ;;  %s22823_s30 = sld [smem:[#allocation12_spill]] (!%p566_p9)  ;;  %vm1303_vm4 = vcmask (!%p566_p9), 1043456   ;;  %vm1287_vm5 = vcmask (!%p566_p9), 27648   ;;  %vm1299_vm6 = vcmask (!%p566_p9), 31744   ;;  %vm10423_vm7 = vcmask (!%p566_p9), 523264  }
  0x1b   : > { %s620_s4 = sand.u32 (!%p566_p9), 1, %s16254_s22   ;;  %vm11953_vm8 = vcmask (!%p566_p9), 204800   ;;  %s22828_s3 = sld [smem:[#allocation17_spill]] (!%p566_p9) }
  0x1c   : > { %s621_s20 = scalar_lea.vmem (!%p566_p9), [#allocation2], %s620_s4  ;;  %s11956_s29 = scalar_lea.sflag (!%p566_p9), [#allocation3], %s620_s4 }
  0x1d   : > { %s11968_s27 = sshll.u32 (!%p566_p9), %s621_s20, 4  ;;  %s22732_s27 = int_to_ptr.vmem [resolvable:$true] %s11968_s27 }
  0x1f   : > { %v646_v0 = vld [vmem:[%s22822_s21 + $0x80] sm:$0xff] (!%p566_p9)  ;;  %v647_v1 = vld [vmem:[%s22822_s21 + $0x88] sm:$0xff] (!%p566_p9)  ;;  %v648_v11 = vld [vmem:[%s22822_s21 + $0x90] sm:$0xff] (!%p566_p9) }
  0x20   : > { %v630_v2 = vld [vmem:[%s22822_s21] sm:$0xff] (!%p566_p9)  ;;  %v14189_v3 = vpack.c.bf16 (!%p566_p9), %v647_v1, %v646_v0  ;;  %v631_v4 = vld [vmem:[%s22822_s21 + $0x8] sm:$0xff] (!%p566_p9)  ;;  %v649_v13 = vld [vmem:[%s22822_s21 + $0x98] sm:$0xff] (!%p566_p9) }
  0x21   : > { %v678_v5 = vld [vmem:[%s22822_s21 + $0x180] sm:$0xff]  ;;  %v679_v6 = vld [vmem:[%s22822_s21 + $0x188] sm:$0xff]  ;;  %v14191_v7 = vpack.c.bf16 %v631_v4, %v630_v2  ;;  %v632_v14 = vld [vmem:[%s22822_s21 + $0x10] sm:$0xff]  ;;  %v14193_v16 = vpack.c.bf16 %v649_v13, %v648_v11  ;;  %s16516_s23 = scalar_select %p622_p10, %s16395_s2, 1 }
  0x22   : > { %v14221_v8 = vpack.c.bf16 %v679_v6, %v678_v5  ;;  %v662_v9 = vld [vmem:[%s22822_s21 + $0x100] sm:$0xff]  ;;  %v663_v10 = vld [vmem:[%s22822_s21 + $0x108] sm:$0xff]  ;;  %14190 = vmatprep.subr.bf16.mxu0 %v14189_v3  ;;  %v633_v15 = vld [vmem:[%s22822_s21 + $0x18] sm:$0xff] }
  0x23   : > { %v14223_v12 = vpack.c.bf16 %v663_v10, %v662_v9  ;;  %14192 = vmatpush3.bf16.msra.mxu0 %v14191_v7  ;;  %v14195_v17 = vpack.c.bf16 %v633_v15, %v632_v14  ;;  %v680_v18 = vld [vmem:[%s22822_s21 + $0x190] sm:$0xff]  ;;  %v681_v19 = vld [vmem:[%s22822_s21 + $0x198] sm:$0xff]  ;;  %v650_v23 = vld [vmem:[%s22822_s21 + $0xa0] sm:$0xff]  ;;  %s16053_s28 = smul.u32 24, %s16516_s23  ;;  %s12639_s23 = sshll.u32 %s16395_s2, 4 }
  0x24   : > { %14222 = vmatprep.subr.bf16.mxu1 %v14221_v8  ;;  %v664_v20 = vld [vmem:[%s22822_s21 + $0x110] sm:$0xff]  ;;  %v14225_v21 = vpack.c.bf16 %v681_v19, %v680_v18  ;;  %v665_v22 = vld [vmem:[%s22822_s21 + $0x118] sm:$0xff]  ;;  %v651_v24 = vld [vmem:[%s22822_s21 + $0xa8] sm:$0xff]  ;;  %14194 = vmatprep.subr.bf16.mxu0 %v14193_v16  ;;  %s22730_s1 = scalar_lea.hbm %s22828_s3, %s12639_s23  ;;  %s16268_s2 = smov [#allocation2]  }
  0x25   : > { %14224 = vmatpush3.bf16.msra.mxu1 %v14223_v12  ;;  %v14227_v25 = vpack.c.bf16 %v665_v22, %v664_v20  ;;  %v14197_v26 = vpack.c.bf16 %v651_v24, %v650_v23  ;;  %v634_v27 = vld [vmem:[%s22822_s21 + $0x20] sm:$0xff]  ;;  %v635_v28 = vld [vmem:[%s22822_s21 + $0x28] sm:$0xff]  ;;  %v652_v35 = vld [vmem:[%s22822_s21 + $0xb0] sm:$0xff]  ;;  %s16573_s0 = scalar_lea.vmem %s22823_s30, %s16053_s28  ;;  %s22824_s30 = sld [smem:[#allocation14_spill]] }
  0x26   : > { %v682_v29 = vld [vmem:[%s22822_s21 + $0x1a0] sm:$0xff]  ;;  %14226 = vmatprep.subr.bf16.mxu1 %v14225_v21  ;;  %v683_v30 = vld [vmem:[%s22822_s21 + $0x1a8] sm:$0xff]  ;;  %v14199_v33 = vpack.c.bf16 %v635_v28, %v634_v27  ;;  %v653_v36 = vld [vmem:[%s22822_s21 + $0xb8] sm:$0xff]  ;;  %s16200_s28 = scalar_lea.vmem %s22732_s27, 16  ;;  %s16204_s24 = sshll.u32 %s16268_s2, 4  ;;  %s16205_s24 = int_to_ptr.vmem [resolvable:$false] %s16204_s24 }
  0x27   : > { %v666_v31 = vld [vmem:[%s22822_s21 + $0x120] sm:$0xff]  ;;  %v667_v32 = vld [vmem:[%s22822_s21 + $0x128] sm:$0xff]  ;;  %14196 = vmatpush3.bf16.msra.mxu0 %v14195_v17  ;;  %v14229_v34 = vpack.c.bf16 %v683_v30, %v682_v29  ;;  %v636_v37 = vld [vmem:[%s22822_s21 + $0x30] sm:$0xff]  ;;  %v14201_v39 = vpack.c.bf16 %v653_v36, %v652_v35  ;;  %p16201_p11 = scmp.ne.s32.totalorder %s22732_s27, %s16200_s28  ;;  %p16207_p0 = scmp.lt.s32.totalorder %s22732_s27, %s16205_s24 }
  0x28   : > { %14198 = vmatprep.subr.bf16.mxu0 %v14197_v26  ;;  %v14231_v38 = vpack.c.bf16 %v667_v32, %v666_v31  ;;  %v637_v40 = vld [vmem:[%s22822_s21 + $0x38] sm:$0xff]  ;;  %v684_v41 = vld [vmem:[%s22822_s21 + $0x1b0] sm:$0xff]  ;;  %v654_v46 = vld [vmem:[%s22822_s21 + $0xc0] sm:$0xff] }
  0x29   : > { %14228 = vmatpush3.bf16.msra.mxu1 %v14227_v25  ;;  %v685_v42 = vld [vmem:[%s22822_s21 + $0x1b8] sm:$0xff]  ;;  %v668_v44 = vld [vmem:[%s22822_s21 + $0x130] sm:$0xff]  ;;  %v655_v47 = vld [vmem:[%s22822_s21 + $0xc8] sm:$0xff]  ;;  %v14203_v48 = vpack.c.bf16 %v637_v40, %v636_v37  ;;  %p16202_p12 = pnand %p16201_p11, %p16412_p5 }
  0x2a   : > { %14230 = vmatprep.subr.bf16.mxu1 %v14229_v34  ;;  %v14233_v43 = vpack.c.bf16 %v685_v42, %v684_v41  ;;  %v669_v45 = vld [vmem:[%s22822_s21 + $0x138] sm:$0xff]  ;;  %v686_v49 = vld [vmem:[%s22822_s21 + $0x1c0] sm:$0xff]  ;;  %v687_v50 = vld [vmem:[%s22822_s21 + $0x1c8] sm:$0xff]  ;;  %v14205_v52 = vpack.c.bf16 %v655_v47, %v654_v46 }
  0x2b   : > { %14200 = vmatpush3.bf16.msra.mxu0 %v14199_v33  ;;  %v14235_v51 = vpack.c.bf16 %v669_v45, %v668_v44  ;;  %v638_v53 = vld [vmem:[%s22822_s21 + $0x40] sm:$0xff]  ;;  %v639_v54 = vld [vmem:[%s22822_s21 + $0x48] sm:$0xff]  ;;  %v14237_v56 = vpack.c.bf16 %v687_v50, %v686_v49  ;;  %v656_v58 = vld [vmem:[%s22822_s21 + $0xd0] sm:$0xff]  ;;  %p16203_p13 = pneg %p16202_p12 }
  0x2c   : > { %14202 = vmatprep.subr.bf16.mxu0 %v14201_v39  ;;  %v670_v55 = vld [vmem:[%s22822_s21 + $0x140] sm:$0xff]  ;;  %v671_v57 = vld [vmem:[%s22822_s21 + $0x148] sm:$0xff]  ;;  %v657_v59 = vld [vmem:[%s22822_s21 + $0xd8] sm:$0xff]  ;;  %v14207_v62 = vpack.c.bf16 %v639_v54, %v638_v53 }
  0x2d   : > { %14232 = vmatpush3.bf16.msra.mxu1 %v14231_v38  ;;  %v688_v60 = vld [vmem:[%s22822_s21 + $0x1d0] sm:$0xff]  ;;  %v689_v61 = vld [vmem:[%s22822_s21 + $0x1d8] sm:$0xff]  ;;  %v14239_v63 = vpack.c.bf16 %v671_v57, %v670_v55  ;;  %v14209_v0 = vpack.c.bf16 %v657_v59, %v656_v58  ;;  %v658_v6 = vld [vmem:[%s22822_s21 + $0xe0] sm:$0xff] }
  0x2e   : > { %14234 = vmatprep.subr.bf16.mxu1 %v14233_v43  ;;  %v640_v1 = vld [vmem:[%s22822_s21 + $0x50] sm:$0xff]  ;;  %v641_v2 = vld [vmem:[%s22822_s21 + $0x58] sm:$0xff]  ;;  %v14241_v4 = vpack.c.bf16 %v689_v61, %v688_v60  ;;  %v659_v7 = vld [vmem:[%s22822_s21 + $0xe8] sm:$0xff] }
  0x2f   : > { %14204 = vmatpush3.bf16.msra.mxu0 %v14203_v48  ;;  %v672_v3 = vld [vmem:[%s22822_s21 + $0x150] sm:$0xff]  ;;  %v673_v5 = vld [vmem:[%s22822_s21 + $0x158] sm:$0xff]  ;;  %v690_v8 = vld [vmem:[%s22822_s21 + $0x1e0] sm:$0xff]  ;;  %v14211_v10 = vpack.c.bf16 %v641_v2, %v640_v1  ;;  %v14213_v14 = vpack.c.bf16 %v659_v7, %v658_v6 }
  0x30   : > { %14206 = vmatprep.subr.bf16.mxu0 %v14205_v52  ;;  %v691_v9 = vld [vmem:[%s22822_s21 + $0x1e8] sm:$0xff]  ;;  %v642_v11 = vld [vmem:[%s22822_s21 + $0x60] sm:$0xff]  ;;  %v14243_v13 = vpack.c.bf16 %v673_v5, %v672_v3  ;;  %v660_v20 = vld [vmem:[%s22822_s21 + $0xf0] sm:$0xff] }
  0x31   : > { %14236 = vmatpush3.bf16.msra.mxu1 %v14235_v51  ;;  %v627_v12 = vld [vmem:[%s16573_s0] sm:$0xff]  ;;  %v643_v15 = vld [vmem:[%s22822_s21 + $0x68] sm:$0xff]  ;;  %v14245_v19 = vpack.c.bf16 %v691_v9, %v690_v8  ;;  %v661_v21 = vld [vmem:[%s22822_s21 + $0xf8] sm:$0xff] }
  0x32   : > { %14238 = vmatprep.subr.bf16.mxu1 %v14237_v56  ;;  %v674_v16 = vld [vmem:[%s22822_s21 + $0x160] sm:$0xff]  ;;  %v675_v17 = vld [vmem:[%s22822_s21 + $0x168] sm:$0xff]  ;;  %v736_v18 = vcombine.high %v627_v12, %v627_v12  ;;  %v692_v23 = vld [vmem:[%s22822_s21 + $0x1f0] sm:$0xff]  ;;  %v14215_v26 = vpack.c.bf16 %v643_v15, %v642_v11  ;;  %v14217_v28 = vpack.c.bf16 %v661_v21, %v660_v20 }
  0x33   : > { %14208 = vmatpush3.bf16.msra.mxu0 %v14207_v62  ;;  %v628_v22 = vld [vmem:[%s16573_s0 + $0x8] sm:$0xff]  ;;  %v693_v24 = vld [vmem:[%s22822_s21 + $0x1f8] sm:$0xff]  ;;  %v14247_v27 = vpack.c.bf16 %v675_v17, %v674_v16  ;;  %v644_v29 = vld [vmem:[%s22822_s21 + $0x70] sm:$0xff] }
  0x34   : > { %14210 = vmatprep.subr.bf16.mxu0 %v14209_v0  ;;  %806 = vmatprep.mubr.f32.mxu0 %v736_v18  ;;  %v737_v25 = vcombine.high %v628_v22, %v628_v22  ;;  %v645_v30 = vld [vmem:[%s22822_s21 + $0x78] sm:$0xff]  ;;  %v676_v31 = vld [vmem:[%s22822_s21 + $0x170] sm:$0xff]  ;;  %v14249_v32 = vpack.c.bf16 %v693_v24, %v692_v23  ;;  %v710_v34 = vld [vmem:[%s22822_s21 + $0x280] sm:$0xff] }
  0x35   : > { %14240 = vmatpush3.bf16.msra.mxu1 %v14239_v63  ;;  %v677_v33 = vld [vmem:[%s22822_s21 + $0x178] sm:$0xff]  ;;  %v711_v35 = vld [vmem:[%s22822_s21 + $0x288] sm:$0xff]  ;;  %v14219_v36 = vpack.c.bf16 %v645_v30, %v644_v29  ;;  %v694_v39 = vld [vmem:[%s22822_s21 + $0x200] sm:$0xff] }
  0x36   : > { %14242 = vmatprep.subr.bf16.mxu1 %v14241_v4  ;;  %876 = vmatprep.mubr.f32.mxu1 %v737_v25  ;;  %v14251_v37 = vpack.c.bf16 %v677_v33, %v676_v31  ;;  %v14253_v38 = vpack.c.bf16 %v711_v35, %v710_v34  ;;  %v695_v40 = vld [vmem:[%s22822_s21 + $0x208] sm:$0xff]  ;;  %v712_v41 = vld [vmem:[%s22822_s21 + $0x290] sm:$0xff]  ;;  %v713_v42 = vld [vmem:[%s22822_s21 + $0x298] sm:$0xff] }
  0x37   : > { %14212 = vmatpush3.bf16.msra.mxu0 %v14211_v10  ;;  %v14255_v43 = vpack.c.bf16 %v695_v40, %v694_v39  ;;  %v629_v44 = vld [vmem:[%s16573_s0 + $0x10] sm:$0xff]  ;;  %v14257_v45 = vpack.c.bf16 %v713_v42, %v712_v41  ;;  %v697_v47 = vld [vmem:[%s22822_s21 + $0x218] sm:$0xff]  ;;  %v714_v49 = vld [vmem:[%s22822_s21 + $0x2a0] sm:$0xff]  ;;  %s22825_s0 = sld [smem:[#allocation15_spill]] }
  0x38   : > { %14214 = vmatprep.subr.bf16.mxu0 %v14213_v14  ;;  %v696_v46 = vld [vmem:[%s22822_s21 + $0x210] sm:$0xff]  ;;  %v738_v48 = vcombine.high %v629_v44, %v629_v44  ;;  %v715_v50 = vld [vmem:[%s22822_s21 + $0x2a8] sm:$0xff]  ;;  %v698_v53 = vld [vmem:[%s22822_s21 + $0x220] sm:$0xff] }
  0x39   : > { %14244 = vmatpush3.bf16.msra.mxu1 %v14243_v13  ;;  %v14259_v51 = vpack.c.bf16 %v697_v47, %v696_v46  ;;  %v14261_v52 = vpack.c.bf16 %v715_v50, %v714_v49  ;;  %v699_v54 = vld [vmem:[%s22822_s21 + $0x228] sm:$0xff]  ;;  %v716_v55 = vld [vmem:[%s22822_s21 + $0x2b0] sm:$0xff]  ;;  %v717_v56 = vld [vmem:[%s22822_s21 + $0x2b8] sm:$0xff]  ;;  %v16264_v46 = vmov 0.0|0.0  }
  0x3a   : > { %14246 = vmatprep.subr.bf16.mxu1 %v14245_v19  ;;  %v14263_v57 = vpack.c.bf16 %v699_v54, %v698_v53  ;;  %v14265_v58 = vpack.c.bf16 %v717_v56, %v716_v55  ;;  %v700_v59 = vld [vmem:[%s22822_s21 + $0x230] sm:$0xff]  ;;  %v701_v60 = vld [vmem:[%s22822_s21 + $0x238] sm:$0xff]  ;;  %v718_v61 = vld [vmem:[%s22822_s21 + $0x2c0] sm:$0xff]  ;;  %v16266_v54 = vmov 0.0  }
  0x3b   : > { %14216 = vmatpush3.bf16.msra.mxu0 %v14215_v26  ;;  %v719_v62 = vld [vmem:[%s22822_s21 + $0x2c8] sm:$0xff]  ;;  %v14267_v63 = vpack.c.bf16 %v701_v60, %v700_v59  ;;  %v702_v1 = vld [vmem:[%s22822_s21 + $0x240] sm:$0xff]  ;;  %v720_v3 = vld [vmem:[%s22822_s21 + $0x2d0] sm:$0xff] }
  0x3c   : > { %14218 = vmatprep.subr.bf16.mxu0 %v14217_v28  ;;  %v14269_v0 = vpack.c.bf16 %v719_v62, %v718_v61  ;;  %v703_v2 = vld [vmem:[%s22822_s21 + $0x248] sm:$0xff]  ;;  %v721_v4 = vld [vmem:[%s22822_s21 + $0x2d8] sm:$0xff]  ;;  %v704_v7 = vld [vmem:[%s22822_s21 + $0x250] sm:$0xff] }
  0x3d   : > { %14248 = vmatpush3.bf16.msra.mxu1 %v14247_v27  ;;  %v14271_v5 = vpack.c.bf16 %v703_v2, %v702_v1  ;;  %v14273_v6 = vpack.c.bf16 %v721_v4, %v720_v3  ;;  %v705_v8 = vld [vmem:[%s22822_s21 + $0x258] sm:$0xff]  ;;  %v722_v9 = vld [vmem:[%s22822_s21 + $0x2e0] sm:$0xff]  ;;  %v723_v10 = vld [vmem:[%s22822_s21 + $0x2e8] sm:$0xff] }
  0x3e   : > { %14250 = vmatprep.subr.bf16.mxu1 %v14249_v32  ;;  %v14275_v11 = vpack.c.bf16 %v705_v8, %v704_v7  ;;  %v706_v13 = vld [vmem:[%s22822_s21 + $0x260] sm:$0xff]  ;;  %v707_v14 = vld [vmem:[%s22822_s21 + $0x268] sm:$0xff]  ;;  %v724_v15 = vld [vmem:[%s22822_s21 + $0x2f0] sm:$0xff] }
  0x3f   : > { %14220 = vmatpush3.bf16.msra.mxu0 %v14219_v36  ;;  %v725_v16 = vld [vmem:[%s22822_s21 + $0x2f8] sm:$0xff]  ;;  %v14279_v17 = vpack.c.bf16 %v707_v14, %v706_v13  ;;  %v708_v19 = vld [vmem:[%s22822_s21 + $0x270] sm:$0xff]  ;;  %v12028_v23 = vld [vmem:[%s22824_s30] ss:$0 sm:$0xff]  ;;  %s22826_s30 = sld [smem:[#allocation16_spill]] }
  0x40   : > { %14254 = vmatprep.subr.bf16.mxu0 %v14253_v38  ;;  %v14281_v18 = vpack.c.bf16 %v725_v16, %v724_v15  ;;  %v709_v20 = vld [vmem:[%s22822_s21 + $0x278] sm:$0xff]  ;;  %v983_v41 = vld [vmem:[%s22777_s5] sm:$0xff]  ;;  %v984_v42 = vld [vmem:[%s22777_s5 + $0x8] sm:$0xff] }
  0x41   : > { %14252 = vmatpush3.bf16.msra.mxu1 %v14251_v37  ;;  %v14283_v21 = vpack.c.bf16 %v709_v20, %v708_v19  ;;  %v986_v49 = vld [vmem:[%s22777_s5 + $0x18] sm:$0xff]  ;;  %v12029_v59 = vld [vmem:[%s22825_s0] ss:$0 sm:$0xff]  ;;  %v1062_v62 = vld [vmem:[%s22778_s6 + $0x8] sm:$0xff] }
  0x42   : > { %807 = vmatmul.mubr.f32.vlgmr.msra.gmra.mrb[0].mxu0 %v627_v12  ;;  %v14277_v12 = vpack.c.bf16 %v723_v10, %v722_v9  ;;  %14285 = vmatprep.subr.bf16.mxu1 %v16264_v46  ;;  %v1061_v61 = vld [vmem:[%s22778_s6] sm:$0xff]  ;;  %v1063_v3 = vld [vmem:[%s22778_s6 + $0x10] sm:$0xff]  ;;  %v1064_v4 = vld [vmem:[%s22778_s6 + $0x18] sm:$0xff] }
  0x43   : > { %14256 = vmatpush3.bf16.msra.mxu0 %v14255_v43  ;;  %946 = vmatprep.mubr.f32.mxu0 %v738_v48  ;;  %v14286_v43 = vpack.c.bf16 %v984_v42, %v983_v41  ;;  %v985_v48 = vld [vmem:[%s22777_s5 + $0x10] sm:$0xff]  ;;  %v14292_v1 = vpack.c.bf16 %v1062_v62, %v1061_v61  ;;  %v1136_v7 = vld [vmem:[%s22779_s7 + $0x8] sm:$0xff]  ;;  %v1138_v10 = vld [vmem:[%s22779_s7 + $0x18] sm:$0xff] }
  0x44   : > { %877 = vmatmul.mubr.f32.vlgmr.msra.gmra.mrb[0].mxu1 %v628_v22  ;;  %14258 = vmatprep.subr.bf16.mxu0 %v14257_v45  ;;  %v12049_v45 = vld [vmem:[%s22779_s7 + $0x28] sm:$0xff]  ;;  %v14289_v50 = vpack.c.bf16 %v986_v49, %v985_v48  ;;  %v1137_v9 = vld [vmem:[%s22779_s7 + $0x10] sm:$0xff] }
  0x45   : > { %14287 = vmatpush3.bf16.msra.mxu1 %v14286_v43  ;;  %13731 = vmatprep.mubr.msk.f32.mxu1 %vm16265_vm1, %v16266_v54  ;;  %v12045_v42 = vld [vmem:[%s22778_s6 + $0x30] sm:$0xff]  ;;  %v12046_v43 = vld [vmem:[%s22778_s6 + $0x38] sm:$0xff]  ;;  %v12057_v62 = vld [vmem:[%s22780_s8 + $0x8] sm:$0xff] }
  0x46   : > { %14288 = vmatprep.subr.bf16.mxu1 %v16264_v46 }
  0x47   : > { %14260 = vmatpush3.bf16.msra.mxu0 %v14259_v51  ;;  %v12050_v51 = vld [vmem:[%s22779_s7 + $0x30] sm:$0xff] }
  0x48   : > { %14262 = vmatprep.subr.bf16.mxu0 %v14261_v52  ;;  %v12051_v52 = vld [vmem:[%s22779_s7 + $0x38] sm:$0xff] }
  0x49   : > { %v14319_v53 = vpack.c.bf16 %v12051_v52, %v12050_v51  ;;  %14290 = vmatpush3.bf16.msra.mxu1 %v14289_v50 }
  0x4a   : > { %14291 = vmatprep.subr.bf16.mxu1 %v16264_v46 }
  0x4b   : > { %14264 = vmatpush3.bf16.msra.mxu0 %v14263_v57 }
  0x4c   : > { %14266 = vmatprep.subr.bf16.mxu0 %v14265_v58 }
  0x4f   : > { %14268 = vmatpush3.bf16.msra.mxu0 %v14267_v63  ;;  %v12030_v63 = vld [vmem:[%s22826_s30] ss:$0 sm:$0xff] }
  0x50   : > { %14270 = vmatprep.subr.bf16.mxu0 %v14269_v0 }
  0x53   : > { %14272 = vmatpush3.bf16.msra.mxu0 %v14271_v5  ;;  %v14295_v5 = vpack.c.bf16 %v1064_v4, %v1063_v3  ;;  %v1377_v3 = vld [vmem:[%s22780_s8] sm:$0xff] }
  0x54   : > { %14274 = vmatprep.subr.bf16.mxu0 %v14273_v6  ;;  %v1135_v6 = vld [vmem:[%s22779_s7] sm:$0xff] }
  0x55   : > { %v14298_v8 = vpack.c.bf16 %v1136_v7, %v1135_v6  ;;  %v12065_v4 = vld [vmem:[%s22778_s6 + $0x40] sm:$0xff]  ;;  %v12067_v7 = vld [vmem:[%s22778_s6 + $0x50] sm:$0xff] }
  0x57   : > { %14276 = vmatpush3.bf16.msra.mxu0 %v14275_v11  ;;  %v14301_v11 = vpack.c.bf16 %v1138_v10, %v1137_v9  ;;  %v12060_v10 = vld [vmem:[%s22777_s5 + $0x40] sm:$0xff] }
  0x58   : > { %14278 = vmatprep.subr.bf16.mxu0 %v14277_v12 }
  0x5b   : > { %14280 = vmatpush3.bf16.msra.mxu0 %v14279_v17 }
  0x5c   : > { %14282 = vmatprep.subr.bf16.mxu0 %v14281_v18 }
  0x5f   : > { %14284 = vmatpush3.bf16.msra.mxu0 %v14283_v21 }
  0x60   : > { %14315 = vmatprep.subr.bf16.mxu0 %v16264_v46 }
  0x62   : > { %947 = vmatmul.mubr.f32.vlgmr.msra.gmra.mrb[2].mxu0 %v629_v44  ;;  %v12048_v44 = vld [vmem:[%s22779_s7 + $0x20] sm:$0xff] }
  0x63   : > { %v14316_v47 = vpack.c.bf16 %v12049_v45, %v12048_v44  ;;  %13796 = vmatprep.mubr.msk.f32.mxu0 %vm16265_vm1, %v16266_v54  ;;  %v14313_v44 = vpack.c.bf16 %v12046_v43, %v12045_v42 }
  0x65   : > { %14317 = vmatpush3.bf16.msra.mxu0 %v14316_v47 }
  0x66   : > { %14318 = vmatprep.subr.bf16.mxu0 %v16264_v46 }
  0x69   : > { %14320 = vmatpush3.bf16.msra.mxu0 %v14319_v53 }
  0x6a   : > { %13809 = vmatprep.subr.mxu0 %v16266_v54 }
 0x115   : > { %v12674_v22 = vpop.f32.mrb[0].mxu0 }
 0x116   : > { %v12675_v24 = vpop.f32.mrb[1].mxu0 }
 0x117   : > { %v12709_v25 = vpop.f32.mrb[0].mxu1  ;;  %v12676_v26 = vadd.f32 %v12675_v24, %v12674_v22 }
 0x118   : > { %v12710_v27 = vpop.f32.mrb[1].mxu1 }
 0x119   : > { %v12711_v28 = vadd.f32 %v12710_v27, %v12709_v25  ;;  %v809_v29 = vadd.f32 %v12676_v26, %v12028_v23 }
 0x11b   : > { %v879_v30 = vadd.f32 %v12711_v28, %v809_v29 }
 0x135   : > { %v12744_v31 = vpop.f32.mrb[2].mxu0 }
 0x136   : > { %v12745_v32 = vpop.f32.mrb[3].mxu0 }
 0x137   : > { %v12746_v33 = vadd.f32 %v12745_v32, %v12744_v31  ;;  %v12039_v31 = vld [vmem:[%s22777_s5 + $0x28] sm:$0xff] }
 0x139   : > { %v16728_v34 = vadd.f32 %v12746_v33, %v879_v30  ;;  %v12038_v30 = vld [vmem:[%s22777_s5 + $0x20] sm:$0xff] }
 0x13a   : > { %v14304_v33 = vpack.c.bf16 %v12039_v31, %v12038_v30 }
 0x13b   : > { %v953_v35 = vsel %vm952_vm0, %v16728_v34, 0.0 }
 0x13c   : > { %954 = vadd.xlane.f32.xlu0 %v953_v35 }
 0x1c9   : > { %v955_v36 = vpop.xlane.xlu0 %954 }
 0x1ca   : > { %v957_v37 = vmul.f32 0.03125, %v955_v36  ;;  %v12040_v36 = vld [vmem:[%s22777_s5 + $0x30] sm:$0xff] }
 0x1cc   : > { %v958_v38 = vsub.f32 %v16728_v34, %v957_v37  ;;  %v12041_v37 = vld [vmem:[%s22777_s5 + $0x38] sm:$0xff] }
 0x1ce   : > { %v959_v39 = vmul.f32 %v958_v38, %v958_v38 }
 0x1d0   : > { %v960_v40 = vsel %vm952_vm0, %v959_v39, 0.0  ;;  %v12043_v39 = vld [vmem:[%s22778_s6 + $0x20] sm:$0xff] }
 0x1d1   : > { %961 = vadd.xlane.f32.xlu0 %v960_v40  ;;  %v12044_v40 = vld [vmem:[%s22778_s6 + $0x28] sm:$0xff] }
 0x1d2   : > { %v14310_v41 = vpack.c.bf16 %v12044_v40, %v12043_v39 }
 0x25e   : > { %v962_v55 = vpop.xlane.xlu0 %961 }
 0x25f   : > { %v963_v56 = vmul.f32 0.03125, %v962_v55 }
 0x261   : > { %v964_v57 = vadd.f32 1e-05, %v963_v56 }
 0x263   : > { %16100 = vrsqrt.f32 %v964_v57 }
 0x26d   : > { %v16101_v58 = vpop.eup %16100 }
 0x26e   : > { %v966_v60 = vmul.f32 %v16101_v58, %v958_v38  ;;  %v14307_v38 = vpack.c.bf16 %v12041_v37, %v12040_v36 }
 0x270   : > { %v974_v0 = vmul.f32 %v12029_v59, %v966_v60 }
 0x272   : > { %v16780_v2 = vadd.f32 %v12030_v63, %v974_v0 }
 0x274   : > { %13732 = vmatmul.mubr.msk.f32.vlgmr.msra.gmra.mrb[2].mxu1 %vm987_vm2, %v16780_v2  ;;  %13797 = vmatmul.mubr.msk.f32.vlgmr.msra.gmra.mrb[4].mxu0 %vm987_vm2, %v16780_v2 }
 0x275   : > { %14293 = vmatpush3.bf16.msra.mxu1 %v14292_v1  ;;  %13742 = vmatprep.mubr.msk.f32.mxu1 %vm16265_vm1, %v16266_v54 }
 0x276   : > { %14294 = vmatprep.subr.bf16.mxu1 %v16264_v46  ;;  %13811 = vmatprep.mubr.msk.f32.mxu0 %vm16265_vm1, %v16266_v54 }
 0x277   : > { %13810 = vmatpush3.msra.mxu0 %v12057_v62 }
 0x278   : > { %14321 = vmatprep.subr.bf16.mxu0 %v16264_v46 }
 0x279   : > { %14296 = vmatpush3.bf16.msra.mxu1 %v14295_v5  ;;  %v12066_v5 = vld [vmem:[%s22778_s6 + $0x48] sm:$0xff] }
 0x27a   : > { %14297 = vmatprep.subr.bf16.mxu1 %v16264_v46  ;;  %v14328_v6 = vpack.c.bf16 %v12066_v5, %v12065_v4  ;;  %v12089_v4 = vld [vmem:[%s22778_s6 + $0x78] sm:$0xff] }
 0x27c   : > { %13743 = vmatmul.mubr.msk.f32.vlgmr.msra.gmra.mrb[4].mxu1 %vm987_vm2, %v16780_v2 }
 0x27d   : > { %14299 = vmatpush3.bf16.msra.mxu1 %v14298_v8  ;;  %13753 = vmatprep.mubr.msk.f32.mxu1 %vm16265_vm1, %v16266_v54  ;;  %v12068_v8 = vld [vmem:[%s22778_s6 + $0x58] sm:$0xff] }
 0x27e   : > { %14300 = vmatprep.subr.bf16.mxu1 %v16264_v46  ;;  %v14331_v9 = vpack.c.bf16 %v12068_v8, %v12067_v7 }
 0x281   : > { %14302 = vmatpush3.bf16.msra.mxu1 %v14301_v11  ;;  %v12061_v11 = vld [vmem:[%s22777_s5 + $0x48] sm:$0xff] }
 0x282   : > { %13756 = vmatprep.subr.mxu1 %v16266_v54 }
 0x284   : > { %13754 = vmatmul.mubr.msk.f32.vlgmr.msra.gmra.mrb[6].mxu1 %vm987_vm2, %v16780_v2 }
 0x285   : > { %13758 = vmatprep.mubr.msk.f32.mxu1 %vm16265_vm1, %v16266_v54 }
 0x347   : > { %v1057_v12 = vpop.f32.mrb[2].mxu1  ;;  %v16820_v13 = vpop.f32.mrb[4].mxu0 }
 0x348   : > { %v13733_v14 = vpop.f32.mrb[3].mxu1  ;;  %v13798_v15 = vpop.f32.mrb[5].mxu0 }
 0x349   : > { %v12063_v14 = vld [vmem:[%s22777_s5 + $0x58] sm:$0xff] }
 0x34f   : > { %v1131_v16 = vpop.f32.mrb[4].mxu1 }
 0x350   : > { %v13744_v17 = vpop.f32.mrb[5].mxu1  ;;  %13757 = vmatpush3.xpose.msk.msra.mxu1 %vm1209_vm3, %v1131_v16 }
 0x351   : > { %13761 = vmatprep.subr.mxu1 %v16266_v54 }
 0x353   : > { %13759 = vmatmul.mubr.msk.f32.vlgmr.msra.gmra.mrb[8].mxu1 %vm1209_vm3, %v1057_v12  ;;  %v14322_v12 = vpack.c.bf16 %v12061_v11, %v12060_v10 }
 0x354   : > { %13763 = vmatprep.mubr.msk.f32.mxu1 %vm16265_vm1, %v16266_v54 }
 0x357   : > { %v1205_v18 = vpop.f32.mrb[6].mxu1 }
 0x358   : > { %v13755_v19 = vpop.f32.mrb[7].mxu1  ;;  %13762 = vmatpush3.msk.msra.mxu1 %vm1303_vm4, %v1205_v18  ;;  %v12070_v18 = vld [vmem:[%s22779_s7 + $0x40] sm:$0xff] }
 0x359   : > { %14303 = vmatprep.subr.bf16.mxu1 %v16264_v46  ;;  %v12071_v19 = vld [vmem:[%s22779_s7 + $0x48] sm:$0xff] }
 0x426   : > { %v1282_v20 = vpop.f32.mrb[8].mxu1 }
 0x427   : > { %v1286_v21 = vmul.f32 0.35355338, %v1282_v20  ;;  %v13760_v22 = vpop.f32.mrb[9].mxu1 }
 0x428   : > { %v14334_v22 = vpack.c.bf16 %v12071_v19, %v12070_v18 }
 0x429   : > { %v1288_v23 = vsel %vm1287_vm5, %v1286_v21, -inf }
 0x42a   : > { %1289 = vmax.xlane.f32.xlu1 %v1288_v23  ;;  %v12072_v23 = vld [vmem:[%s22779_s7 + $0x50] sm:$0xff] }
 0x4b7   : > { %v1290_v24 = vpop.xlane.xlu1 %1289 }
 0x4b8   : > { %v1291_v25 = vsub.f32 %v1286_v21, %v1290_v24  ;;  %v12073_v24 = vld [vmem:[%s22779_s7 + $0x58] sm:$0xff] }
 0x4ba   : > { %v1292_v26 = vmul.f32 1.442695, %v1291_v25  ;;  %v14337_v25 = vpack.c.bf16 %v12073_v24, %v12072_v23 }
 0x4bc   : > { %16102 = vpow2.f32 %v1292_v26 }
 0x4c6   : > { %v16103_v27 = vpop.eup %16102 }
 0x4c7   : > { %v1294_v28 = vsel %vm1287_vm5, %v16103_v27, 0.0 }
 0x4c8   : > { %1295 = vadd.xlane.f32.xlu1 %v1294_v28 }
 0x555   : > { %v1296_v29 = vpop.xlane.xlu1 %1295 }
 0x556   : > { %16104 = vrcp.f32 %v1296_v29 }
 0x560   : > { %v16105_v32 = vpop.eup %16104 }
 0x561   : > { %v1298_v35 = vmul.f32 %v16105_v32, %v16103_v27 }
 0x563   : > { %13764 = vmatmul.mubr.msk.f32.vlgmr.msra.gmra.mrb[10].mxu1 %vm1299_vm6, %v1298_v35 }
 0x564   : > { %14305 = vmatpush3.bf16.msra.mxu1 %v14304_v33  ;;  %13774 = vmatprep.mubr.msk.f32.mxu1 %vm16265_vm1, %v16266_v54 }
 0x565   : > { %14306 = vmatprep.subr.bf16.mxu1 %v16264_v46 }
 0x568   : > { %14308 = vmatpush3.bf16.msra.mxu1 %v14307_v38 }
 0x569   : > { %14309 = vmatprep.subr.bf16.mxu1 %v16264_v46 }
 0x56b   : > { %13775 = vmatmul.mubr.msk.f32.vlgmr.msra.gmra.mrb[12].mxu1 %vm987_vm2, %v16780_v2 }
 0x56c   : > { %14311 = vmatpush3.bf16.msra.mxu1 %v14310_v41  ;;  %13785 = vmatprep.mubr.msk.f32.mxu1 %vm16265_vm1, %v16266_v54 }
 0x56d   : > { %14312 = vmatprep.subr.bf16.mxu1 %v16264_v46 }
 0x570   : > { %14314 = vmatpush3.bf16.msra.mxu1 %v14313_v44 }
 0x571   : > { %13799 = vmatprep.subr.mxu1 %v16266_v54 }
 0x573   : > { %13786 = vmatmul.mubr.msk.f32.vlgmr.msra.gmra.mrb[14].mxu1 %vm987_vm2, %v16780_v2 }
 0x574   : > { %13801 = vmatprep.mubr.msk.f32.mxu1 %vm16265_vm1, %v16266_v54 }
 0x636   : > { %v1373_v45 = vpop.f32.mrb[10].mxu1 }
 0x637   : > { %v13765_v47 = vpop.f32.mrb[11].mxu1 }
 0x63e   : > { %v1449_v48 = vpop.f32.mrb[12].mxu1 }
 0x63f   : > { %v13776_v49 = vpop.f32.mrb[13].mxu1 }
 0x640   : > { %v12082_v49 = vld [vmem:[%s22777_s5 + $0x68] sm:$0xff] }
 0x646   : > { %v1524_v50 = vpop.f32.mrb[14].mxu1 }
 0x647   : > { %v13787_v51 = vpop.f32.mrb[15].mxu1  ;;  %13800 = vmatpush3.xpose.msk.msra.mxu1 %vm1209_vm3, %v1524_v50 }
 0x648   : > { %13804 = vmatprep.subr.mxu1 %v16266_v54 }
 0x64a   : > { %13802 = vmatmul.mubr.msk.f32.vlgmr.msra.gmra.mrb[16].mxu1 %vm1209_vm3, %v1449_v48  ;;  %v12081_v48 = vld [vmem:[%s22777_s5 + $0x60] sm:$0xff] }
 0x64b   : > { %13805 = vmatpush3.msk.msra.mxu1 %vm1303_vm4, %v16820_v13  ;;  %13806 = vmatprep.mubr.msk.f32.mxu1 %vm16265_vm1, %v16266_v54  ;;  %v12062_v13 = vld [vmem:[%s22777_s5 + $0x50] sm:$0xff]  ;;  %v14340_v51 = vpack.c.bf16 %v12082_v49, %v12081_v48  ;;  %v2905_v49 = vld [vmem:[%s22782_s10 + $0x198] sm:$0xff] }
 0x64c   : > { %13814 = vmatprep.subr.mxu1 %v16266_v54  ;;  %v14325_v17 = vpack.c.bf16 %v12063_v14, %v12062_v13 }
 0x71d   : > { %v1675_v52 = vpop.f32.mrb[16].mxu1 }
 0x71e   : > { %v1679_v53 = vmul.f32 0.35355338, %v1675_v52  ;;  %v13803_v55 = vpop.f32.mrb[17].mxu1 }
 0x71f   : > { %v12084_v55 = vld [vmem:[%s22777_s5 + $0x78] sm:$0xff] }
 0x720   : > { %v1680_v56 = vsel %vm1287_vm5, %v1679_v53, -inf }
 0x721   : > { %1681 = vmax.xlane.f32.xlu0 %v1680_v56 }
 0x7ae   : > { %v1682_v57 = vpop.xlane.xlu0 %1681 }
 0x7af   : > { %v1683_v58 = vsub.f32 %v1679_v53, %v1682_v57  ;;  %v12083_v53 = vld [vmem:[%s22777_s5 + $0x70] sm:$0xff]  ;;  %v12091_v57 = vld [vmem:[%s22779_s7 + $0x60] sm:$0xff] }
 0x7b0   : > { %v14343_v56 = vpack.c.bf16 %v12084_v55, %v12083_v53  ;;  %v2888_v55 = vld [vmem:[%s22782_s10 + $0x110] sm:$0xff] }
 0x7b1   : > { %v1684_v59 = vmul.f32 1.442695, %v1683_v58  ;;  %v12092_v58 = vld [vmem:[%s22779_s7 + $0x68] sm:$0xff] }
 0x7b3   : > { %16106 = vpow2.f32 %v1684_v59  ;;  %v14352_v59 = vpack.c.bf16 %v12092_v58, %v12091_v57  ;;  %v2859_v58 = vld [vmem:[%s22782_s10 + $0x28] sm:$0xff] }
 0x7bd   : > { %v16107_v60 = vpop.eup %16106 }
 0x7be   : > { %v1686_v61 = vsel %vm1287_vm5, %v16107_v60, 0.0 }
 0x7bf   : > { %1687 = vadd.xlane.f32.xlu1 %v1686_v61  ;;  %v12094_v61 = vld [vmem:[%s22779_s7 + $0x78] sm:$0xff] }
 0x84c   : > { %v1688_v63 = vpop.xlane.xlu1 %1687 }
 0x84d   : > { %16108 = vrcp.f32 %v1688_v63  ;;  %v12086_v63 = vld [vmem:[%s22778_s6 + $0x60] sm:$0xff] }
 0x857   : > { %v16109_v0 = vpop.eup %16108 }
 0x858   : > { %v1690_v1 = vmul.f32 %v16109_v0, %v16107_v60  ;;  %v12093_v60 = vld [vmem:[%s22779_s7 + $0x70] sm:$0xff]  ;;  %v12087_v0 = vld [vmem:[%s22778_s6 + $0x68] sm:$0xff] }
 0x859   : > { %v14355_v62 = vpack.c.bf16 %v12094_v61, %v12093_v60  ;;  %v2861_v61 = vld [vmem:[%s22782_s10 + $0x38] sm:$0xff] }
 0x85a   : > { %13807 = vmatmul.mubr.msk.f32.vlgmr.msra.gmra.mrb[18].mxu1 %vm1299_vm6, %v1690_v1  ;;  %v14346_v1 = vpack.c.bf16 %v12087_v0, %v12086_v63 }
 0x85b   : > { %13815 = vmatpush3.msra.mxu1 %v1377_v3  ;;  %13816 = vmatprep.mubr.msk.f32.mxu1 %vm16265_vm1, %v16266_v54  ;;  %v12088_v3 = vld [vmem:[%s22778_s6 + $0x70] sm:$0xff] }
 0x85c   : > { %14327 = vmatprep.subr.bf16.mxu1 %v16264_v46  ;;  %v14349_v7 = vpack.c.bf16 %v12089_v4, %v12088_v3  ;;  %v2858_v3 = vld [vmem:[%s22782_s10 + $0x20] sm:$0xff] }
 0x85d   : > { %v2874_v4 = vld [vmem:[%s22782_s10 + $0xa0] sm:$0xff] }
 0x85e   : > { %13817 = vmatmul.mubr.msk.f32.vlgmr.msra.gmra.mrb[20].mxu1 %vm1209_vm3, %v1373_v45  ;;  %v12079_v45 = vld [vmem:[%s22780_s8 + $0x10] sm:$0xff] }
 0x85f   : > { %14329 = vmatpush3.bf16.msra.mxu1 %v14328_v6  ;;  %13838 = vmatprep.mubr.msk.f32.mxu1 %vm16265_vm1, %v16266_v54 }
 0x860   : > { %14330 = vmatprep.subr.bf16.mxu1 %v16264_v46 }
 0x863   : > { %14332 = vmatpush3.bf16.msra.mxu1 %v14331_v9 }
 0x864   : > { %13852 = vmatprep.subr.mxu1 %v16266_v54 }
 0x866   : > { %13839 = vmatmul.mubr.msk.f32.vlgmr.msra.gmra.mrb[22].mxu1 %vm987_vm2, %v16780_v2 }
 0x867   : > { %13854 = vmatprep.mubr.msk.f32.mxu1 %vm16265_vm1, %v16266_v54 }
 0x92d   : > { %v1763_v15 = vpop.f32.mrb[18].mxu1 }
 0x92e   : > { %v13808_v16 = vpop.f32.mrb[19].mxu1  ;;  %13812 = vmatmul.mubr.msk.f32.vlgmr.msra.gmra.mrb[6].mxu0 %vm1209_vm3, %v1763_v15 }
 0x92f   : > { %14323 = vmatpush3.bf16.msra.mxu0 %v14322_v12  ;;  %13827 = vmatprep.mubr.msk.f32.mxu0 %vm16265_vm1, %v16266_v54 }
 0x930   : > { %14324 = vmatprep.subr.bf16.mxu0 %v16264_v46 }
 0x931   : > { %v1911_v20 = vpop.f32.mrb[20].mxu1 }
 0x932   : > { %v13818_v21 = vpop.f32.mrb[21].mxu1 }
 0x933   : > { %14326 = vmatpush3.bf16.msra.mxu0 %v14325_v17 }
 0x934   : > { %14333 = vmatprep.subr.bf16.mxu0 %v16264_v46 }
 0x936   : > { %13828 = vmatmul.mubr.msk.f32.vlgmr.msra.gmra.mrb[8].mxu0 %vm987_vm2, %v16780_v2 }
 0x937   : > { %14335 = vmatpush3.bf16.msra.mxu0 %v14334_v22  ;;  %13849 = vmatprep.mubr.msk.f32.mxu0 %vm16265_vm1, %v16266_v54 }
 0x938   : > { %14336 = vmatprep.subr.bf16.mxu0 %v16264_v46 }
 0x939   : > { %v2061_v26 = vpop.f32.mrb[22].mxu1 }
 0x93a   : > { %v13840_v27 = vpop.f32.mrb[23].mxu1  ;;  %13853 = vmatpush3.xpose.msk.msra.mxu1 %vm1209_vm3, %v2061_v26 }
 0x93b   : > { %14338 = vmatpush3.bf16.msra.mxu0 %v14337_v25  ;;  %13857 = vmatprep.subr.mxu1 %v16266_v54  ;;  %v12100_v25 = vld [vmem:[%s22780_s8 + $0x18] sm:$0xff] }
 0x93c   : > { %13862 = vmatprep.subr.mxu0 %v16266_v54 }
 0x93e   : > { %13850 = vmatmul.mubr.msk.f32.vlgmr.msra.gmra.mrb[10].mxu0 %vm987_vm2, %v16780_v2 }
 0x93f   : > { %13864 = vmatprep.mubr.msk.f32.mxu0 %vm16265_vm1, %v16266_v54  ;;  %13863 = vmatpush3.msra.mxu0 %v12079_v45  ;;  %v2903_v45 = vld [vmem:[%s22782_s10 + $0x188] sm:$0xff] }
 0x940   : > { %14345 = vmatprep.subr.bf16.mxu0 %v16264_v46 }
 0xa01   : > { %v1838_v28 = vpop.f32.mrb[6].mxu0 }
 0xa02   : > { %v16953_v29 = vadd.f32 %v1911_v20, %v1838_v28  ;;  %v13813_v30 = vpop.f32.mrb[7].mxu0 }
 0xa03   : > { %v2871_v30 = vld [vmem:[%s22782_s10 + $0x88] sm:$0xff] }
 0xa09   : > { %v1986_v31 = vpop.f32.mrb[8].mxu0 }
 0xa0a   : > { %v13829_v32 = vpop.f32.mrb[9].mxu0  ;;  %13855 = vmatmul.mubr.msk.f32.vlgmr.msra.gmra.mrb[24].mxu1 %vm1209_vm3, %v1986_v31  ;;  %v2857_v31 = vld [vmem:[%s22782_s10 + $0x18] sm:$0xff] }
 0xa0b   : > { %13859 = vmatprep.mubr.msk.f32.mxu1 %vm16265_vm1, %v16266_v54 }
 0xa11   : > { %v2136_v33 = vpop.f32.mrb[10].mxu0 }
 0xa12   : > { %v13851_v35 = vpop.f32.mrb[11].mxu0  ;;  %13858 = vmatpush3.msk.msra.mxu1 %vm1303_vm4, %v2136_v33  ;;  %v2873_v33 = vld [vmem:[%s22782_s10 + $0x98] sm:$0xff] }
 0xa13   : > { %14339 = vmatprep.subr.bf16.mxu1 %v16264_v46  ;;  %v2854_v35 = vld [vmem:[%s22782_s10] sm:$0xff] }
 0xadd   : > { %v2212_v36 = vpop.f32.mrb[24].mxu1 }
 0xade   : > { %v2216_v37 = vmul.f32 0.35355338, %v2212_v36  ;;  %v13856_v38 = vpop.f32.mrb[25].mxu1  ;;  %v2870_v36 = vld [vmem:[%s22782_s10 + $0x80] sm:$0xff] }
 0xadf   : > { %v14359_v38 = vpack.c.bf16 %v2870_v36, %v2854_v35  ;;  %v2911_v35 = vld [vmem:[%s22782_s10 + $0x1c8] sm:$0xff]  ;;  %v2897_v36 = vld [vmem:[%s22782_s10 + $0x158] sm:$0xff] }
 0xae0   : > { %v2217_v39 = vsel %vm1287_vm5, %v2216_v37, -inf }
 0xae1   : > { %2218 = vmax.xlane.f32.xlu0 %v2217_v39  ;;  %v2856_v39 = vld [vmem:[%s22782_s10 + $0x10] sm:$0xff] }
 0xb6e   : > { %v2219_v40 = vpop.xlane.xlu0 %2218 }
 0xb6f   : > { %v2220_v41 = vsub.f32 %v2216_v37, %v2219_v40  ;;  %v14365_v37 = vpack.c.bf16 %v2873_v33, %v2857_v31  ;;  %v2872_v40 = vld [vmem:[%s22782_s10 + $0x90] sm:$0xff]  ;;  %v2895_v33 = vld [vmem:[%s22782_s10 + $0x148] sm:$0xff] }
 0xb70   : > { %v2864_v31 = vld [vmem:[%s22782_s10 + $0x50] sm:$0xff] }
 0xb71   : > { %v2221_v42 = vmul.f32 1.442695, %v2220_v41  ;;  %v14367_v41 = vpack.c.bf16 %v2872_v40, %v2856_v39  ;;  %v2894_v40 = vld [vmem:[%s22782_s10 + $0x140] sm:$0xff] }
 0xb73   : > { %16110 = vpow2.f32 %v2221_v42 }
 0xb7d   : > { %v16111_v43 = vpop.eup %16110 }
 0xb7e   : > { %v2223_v44 = vsel %vm1287_vm5, %v16111_v43, 0.0 }
 0xb7f   : > { %2224 = vadd.xlane.f32.xlu1 %v2223_v44  ;;  %v2887_v44 = vld [vmem:[%s22782_s10 + $0x108] sm:$0xff] }
 0xb80   : > { %v14361_v48 = vpack.c.bf16 %v2903_v45, %v2887_v44  ;;  %v2896_v44 = vld [vmem:[%s22782_s10 + $0x150] sm:$0xff] }
 0xb81   : > { %v2912_v45 = vld [vmem:[%s22782_s10 + $0x1d0] sm:$0xff] }
 0xc0c   : > { %v2225_v47 = vpop.xlane.xlu1 %2224 }
 0xc0d   : > { %16112 = vrcp.f32 %v2225_v47  ;;  %v2889_v47 = vld [vmem:[%s22782_s10 + $0x118] sm:$0xff] }
 0xc17   : > { %v16113_v50 = vpop.eup %16112 }
 0xc18   : > { %v2227_v52 = vmul.f32 %v16113_v50, %v16111_v43  ;;  %v2886_v50 = vld [vmem:[%s22782_s10 + $0x100] sm:$0xff] }
 0xc1a   : > { %13860 = vmatmul.mubr.msk.f32.vlgmr.msra.gmra.mrb[26].mxu1 %vm1299_vm6, %v2227_v52  ;;  %v14369_v52 = vpack.c.bf16 %v2905_v49, %v2889_v47  ;;  %v2867_v47 = vld [vmem:[%s22782_s10 + $0x68] sm:$0xff]  ;;  %v2869_v49 = vld [vmem:[%s22782_s10 + $0x78] sm:$0xff] }
 0xc1b   : > { %14341 = vmatpush3.bf16.msra.mxu1 %v14340_v51  ;;  %13875 = vmatprep.mubr.msk.f32.mxu1 %vm16265_vm1, %v16266_v54  ;;  %v2902_v51 = vld [vmem:[%s22782_s10 + $0x180] sm:$0xff] }
 0xc1c   : > { %14342 = vmatprep.subr.bf16.mxu1 %v16264_v46  ;;  %v14363_v53 = vpack.c.bf16 %v2902_v51, %v2886_v50  ;;  %v2885_v50 = vld [vmem:[%s22782_s10 + $0xf8] sm:$0xff] }
 0xc1f   : > { %14344 = vmatpush3.bf16.msra.mxu1 %v14343_v56  ;;  %v2904_v56 = vld [vmem:[%s22782_s10 + $0x190] sm:$0xff] }
 0xc20   : > { %14351 = vmatprep.subr.bf16.mxu1 %v16264_v46  ;;  %v14371_v57 = vpack.c.bf16 %v2904_v56, %v2888_v55  ;;  %v2882_v55 = vld [vmem:[%s22782_s10 + $0xe0] sm:$0xff] }
 0xc22   : > { %13876 = vmatmul.mubr.msk.f32.vlgmr.msra.gmra.mrb[28].mxu1 %vm987_vm2, %v16780_v2 }
 0xc23   : > { %14353 = vmatpush3.bf16.msra.mxu1 %v14352_v59  ;;  %13897 = vmatprep.mubr.msk.f32.mxu1 %vm16265_vm1, %v16266_v54  ;;  %v2875_v59 = vld [vmem:[%s22782_s10 + $0xa8] sm:$0xff] }
 0xc24   : > { %14354 = vmatprep.subr.bf16.mxu1 %v16264_v46  ;;  %v14373_v60 = vpack.c.bf16 %v2875_v59, %v2859_v58  ;;  %v2868_v58 = vld [vmem:[%s22782_s10 + $0x70] sm:$0xff] }
 0xc25   : > { %v2884_v59 = vld [vmem:[%s22782_s10 + $0xf0] sm:$0xff] }
 0xc27   : > { %14356 = vmatpush3.bf16.msra.mxu1 %v14355_v62  ;;  %v2877_v62 = vld [vmem:[%s22782_s10 + $0xb8] sm:$0xff] }
 0xc28   : > { %13910 = vmatprep.subr.mxu1 %v16266_v54  ;;  %v14381_v63 = vpack.c.bf16 %v2877_v62, %v2861_v61  ;;  %v2915_v61 = vld [vmem:[%s22782_s10 + $0x1e8] sm:$0xff]  ;;  %v2901_v62 = vld [vmem:[%s22782_s10 + $0x178] sm:$0xff] }
 0xc2a   : > { %13898 = vmatmul.mubr.msk.f32.vlgmr.msra.gmra.mrb[30].mxu1 %vm987_vm2, %v16780_v2 }
 0xc2b   : > { %13912 = vmatprep.mubr.msk.f32.mxu1 %vm16265_vm1, %v16266_v54  ;;  %13911 = vmatpush3.msra.mxu1 %v12100_v25 }
 0xc2c   : > { %14366 = vmatprep.subr.bf16.mxu1 %v14365_v37  ;;  %v2913_v37 = vld [vmem:[%s22782_s10 + $0x1d8] sm:$0xff] }
 0xced   : > { %v2300_v5 = vpop.f32.mrb[26].mxu1 }
 0xcee   : > { %v13861_v6 = vpop.f32.mrb[27].mxu1  ;;  %13865 = vmatmul.mubr.msk.f32.vlgmr.msra.gmra.mrb[12].mxu0 %vm1209_vm3, %v2300_v5 }
 0xcef   : > { %14347 = vmatpush3.bf16.msra.mxu0 %v14346_v1  ;;  %13886 = vmatprep.mubr.msk.f32.mxu0 %vm16265_vm1, %v16266_v54  ;;  %v12102_v1 = vld [vmem:[%s22781_s9] ss:$0 sm:$0xff] }
 0xcf0   : > { %14348 = vmatprep.subr.bf16.mxu0 %v16264_v46 }
 0xcf3   : > { %14350 = vmatpush3.bf16.msra.mxu0 %v14349_v7  ;;  %v2860_v7 = vld [vmem:[%s22782_s10 + $0x30] sm:$0xff] }
 0xcf4   : > { %13900 = vmatprep.subr.mxu0 %v16266_v54 }
 0xcf5   : > { %v2451_v8 = vpop.f32.mrb[28].mxu1 }
 0xcf6   : > { %v13877_v9 = vpop.f32.mrb[29].mxu1  ;;  %13887 = vmatmul.mubr.msk.f32.vlgmr.msra.gmra.mrb[14].mxu0 %vm987_vm2, %v16780_v2 }
 0xcf7   : > { %13902 = vmatprep.mubr.msk.f32.mxu0 %vm16265_vm1, %v16266_v54  ;;  %v2891_v9 = vld [vmem:[%s22782_s10 + $0x128] sm:$0xff] }
 0xcfd   : > { %v2601_v10 = vpop.f32.mrb[30].mxu1 }
 0xcfe   : > { %v13899_v11 = vpop.f32.mrb[31].mxu1 }
 0xcff   : > { %v2893_v11 = vld [vmem:[%s22782_s10 + $0x138] sm:$0xff] }
 0xdc1   : > { %v2375_v12 = vpop.f32.mrb[12].mxu0 }
 0xdc2   : > { %v17027_v13 = vadd.f32 %v2375_v12, %v16953_v29  ;;  %v13866_v14 = vpop.f32.mrb[13].mxu0  ;;  %v2855_v29 = vld [vmem:[%s22782_s10 + $0x8] sm:$0xff]  ;;  %v2909_v12 = vld [vmem:[%s22782_s10 + $0x1b8] sm:$0xff] }
 0xdc3   : > { %v14357_v32 = vpack.c.bf16 %v2871_v30, %v2855_v29  ;;  %v14375_v14 = vpack.c.bf16 %v2874_v4, %v2858_v3  ;;  %v2898_v3 = vld [vmem:[%s22782_s10 + $0x160] sm:$0xff] }
 0xdc4   : > { %v2914_v4 = vld [vmem:[%s22782_s10 + $0x1e0] sm:$0xff] }
 0xdc9   : > { %v2526_v15 = vpop.f32.mrb[14].mxu0 }
 0xdca   : > { %v13888_v16 = vpop.f32.mrb[15].mxu0  ;;  %13901 = vmatpush3.xpose.msk.msra.mxu0 %vm1209_vm3, %v2526_v15 }
 0xdcb   : > { %13905 = vmatprep.subr.mxu0 %v16266_v54  ;;  %v2890_v16 = vld [vmem:[%s22782_s10 + $0x120] sm:$0xff] }
 0xdcd   : > { %13903 = vmatmul.mubr.msk.f32.vlgmr.msra.gmra.mrb[16].mxu0 %vm1209_vm3, %v2451_v8  ;;  %v2876_v8 = vld [vmem:[%s22782_s10 + $0xb0] sm:$0xff] }
 0xdce   : > { %13906 = vmatpush3.msk.msra.mxu0 %vm1303_vm4, %v2601_v10  ;;  %13907 = vmatprep.mubr.msk.f32.mxu0 %vm16265_vm1, %v16266_v54  ;;  %v2907_v10 = vld [vmem:[%s22782_s10 + $0x1a8] sm:$0xff]  ;;  %v14383_v15 = vpack.c.bf16 %v2876_v8, %v2860_v7  ;;  %v2900_v7 = vld [vmem:[%s22782_s10 + $0x170] sm:$0xff] }
 0xdcf   : > { %14358 = vmatprep.subr.bf16.mxu0 %v14357_v32  ;;  %v2880_v32 = vld [vmem:[%s22782_s10 + $0xd0] sm:$0xff] }
 0xdd0   : > { %v14399_v39 = vpack.c.bf16 %v2880_v32, %v2864_v31  ;;  %v2916_v8 = vld [vmem:[%s22782_s10 + $0x1f0] sm:$0xff]  ;;  %v3752_v32 = vld [vmem:[%s22784_s12 + $0x118] sm:$0xff] }
 0xdd1   : > { %v3751_v31 = vld [vmem:[%s22784_s12 + $0x110] sm:$0xff] }
 0xea0   : > { %v2677_v2 = vpop.f32.mrb[16].mxu0 }
 0xea1   : > { %v2681_v17 = vmul.f32 0.35355338, %v2677_v2  ;;  %v13904_v18 = vpop.f32.mrb[17].mxu0  ;;  %v2906_v2 = vld [vmem:[%s22782_s10 + $0x1a0] sm:$0xff] }
 0xea2   : > { %v14377_v18 = vpack.c.bf16 %v2907_v10, %v2891_v9  ;;  %v14379_v25 = vpack.c.bf16 %v2906_v2, %v2890_v16  ;;  %v3733_v9 = vld [vmem:[%s22784_s12 + $0x80] sm:$0xff]  ;;  %v3734_v10 = vld [vmem:[%s22784_s12 + $0x88] sm:$0xff] }
 0xea3   : > { %v2682_v19 = vsel %vm1287_vm5, %v2681_v17, -inf  ;;  %v14421_v16 = vpack.c.bf16 %v3734_v10, %v3733_v9  ;;  %v3743_v10 = vld [vmem:[%s22784_s12 + $0xd0] sm:$0xff] }
 0xea4   : > { %2683 = vmax.xlane.f32.xlu0 %v2682_v19  ;;  %v14385_v19 = vpack.c.bf16 %v2909_v12, %v2893_v11  ;;  %v3765_v11 = vld [vmem:[%s22784_s12 + $0x180] sm:$0xff]  ;;  %v3766_v12 = vld [vmem:[%s22784_s12 + $0x188] sm:$0xff] }
 0xea5   : > { %v14453_v2 = vpack.c.bf16 %v3766_v12, %v3765_v11  ;;  %v3744_v11 = vld [vmem:[%s22784_s12 + $0xd8] sm:$0xff]  ;;  %v3775_v12 = vld [vmem:[%s22784_s12 + $0x1d0] sm:$0xff] }
 0xf31   : > { %v2684_v20 = vpop.xlane.xlu0 %2683 }
 0xf32   : > { %v2685_v21 = vsub.f32 %v2681_v17, %v2684_v20  ;;  %v2892_v20 = vld [vmem:[%s22782_s10 + $0x130] sm:$0xff] }
 0xf34   : > { %v2686_v22 = vmul.f32 1.442695, %v2685_v21  ;;  %v2863_v21 = vld [vmem:[%s22782_s10 + $0x48] sm:$0xff] }
 0xf36   : > { %16114 = vpow2.f32 %v2686_v22  ;;  %v2879_v22 = vld [vmem:[%s22782_s10 + $0xc8] sm:$0xff] }
 0xf37   : > { %v14389_v29 = vpack.c.bf16 %v2879_v22, %v2863_v21  ;;  %v3735_v22 = vld [vmem:[%s22784_s12 + $0x90] sm:$0xff] }
 0xf40   : > { %v16115_v23 = vpop.eup %16114 }
 0xf41   : > { %v2688_v24 = vsel %vm1287_vm5, %v16115_v23, 0.0 }
 0xf42   : > { %2689 = vadd.xlane.f32.xlu1 %v2688_v24  ;;  %v2881_v24 = vld [vmem:[%s22782_s10 + $0xd8] sm:$0xff] }
 0xfcf   : > { %v2690_v26 = vpop.xlane.xlu1 %2689 }
 0xfd0   : > { %16116 = vrcp.f32 %v2690_v26 }
 0xfda   : > { %v16117_v27 = vpop.eup %16116 }
 0xfdb   : > { %v2692_v28 = vmul.f32 %v16117_v27, %v16115_v23  ;;  %v2865_v23 = vld [vmem:[%s22782_s10 + $0x58] sm:$0xff]  ;;  %v2862_v27 = vld [vmem:[%s22782_s10 + $0x40] sm:$0xff] }
 0xfdc   : > { %v14397_v30 = vpack.c.bf16 %v2881_v24, %v2865_v23  ;;  %v3736_v23 = vld [vmem:[%s22784_s12 + $0x98] sm:$0xff]  ;;  %v3767_v24 = vld [vmem:[%s22784_s12 + $0x190] sm:$0xff] }
 0xfdd   : > { %13908 = vmatmul.mubr.msk.f32.vlgmr.msra.gmra.mrb[18].mxu0 %vm1299_vm6, %v2692_v28  ;;  %v2878_v28 = vld [vmem:[%s22782_s10 + $0xc0] sm:$0xff] }
 0xfde   : > { %3069 = vmatprep.mubr.f32.mxu0 %v16266_v54  ;;  %14360 = vmatpush1.bf16.msra.mxu0 %v14359_v38  ;;  %v14391_v38 = vpack.c.bf16 %v2878_v28, %v2862_v27  ;;  %v3719_v27 = vld [vmem:[%s22784_s12 + $0x10] sm:$0xff]  ;;  %v3720_v28 = vld [vmem:[%s22784_s12 + $0x18] sm:$0xff] }
 0xfdf   : > { %14362 = vmatprep.subr.bf16.mxu0 %v14361_v48  ;;  %v2883_v48 = vld [vmem:[%s22782_s10 + $0xe8] sm:$0xff] }
 0xfe0   : > { %v14405_v56 = vpack.c.bf16 %v2883_v48, %v2867_v47  ;;  %v3739_v48 = vld [vmem:[%s22784_s12 + $0xb0] sm:$0xff] }
 0xfe2   : > { %14364 = vmatpush1.bf16.msra.mxu0 %v14363_v53  ;;  %v2866_v53 = vld [vmem:[%s22782_s10 + $0x60] sm:$0xff] }
 0xfe3   : > { %14374 = vmatprep.subr.bf16.mxu0 %v14373_v60  ;;  %v2899_v60 = vld [vmem:[%s22782_s10 + $0x168] sm:$0xff] }
0x10b0   : > { %v2765_v42 = vpop.f32.mrb[18].mxu0 }
0x10b1   : > { %v13909_v43 = vpop.f32.mrb[19].mxu0  ;;  %13913 = vmatmul.mubr.msk.f32.vlgmr.msra.gmra.mrb[32].mxu1 %vm1209_vm3, %v2765_v42  ;;  %v14393_v42 = vpack.c.bf16 %v2911_v35, %v2895_v33  ;;  %v14459_v33 = vpack.c.bf16 %v3752_v32, %v3751_v31  ;;  %v3737_v35 = vld [vmem:[%s22784_s12 + $0xa0] sm:$0xff]  ;;  %v3762_v31 = vld [vmem:[%s22784_s12 + $0x168] sm:$0xff] }
0x10b2   : > { %14368 = vmatpush1.bf16.msra.mxu1 %v14367_v41  ;;  %3140 = vmatprep.mubr.f32.mxu1 %v16266_v54  ;;  %v2910_v41 = vld [vmem:[%s22782_s10 + $0x1c0] sm:$0xff]  ;;  %v14401_v43 = vpack.c.bf16 %v2913_v37, %v2897_v36  ;;  %v3738_v36 = vld [vmem:[%s22784_s12 + $0xa8] sm:$0xff] }
0x10b3   : > { %14370 = vmatprep.subr.bf16.mxu1 %v14369_v52  ;;  %v14395_v51 = vpack.c.bf16 %v2910_v41, %v2894_v40  ;;  %v14403_v52 = vpack.c.bf16 %v2912_v45, %v2896_v44  ;;  %v3769_v37 = vld [vmem:[%s22784_s12 + $0x1a0] sm:$0xff]  ;;  %v3722_v41 = vld [vmem:[%s22784_s12 + $0x28] sm:$0xff] }
0x10b4   : > { %v3721_v40 = vld [vmem:[%s22784_s12 + $0x20] sm:$0xff]  ;;  %v3754_v45 = vld [vmem:[%s22784_s12 + $0x128] sm:$0xff] }
0x10b5   : > { %v3753_v44 = vld [vmem:[%s22784_s12 + $0x120] sm:$0xff] }
0x10b6   : > { %14372 = vmatpush1.bf16.msra.mxu1 %v14371_v57  ;;  %v14413_v57 = vpack.c.bf16 %v2885_v50, %v2869_v49  ;;  %v14463_v47 = vpack.c.bf16 %v3754_v45, %v3753_v44  ;;  %v3740_v49 = vld [vmem:[%s22784_s12 + $0xb8] sm:$0xff]  ;;  %v3771_v50 = vld [vmem:[%s22784_s12 + $0x1b0] sm:$0xff] }
0x10b7   : > { %14382 = vmatprep.subr.bf16.mxu1 %v14381_v63  ;;  %v2917_v63 = vld [vmem:[%s22782_s10 + $0x1f8] sm:$0xff] }
0x10b8   : > { %v3764_v44 = vld [vmem:[%s22784_s12 + $0x178] sm:$0xff] }
0x1184   : > { %v2840_v0 = vpop.f32.mrb[32].mxu1 }
0x1185   : > { %v2844_v5 = vadd.f32 %v2840_v0, %v17027_v13  ;;  %v13914_v6 = vpop.f32.mrb[33].mxu1  ;;  %v14407_v0 = vpack.c.bf16 %v2882_v55, %v2866_v53  ;;  %v3723_v53 = vld [vmem:[%s22784_s12 + $0x30] sm:$0xff]  ;;  %v3724_v55 = vld [vmem:[%s22784_s12 + $0x38] sm:$0xff] }
0x1186   : > { %v14417_v6 = vpack.c.bf16 %v2917_v63, %v2901_v62  ;;  %v3742_v62 = vld [vmem:[%s22784_s12 + $0xc8] sm:$0xff]  ;;  %v3773_v63 = vld [vmem:[%s22784_s12 + $0x1c0] sm:$0xff] }
0x1187   : > { %v2845_v13 = vadd.f32 %v2844_v5, %v16728_v34  ;;  %v2908_v34 = vld [vmem:[%s22782_s10 + $0x1b0] sm:$0xff]  ;;  %v14409_v5 = vpack.c.bf16 %v2915_v61, %v2899_v60  ;;  %v3741_v61 = vld [vmem:[%s22784_s12 + $0xc0] sm:$0xff] }
0x1188   : > { %v14387_v26 = vpack.c.bf16 %v2908_v34, %v2892_v20  ;;  %v3750_v20 = vld [vmem:[%s22784_s12 + $0x108] sm:$0xff] }
0x1189   : > { %v17139_v17 = vadd.f32 %v12102_v1, %v2845_v13  ;;  %v14415_v1 = vpack.c.bf16 %v2884_v59, %v2868_v58  ;;  %v14411_v13 = vpack.c.bf16 %v2914_v4, %v2898_v3  ;;  %v3755_v58 = vld [vmem:[%s22784_s12 + $0x130] sm:$0xff]  ;;  %v3756_v59 = vld [vmem:[%s22784_s12 + $0x138] sm:$0xff]  ;;  %v3725_v3 = vld [vmem:[%s22784_s12 + $0x40] sm:$0xff] }
0x118a   : > { %v14467_v60 = vpack.c.bf16 %v3756_v59, %v3755_v58  ;;  %v3726_v4 = vld [vmem:[%s22784_s12 + $0x48] sm:$0xff]  ;;  %v17480_v58 = vld [vmem:[%s22783_s11] sm:$0xff] }
0x118b   : > { %12103 = vmatmul.mubr.msk.f32.vlgmr.msra.gmra.mrb[20].mxu0 %vm987_vm2, %v17139_v17  ;;  %12104 = vmatmul.mubr.msk.f32.vlgmr.msra.gmra.mrb[34].mxu1 %vm987_vm2, %v17139_v17 }
0x118c   : > { %14376 = vmatpush1.bf16.msra.mxu0 %v14375_v14  ;;  %14384 = vmatpush1.bf16.msra.mxu1 %v14383_v15  ;;  %v14419_v14 = vpack.c.bf16 %v2916_v8, %v2900_v7  ;;  %v3717_v15 = vld [vmem:[%s22784_s12] sm:$0xff]  ;;  %v3758_v8 = vld [vmem:[%s22784_s12 + $0x148] sm:$0xff] }
0x118d   : > { %14378 = vmatprep.subr.bf16.mxu0 %v14377_v18  ;;  %14386 = vmatprep.subr.bf16.mxu1 %v14385_v19  ;;  %v3718_v18 = vld [vmem:[%s22784_s12 + $0x8] sm:$0xff]  ;;  %v3749_v19 = vld [vmem:[%s22784_s12 + $0x100] sm:$0xff] }
0x118e   : > { %3211 = vmatprep.mubr.f32.mxu0 %v16266_v54  ;;  %3282 = vmatprep.mubr.f32.mxu1 %v16266_v54  ;;  %v14423_v34 = vpack.c.bf16 %v3718_v18, %v3717_v15  ;;  %v14455_v21 = vpack.c.bf16 %v3750_v20, %v3749_v19  ;;  %v3757_v7 = vld [vmem:[%s22784_s12 + $0x140] sm:$0xff]  ;;  %v3727_v15 = vld [vmem:[%s22784_s12 + $0x50] sm:$0xff]  ;;  %v3760_v20 = vld [vmem:[%s22784_s12 + $0x158] sm:$0xff] }
0x118f   : > { %v14471_v9 = vpack.c.bf16 %v3758_v8, %v3757_v7  ;;  %v3759_v19 = vld [vmem:[%s22784_s12 + $0x150] sm:$0xff] }
0x1190   : > { %14380 = vmatpush1.bf16.msra.mxu0 %v14379_v25  ;;  %14388 = vmatpush1.bf16.msra.mxu1 %v14387_v26  ;;  %v14425_v25 = vpack.c.bf16 %v3736_v23, %v3735_v22  ;;  %v3768_v26 = vld [vmem:[%s22784_s12 + $0x198] sm:$0xff]  ;;  %v3746_v22 = vld [vmem:[%s22784_s12 + $0xe8] sm:$0xff]  ;;  %v3777_v23 = vld [vmem:[%s22784_s12 + $0x1e0] sm:$0xff] }
0x1191   : > { %14390 = vmatprep.subr.bf16.mxu0 %v14389_v29  ;;  %14398 = vmatprep.subr.bf16.mxu1 %v14397_v30  ;;  %v14457_v29 = vpack.c.bf16 %v3768_v26, %v3767_v24  ;;  %v14427_v30 = vpack.c.bf16 %v3720_v28, %v3719_v27  ;;  %v3729_v26 = vld [vmem:[%s22784_s12 + $0x60] sm:$0xff]  ;;  %v3730_v27 = vld [vmem:[%s22784_s12 + $0x68] sm:$0xff] }
0x1193   : > { %12105 = vmatmul.mubr.msk.f32.vlgmr.msra.gmra.mrb[22].mxu0 %vm987_vm2, %v17139_v17  ;;  %12106 = vmatmul.mubr.msk.f32.vlgmr.msra.gmra.mrb[36].mxu1 %vm987_vm2, %v17139_v17 }
0x1194   : > { %14392 = vmatpush1.bf16.msra.mxu0 %v14391_v38  ;;  %14400 = vmatpush1.bf16.msra.mxu1 %v14399_v39  ;;  %v14429_v38 = vpack.c.bf16 %v3738_v36, %v3737_v35  ;;  %v3770_v39 = vld [vmem:[%s22784_s12 + $0x1a8] sm:$0xff]  ;;  %v3748_v35 = vld [vmem:[%s22784_s12 + $0xf8] sm:$0xff]  ;;  %v3779_v36 = vld [vmem:[%s22784_s12 + $0x1f0] sm:$0xff] }
0x1195   : > { %14394 = vmatprep.subr.bf16.mxu0 %v14393_v42  ;;  %14402 = vmatprep.subr.bf16.mxu1 %v14401_v43  ;;  %v14461_v42 = vpack.c.bf16 %v3770_v39, %v3769_v37  ;;  %v14431_v43 = vpack.c.bf16 %v3722_v41, %v3721_v40  ;;  %v3731_v39 = vld [vmem:[%s22784_s12 + $0x70] sm:$0xff]  ;;  %v3732_v40 = vld [vmem:[%s22784_s12 + $0x78] sm:$0xff] }
0x1196   : > { %3353 = vmatprep.mubr.f32.mxu0 %v16266_v54  ;;  %3424 = vmatprep.mubr.f32.mxu1 %v16266_v54 }
0x1198   : > { %14396 = vmatpush1.bf16.msra.mxu0 %v14395_v51  ;;  %14404 = vmatpush1.bf16.msra.mxu1 %v14403_v52  ;;  %v14433_v51 = vpack.c.bf16 %v3740_v49, %v3739_v48  ;;  %v3772_v52 = vld [vmem:[%s22784_s12 + $0x1b8] sm:$0xff]  ;;  %v3798_v48 = vld [vmem:[%s22784_s12 + $0x288] sm:$0xff]  ;;  %v3829_v49 = vld [vmem:[%s22784_s12 + $0x380] sm:$0xff] }
0x1199   : > { %14406 = vmatprep.subr.bf16.mxu0 %v14405_v56  ;;  %14414 = vmatprep.subr.bf16.mxu1 %v14413_v57  ;;  %v14465_v56 = vpack.c.bf16 %v3772_v52, %v3771_v50  ;;  %v14435_v57 = vpack.c.bf16 %v3724_v55, %v3723_v53  ;;  %v2922_v53 = vlaneseq }
0x119b   : > { %12107 = vmatmul.mubr.msk.f32.vlgmr.msra.gmra.mrb[24].mxu0 %vm987_vm2, %v17139_v17  ;;  %12108 = vmatmul.mubr.msk.f32.vlgmr.msra.gmra.mrb[38].mxu1 %vm987_vm2, %v17139_v17  ;;  %v17469_v55 = vshrl.u32 %v2922_v53, 7  ;;  %v17553_v53 = vld [vmem:[%s22783_s11 + $0x8] sm:$0xff] }
0x119c   : > { %14408 = vmatpush1.bf16.msra.mxu0 %v14407_v0  ;;  %14416 = vmatpush1.bf16.msra.mxu1 %v14415_v1  ;;  %v14437_v0 = vpack.c.bf16 %v3742_v62, %v3741_v61  ;;  %v3774_v1 = vld [vmem:[%s22784_s12 + $0x1c8] sm:$0xff] }
0x119d   : > { %14410 = vmatprep.subr.bf16.mxu0 %v14409_v5  ;;  %14418 = vmatprep.subr.bf16.mxu1 %v14417_v6  ;;  %v14469_v5 = vpack.c.bf16 %v3774_v1, %v3773_v63  ;;  %v14439_v6 = vpack.c.bf16 %v3726_v4, %v3725_v3  ;;  %v17483_v59 = vsub.s32 1, %v17469_v55 }
0x119e   : > { %3495 = vmatprep.mubr.f32.mxu0 %v16266_v54  ;;  %3566 = vmatprep.mubr.f32.mxu1 %v16266_v54 }
0x119f   : > { %v2929_v63 = vrot.slane %v17480_v58, %v17483_v59 }
0x11a0   : > { %14412 = vmatpush1.bf16.msra.mxu0 %v14411_v13  ;;  %14420 = vmatpush1.bf16.msra.mxu1 %v14419_v14  ;;  %v14441_v13 = vpack.c.bf16 %v3744_v11, %v3743_v10  ;;  %v3776_v14 = vld [vmem:[%s22784_s12 + $0x1d8] sm:$0xff]  ;;  %v17505_v10 = vsub.s32 5, %v17469_v55  ;;  %v17508_v11 = vsub.s32 7, %v17469_v55 }
0x11a1   : > { %14422 = vmatprep.subr.bf16.mxu0 %v14421_v16  ;;  %14454 = vmatprep.subr.bf16.mxu1 %v14453_v2  ;;  %v3728_v16 = vld [vmem:[%s22784_s12 + $0x58] sm:$0xff]  ;;  %v14473_v2 = vpack.c.bf16 %v3776_v14, %v3775_v12 }
0x11a2   : > { %v14443_v18 = vpack.c.bf16 %v3728_v16, %v3727_v15 }
0x11a3   : > { %12109 = vmatmul.mubr.msk.f32.vlgmr.msra.gmra.mrb[26].mxu0 %vm987_vm2, %v17139_v17  ;;  %12110 = vmatmul.mubr.msk.f32.vlgmr.msra.gmra.mrb[40].mxu1 %vm987_vm2, %v17139_v17 }
0x11a4   : > { %14424 = vmatpush3.bf16.msra.mxu0 %v14423_v34  ;;  %14456 = vmatpush3.bf16.msra.mxu1 %v14455_v21  ;;  %v14475_v34 = vpack.c.bf16 %v3760_v20, %v3759_v19  ;;  %v3745_v21 = vld [vmem:[%s22784_s12 + $0xe0] sm:$0xff]  ;;  %v2945_v20 = vrot.slane %v17480_v58, %v17505_v10 }
0x11a5   : > { %14426 = vmatprep.subr.bf16.mxu0 %v14425_v25  ;;  %14458 = vmatprep.subr.bf16.mxu1 %v14457_v29  ;;  %v14445_v24 = vpack.c.bf16 %v3746_v22, %v3745_v21  ;;  %v3778_v25 = vld [vmem:[%s22784_s12 + $0x1e8] sm:$0xff]  ;;  %v14447_v29 = vpack.c.bf16 %v3730_v27, %v3729_v26 }
0x11a6   : > { %v14477_v28 = vpack.c.bf16 %v3778_v25, %v3777_v23 }
0x11a8   : > { %14428 = vmatpush3.bf16.msra.mxu0 %v14427_v30  ;;  %14460 = vmatpush3.bf16.msra.mxu1 %v14459_v33  ;;  %v3761_v30 = vld [vmem:[%s22784_s12 + $0x160] sm:$0xff]  ;;  %v3747_v33 = vld [vmem:[%s22784_s12 + $0xf0] sm:$0xff] }
0x11a9   : > { %14430 = vmatprep.subr.bf16.mxu0 %v14429_v38  ;;  %14462 = vmatprep.subr.bf16.mxu1 %v14461_v42  ;;  %v14479_v32 = vpack.c.bf16 %v3762_v31, %v3761_v30  ;;  %v14449_v37 = vpack.c.bf16 %v3748_v35, %v3747_v33  ;;  %v3780_v38 = vld [vmem:[%s22784_s12 + $0x1f8] sm:$0xff]  ;;  %v14451_v42 = vpack.c.bf16 %v3732_v40, %v3731_v39 }
0x11aa   : > { %v14481_v41 = vpack.c.bf16 %v3780_v38, %v3779_v36 }
0x11ac   : > { %14432 = vmatpush3.bf16.msra.mxu0 %v14431_v43  ;;  %14464 = vmatpush3.bf16.msra.mxu1 %v14463_v47  ;;  %v3763_v43 = vld [vmem:[%s22784_s12 + $0x170] sm:$0xff]  ;;  %v3797_v47 = vld [vmem:[%s22784_s12 + $0x280] sm:$0xff] }
0x11ad   : > { %14434 = vmatprep.subr.bf16.mxu0 %v14433_v51  ;;  %14466 = vmatprep.subr.bf16.mxu1 %v14465_v56  ;;  %v14483_v45 = vpack.c.bf16 %v3764_v44, %v3763_v43  ;;  %v14485_v50 = vpack.c.bf16 %v3798_v48, %v3797_v47  ;;  %v3830_v51 = vld [vmem:[%s22784_s12 + $0x388] sm:$0xff]  ;;  %v17472_v56 = vsub.s32 0, %v17469_v55  ;;  %v17541_v44 = vsub.s32 4, %v17469_v55 }
0x11ae   : > { %v14517_v52 = vpack.c.bf16 %v3830_v51, %v3829_v49 }
0x11af   : > { %v2925_v61 = vrot.slane %v17480_v58, %v17472_v56 }
0x11b0   : > { %14436 = vmatpush3.bf16.msra.mxu0 %v14435_v57  ;;  %14468 = vmatpush3.bf16.msra.mxu1 %v14467_v60  ;;  %v17475_v57 = vsub.s32 2, %v17469_v55  ;;  %v17486_v60 = vsub.s32 3, %v17469_v55 }
0x11b1   : > { %14438 = vmatprep.subr.bf16.mxu0 %v14437_v0  ;;  %14470 = vmatprep.subr.bf16.mxu1 %v14469_v5 }
0x11b2   : > { %v2933_v62 = vrot.slane %v17480_v58, %v17475_v57  ;;  %v2937_v0 = vrot.slane %v17480_v58, %v17486_v60 }
0x11b4   : > { %14440 = vmatpush3.bf16.msra.mxu0 %v14439_v6  ;;  %14472 = vmatpush3.bf16.msra.mxu1 %v14471_v9 }
0x11b5   : > { %14442 = vmatprep.subr.bf16.mxu0 %v14441_v13  ;;  %14474 = vmatprep.subr.bf16.mxu1 %v14473_v2 }
0x11b8   : > { %14444 = vmatpush3.bf16.msra.mxu0 %v14443_v18  ;;  %14476 = vmatpush3.bf16.msra.mxu1 %v14475_v34  ;;  %v2953_v34 = vrot.slane %v17480_v58, %v17508_v11 }
0x11b9   : > { %14446 = vmatprep.subr.bf16.mxu0 %v14445_v24  ;;  %14478 = vmatprep.subr.bf16.mxu1 %v14477_v28 }
0x11bc   : > { %14448 = vmatpush3.bf16.msra.mxu0 %v14447_v29  ;;  %14480 = vmatpush3.bf16.msra.mxu1 %v14479_v32 }
0x11bd   : > { %14450 = vmatprep.subr.bf16.mxu0 %v14449_v37  ;;  %14482 = vmatprep.subr.bf16.mxu1 %v14481_v41 }
0x11c0   : > { %14452 = vmatpush3.bf16.msra.mxu0 %v14451_v42  ;;  %14484 = vmatpush3.bf16.msra.mxu1 %v14483_v45 }
0x11c1   : > { %14486 = vmatprep.subr.bf16.mxu0 %v14485_v50  ;;  %14518 = vmatprep.subr.bf16.mxu1 %v14517_v52  ;;  %v17548_v52 = vsub.s32 6, %v17469_v55 }
0x125e   : > { %v3071_v1 = vpop.f32.mrb[20].mxu0  ;;  %v3142_v3 = vpop.f32.mrb[34].mxu1 }
0x125f   : > { %v17496_v4 = vadd.f32 %v3071_v1, %v2925_v61  ;;  %v17498_v5 = vadd.f32 %v3142_v3, %v2933_v62  ;;  %v3073_v6 = vpop.f32.mrb[21].mxu0  ;;  %v3144_v7 = vpop.f32.mrb[35].mxu1  ;;  %v2961_v3 = vrot.slane %v17553_v53, %v17483_v59 }
0x1260   : > { %v17500_v8 = vadd.f32 %v3073_v6, %v2929_v63  ;;  %v17502_v9 = vadd.f32 %v3144_v7, %v2937_v0  ;;  %v2941_v63 = vrot.slane %v17480_v58, %v17541_v44  ;;  %v2981_v6 = vrot.slane %v17553_v53, %v17548_v52 }
0x1261   : > { %v3589_v12 = vmul.f32 %v17496_v4, %v17496_v4  ;;  %v3591_v13 = vmul.f32 %v17498_v5, %v17498_v5  ;;  %v2949_v7 = vrot.slane %v17480_v58, %v17548_v52 }
0x1262   : > { %v3590_v14 = vmul.f32 %v17500_v8, %v17500_v8  ;;  %v3592_v15 = vmul.f32 %v17502_v9, %v17502_v9 }
0x1263   : > { %v3605_v16 = vmul.f32 %v3589_v12, %v17496_v4  ;;  %v3607_v2 = vmul.f32 %v3591_v13, %v17498_v5  ;;  %v2969_v12 = vrot.slane %v17553_v53, %v17486_v60 }
0x1264   : > { %v3606_v18 = vmul.f32 %v3590_v14, %v17500_v8  ;;  %v3608_v19 = vmul.f32 %v3592_v15, %v17502_v9 }
0x1265   : > { %v3621_v21 = vmul.f32 0.044715, %v3605_v16  ;;  %v3623_v22 = vmul.f32 0.044715, %v3607_v2 }
0x1266   : > { %v3622_v23 = vmul.f32 0.044715, %v3606_v18  ;;  %v3624_v24 = vmul.f32 0.044715, %v3608_v19  ;;  %v3213_v25 = vpop.f32.mrb[22].mxu0  ;;  %v3284_v26 = vpop.f32.mrb[36].mxu1 }
0x1267   : > { %v3637_v27 = vadd.f32 %v3621_v21, %v17496_v4  ;;  %v3215_v28 = vpop.f32.mrb[23].mxu0  ;;  %v3286_v29 = vpop.f32.mrb[37].mxu1  ;;  %v3639_v36 = vadd.f32 %v3623_v22, %v17498_v5  ;;  %v17567_v13 = vadd.f32 %v3213_v25, %v2941_v63  ;;  %v17579_v58 = vadd.f32 %v3284_v26, %v2949_v7  ;;  %v3781_v22 = vld [vmem:[%s22784_s12 + $0x200] sm:$0xff]  ;;  %v3814_v26 = vld [vmem:[%s22784_s12 + $0x308] sm:$0xff] }
0x1268   : > { %v3638_v30 = vadd.f32 %v3622_v23, %v17500_v8  ;;  %v17528_v31 = vadd.f32 %v3215_v28, %v2945_v20  ;;  %v17530_v32 = vadd.f32 %v3286_v29, %v2953_v34  ;;  %v3640_v33 = vadd.f32 %v3624_v24, %v17502_v9  ;;  %v3782_v23 = vld [vmem:[%s22784_s12 + $0x208] sm:$0xff]  ;;  %v3813_v24 = vld [vmem:[%s22784_s12 + $0x300] sm:$0xff]  ;;  %v3800_v28 = vld [vmem:[%s22784_s12 + $0x298] sm:$0xff] }
0x1269   : > { %v3653_v35 = vmul.f32 0.7978846, %v3637_v27  ;;  %v3655_v43 = vmul.f32 0.7978846, %v3639_v36  ;;  %v3593_v25 = vmul.f32 %v17567_v13, %v17567_v13  ;;  %v3799_v27 = vld [vmem:[%s22784_s12 + $0x290] sm:$0xff]  ;;  %v3595_v36 = vmul.f32 %v17579_v58, %v17579_v58 }
0x126a   : > { %v3654_v37 = vmul.f32 0.7978846, %v3638_v30  ;;  %v3594_v38 = vmul.f32 %v17528_v31, %v17528_v31  ;;  %v3596_v39 = vmul.f32 %v17530_v32, %v17530_v32  ;;  %v3656_v40 = vmul.f32 0.7978846, %v3640_v33 }
0x126b   : > { %16118 = vtanh.f32 %v3653_v35  ;;  %v3611_v7 = vmul.f32 %v3595_v36, %v17579_v58 }
0x126c   : > { %v3610_v41 = vmul.f32 %v3594_v38, %v17528_v31  ;;  %v3612_v42 = vmul.f32 %v3596_v39, %v17530_v32  ;;  %16120 = vtanh.f32 %v3654_v37  ;;  %v3574_v37 = vmul.f32 0.5, %v17500_v8  ;;  %v3832_v8 = vld [vmem:[%s22784_s12 + $0x398] sm:$0xff] }
0x126d   : > { %16122 = vtanh.f32 %v3656_v40  ;;  %v14487_v39 = vpack.c.bf16 %v3782_v23, %v3781_v22  ;;  %v3573_v40 = vmul.f32 0.5, %v17496_v4  ;;  %v3783_v4 = vld [vmem:[%s22784_s12 + $0x210] sm:$0xff] }
0x126e   : > { %v17543_v45 = vpop.f32.mrb[24].mxu0  ;;  %v17545_v47 = vpop.f32.mrb[38].mxu1  ;;  %v3626_v48 = vmul.f32 0.044715, %v3610_v41  ;;  %v3628_v49 = vmul.f32 0.044715, %v3612_v42  ;;  %16124 = vtanh.f32 %v3655_v43  ;;  %v14519_v42 = vpack.c.bf16 %v3814_v26, %v3813_v24 }
0x126f   : > { %v3357_v50 = vpop.f32.mrb[25].mxu0  ;;  %v3428_v51 = vpop.f32.mrb[39].mxu1  ;;  %v14489_v43 = vpack.c.bf16 %v3800_v28, %v3799_v27  ;;  %v3815_v26 = vld [vmem:[%s22784_s12 + $0x310] sm:$0xff] }
0x1270   : > { %v3642_v61 = vadd.f32 %v3626_v48, %v17528_v31  ;;  %v3644_v62 = vadd.f32 %v3628_v49, %v17530_v32  ;;  %v17571_v16 = vadd.f32 %v3357_v50, %v2961_v3  ;;  %v17581_v21 = vadd.f32 %v3428_v51, %v2969_v12  ;;  %v3831_v48 = vld [vmem:[%s22784_s12 + $0x390] sm:$0xff] }
0x1271   : > { %v3609_v49 = vmul.f32 %v3593_v25, %v17567_v13  ;;  %v3576_v51 = vmul.f32 0.5, %v17502_v9  ;;  %v14521_v24 = vpack.c.bf16 %v3832_v8, %v3831_v48  ;;  %v3803_v48 = vld [vmem:[%s22784_s12 + $0x2b0] sm:$0xff] }
0x1272   : > { %v3658_v0 = vmul.f32 0.7978846, %v3642_v61  ;;  %v3660_v1 = vmul.f32 0.7978846, %v3644_v62  ;;  %v3598_v30 = vmul.f32 %v17571_v16, %v17571_v16  ;;  %v3600_v41 = vmul.f32 %v17581_v21, %v17581_v21  ;;  %v3784_v62 = vld [vmem:[%s22784_s12 + $0x218] sm:$0xff] }
0x1273   : > { %v14491_v25 = vpack.c.bf16 %v3784_v62, %v3783_v4  ;;  %v3625_v27 = vmul.f32 0.044715, %v3609_v49  ;;  %v3835_v4 = vld [vmem:[%s22784_s12 + $0x3b0] sm:$0xff]  ;;  %v3836_v62 = vld [vmem:[%s22784_s12 + $0x3b8] sm:$0xff] }
0x1274   : > { %16126 = vtanh.f32 %v3658_v0  ;;  %v3575_v0 = vmul.f32 0.5, %v17498_v5  ;;  %v3802_v5 = vld [vmem:[%s22784_s12 + $0x2a8] sm:$0xff]  ;;  %v3616_v22 = vmul.f32 %v3600_v41, %v17581_v21 }
0x1275   : > { %16128 = vtanh.f32 %v3660_v1  ;;  %v16119_v20 = vpop.eup %16118  ;;  %v3614_v1 = vmul.f32 %v3598_v30, %v17571_v16 }
0x1276   : > { %v17569_v14 = vpop.f32.mrb[26].mxu0  ;;  %v3568_v15 = vpop.f32.mrb[40].mxu1  ;;  %v3685_v33 = vadd.f32 1.0, %v16119_v20  ;;  %v3632_v49 = vmul.f32 0.044715, %v3616_v22 }
0x1277   : > { %v17573_v2 = vadd.f32 %v3568_v15, %v2981_v6  ;;  %v17575_v18 = vpop.f32.mrb[27].mxu0  ;;  %v17577_v19 = vpop.f32.mrb[41].mxu1  ;;  %v3578_v15 = vmul.f32 0.5, %v17528_v31  ;;  %v3816_v31 = vld [vmem:[%s22784_s12 + $0x318] sm:$0xff]  ;;  %v3630_v36 = vmul.f32 0.044715, %v3614_v1 }
0x1278   : > { %v16121_v34 = vpop.eup %16120  ;;  %v3701_v3 = vmul.f32 %v3685_v33, %v3573_v40  ;;  %v3833_v33 = vld [vmem:[%s22784_s12 + $0x3a0] sm:$0xff]  ;;  %v14523_v40 = vpack.c.bf16 %v3816_v31, %v3815_v26  ;;  %v3787_v1 = vld [vmem:[%s22784_s12 + $0x230] sm:$0xff] }
0x1279   : > { %v16123_v29 = vpop.eup %16122  ;;  %v3686_v38 = vadd.f32 1.0, %v16121_v34  ;;  %v3801_v34 = vld [vmem:[%s22784_s12 + $0x2a0] sm:$0xff] }
0x127a   : > { %v16125_v35 = vpop.eup %16124  ;;  %v3688_v61 = vadd.f32 1.0, %v16123_v29  ;;  %v3580_v29 = vmul.f32 0.5, %v17530_v32  ;;  %v3786_v32 = vld [vmem:[%s22784_s12 + $0x228] sm:$0xff] }
0x127b   : > { %v3702_v50 = vmul.f32 %v3686_v38, %v3574_v37  ;;  %v3687_v9 = vadd.f32 1.0, %v16125_v35  ;;  %v3834_v35 = vld [vmem:[%s22784_s12 + $0x3a8] sm:$0xff]  ;;  %v14493_v37 = vpack.c.bf16 %v3802_v5, %v3801_v34  ;;  %v3785_v38 = vld [vmem:[%s22784_s12 + $0x220] sm:$0xff]  ;;  %v3819_v34 = vld [vmem:[%s22784_s12 + $0x330] sm:$0xff] }
0x127c   : > { %v3704_v12 = vmul.f32 %v3688_v61, %v3576_v51  ;;  %v3817_v51 = vld [vmem:[%s22784_s12 + $0x320] sm:$0xff]  ;;  %v3641_v61 = vadd.f32 %v3625_v27, %v17567_v13  ;;  %v14495_v8 = vpack.c.bf16 %v3786_v32, %v3785_v38  ;;  %v3820_v5 = vld [vmem:[%s22784_s12 + $0x338] sm:$0xff]  ;;  %v3822_v32 = vld [vmem:[%s22784_s12 + $0x348] sm:$0xff] }
0x127d   : > { %4044 = vmatprep.mubr.f32.mxu0 %v3702_v50  ;;  %v3703_v23 = vmul.f32 %v3687_v9, %v3575_v0  ;;  %v14525_v50 = vpack.c.bf16 %v3834_v35, %v3833_v33  ;;  %v3789_v27 = vld [vmem:[%s22784_s12 + $0x240] sm:$0xff]  ;;  %v3807_v33 = vld [vmem:[%s22784_s12 + $0x2d0] sm:$0xff]  ;;  %v3808_v35 = vld [vmem:[%s22784_s12 + $0x2d8] sm:$0xff] }
0x127e   : > { %v16127_v63 = vpop.eup %16126  ;;  %4045 = vmatmul.mubr.f32.vlgmr.msra.gmra.mrb[28].mxu0 %v3701_v3  ;;  %4114 = vmatprep.mubr.f32.mxu1 %v3704_v12  ;;  %v3788_v3 = vld [vmem:[%s22784_s12 + $0x238] sm:$0xff]  ;;  %v3806_v12 = vld [vmem:[%s22784_s12 + $0x2c8] sm:$0xff]  ;;  %v3657_v22 = vmul.f32 0.7978846, %v3641_v61  ;;  %v3821_v38 = vld [vmem:[%s22784_s12 + $0x340] sm:$0xff] }
0x127f   : > { %v16129_v6 = vpop.eup %16128  ;;  %v3690_v20 = vadd.f32 1.0, %v16127_v63  ;;  %14488 = vmatpush3.bf16.msra.mxu0 %v14487_v39  ;;  %4115 = vmatmul.mubr.f32.vlgmr.msra.gmra.mrb[42].mxu1 %v3703_v23  ;;  %v3627_v39 = vmul.f32 0.044715, %v3611_v7  ;;  %v3646_v63 = vadd.f32 %v3630_v36, %v17571_v16  ;;  %v3805_v7 = vld [vmem:[%s22784_s12 + $0x2c0] sm:$0xff]  ;;  %v14499_v23 = vpack.c.bf16 %v3788_v3, %v3787_v1  ;;  %v3842_v1 = vld [vmem:[%s22784_s12 + $0x3e8] sm:$0xff] }
0x1280   : > { %v3692_v30 = vadd.f32 1.0, %v16129_v6  ;;  %14490 = vmatprep.subr.bf16.mxu0 %v14489_v43  ;;  %14520 = vmatpush3.bf16.msra.mxu1 %v14519_v42  ;;  %v3804_v43 = vld [vmem:[%s22784_s12 + $0x2b8] sm:$0xff]  ;;  %v3818_v42 = vld [vmem:[%s22784_s12 + $0x328] sm:$0xff]  ;;  %v14501_v31 = vpack.c.bf16 %v3806_v12, %v3805_v7  ;;  %16130 = vtanh.f32 %v3657_v22  ;;  %v2977_v3 = vrot.slane %v17553_v53, %v17505_v10 }
0x1281   : > { %v3706_v28 = vmul.f32 %v3690_v20, %v3578_v15  ;;  %14522 = vmatprep.subr.bf16.mxu1 %v14521_v24  ;;  %v14497_v0 = vpack.c.bf16 %v3804_v43, %v3803_v48  ;;  %v3643_v9 = vadd.f32 %v3627_v39, %v17579_v58  ;;  %v14527_v6 = vpack.c.bf16 %v3818_v42, %v3817_v51  ;;  %v3837_v24 = vld [vmem:[%s22784_s12 + $0x3c0] sm:$0xff]  ;;  %v3791_v43 = vld [vmem:[%s22784_s12 + $0x250] sm:$0xff]  ;;  %v3810_v42 = vld [vmem:[%s22784_s12 + $0x2e8] sm:$0xff] }
0x1282   : > { %v3708_v41 = vmul.f32 %v3692_v30, %v3580_v29  ;;  %v3648_v15 = vadd.f32 %v3632_v49, %v17581_v21  ;;  %v14529_v20 = vpack.c.bf16 %v3836_v62, %v3835_v4  ;;  %v3662_v26 = vmul.f32 0.7978846, %v3646_v63  ;;  %v3792_v49 = vld [vmem:[%s22784_s12 + $0x258] sm:$0xff]  ;;  %v3809_v51 = vld [vmem:[%s22784_s12 + $0x2e0] sm:$0xff]  ;;  %v3794_v7 = vld [vmem:[%s22784_s12 + $0x268] sm:$0xff] }
0x1283   : > { %4184 = vmatprep.mubr.f32.mxu0 %v3706_v28  ;;  %14492 = vmatpush3.bf16.msra.mxu0 %v14491_v25  ;;  %v3838_v25 = vld [vmem:[%s22784_s12 + $0x3c8] sm:$0xff]  ;;  %v3659_v29 = vmul.f32 0.7978846, %v3643_v9  ;;  %v14531_v30 = vpack.c.bf16 %v3820_v5, %v3819_v34  ;;  %v14505_v48 = vpack.c.bf16 %v3808_v35, %v3807_v33  ;;  %v3824_v4 = vld [vmem:[%s22784_s12 + $0x358] sm:$0xff]  ;;  %v2957_v62 = vrot.slane %v17553_v53, %v17472_v56 }
0x1284   : > { %4254 = vmatprep.mubr.f32.mxu1 %v3708_v41  ;;  %14494 = vmatprep.subr.bf16.mxu0 %v14493_v37  ;;  %v3790_v28 = vld [vmem:[%s22784_s12 + $0x248] sm:$0xff]  ;;  %v3664_v36 = vmul.f32 0.7978846, %v3648_v15  ;;  %v14533_v37 = vpack.c.bf16 %v3838_v25, %v3837_v24  ;;  %v3840_v41 = vld [vmem:[%s22784_s12 + $0x3d8] sm:$0xff]  ;;  %16132 = vtanh.f32 %v3662_v26  ;;  %v14507_v63 = vpack.c.bf16 %v3792_v49, %v3791_v43 }
0x1285   : > { %14524 = vmatpush3.bf16.msra.mxu1 %v14523_v40  ;;  %v14503_v39 = vpack.c.bf16 %v3790_v28, %v3789_v27  ;;  %v3839_v40 = vld [vmem:[%s22784_s12 + $0x3d0] sm:$0xff]  ;;  %16134 = vtanh.f32 %v3659_v29  ;;  %v14509_v9 = vpack.c.bf16 %v3810_v42, %v3809_v51  ;;  %v2965_v12 = vrot.slane %v17553_v53, %v17475_v57  ;;  %v3812_v34 = vld [vmem:[%s22784_s12 + $0x2f8] sm:$0xff]  ;;  %v3826_v24 = vld [vmem:[%s22784_s12 + $0x368] sm:$0xff] }
0x1286   : > { %14526 = vmatprep.subr.bf16.mxu1 %v14525_v50  ;;  %v14535_v50 = vpack.c.bf16 %v3822_v32, %v3821_v38  ;;  %v14537_v61 = vpack.c.bf16 %v3840_v41, %v3839_v40  ;;  %16136 = vtanh.f32 %v3664_v36  ;;  %v2985_v5 = vrot.slane %v17553_v53, %v17508_v11  ;;  %v3844_v27 = vld [vmem:[%s22784_s12 + $0x3f8] sm:$0xff]  ;;  %v3894_v49 = vld [vmem:[%s22784_s12 + $0x588] sm:$0xff] }
0x1287   : > { %14496 = vmatpush3.bf16.msra.mxu0 %v14495_v8  ;;  %v3823_v8 = vld [vmem:[%s22784_s12 + $0x350] sm:$0xff]  ;;  %v17776_v25 = vadd.f32 %v17543_v45, %v2957_v62  ;;  %v17785_v28 = vadd.f32 %v17575_v18, %v2977_v3  ;;  %v17794_v35 = vadd.f32 %v17545_v47, %v2965_v12  ;;  %v3861_v18 = vld [vmem:[%s22784_s12 + $0x480] sm:$0xff]  ;;  %v3828_v40 = vld [vmem:[%s22784_s12 + $0x378] sm:$0xff] }
0x1288   : > { %14498 = vmatprep.subr.bf16.mxu0 %v14497_v0  ;;  %v3841_v0 = vld [vmem:[%s22784_s12 + $0x3e0] sm:$0xff]  ;;  %v14539_v15 = vpack.c.bf16 %v3824_v4, %v3823_v8  ;;  %v3795_v45 = vld [vmem:[%s22784_s12 + $0x270] sm:$0xff]  ;;  %v17803_v32 = vadd.f32 %v17577_v19, %v2985_v5  ;;  %v3846_v4 = vld [vmem:[%s22784_s12 + $0x408] sm:$0xff] }
0x1289   : > { %14528 = vmatpush3.bf16.msra.mxu1 %v14527_v6  ;;  %v3793_v6 = vld [vmem:[%s22784_s12 + $0x260] sm:$0xff]  ;;  %v14541_v22 = vpack.c.bf16 %v3842_v1, %v3841_v0  ;;  %v3827_v47 = vld [vmem:[%s22784_s12 + $0x370] sm:$0xff]  ;;  %v3602_v51 = vmul.f32 %v17785_v28, %v17785_v28  ;;  %v3599_v62 = vmul.f32 %v17794_v35, %v17794_v35  ;;  %v3864_v3 = vld [vmem:[%s22784_s12 + $0x498] sm:$0xff] }
0x128a   : > { %14530 = vmatprep.subr.bf16.mxu1 %v14529_v20  ;;  %v3811_v20 = vld [vmem:[%s22784_s12 + $0x2f0] sm:$0xff]  ;;  %v14511_v26 = vpack.c.bf16 %v3794_v7, %v3793_v6  ;;  %v16131_v33 = vpop.eup %16130  ;;  %v3893_v19 = vld [vmem:[%s22784_s12 + $0x580] sm:$0xff]  ;;  %v3604_v6 = vmul.f32 %v17803_v32, %v17803_v32 }
0x128b   : > { %14500 = vmatpush3.bf16.msra.mxu0 %v14499_v23  ;;  %v3825_v23 = vld [vmem:[%s22784_s12 + $0x360] sm:$0xff]  ;;  %v14513_v29 = vpack.c.bf16 %v3812_v34, %v3811_v20  ;;  %v3689_v42 = vadd.f32 1.0, %v16131_v33  ;;  %v3863_v1 = vld [vmem:[%s22784_s12 + $0x490] sm:$0xff]  ;;  %v14581_v12 = vpack.c.bf16 %v3894_v49, %v3893_v19  ;;  %v3878_v20 = vld [vmem:[%s22784_s12 + $0x508] sm:$0xff] }
0x128c   : > { %14502 = vmatprep.subr.bf16.mxu0 %v14501_v31  ;;  %v3843_v31 = vld [vmem:[%s22784_s12 + $0x3f0] sm:$0xff]  ;;  %v14543_v36 = vpack.c.bf16 %v3826_v24, %v3825_v23  ;;  %v3845_v8 = vld [vmem:[%s22784_s12 + $0x400] sm:$0xff]  ;;  %v3896_v24 = vld [vmem:[%s22784_s12 + $0x598] sm:$0xff] }
0x128d   : > { %14532 = vmatpush3.bf16.msra.mxu1 %v14531_v30  ;;  %v3796_v30 = vld [vmem:[%s22784_s12 + $0x278] sm:$0xff]  ;;  %v14551_v5 = vpack.c.bf16 %v3846_v4, %v3845_v8  ;;  %v3895_v23 = vld [vmem:[%s22784_s12 + $0x590] sm:$0xff]  ;;  %v3897_v19 = vld [vmem:[%s22784_s12 + $0x5a0] sm:$0xff] }
0x128e   : > { %14534 = vmatprep.subr.bf16.mxu1 %v14533_v37  ;;  %v3862_v37 = vld [vmem:[%s22784_s12 + $0x488] sm:$0xff]  ;;  %v16133_v38 = vpop.eup %16132  ;;  %v14515_v43 = vpack.c.bf16 %v3796_v30, %v3795_v45  ;;  %v3848_v45 = vld [vmem:[%s22784_s12 + $0x418] sm:$0xff]  ;;  %v3615_v30 = vmul.f32 %v3599_v62, %v17794_v35  ;;  %v3867_v62 = vld [vmem:[%s22784_s12 + $0x4b0] sm:$0xff] }
0x128f   : > { %14504 = vmatpush3.bf16.msra.mxu0 %v14503_v39  ;;  %v14545_v39 = vpack.c.bf16 %v3844_v27, %v3843_v31  ;;  %v16135_v41 = vpop.eup %16134  ;;  %v3694_v0 = vadd.f32 1.0, %v16133_v38  ;;  %v3618_v31 = vmul.f32 %v3602_v51, %v17785_v28  ;;  %v3620_v38 = vmul.f32 %v3604_v6, %v17803_v32  ;;  %v3898_v49 = vld [vmem:[%s22784_s12 + $0x5a8] sm:$0xff] }
0x1290   : > { %14506 = vmatprep.subr.bf16.mxu0 %v14505_v48  ;;  %v3597_v48 = vmul.f32 %v17776_v25, %v17776_v25  ;;  %v3691_v7 = vadd.f32 1.0, %v16135_v41  ;;  %v3631_v8 = vmul.f32 0.044715, %v3615_v30 }
0x1291   : > { %14536 = vmatpush3.bf16.msra.mxu1 %v14535_v50  ;;  %v16137_v50 = vpop.eup %16136 }
0x1292   : > { %14538 = vmatprep.subr.bf16.mxu1 %v14537_v61  ;;  %v14549_v61 = vpack.c.bf16 %v3862_v37, %v3861_v18  ;;  %v3613_v34 = vmul.f32 %v3597_v48, %v17776_v25  ;;  %v3865_v18 = vld [vmem:[%s22784_s12 + $0x4a0] sm:$0xff]  ;;  %v3866_v37 = vld [vmem:[%s22784_s12 + $0x4a8] sm:$0xff] }
0x1293   : > { %14508 = vmatpush3.bf16.msra.mxu0 %v14507_v63  ;;  %v14547_v63 = vpack.c.bf16 %v3828_v40, %v3827_v47  ;;  %v14585_v47 = vpack.c.bf16 %v3896_v24, %v3895_v23  ;;  %v3879_v40 = vld [vmem:[%s22784_s12 + $0x510] sm:$0xff]  ;;  %v14557_v51 = vpack.c.bf16 %v3866_v37, %v3865_v18  ;;  %v3869_v24 = vld [vmem:[%s22784_s12 + $0x4c0] sm:$0xff] }
0x1294   : > { %14510 = vmatprep.subr.bf16.mxu0 %v14509_v9  ;;  %v3577_v9 = vmul.f32 0.5, %v17567_v13  ;;  %v3582_v13 = vmul.f32 0.5, %v17571_v16  ;;  %v3847_v16 = vld [vmem:[%s22784_s12 + $0x410] sm:$0xff]  ;;  %v3629_v41 = vmul.f32 0.044715, %v3613_v34  ;;  %v3853_v37 = vld [vmem:[%s22784_s12 + $0x440] sm:$0xff] }
0x1295   : > { %14540 = vmatpush3.bf16.msra.mxu1 %v14539_v15  ;;  %v3877_v15 = vld [vmem:[%s22784_s12 + $0x500] sm:$0xff] }
0x1296   : > { %14542 = vmatprep.subr.bf16.mxu1 %v14541_v22  ;;  %v3696_v22 = vadd.f32 1.0, %v16137_v50  ;;  %v3705_v27 = vmul.f32 %v3689_v42, %v3577_v9  ;;  %v3710_v33 = vmul.f32 %v3694_v0, %v3582_v13  ;;  %v3634_v50 = vmul.f32 0.044715, %v3618_v31  ;;  %v3849_v42 = vld [vmem:[%s22784_s12 + $0x420] sm:$0xff]  ;;  %v3882_v9 = vld [vmem:[%s22784_s12 + $0x528] sm:$0xff]  ;;  %v3852_v13 = vld [vmem:[%s22784_s12 + $0x438] sm:$0xff] }
0x1297   : > { %14512 = vmatpush3.bf16.msra.mxu0 %v14511_v26  ;;  %v3579_v26 = vmul.f32 0.5, %v17579_v58  ;;  %v3584_v58 = vmul.f32 0.5, %v17581_v21  ;;  %v3880_v21 = vld [vmem:[%s22784_s12 + $0x518] sm:$0xff]  ;;  %v3636_v0 = vmul.f32 0.044715, %v3620_v38  ;;  %v3645_v6 = vadd.f32 %v3629_v41, %v17776_v25  ;;  %v3854_v38 = vld [vmem:[%s22784_s12 + $0x448] sm:$0xff] }
0x1298   : > { %14514 = vmatprep.subr.bf16.mxu0 %v14513_v29  ;;  %v14553_v29 = vpack.c.bf16 %v3864_v3, %v3863_v1  ;;  %v14587_v4 = vpack.c.bf16 %v3880_v21, %v3879_v40  ;;  %v14589_v1 = vpack.c.bf16 %v3898_v49, %v3897_v19  ;;  %v3881_v3 = vld [vmem:[%s22784_s12 + $0x520] sm:$0xff]  ;;  %v3871_v40 = vld [vmem:[%s22784_s12 + $0x4d0] sm:$0xff]  ;;  %v3872_v21 = vld [vmem:[%s22784_s12 + $0x4d8] sm:$0xff]  ;;  %v14567_v49 = vpack.c.bf16 %v3854_v38, %v3853_v37 }
0x1299   : > { %14544 = vmatpush3.bf16.msra.mxu1 %v14543_v36  ;;  %v14583_v36 = vpack.c.bf16 %v3878_v20, %v3877_v15  ;;  %v3712_v48 = vmul.f32 %v3696_v22, %v3584_v58  ;;  %v3900_v15 = vld [vmem:[%s22784_s12 + $0x5b8] sm:$0xff]  ;;  %v3650_v20 = vadd.f32 %v3634_v50, %v17785_v28  ;;  %v3647_v22 = vadd.f32 %v3631_v8, %v17794_v35  ;;  %v3886_v19 = vld [vmem:[%s22784_s12 + $0x548] sm:$0xff]  ;;  %v3903_v50 = vld [vmem:[%s22784_s12 + $0x5d0] sm:$0xff] }
0x129a   : > { %14546 = vmatprep.subr.bf16.mxu1 %v14545_v39  ;;  %v3707_v39 = vmul.f32 %v3691_v7, %v3579_v26  ;;  %v14591_v23 = vpack.c.bf16 %v3882_v9, %v3881_v3  ;;  %v3870_v26 = vld [vmem:[%s22784_s12 + $0x4c8] sm:$0xff]  ;;  %v3652_v31 = vadd.f32 %v3636_v0, %v17803_v32  ;;  %v3856_v8 = vld [vmem:[%s22784_s12 + $0x458] sm:$0xff]  ;;  %v2973_v9 = vrot.slane %v17553_v53, %v17541_v44  ;;  %v3891_v38 = vld [vmem:[%s22784_s12 + $0x570] sm:$0xff] }
0x129b   : > { %14516 = vmatpush3.bf16.msra.mxu0 %v14515_v43  ;;  %v14555_v43 = vpack.c.bf16 %v3848_v45, %v3847_v16  ;;  %v3884_v16 = vld [vmem:[%s22784_s12 + $0x538] sm:$0xff]  ;;  %v3661_v45 = vmul.f32 0.7978846, %v3645_v6  ;;  %v3666_v58 = vmul.f32 0.7978846, %v3650_v20  ;;  %v14565_v18 = vpack.c.bf16 %v3870_v26, %v3869_v24  ;;  %v3857_v20 = vld [vmem:[%s22784_s12 + $0x460] sm:$0xff] }
0x129c   : > { %14550 = vmatprep.subr.bf16.mxu0 %v14549_v61  ;;  %v3850_v61 = vld [vmem:[%s22784_s12 + $0x428] sm:$0xff]  ;;  %v3668_v41 = vmul.f32 0.7978846, %v3652_v31  ;;  %v3888_v3 = vld [vmem:[%s22784_s12 + $0x558] sm:$0xff]  ;;  %v18002_v26 = vadd.f32 %v17569_v14, %v2973_v9 }
0x129d   : > { %14548 = vmatpush3.bf16.msra.mxu1 %v14547_v63  ;;  %v3868_v63 = vld [vmem:[%s22784_s12 + $0x4b8] sm:$0xff]  ;;  %v14559_v7 = vpack.c.bf16 %v3850_v61, %v3849_v42  ;;  %16138 = vtanh.f32 %v3661_v45  ;;  %v14569_v42 = vpack.c.bf16 %v3872_v21, %v3871_v40  ;;  %v3855_v61 = vld [vmem:[%s22784_s12 + $0x450] sm:$0xff]  ;;  %v3858_v53 = vld [vmem:[%s22784_s12 + $0x468] sm:$0xff] }
0x129e   : > { %4185 = vmatmul.mubr.f32.vlgmr.msra.gmra.mrb[30].mxu0 %v3705_v27  ;;  %14582 = vmatprep.subr.bf16.mxu1 %v14581_v12  ;;  %v3899_v12 = vld [vmem:[%s22784_s12 + $0x5b0] sm:$0xff]  ;;  %v14561_v34 = vpack.c.bf16 %v3868_v63, %v3867_v62  ;;  %16140 = vtanh.f32 %v3666_v58  ;;  %v3873_v62 = vld [vmem:[%s22784_s12 + $0x4e0] sm:$0xff]  ;;  %v3874_v63 = vld [vmem:[%s22784_s12 + $0x4e8] sm:$0xff]  ;;  %v14571_v6 = vpack.c.bf16 %v3856_v8, %v3855_v61  ;;  %v14575_v31 = vpack.c.bf16 %v3858_v53, %v3857_v20 }
0x129f   : > { %14552 = vmatpush3.bf16.msra.mxu0 %v14551_v5  ;;  %4324 = vmatprep.mubr.f32.mxu0 %v3710_v33  ;;  %v3851_v5 = vld [vmem:[%s22784_s12 + $0x430] sm:$0xff]  ;;  %v14593_v27 = vpack.c.bf16 %v3900_v15, %v3899_v12  ;;  %v3901_v33 = vld [vmem:[%s22784_s12 + $0x5c0] sm:$0xff]  ;;  %v3906_v12 = vld [vmem:[%s22784_s12 + $0x5e8] sm:$0xff]  ;;  %v14573_v15 = vpack.c.bf16 %v3874_v63, %v3873_v62  ;;  %v3601_v40 = vmul.f32 %v18002_v26, %v18002_v26  ;;  %v3581_v63 = vmul.f32 0.5, %v17776_v25 }
0x12a0   : > { %4255 = vmatmul.mubr.f32.vlgmr.msra.gmra.mrb[44].mxu1 %v3707_v39  ;;  %14554 = vmatprep.subr.bf16.mxu0 %v14553_v29  ;;  %v3883_v29 = vld [vmem:[%s22784_s12 + $0x530] sm:$0xff]  ;;  %v14563_v30 = vpack.c.bf16 %v3852_v13, %v3851_v5  ;;  %v3663_v39 = vmul.f32 0.7978846, %v3647_v22  ;;  %v3876_v13 = vld [vmem:[%s22784_s12 + $0x4f8] sm:$0xff]  ;;  %v3890_v24 = vld [vmem:[%s22784_s12 + $0x568] sm:$0xff]  ;;  %v3583_v53 = vmul.f32 0.5, %v17794_v35 }
0x12a1   : > { %14584 = vmatpush3.bf16.msra.mxu1 %v14583_v36  ;;  %4394 = vmatprep.mubr.f32.mxu1 %v3712_v48  ;;  %v3902_v36 = vld [vmem:[%s22784_s12 + $0x5c8] sm:$0xff]  ;;  %v3875_v5 = vld [vmem:[%s22784_s12 + $0x4f0] sm:$0xff]  ;;  %v3860_v14 = vld [vmem:[%s22784_s12 + $0x478] sm:$0xff] }
0x12a2   : > { %14586 = vmatprep.subr.bf16.mxu1 %v14585_v47  ;;  %v14595_v47 = vpack.c.bf16 %v3884_v16, %v3883_v29  ;;  %v14597_v48 = vpack.c.bf16 %v3902_v36, %v3901_v33  ;;  %16142 = vtanh.f32 %v3663_v39  ;;  %v3908_v29 = vld [vmem:[%s22784_s12 + $0x5f8] sm:$0xff]  ;;  %v14577_v16 = vpack.c.bf16 %v3876_v13, %v3875_v5  ;;  %v3859_v45 = vld [vmem:[%s22784_s12 + $0x470] sm:$0xff]  ;;  %v3925_v36 = vld [vmem:[%s22784_s12 + $0x680] sm:$0xff] }
0x12a3   : > { %14556 = vmatpush3.bf16.msra.mxu0 %v14555_v43  ;;  %v3885_v43 = vld [vmem:[%s22784_s12 + $0x540] sm:$0xff]  ;;  %16144 = vtanh.f32 %v3668_v41  ;;  %v3926_v58 = vld [vmem:[%s22784_s12 + $0x688] sm:$0xff]  ;;  %v3892_v39 = vld [vmem:[%s22784_s12 + $0x578] sm:$0xff]  ;;  %v14579_v21 = vpack.c.bf16 %v3860_v14, %v3859_v45 }
0x12a4   : > { %14558 = vmatprep.subr.bf16.mxu0 %v14557_v51  ;;  %v3904_v51 = vld [vmem:[%s22784_s12 + $0x5d8] sm:$0xff]  ;;  %v3957_v41 = vld [vmem:[%s22784_s12 + $0x780] sm:$0xff]  ;;  %v14611_v61 = vpack.c.bf16 %v3892_v39, %v3891_v38  ;;  %v3942_v9 = vld [vmem:[%s22784_s12 + $0x708] sm:$0xff] }
0x12a5   : > { %14588 = vmatpush3.bf16.msra.mxu1 %v14587_v4  ;;  %v14599_v4 = vpack.c.bf16 %v3886_v19, %v3885_v43  ;;  %v14601_v0 = vpack.c.bf16 %v3904_v51, %v3903_v50  ;;  %v3909_v50 = vld [vmem:[%s22784_s12 + $0x600] sm:$0xff]  ;;  %v3910_v51 = vld [vmem:[%s22784_s12 + $0x608] sm:$0xff]  ;;  %v3928_v62 = vld [vmem:[%s22784_s12 + $0x698] sm:$0xff] }
0x12a6   : > { %14590 = vmatprep.subr.bf16.mxu1 %v14589_v1  ;;  %v3887_v1 = vld [vmem:[%s22784_s12 + $0x550] sm:$0xff]  ;;  %v3960_v20 = vld [vmem:[%s22784_s12 + $0x798] sm:$0xff]  ;;  %v3929_v35 = vld [vmem:[%s22784_s12 + $0x6a0] sm:$0xff] }
0x12a7   : > { %14560 = vmatpush3.bf16.msra.mxu0 %v14559_v7  ;;  %v3905_v7 = vld [vmem:[%s22784_s12 + $0x5e0] sm:$0xff]  ;;  %v3959_v25 = vld [vmem:[%s22784_s12 + $0x790] sm:$0xff]  ;;  %v3914_v38 = vld [vmem:[%s22784_s12 + $0x628] sm:$0xff] }
0x12a8   : > { %14562 = vmatprep.subr.bf16.mxu0 %v14561_v34  ;;  %v14603_v34 = vpack.c.bf16 %v3888_v3, %v3887_v1  ;;  %v14605_v22 = vpack.c.bf16 %v3906_v12, %v3905_v7  ;;  %v3941_v3 = vld [vmem:[%s22784_s12 + $0x700] sm:$0xff]  ;;  %v14615_v7 = vpack.c.bf16 %v3910_v51, %v3909_v50  ;;  %v3586_v12 = vmul.f32 0.5, %v17785_v28  ;;  %v3911_v13 = vld [vmem:[%s22784_s12 + $0x610] sm:$0xff]  ;;  %v3912_v28 = vld [vmem:[%s22784_s12 + $0x618] sm:$0xff] }
0x12a9   : > { %14592 = vmatpush3.bf16.msra.mxu1 %v14591_v23  ;;  %v3889_v23 = vld [vmem:[%s22784_s12 + $0x560] sm:$0xff]  ;;  %v3943_v45 = vld [vmem:[%s22784_s12 + $0x710] sm:$0xff]  ;;  %v3964_v51 = vld [vmem:[%s22784_s12 + $0x7b8] sm:$0xff] }
0x12aa   : > { %14594 = vmatprep.subr.bf16.mxu1 %v14593_v27  ;;  %v3907_v27 = vld [vmem:[%s22784_s12 + $0x5f0] sm:$0xff]  ;;  %v14607_v33 = vpack.c.bf16 %v3890_v24, %v3889_v23  ;;  %v14647_v24 = vpack.c.bf16 %v3942_v9, %v3941_v3  ;;  %v3948_v9 = vld [vmem:[%s22784_s12 + $0x738] sm:$0xff] }
0x12ab   : > { %14564 = vmatpush3.bf16.msra.mxu0 %v14563_v30  ;;  %v16139_v30 = vpop.eup %16138  ;;  %v14609_v37 = vpack.c.bf16 %v3908_v29, %v3907_v27  ;;  %v3930_v27 = vld [vmem:[%s22784_s12 + $0x6a8] sm:$0xff]  ;;  %v3963_v50 = vld [vmem:[%s22784_s12 + $0x7b0] sm:$0xff] }
0x12ac   : > { %14566 = vmatprep.subr.bf16.mxu0 %v14565_v18  ;;  %v16141_v18 = vpop.eup %16140  ;;  %v3693_v19 = vadd.f32 1.0, %v16139_v30  ;;  %v3947_v3 = vld [vmem:[%s22784_s12 + $0x730] sm:$0xff] }
0x12ad   : > { %14596 = vmatpush3.bf16.msra.mxu1 %v14595_v47  ;;  %v16143_v47 = vpop.eup %16142  ;;  %v3698_v8 = vadd.f32 1.0, %v16141_v18  ;;  %v14621_v18 = vpack.c.bf16 %v3930_v27, %v3929_v35  ;;  %v3967_v35 = vld [vmem:[%s22784_s12 + $0x7d0] sm:$0xff]  ;;  %v3968_v27 = vld [vmem:[%s22784_s12 + $0x7d8] sm:$0xff] }
0x12ae   : > { %14598 = vmatprep.subr.bf16.mxu1 %v14597_v48  ;;  %v3958_v48 = vld [vmem:[%s22784_s12 + $0x788] sm:$0xff]  ;;  %v16145_v43 = vpop.eup %16144 }
0x12af   : > { %14568 = vmatpush3.bf16.msra.mxu0 %v14567_v49  ;;  %v14613_v49 = vpack.c.bf16 %v3926_v58, %v3925_v36  ;;  %v14645_v1 = vpack.c.bf16 %v3958_v48, %v3957_v41  ;;  %v3714_v23 = vmul.f32 %v3698_v8, %v3586_v12  ;;  %v3961_v36 = vld [vmem:[%s22784_s12 + $0x7a0] sm:$0xff]  ;;  %v3962_v58 = vld [vmem:[%s22784_s12 + $0x7a8] sm:$0xff]  ;;  %v3916_v8 = vld [vmem:[%s22784_s12 + $0x638] sm:$0xff] }
0x12b0   : > { %14570 = vmatprep.subr.bf16.mxu0 %v14569_v42  ;;  %v3603_v42 = vmul.f32 %v17573_v2, %v17573_v2  ;;  %v14653_v41 = vpack.c.bf16 %v3962_v58, %v3961_v36  ;;  %v3945_v48 = vld [vmem:[%s22784_s12 + $0x720] sm:$0xff]  ;;  %v3951_v36 = vld [vmem:[%s22784_s12 + $0x750] sm:$0xff]  ;;  %v3952_v58 = vld [vmem:[%s22784_s12 + $0x758] sm:$0xff] }
0x12b1   : > { %14600 = vmatpush3.bf16.msra.mxu1 %v14599_v4  ;;  %v3927_v4 = vld [vmem:[%s22784_s12 + $0x690] sm:$0xff]  ;;  %v3965_v12 = vld [vmem:[%s22784_s12 + $0x7c0] sm:$0xff] }
0x12b2   : > { %14602 = vmatprep.subr.bf16.mxu1 %v14601_v0  ;;  %v3695_v0 = vadd.f32 1.0, %v16143_v47  ;;  %v14617_v5 = vpack.c.bf16 %v3928_v62, %v3927_v4 }
0x12b3   : > { %14572 = vmatpush3.bf16.msra.mxu0 %v14571_v6  ;;  %v3617_v6 = vmul.f32 %v3601_v40, %v18002_v26  ;;  %v3931_v40 = vld [vmem:[%s22784_s12 + $0x6b0] sm:$0xff] }
0x12b4   : > { %14574 = vmatprep.subr.bf16.mxu0 %v14573_v15  ;;  %v3700_v15 = vadd.f32 1.0, %v16145_v43  ;;  %v3711_v29 = vmul.f32 %v3695_v0, %v3583_v53  ;;  %v3946_v43 = vld [vmem:[%s22784_s12 + $0x728] sm:$0xff] }
0x12b5   : > { %14604 = vmatpush3.bf16.msra.mxu1 %v14603_v34  ;;  %v3709_v34 = vmul.f32 %v3693_v19, %v3581_v63  ;;  %v3633_v14 = vmul.f32 0.044715, %v3617_v6  ;;  %v14655_v62 = vpack.c.bf16 %v3946_v43, %v3945_v48  ;;  %v3933_v63 = vld [vmem:[%s22784_s12 + $0x6c0] sm:$0xff]  ;;  %v3934_v0 = vld [vmem:[%s22784_s12 + $0x6c8] sm:$0xff]  ;;  %v3940_v48 = vld [vmem:[%s22784_s12 + $0x6f8] sm:$0xff] }
0x12b6   : > { %14606 = vmatprep.subr.bf16.mxu1 %v14605_v22  ;;  %v3619_v22 = vmul.f32 %v3603_v42, %v17573_v2  ;;  %v3918_v53 = vld [vmem:[%s22784_s12 + $0x648] sm:$0xff] }
0x12b7   : > { %14576 = vmatpush3.bf16.msra.mxu0 %v14575_v31  ;;  %v3588_v31 = vmul.f32 0.5, %v17803_v32  ;;  %v3944_v32 = vld [vmem:[%s22784_s12 + $0x718] sm:$0xff]  ;;  %v3649_v19 = vadd.f32 %v3633_v14, %v18002_v26  ;;  %v3937_v14 = vld [vmem:[%s22784_s12 + $0x6e0] sm:$0xff] }
0x12b8   : > { %14578 = vmatprep.subr.bf16.mxu0 %v14577_v16  ;;  %v14649_v16 = vpack.c.bf16 %v3960_v20, %v3959_v25  ;;  %v3635_v39 = vmul.f32 0.044715, %v3619_v22  ;;  %v14651_v47 = vpack.c.bf16 %v3944_v32, %v3943_v45  ;;  %v14629_v25 = vpack.c.bf16 %v3934_v0, %v3933_v63  ;;  %v3917_v20 = vld [vmem:[%s22784_s12 + $0x640] sm:$0xff]  ;;  %v3920_v45 = vld [vmem:[%s22784_s12 + $0x658] sm:$0xff] }
0x12b9   : > { %14608 = vmatpush3.bf16.msra.mxu1 %v14607_v33  ;;  %v3716_v30 = vmul.f32 %v3700_v15, %v3588_v31  ;;  %v14619_v33 = vpack.c.bf16 %v3912_v28, %v3911_v13  ;;  %v3665_v6 = vmul.f32 0.7978846, %v3649_v19  ;;  %v3966_v15 = vld [vmem:[%s22784_s12 + $0x7c8] sm:$0xff]  ;;  %v3935_v13 = vld [vmem:[%s22784_s12 + $0x6d0] sm:$0xff]  ;;  %v3936_v28 = vld [vmem:[%s22784_s12 + $0x6d8] sm:$0xff]  ;;  %v14631_v31 = vpack.c.bf16 %v3918_v53, %v3917_v20 }
0x12ba   : > { %14610 = vmatprep.subr.bf16.mxu1 %v14609_v37  ;;  %v3913_v37 = vld [vmem:[%s22784_s12 + $0x620] sm:$0xff]  ;;  %v3651_v4 = vadd.f32 %v3635_v39, %v17573_v2  ;;  %v14661_v22 = vpack.c.bf16 %v3966_v15, %v3965_v12  ;;  %v3585_v15 = vmul.f32 0.5, %v18002_v26  ;;  %v3587_v20 = vmul.f32 0.5, %v17573_v2 }
0x12bb   : > { %14580 = vmatpush3.bf16.msra.mxu0 %v14579_v21  ;;  %v3932_v21 = vld [vmem:[%s22784_s12 + $0x6b8] sm:$0xff]  ;;  %16146 = vtanh.f32 %v3665_v6  ;;  %v3953_v19 = vld [vmem:[%s22784_s12 + $0x760] sm:$0xff] }
0x12bc   : > { %14614 = vmatprep.subr.bf16.mxu0 %v14613_v49  ;;  %v14623_v49 = vpack.c.bf16 %v3914_v38, %v3913_v37  ;;  %v14625_v42 = vpack.c.bf16 %v3932_v21, %v3931_v40  ;;  %v3969_v37 = vld [vmem:[%s22784_s12 + $0x7e0] sm:$0xff]  ;;  %v3970_v38 = vld [vmem:[%s22784_s12 + $0x7e8] sm:$0xff]  ;;  %v14667_v21 = vpack.c.bf16 %v3952_v58, %v3951_v36 }
0x12bd   : > { %14612 = vmatpush3.bf16.msra.mxu1 %v14611_v61  ;;  %v3915_v61 = vld [vmem:[%s22784_s12 + $0x630] sm:$0xff]  ;;  %v3922_v40 = vld [vmem:[%s22784_s12 + $0x668] sm:$0xff]  ;;  %v14669_v43 = vpack.c.bf16 %v3970_v38, %v3969_v37  ;;  %v12111_v2 = vld [vmem:[%s22785_s13] ss:$0 sm:$0xff] }
0x12be   : > { %4325 = vmatmul.mubr.f32.vlgmr.msra.gmra.mrb[32].mxu0 %v3709_v34  ;;  %14646 = vmatprep.subr.bf16.mxu1 %v14645_v1  ;;  %v14657_v1 = vpack.c.bf16 %v3964_v51, %v3963_v50  ;;  %v3667_v34 = vmul.f32 0.7978846, %v3651_v4  ;;  %v3971_v51 = vld [vmem:[%s22784_s12 + $0x7f0] sm:$0xff]  ;;  %v3924_v4 = vld [vmem:[%s22784_s12 + $0x678] sm:$0xff] }
0x12bf   : > { %14616 = vmatpush3.bf16.msra.mxu0 %v14615_v7  ;;  %4464 = vmatprep.mubr.f32.mxu0 %v3714_v23  ;;  %v14627_v7 = vpack.c.bf16 %v3916_v8, %v3915_v61  ;;  %v3949_v23 = vld [vmem:[%s22784_s12 + $0x740] sm:$0xff]  ;;  %v3923_v8 = vld [vmem:[%s22784_s12 + $0x670] sm:$0xff] }
0x12c0   : > { %4395 = vmatmul.mubr.f32.vlgmr.msra.gmra.mrb[46].mxu1 %v3711_v29  ;;  %14618 = vmatprep.subr.bf16.mxu0 %v14617_v5  ;;  %v14659_v5 = vpack.c.bf16 %v3948_v9, %v3947_v3  ;;  %v14633_v29 = vpack.c.bf16 %v3936_v28, %v3935_v13  ;;  %16148 = vtanh.f32 %v3667_v34  ;;  %v3956_v3 = vld [vmem:[%s22784_s12 + $0x778] sm:$0xff]  ;;  %v14643_v6 = vpack.c.bf16 %v3924_v4, %v3923_v8 }
0x12c1   : > { %14648 = vmatpush3.bf16.msra.mxu1 %v14647_v24  ;;  %4534 = vmatprep.mubr.f32.mxu1 %v3716_v30  ;;  %v3950_v24 = vld [vmem:[%s22784_s12 + $0x748] sm:$0xff] }
0x12c2   : > { %14650 = vmatprep.subr.bf16.mxu1 %v14649_v16  ;;  %v3919_v16 = vld [vmem:[%s22784_s12 + $0x650] sm:$0xff]  ;;  %v14663_v32 = vpack.c.bf16 %v3950_v24, %v3949_v23  ;;  %v3938_v30 = vld [vmem:[%s22784_s12 + $0x6e8] sm:$0xff] }
0x12c3   : > { %14620 = vmatpush3.bf16.msra.mxu0 %v14619_v33  ;;  %v14665_v33 = vpack.c.bf16 %v3968_v27, %v3967_v35  ;;  %v14637_v39 = vpack.c.bf16 %v3938_v30, %v3937_v14 }
0x12c4   : > { %14622 = vmatprep.subr.bf16.mxu0 %v14621_v18  ;;  %v14635_v18 = vpack.c.bf16 %v3920_v45, %v3919_v16 }
0x12c5   : > { %14652 = vmatpush3.bf16.msra.mxu1 %v14651_v47  ;;  %v3921_v47 = vld [vmem:[%s22784_s12 + $0x660] sm:$0xff] }
0x12c6   : > { %14654 = vmatprep.subr.bf16.mxu1 %v14653_v41  ;;  %v3939_v41 = vld [vmem:[%s22784_s12 + $0x6f0] sm:$0xff]  ;;  %v14639_v50 = vpack.c.bf16 %v3922_v40, %v3921_v47 }
0x12c7   : > { %14624 = vmatpush3.bf16.msra.mxu0 %v14623_v49  ;;  %v3954_v49 = vld [vmem:[%s22784_s12 + $0x768] sm:$0xff]  ;;  %v14641_v61 = vpack.c.bf16 %v3940_v48, %v3939_v41 }
0x12c8   : > { %14626 = vmatprep.subr.bf16.mxu0 %v14625_v42  ;;  %v3972_v42 = vld [vmem:[%s22784_s12 + $0x7f8] sm:$0xff]  ;;  %v14671_v63 = vpack.c.bf16 %v3954_v49, %v3953_v19 }
0x12c9   : > { %14656 = vmatpush3.bf16.msra.mxu1 %v14655_v62  ;;  %v16147_v62 = vpop.eup %16146  ;;  %v14673_v0 = vpack.c.bf16 %v3972_v42, %v3971_v51 }
0x12ca   : > { %14658 = vmatprep.subr.bf16.mxu1 %v14657_v1  ;;  %v3955_v1 = vld [vmem:[%s22784_s12 + $0x770] sm:$0xff]  ;;  %v16149_v9 = vpop.eup %16148 }
0x12cb   : > { %14628 = vmatpush3.bf16.msra.mxu0 %v14627_v7  ;;  %v3697_v7 = vadd.f32 1.0, %v16147_v62  ;;  %v14675_v12 = vpack.c.bf16 %v3956_v3, %v3955_v1  ;;  %v12121_v3 = vld [vmem:[%s22778_s6 + $0x80] sm:$0xff] }
0x12cc   : > { %14630 = vmatprep.subr.bf16.mxu0 %v14629_v25  ;;  %v3699_v25 = vadd.f32 1.0, %v16149_v9  ;;  %v12122_v9 = vld [vmem:[%s22778_s6 + $0x88] sm:$0xff] }
0x12cd   : > { %14660 = vmatpush3.bf16.msra.mxu1 %v14659_v5  ;;  %v3713_v53 = vmul.f32 %v3697_v7, %v3585_v15  ;;  %v12118_v7 = vld [vmem:[%s22777_s5 + $0x90] sm:$0xff] }
0x12ce   : > { %14662 = vmatprep.subr.bf16.mxu1 %v14661_v22  ;;  %v3715_v34 = vmul.f32 %v3699_v25, %v3587_v20  ;;  %v12123_v15 = vld [vmem:[%s22778_s6 + $0x90] sm:$0xff]  ;;  %v12124_v20 = vld [vmem:[%s22778_s6 + $0x98] sm:$0xff] }
0x12cf   : > { %14632 = vmatpush3.bf16.msra.mxu0 %v14631_v31 }
0x12d0   : > { %14634 = vmatprep.subr.bf16.mxu0 %v14633_v29 }
0x12d1   : > { %14664 = vmatpush3.bf16.msra.mxu1 %v14663_v32 }
0x12d2   : > { %14666 = vmatprep.subr.bf16.mxu1 %v14665_v33 }
0x12d3   : > { %14636 = vmatpush3.bf16.msra.mxu0 %v14635_v18 }
0x12d4   : > { %14638 = vmatprep.subr.bf16.mxu0 %v14637_v39 }
0x12d5   : > { %14668 = vmatpush3.bf16.msra.mxu1 %v14667_v21 }
0x12d6   : > { %14670 = vmatprep.subr.bf16.mxu1 %v14669_v43 }
0x12d7   : > { %14640 = vmatpush3.bf16.msra.mxu0 %v14639_v50 }
0x12d8   : > { %14642 = vmatprep.subr.bf16.mxu0 %v14641_v61 }
0x12d9   : > { %14672 = vmatpush3.bf16.msra.mxu1 %v14671_v63 }
0x12da   : > { %14674 = vmatprep.subr.bf16.mxu1 %v14673_v0  ;;  %v12116_v0 = vld [vmem:[%s22777_s5 + $0x80] sm:$0xff] }
0x12db   : > { %14644 = vmatpush3.bf16.msra.mxu0 %v14643_v6  ;;  %v14684_v6 = vpack.c.bf16 %v12122_v9, %v12121_v3 }
0x12dc   : > { %14677 = vmatprep.subr.bf16.mxu0 %v16264_v46 }
0x12dd   : > { %14676 = vmatpush3.bf16.msra.mxu1 %v14675_v12  ;;  %v12119_v12 = vld [vmem:[%s22777_s5 + $0x98] sm:$0xff] }
0x12de   : > { %4465 = vmatmul.mubr.f32.vlgmr.msra.gmra.mrb[34].mxu0 %v3713_v53  ;;  %14683 = vmatprep.subr.bf16.mxu1 %v16264_v46  ;;  %v14681_v25 = vpack.c.bf16 %v12119_v12, %v12118_v7  ;;  %v14687_v53 = vpack.c.bf16 %v12124_v20, %v12123_v15  ;;  %v12141_v12 = vld [vmem:[%s22778_s6 + $0xa0] sm:$0xff]  ;;  %v12142_v15 = vld [vmem:[%s22778_s6 + $0xa8] sm:$0xff] }
0x12df   : > { %13923 = vmatprep.mubr.msk.f32.mxu0 %vm16265_vm1, %v16266_v54  ;;  %v14702_v20 = vpack.c.bf16 %v12142_v15, %v12141_v12 }
0x12e0   : > { %4535 = vmatmul.mubr.f32.vlgmr.msra.gmra.mrb[48].mxu1 %v3715_v34 }
0x12e1   : > { %13934 = vmatprep.mubr.msk.f32.mxu1 %vm16265_vm1, %v16266_v54  ;;  %14685 = vmatpush3.bf16.msra.mxu1 %v14684_v6 }
0x12e2   : > { %14686 = vmatprep.subr.bf16.mxu1 %v16264_v46 }
0x12e5   : > { %14688 = vmatpush3.bf16.msra.mxu1 %v14687_v53 }
0x12e6   : > { %13948 = vmatprep.subr.mxu1 %v16266_v54 }
0x1351   : > { %v12863_v26 = vpop.f32.mrb[28].mxu0 }
0x1352   : > { %v12864_v5 = vpop.f32.mrb[29].mxu0  ;;  %v12898_v13 = vpop.f32.mrb[42].mxu1 }
0x1353   : > { %v12865_v28 = vadd.f32 %v12864_v5, %v12863_v26  ;;  %v12899_v22 = vpop.f32.mrb[43].mxu1 }
0x1354   : > { %v12900_v24 = vadd.f32 %v12899_v22, %v12898_v13  ;;  %v12113_v13 = vld [vmem:[%s22825_s0 + $0x1] ss:$0 sm:$0xff]  ;;  %s16206_s0 = scalar_lea.vmem %s16205_s24, 32 }
0x1355   : > { %v4047_v23 = vadd.f32 %v12865_v28, %v12111_v2  ;;  %v12126_v22 = vld [vmem:[%s22779_s7 + $0x80] sm:$0xff]  ;;  %p16208_p1 = scmp.lt.s32.totalorder %s16206_s0, %s16200_s28 }
0x1357   : > { %v4117_v31 = vadd.f32 %v12900_v24, %v4047_v23  ;;  %v12127_v23 = vld [vmem:[%s22779_s7 + $0x88] sm:$0xff]  ;;  %v12115_v24 = vld [vmem:[%s22826_s30 + $0x1] ss:$0 sm:$0xff]  ;;  %p16209_p2 = por %p16208_p1, %p16207_p0 }
0x1359   : > { %p16210_p3 = pnand %p16209_p2, %p16203_p13 }
0x1371   : > { %v12933_v35 = vpop.f32.mrb[30].mxu0 }
0x1372   : > { %v12934_v27 = vpop.f32.mrb[31].mxu0 }
0x1373   : > { %v12968_v29 = vpop.f32.mrb[44].mxu1  ;;  %v12935_v16 = vadd.f32 %v12934_v27, %v12933_v35  ;;  %v14690_v35 = vpack.c.bf16 %v12127_v23, %v12126_v22 }
0x1374   : > { %v12969_v45 = vpop.f32.mrb[45].mxu1 }
0x1375   : > { %v4187_v32 = vadd.f32 %v12935_v16, %v4117_v31  ;;  %v12970_v14 = vadd.f32 %v12969_v45, %v12968_v29  ;;  %v12128_v29 = vld [vmem:[%s22779_s7 + $0x90] sm:$0xff]  ;;  %v12129_v16 = vld [vmem:[%s22779_s7 + $0x98] sm:$0xff] }
0x1376   : > { %v14693_v45 = vpack.c.bf16 %v12129_v16, %v12128_v29 }
0x1377   : > { %v4257_v30 = vadd.f32 %v12970_v14, %v4187_v32  ;;  %v12136_v32 = vld [vmem:[%s22777_s5 + $0xa0] sm:$0xff]  ;;  %v12137_v14 = vld [vmem:[%s22777_s5 + $0xa8] sm:$0xff] }
0x1391   : > { %v13003_v33 = vpop.f32.mrb[32].mxu0 }
0x1392   : > { %v13004_v36 = vpop.f32.mrb[33].mxu0 }
0x1393   : > { %v13038_v58 = vpop.f32.mrb[46].mxu1  ;;  %v13005_v18 = vadd.f32 %v13004_v36, %v13003_v33  ;;  %v12138_v33 = vld [vmem:[%s22777_s5 + $0xb0] sm:$0xff]  ;;  %v12139_v36 = vld [vmem:[%s22777_s5 + $0xb8] sm:$0xff] }
0x1394   : > { %v13039_v37 = vpop.f32.mrb[47].mxu1 }
0x1395   : > { %v4327_v38 = vadd.f32 %v13005_v18, %v4257_v30  ;;  %v13040_v39 = vadd.f32 %v13039_v37, %v13038_v58  ;;  %v14696_v30 = vpack.c.bf16 %v12137_v14, %v12136_v32  ;;  %v14699_v58 = vpack.c.bf16 %v12139_v36, %v12138_v33  ;;  %v12146_v18 = vld [vmem:[%s22779_s7 + $0xa0] sm:$0xff]  ;;  %v12147_v37 = vld [vmem:[%s22779_s7 + $0xa8] sm:$0xff] }
0x1397   : > { %v4397_v47 = vadd.f32 %v13040_v39, %v4327_v38  ;;  %v14708_v38 = vpack.c.bf16 %v12147_v37, %v12146_v18  ;;  %v12148_v39 = vld [vmem:[%s22779_s7 + $0xb0] sm:$0xff]  ;;  %v12135_v18 = vld [vmem:[%s22780_s8 + $0x20] sm:$0xff] }
0x1398   : > { %v12163_v37 = vld [vmem:[%s22778_s6 + $0xc0] sm:$0xff] }
0x13b1   : > { %v13073_v40 = vpop.f32.mrb[34].mxu0 }
0x13b2   : > { %v13074_v21 = vpop.f32.mrb[35].mxu0 }
0x13b3   : > { %v13108_v41 = vpop.f32.mrb[48].mxu1  ;;  %v13075_v48 = vadd.f32 %v13074_v21, %v13073_v40 }
0x13b4   : > { %v13109_v43 = vpop.f32.mrb[49].mxu1 }
0x13b5   : > { %v4467_v19 = vadd.f32 %v13075_v48, %v4397_v47  ;;  %v13110_v49 = vadd.f32 %v13109_v43, %v13108_v41  ;;  %v12149_v47 = vld [vmem:[%s22779_s7 + $0xb8] sm:$0xff] }
0x13b6   : > { %v14711_v40 = vpack.c.bf16 %v12149_v47, %v12148_v39  ;;  %v12165_v47 = vld [vmem:[%s22778_s6 + $0xd0] sm:$0xff] }
0x13b7   : > { %v4537_v50 = vadd.f32 %v13110_v49, %v4467_v19 }
0x13b9   : > { %v18238_v51 = vadd.f32 %v4537_v50, %v17139_v17  ;;  %v12117_v17 = vld [vmem:[%s22777_s5 + $0x88] sm:$0xff] }
0x13ba   : > { %v14678_v1 = vpack.c.bf16 %v12117_v17, %v12116_v0 }
0x13bb   : > { %v4541_v42 = vsel %vm952_vm0, %v18238_v51, 0.0 }
0x13bc   : > { %4542 = vadd.xlane.f32.xlu0 %v4541_v42  ;;  %14679 = vmatpush3.bf16.msra.mxu0 %v14678_v1 }
0x13bd   : > { %14680 = vmatprep.subr.bf16.mxu0 %v16264_v46 }
0x13c0   : > { %14682 = vmatpush3.bf16.msra.mxu0 %v14681_v25 }
0x13c1   : > { %14689 = vmatprep.subr.bf16.mxu0 %v16264_v46 }
0x1449   : > { %v4543_v61 = vpop.xlane.xlu0 %4542 }
0x144a   : > { %v4544_v8 = vmul.f32 0.03125, %v4543_v61 }
0x144c   : > { %v4545_v4 = vsub.f32 %v18238_v51, %v4544_v8 }
0x144e   : > { %v4546_v62 = vmul.f32 %v4545_v4, %v4545_v4 }
0x1450   : > { %v4547_v63 = vsel %vm952_vm0, %v4546_v62, 0.0 }
0x1451   : > { %4548 = vadd.xlane.f32.xlu1 %v4547_v63 }
0x14de   : > { %v4549_v34 = vpop.xlane.xlu1 %4548 }
0x14df   : > { %v4550_v26 = vmul.f32 0.03125, %v4549_v34  ;;  %v12143_v34 = vld [vmem:[%s22778_s6 + $0xb0] sm:$0xff] }
0x14e1   : > { %v4551_v2 = vadd.f32 1e-05, %v4550_v26  ;;  %v12144_v26 = vld [vmem:[%s22778_s6 + $0xb8] sm:$0xff] }
0x14e3   : > { %16150 = vrsqrt.f32 %v4551_v2  ;;  %v14705_v2 = vpack.c.bf16 %v12144_v26, %v12143_v34 }
0x14ed   : > { %v16151_v5 = vpop.eup %16150 }
0x14ee   : > { %v4553_v28 = vmul.f32 %v16151_v5, %v4545_v4 }
0x14f0   : > { %v4562_v31 = vmul.f32 %v12113_v13, %v4553_v28 }
0x14f2   : > { %v18284_v27 = vadd.f32 %v12115_v24, %v4562_v31 }
0x14f4   : > { %13924 = vmatmul.mubr.msk.f32.vlgmr.msra.gmra.mrb[36].mxu0 %vm987_vm2, %v18284_v27  ;;  %13935 = vmatmul.mubr.msk.f32.vlgmr.msra.gmra.mrb[50].mxu1 %vm987_vm2, %v18284_v27 }
0x14f5   : > { %14691 = vmatpush3.bf16.msra.mxu0 %v14690_v35  ;;  %13945 = vmatprep.mubr.msk.f32.mxu0 %vm16265_vm1, %v16266_v54 }
0x14f6   : > { %14692 = vmatprep.subr.bf16.mxu0 %v16264_v46  ;;  %13950 = vmatprep.mubr.msk.f32.mxu1 %vm16265_vm1, %v16266_v54 }
0x14f9   : > { %14694 = vmatpush3.bf16.msra.mxu0 %v14693_v45 }
0x14fa   : > { %14695 = vmatprep.subr.bf16.mxu0 %v16264_v46 }
0x14fc   : > { %13946 = vmatmul.mubr.msk.f32.vlgmr.msra.gmra.mrb[38].mxu0 %vm987_vm2, %v18284_v27 }
0x14fd   : > { %14697 = vmatpush3.bf16.msra.mxu0 %v14696_v30  ;;  %13966 = vmatprep.mubr.msk.f32.mxu0 %vm16265_vm1, %v16266_v54  ;;  %v12155_v30 = vld [vmem:[%s22780_s8 + $0x28] sm:$0xff] }
0x14fe   : > { %14698 = vmatprep.subr.bf16.mxu0 %v16264_v46 }
0x1501   : > { %14700 = vmatpush3.bf16.msra.mxu0 %v14699_v58 }
0x1502   : > { %14707 = vmatprep.subr.bf16.mxu0 %v16264_v46 }
0x1504   : > { %13967 = vmatmul.mubr.msk.f32.vlgmr.msra.gmra.mrb[40].mxu0 %vm987_vm2, %v18284_v27 }
0x1505   : > { %14709 = vmatpush3.bf16.msra.mxu0 %v14708_v38  ;;  %13988 = vmatprep.mubr.msk.f32.mxu0 %vm16265_vm1, %v16266_v54  ;;  %v12164_v38 = vld [vmem:[%s22778_s6 + $0xc8] sm:$0xff] }
0x1506   : > { %14710 = vmatprep.subr.bf16.mxu0 %v16264_v46  ;;  %v14720_v39 = vpack.c.bf16 %v12164_v38, %v12163_v37  ;;  %v12190_v37 = vld [vmem:[%s22779_s7 + $0xe8] sm:$0xff] }
0x1509   : > { %14712 = vmatpush3.bf16.msra.mxu0 %v14711_v40  ;;  %v12166_v40 = vld [vmem:[%s22778_s6 + $0xd8] sm:$0xff] }
0x150a   : > { %14001 = vmatprep.subr.mxu0 %v16266_v54 }
0x150c   : > { %13989 = vmatmul.mubr.msk.f32.vlgmr.msra.gmra.mrb[42].mxu0 %vm987_vm2, %v18284_v27 }
0x150d   : > { %14003 = vmatprep.mubr.msk.f32.mxu0 %vm16265_vm1, %v16266_v54  ;;  %14002 = vmatpush3.msra.mxu0 %v12155_v30 }
0x150e   : > { %14713 = vmatprep.subr.bf16.mxu0 %v16264_v46 }
0x15c7   : > { %v4646_v21 = vpop.f32.mrb[36].mxu0  ;;  %v4721_v41 = vpop.f32.mrb[50].mxu1 }
0x15c8   : > { %v13925_v48 = vpop.f32.mrb[37].mxu0  ;;  %v13936_v43 = vpop.f32.mrb[51].mxu1  ;;  %13949 = vmatpush3.xpose.msk.msra.mxu1 %vm1209_vm3, %v4721_v41  ;;  %v12158_v41 = vld [vmem:[%s22777_s5 + $0xc0] sm:$0xff] }
0x15c9   : > { %13953 = vmatprep.subr.mxu1 %v16266_v54  ;;  %v12159_v48 = vld [vmem:[%s22777_s5 + $0xc8] sm:$0xff] }
0x15ca   : > { %v14714_v43 = vpack.c.bf16 %v12159_v48, %v12158_v41  ;;  %v12185_v41 = vld [vmem:[%s22778_s6 + $0xe8] sm:$0xff] }
0x15cb   : > { %13951 = vmatmul.mubr.msk.f32.vlgmr.msra.gmra.mrb[52].mxu1 %vm1209_vm3, %v4646_v21  ;;  %v14723_v21 = vpack.c.bf16 %v12166_v40, %v12165_v47  ;;  %v12192_v47 = vld [vmem:[%s22779_s7 + $0xf8] sm:$0xff] }
0x15cc   : > { %13955 = vmatprep.mubr.msk.f32.mxu1 %vm16265_vm1, %v16266_v54 }
0x15cf   : > { %v4796_v19 = vpop.f32.mrb[38].mxu0 }
0x15d0   : > { %v13947_v49 = vpop.f32.mrb[39].mxu0  ;;  %13954 = vmatpush3.msk.msra.mxu1 %vm1303_vm4, %v4796_v19  ;;  %v12160_v19 = vld [vmem:[%s22777_s5 + $0xd0] sm:$0xff] }
0x15d1   : > { %14701 = vmatprep.subr.bf16.mxu1 %v16264_v46  ;;  %v12161_v49 = vld [vmem:[%s22777_s5 + $0xd8] sm:$0xff] }
0x15d7   : > { %v5037_v50 = vpop.f32.mrb[40].mxu0 }
0x15d8   : > { %v13968_v42 = vpop.f32.mrb[41].mxu0 }
0x15df   : > { %v5187_v61 = vpop.f32.mrb[42].mxu0 }
0x15e0   : > { %v13990_v8 = vpop.f32.mrb[43].mxu0 }
0x15e1   : > { %v12168_v8 = vld [vmem:[%s22779_s7 + $0xc0] sm:$0xff] }
0x169e   : > { %v4872_v4 = vpop.f32.mrb[52].mxu1 }
0x169f   : > { %v4876_v62 = vmul.f32 0.35355338, %v4872_v4  ;;  %v13952_v63 = vpop.f32.mrb[53].mxu1  ;;  %v12169_v4 = vld [vmem:[%s22779_s7 + $0xc8] sm:$0xff] }
0x16a1   : > { %v4877_v0 = vsel %vm1287_vm5, %v4876_v62, -inf }
0x16a2   : > { %4878 = vmax.xlane.f32.xlu0 %v4877_v0  ;;  %v14726_v0 = vpack.c.bf16 %v12169_v4, %v12168_v8 }
0x172f   : > { %v4879_v17 = vpop.xlane.xlu0 %4878 }
0x1730   : > { %v4880_v1 = vsub.f32 %v4876_v62, %v4879_v17  ;;  %v12170_v17 = vld [vmem:[%s22779_s7 + $0xd0] sm:$0xff] }
0x1732   : > { %v4881_v3 = vmul.f32 1.442695, %v4880_v1  ;;  %v12171_v1 = vld [vmem:[%s22779_s7 + $0xd8] sm:$0xff] }
0x1734   : > { %16152 = vpow2.f32 %v4881_v3  ;;  %v14729_v3 = vpack.c.bf16 %v12171_v1, %v12170_v17 }
0x173e   : > { %v16153_v9 = vpop.eup %16152 }
0x173f   : > { %v4883_v6 = vsel %vm1287_vm5, %v16153_v9, 0.0 }
0x1740   : > { %4884 = vadd.xlane.f32.xlu1 %v4883_v6 }
0x17cd   : > { %v4885_v7 = vpop.xlane.xlu1 %4884 }
0x17ce   : > { %16154 = vrcp.f32 %v4885_v7 }
0x17d8   : > { %v16155_v25 = vpop.eup %16154 }
0x17d9   : > { %v4887_v53 = vmul.f32 %v16155_v25, %v16153_v9 }
0x17db   : > { %13956 = vmatmul.mubr.msk.f32.vlgmr.msra.gmra.mrb[54].mxu1 %vm1299_vm6, %v4887_v53 }
0x17dc   : > { %14703 = vmatpush3.bf16.msra.mxu1 %v14702_v20  ;;  %13977 = vmatprep.mubr.msk.f32.mxu1 %vm16265_vm1, %v16266_v54 }
0x17dd   : > { %14704 = vmatprep.subr.bf16.mxu1 %v16264_v46 }
0x17e0   : > { %14706 = vmatpush3.bf16.msra.mxu1 %v14705_v2 }
0x17e1   : > { %13991 = vmatprep.subr.mxu1 %v16266_v54 }
0x17e3   : > { %13978 = vmatmul.mubr.msk.f32.vlgmr.msra.gmra.mrb[56].mxu1 %vm987_vm2, %v18284_v27 }
0x17e4   : > { %13993 = vmatprep.mubr.msk.f32.mxu1 %vm16265_vm1, %v16266_v54 }
0x18ae   : > { %v4960_v5 = vpop.f32.mrb[54].mxu1 }
0x18af   : > { %v13957_v13 = vpop.f32.mrb[55].mxu1 }
0x18b6   : > { %v5112_v28 = vpop.f32.mrb[56].mxu1 }
0x18b7   : > { %v13979_v22 = vpop.f32.mrb[57].mxu1  ;;  %13992 = vmatpush3.xpose.msk.msra.mxu1 %vm1209_vm3, %v5112_v28 }
0x18b8   : > { %13996 = vmatprep.subr.mxu1 %v16266_v54 }
0x18ba   : > { %13994 = vmatmul.mubr.msk.f32.vlgmr.msra.gmra.mrb[58].mxu1 %vm1209_vm3, %v5037_v50 }
0x18bb   : > { %13997 = vmatpush3.msk.msra.mxu1 %vm1303_vm4, %v5187_v61  ;;  %13998 = vmatprep.mubr.msk.f32.mxu1 %vm16265_vm1, %v16266_v54  ;;  %v14717_v61 = vpack.c.bf16 %v12161_v49, %v12160_v19  ;;  %v12187_v19 = vld [vmem:[%s22778_s6 + $0xf8] sm:$0xff] }
0x18bc   : > { %14006 = vmatprep.subr.mxu1 %v16266_v54 }
0x198d   : > { %v5263_v23 = vpop.f32.mrb[58].mxu1 }
0x198e   : > { %v5267_v24 = vmul.f32 0.35355338, %v5263_v23  ;;  %v13995_v31 = vpop.f32.mrb[59].mxu1 }
0x1990   : > { %v5268_v35 = vsel %vm1287_vm5, %v5267_v24, -inf }
0x1991   : > { %5269 = vmax.xlane.f32.xlu0 %v5268_v35  ;;  %v12177_v35 = vld [vmem:[%s22780_s8 + $0x30] sm:$0xff] }
0x1a1e   : > { %v5270_v29 = vpop.xlane.xlu0 %5269 }
0x1a1f   : > { %v5271_v16 = vsub.f32 %v5267_v24, %v5270_v29 }
0x1a21   : > { %v5272_v45 = vmul.f32 1.442695, %v5271_v16  ;;  %v12179_v16 = vld [vmem:[%s22777_s5 + $0xe0] sm:$0xff] }
0x1a23   : > { %16156 = vpow2.f32 %v5272_v45  ;;  %v12180_v45 = vld [vmem:[%s22777_s5 + $0xe8] sm:$0xff] }
0x1a2d   : > { %v16157_v32 = vpop.eup %16156 }
0x1a2e   : > { %v5274_v14 = vsel %vm1287_vm5, %v16157_v32, 0.0 }
0x1a2f   : > { %5275 = vadd.xlane.f32.xlu1 %v5274_v14  ;;  %v14732_v14 = vpack.c.bf16 %v12180_v45, %v12179_v16  ;;  %v12204_v45 = vld [vmem:[%s22782_s10 + $0x210] sm:$0xff] }
0x1abc   : > { %v5276_v33 = vpop.xlane.xlu1 %5275 }
0x1abd   : > { %16158 = vrcp.f32 %v5276_v33  ;;  %v12181_v33 = vld [vmem:[%s22777_s5 + $0xf0] sm:$0xff] }
0x1ac7   : > { %v16159_v36 = vpop.eup %16158 }
0x1ac8   : > { %v5278_v58 = vmul.f32 %v16159_v36, %v16157_v32  ;;  %v12182_v36 = vld [vmem:[%s22777_s5 + $0xf8] sm:$0xff] }
0x1aca   : > { %13999 = vmatmul.mubr.msk.f32.vlgmr.msra.gmra.mrb[60].mxu1 %vm1299_vm6, %v5278_v58  ;;  %v14735_v58 = vpack.c.bf16 %v12182_v36, %v12181_v33  ;;  %v12235_v36 = vld [vmem:[%s22782_s10 + $0x308] sm:$0xff] }
0x1acb   : > { %14007 = vmatpush3.msra.mxu1 %v12135_v18  ;;  %14008 = vmatprep.mubr.msk.f32.mxu1 %vm16265_vm1, %v16266_v54  ;;  %v12189_v18 = vld [vmem:[%s22779_s7 + $0xe0] sm:$0xff] }
0x1acc   : > { %14719 = vmatprep.subr.bf16.mxu1 %v16264_v46  ;;  %v14744_v38 = vpack.c.bf16 %v12190_v37, %v12189_v18  ;;  %v12237_v18 = vld [vmem:[%s22782_s10 + $0x318] sm:$0xff] }
0x1ace   : > { %14009 = vmatmul.mubr.msk.f32.vlgmr.msra.gmra.mrb[62].mxu1 %vm1209_vm3, %v4960_v5 }
0x1acf   : > { %14721 = vmatpush3.bf16.msra.mxu1 %v14720_v39  ;;  %14030 = vmatprep.mubr.msk.f32.mxu1 %vm16265_vm1, %v16266_v54  ;;  %v12191_v39 = vld [vmem:[%s22779_s7 + $0xf0] sm:$0xff] }
0x1ad0   : > { %14722 = vmatprep.subr.bf16.mxu1 %v16264_v46  ;;  %v14747_v40 = vpack.c.bf16 %v12192_v47, %v12191_v39  ;;  %v12234_v39 = vld [vmem:[%s22782_s10 + $0x300] sm:$0xff] }
0x1ad1   : > { %v12250_v47 = vld [vmem:[%s22782_s10 + $0x380] sm:$0xff] }
0x1ad3   : > { %14724 = vmatpush3.bf16.msra.mxu1 %v14723_v21  ;;  %v12184_v21 = vld [vmem:[%s22778_s6 + $0xe0] sm:$0xff] }
0x1ad4   : > { %14044 = vmatprep.subr.mxu1 %v16266_v54  ;;  %v14738_v48 = vpack.c.bf16 %v12185_v41, %v12184_v21  ;;  %v14755_v21 = vpack.c.bf16 %v12250_v47, %v12234_v39  ;;  %v12236_v41 = vld [vmem:[%s22782_s10 + $0x310] sm:$0xff]  ;;  %v12242_v39 = vld [vmem:[%s22782_s10 + $0x340] sm:$0xff] }
0x1ad5   : > { %v12258_v47 = vld [vmem:[%s22782_s10 + $0x3c0] sm:$0xff] }
0x1ad6   : > { %14031 = vmatmul.mubr.msk.f32.vlgmr.msra.gmra.mrb[64].mxu1 %vm987_vm2, %v18284_v27 }
0x1ad7   : > { %14046 = vmatprep.mubr.msk.f32.mxu1 %vm16265_vm1, %v16266_v54 }
0x1b9d   : > { %v5351_v50 = vpop.f32.mrb[60].mxu1 }
0x1b9e   : > { %v14000_v42 = vpop.f32.mrb[61].mxu1  ;;  %14004 = vmatmul.mubr.msk.f32.vlgmr.msra.gmra.mrb[44].mxu0 %vm1209_vm3, %v5351_v50 }
0x1b9f   : > { %14715 = vmatpush3.bf16.msra.mxu0 %v14714_v43  ;;  %14019 = vmatprep.mubr.msk.f32.mxu0 %vm16265_vm1, %v16266_v54  ;;  %v12186_v43 = vld [vmem:[%s22778_s6 + $0xf0] sm:$0xff] }
0x1ba0   : > { %14716 = vmatprep.subr.bf16.mxu0 %v16264_v46  ;;  %v14741_v42 = vpack.c.bf16 %v12187_v19, %v12186_v43  ;;  %v12207_v19 = vld [vmem:[%s22782_s10 + $0x228] sm:$0xff] }
0x1ba1   : > { %v5499_v62 = vpop.f32.mrb[62].mxu1 }
0x1ba2   : > { %v14010_v63 = vpop.f32.mrb[63].mxu1 }
0x1ba3   : > { %14718 = vmatpush3.bf16.msra.mxu0 %v14717_v61 }
0x1ba4   : > { %14725 = vmatprep.subr.bf16.mxu0 %v16264_v46 }
0x1ba6   : > { %14020 = vmatmul.mubr.msk.f32.vlgmr.msra.gmra.mrb[46].mxu0 %vm987_vm2, %v18284_v27 }
0x1ba7   : > { %14727 = vmatpush3.bf16.msra.mxu0 %v14726_v0  ;;  %14041 = vmatprep.mubr.msk.f32.mxu0 %vm16265_vm1, %v16266_v54 }
0x1ba8   : > { %14728 = vmatprep.subr.bf16.mxu0 %v16264_v46 }
0x1ba9   : > { %v5649_v9 = vpop.f32.mrb[64].mxu1 }
0x1baa   : > { %v14032_v6 = vpop.f32.mrb[65].mxu1  ;;  %14045 = vmatpush3.xpose.msk.msra.mxu1 %vm1209_vm3, %v5649_v9 }
0x1bab   : > { %14730 = vmatpush3.bf16.msra.mxu0 %v14729_v3  ;;  %14049 = vmatprep.subr.mxu1 %v16266_v54 }
0x1bac   : > { %14054 = vmatprep.subr.mxu0 %v16266_v54 }
0x1bae   : > { %14042 = vmatmul.mubr.msk.f32.vlgmr.msra.gmra.mrb[48].mxu0 %vm987_vm2, %v18284_v27 }
0x1baf   : > { %14056 = vmatprep.mubr.msk.f32.mxu0 %vm16265_vm1, %v16266_v54  ;;  %14055 = vmatpush3.msra.mxu0 %v12177_v35  ;;  %v12218_v35 = vld [vmem:[%s22782_s10 + $0x280] sm:$0xff] }
0x1bb0   : > { %14737 = vmatprep.subr.bf16.mxu0 %v16264_v46 }
0x1c71   : > { %v5426_v7 = vpop.f32.mrb[44].mxu0 }
0x1c72   : > { %v18454_v12 = vadd.f32 %v5499_v62, %v5426_v7  ;;  %v14005_v15 = vpop.f32.mrb[45].mxu0 }
0x1c79   : > { %v5574_v25 = vpop.f32.mrb[46].mxu0 }
0x1c7a   : > { %v14021_v20 = vpop.f32.mrb[47].mxu0  ;;  %14047 = vmatmul.mubr.msk.f32.vlgmr.msra.gmra.mrb[66].mxu1 %vm1209_vm3, %v5574_v25 }
0x1c7b   : > { %14051 = vmatprep.mubr.msk.f32.mxu1 %vm16265_vm1, %v16266_v54 }
0x1c81   : > { %v5724_v53 = vpop.f32.mrb[48].mxu0 }
0x1c82   : > { %v14043_v34 = vpop.f32.mrb[49].mxu0  ;;  %14050 = vmatpush3.msk.msra.mxu1 %vm1303_vm4, %v5724_v53 }
0x1c83   : > { %14731 = vmatprep.subr.bf16.mxu1 %v16264_v46  ;;  %v12198_v34 = vld [vmem:[%s22780_s8 + $0x38] sm:$0xff] }
0x1d4d   : > { %v5800_v26 = vpop.f32.mrb[66].mxu1 }
0x1d4e   : > { %v5804_v2 = vmul.f32 0.35355338, %v5800_v26  ;;  %v14048_v5 = vpop.f32.mrb[67].mxu1 }
0x1d50   : > { %v5805_v13 = vsel %vm1287_vm5, %v5804_v2, -inf }
0x1d51   : > { %5806 = vmax.xlane.f32.xlu0 %v5805_v13  ;;  %v12203_v13 = vld [vmem:[%s22782_s10 + $0x208] sm:$0xff] }
0x1dde   : > { %v5807_v28 = vpop.xlane.xlu0 %5806 }
0x1ddf   : > { %v5808_v22 = vsub.f32 %v5804_v2, %v5807_v28  ;;  %v12219_v28 = vld [vmem:[%s22782_s10 + $0x288] sm:$0xff] }
0x1de1   : > { %v5809_v23 = vmul.f32 1.442695, %v5808_v22  ;;  %v12205_v22 = vld [vmem:[%s22782_s10 + $0x218] sm:$0xff] }
0x1de3   : > { %16160 = vpow2.f32 %v5809_v23  ;;  %v14749_v23 = vpack.c.bf16 %v12219_v28, %v12203_v13  ;;  %v12240_v13 = vld [vmem:[%s22782_s10 + $0x330] sm:$0xff]  ;;  %v12211_v28 = vld [vmem:[%s22782_s10 + $0x248] sm:$0xff] }
0x1ded   : > { %v16161_v24 = vpop.eup %16160 }
0x1dee   : > { %v5811_v31 = vsel %vm1287_vm5, %v16161_v24, 0.0 }
0x1def   : > { %5812 = vadd.xlane.f32.xlu1 %v5811_v31  ;;  %v12202_v31 = vld [vmem:[%s22782_s10 + $0x200] sm:$0xff] }
0x1df0   : > { %v14751_v16 = vpack.c.bf16 %v12218_v35, %v12202_v31 }
0x1e7c   : > { %v5813_v29 = vpop.xlane.xlu1 %5812 }
0x1e7d   : > { %16162 = vrcp.f32 %v5813_v29 }
0x1e87   : > { %v16163_v32 = vpop.eup %16162 }
0x1e88   : > { %v5815_v30 = vmul.f32 %v16163_v32, %v16161_v24  ;;  %v12221_v24 = vld [vmem:[%s22782_s10 + $0x298] sm:$0xff]  ;;  %v12220_v32 = vld [vmem:[%s22782_s10 + $0x290] sm:$0xff] }
0x1e89   : > { %v14757_v29 = vpack.c.bf16 %v12221_v24, %v12205_v22  ;;  %v12227_v22 = vld [vmem:[%s22782_s10 + $0x2c8] sm:$0xff]  ;;  %v12229_v24 = vld [vmem:[%s22782_s10 + $0x2d8] sm:$0xff] }
0x1e8a   : > { %14052 = vmatmul.mubr.msk.f32.vlgmr.msra.gmra.mrb[68].mxu1 %vm1299_vm6, %v5815_v30 }
0x1e8b   : > { %14733 = vmatpush3.bf16.msra.mxu1 %v14732_v14  ;;  %14067 = vmatprep.mubr.msk.f32.mxu1 %vm16265_vm1, %v16266_v54  ;;  %v14759_v14 = vpack.c.bf16 %v12220_v32, %v12204_v45  ;;  %v14781_v45 = vpack.c.bf16 %v12227_v22, %v12211_v28 }
0x1e8c   : > { %14734 = vmatprep.subr.bf16.mxu1 %v16264_v46 }
0x1e8f   : > { %14736 = vmatpush3.bf16.msra.mxu1 %v14735_v58  ;;  %v12251_v58 = vld [vmem:[%s22782_s10 + $0x388] sm:$0xff] }
0x1e90   : > { %14743 = vmatprep.subr.bf16.mxu1 %v16264_v46  ;;  %v14753_v37 = vpack.c.bf16 %v12251_v58, %v12235_v36  ;;  %v12259_v36 = vld [vmem:[%s22782_s10 + $0x3c8] sm:$0xff]  ;;  %v12245_v58 = vld [vmem:[%s22782_s10 + $0x358] sm:$0xff] }
0x1e92   : > { %14068 = vmatmul.mubr.msk.f32.vlgmr.msra.gmra.mrb[70].mxu1 %vm987_vm2, %v18284_v27 }
0x1e93   : > { %14745 = vmatpush3.bf16.msra.mxu1 %v14744_v38  ;;  %14089 = vmatprep.mubr.msk.f32.mxu1 %vm16265_vm1, %v16266_v54  ;;  %v12253_v38 = vld [vmem:[%s22782_s10 + $0x398] sm:$0xff] }
0x1e94   : > { %14746 = vmatprep.subr.bf16.mxu1 %v16264_v46 }
0x1e97   : > { %14748 = vmatpush3.bf16.msra.mxu1 %v14747_v40  ;;  %v14761_v40 = vpack.c.bf16 %v12253_v38, %v12237_v18  ;;  %v12261_v18 = vld [vmem:[%s22782_s10 + $0x3d8] sm:$0xff] }
0x1e98   : > { %14102 = vmatprep.subr.mxu1 %v16266_v54 }
0x1e9a   : > { %14090 = vmatmul.mubr.msk.f32.vlgmr.msra.gmra.mrb[72].mxu1 %vm987_vm2, %v18284_v27 }
0x1e9b   : > { %14104 = vmatprep.mubr.msk.f32.mxu1 %vm16265_vm1, %v16266_v54  ;;  %14103 = vmatpush3.msra.mxu1 %v12198_v34  ;;  %v12254_v34 = vld [vmem:[%s22782_s10 + $0x3a0] sm:$0xff] }
0x1e9c   : > { %14758 = vmatprep.subr.bf16.mxu1 %v14757_v29  ;;  %v12210_v29 = vld [vmem:[%s22782_s10 + $0x240] sm:$0xff] }
0x1f5d   : > { %v5888_v49 = vpop.f32.mrb[68].mxu1 }
0x1f5e   : > { %v14053_v50 = vpop.f32.mrb[69].mxu1  ;;  %14057 = vmatmul.mubr.msk.f32.vlgmr.msra.gmra.mrb[50].mxu0 %vm1209_vm3, %v5888_v49  ;;  %v12223_v49 = vld [vmem:[%s22782_s10 + $0x2a8] sm:$0xff] }
0x1f5f   : > { %14739 = vmatpush3.bf16.msra.mxu0 %v14738_v48  ;;  %14078 = vmatprep.mubr.msk.f32.mxu0 %vm16265_vm1, %v16266_v54  ;;  %v12252_v48 = vld [vmem:[%s22782_s10 + $0x390] sm:$0xff]  ;;  %v12209_v50 = vld [vmem:[%s22782_s10 + $0x238] sm:$0xff] }
0x1f60   : > { %14740 = vmatprep.subr.bf16.mxu0 %v16264_v46  ;;  %v14763_v43 = vpack.c.bf16 %v12252_v48, %v12236_v41  ;;  %v12244_v41 = vld [vmem:[%s22782_s10 + $0x350] sm:$0xff] }
0x1f61   : > { %v12260_v48 = vld [vmem:[%s22782_s10 + $0x3d0] sm:$0xff] }
0x1f63   : > { %14742 = vmatpush3.bf16.msra.mxu0 %v14741_v42  ;;  %v14765_v42 = vpack.c.bf16 %v12223_v49, %v12207_v19  ;;  %v12231_v19 = vld [vmem:[%s22782_s10 + $0x2e8] sm:$0xff]  ;;  %v12217_v49 = vld [vmem:[%s22782_s10 + $0x278] sm:$0xff] }
0x1f64   : > { %14092 = vmatprep.subr.mxu0 %v16266_v54 }
0x1f65   : > { %v6039_v61 = vpop.f32.mrb[70].mxu1 }
0x1f66   : > { %v14069_v8 = vpop.f32.mrb[71].mxu1  ;;  %14079 = vmatmul.mubr.msk.f32.vlgmr.msra.gmra.mrb[52].mxu0 %vm987_vm2, %v18284_v27 }
0x1f67   : > { %14094 = vmatprep.mubr.msk.f32.mxu0 %vm16265_vm1, %v16266_v54 }
0x1f6d   : > { %v6189_v4 = vpop.f32.mrb[72].mxu1 }
0x1f6e   : > { %v14091_v62 = vpop.f32.mrb[73].mxu1 }
0x1f6f   : > { %v12201_v62 = vld [vmem:[%s22781_s9 + $0x1] ss:$0 sm:$0xff] }
0x2031   : > { %v5963_v63 = vpop.f32.mrb[50].mxu0 }
0x2032   : > { %v18528_v0 = vadd.f32 %v5963_v63, %v18454_v12  ;;  %v14058_v17 = vpop.f32.mrb[51].mxu0  ;;  %v12206_v63 = vld [vmem:[%s22782_s10 + $0x220] sm:$0xff] }
0x2033   : > { %v12222_v17 = vld [vmem:[%s22782_s10 + $0x2a0] sm:$0xff] }
0x2039   : > { %v6114_v1 = vpop.f32.mrb[52].mxu0 }
0x203a   : > { %v14080_v3 = vpop.f32.mrb[53].mxu0  ;;  %14093 = vmatpush3.xpose.msk.msra.mxu0 %vm1209_vm3, %v6114_v1 }
0x203b   : > { %14097 = vmatprep.subr.mxu0 %v16266_v54 }
0x203d   : > { %14095 = vmatmul.mubr.msk.f32.vlgmr.msra.gmra.mrb[54].mxu0 %vm1209_vm3, %v6039_v61  ;;  %v12225_v61 = vld [vmem:[%s22782_s10 + $0x2b8] sm:$0xff] }
0x203e   : > { %14098 = vmatpush3.msk.msra.mxu0 %vm1303_vm4, %v6189_v4  ;;  %14099 = vmatprep.mubr.msk.f32.mxu0 %vm16265_vm1, %v16266_v54  ;;  %v14773_v8 = vpack.c.bf16 %v12225_v61, %v12209_v50  ;;  %v12233_v50 = vld [vmem:[%s22782_s10 + $0x2f8] sm:$0xff]  ;;  %v14795_v61 = vpack.c.bf16 %v12260_v48, %v12244_v41  ;;  %v12296_v41 = vld [vmem:[%s22784_s12 + $0x8a0] sm:$0xff]  ;;  %v12297_v48 = vld [vmem:[%s22784_s12 + $0x8a8] sm:$0xff] }
0x203f   : > { %14750 = vmatprep.subr.bf16.mxu0 %v14749_v23  ;;  %v12213_v23 = vld [vmem:[%s22782_s10 + $0x258] sm:$0xff] }
0x2040   : > { %v14789_v32 = vpack.c.bf16 %v12229_v24, %v12213_v23  ;;  %v12276_v23 = vld [vmem:[%s22784_s12 + $0x800] sm:$0xff] }
0x2110   : > { %v6265_v27 = vpop.f32.mrb[54].mxu0 }
0x2111   : > { %v6269_v9 = vmul.f32 0.35355338, %v6265_v27  ;;  %v14096_v6 = vpop.f32.mrb[55].mxu0  ;;  %v12208_v27 = vld [vmem:[%s22782_s10 + $0x230] sm:$0xff] }
0x2112   : > { %v12239_v6 = vld [vmem:[%s22782_s10 + $0x328] sm:$0xff] }
0x2113   : > { %v6270_v7 = vsel %vm1287_vm5, %v6269_v9, -inf }
0x2114   : > { %6271 = vmax.xlane.f32.xlu0 %v6270_v7  ;;  %v12255_v7 = vld [vmem:[%s22782_s10 + $0x3a8] sm:$0xff] }
0x21a1   : > { %v6272_v12 = vpop.xlane.xlu0 %6271 }
0x21a2   : > { %v6273_v15 = vsub.f32 %v6269_v9, %v6272_v12  ;;  %v12224_v9 = vld [vmem:[%s22782_s10 + $0x2b0] sm:$0xff]  ;;  %v12257_v12 = vld [vmem:[%s22782_s10 + $0x3b8] sm:$0xff] }
0x21a4   : > { %v6274_v25 = vmul.f32 1.442695, %v6273_v15 }
0x21a6   : > { %16164 = vpow2.f32 %v6274_v25  ;;  %v14767_v25 = vpack.c.bf16 %v12222_v17, %v12206_v63  ;;  %v14805_v63 = vpack.c.bf16 %v12233_v50, %v12217_v49  ;;  %v12216_v17 = vld [vmem:[%s22782_s10 + $0x270] sm:$0xff]  ;;  %v12329_v49 = vld [vmem:[%s22784_s12 + $0x9a8] sm:$0xff]  ;;  %v12280_v50 = vld [vmem:[%s22784_s12 + $0x820] sm:$0xff] }
0x21b0   : > { %v16165_v20 = vpop.eup %16164 }
0x21b1   : > { %v6276_v53 = vsel %vm1287_vm5, %v16165_v20, 0.0 }
0x21b2   : > { %6277 = vadd.xlane.f32.xlu1 %v6276_v53  ;;  %v12238_v53 = vld [vmem:[%s22782_s10 + $0x320] sm:$0xff] }
0x21b3   : > { %v14771_v31 = vpack.c.bf16 %v12254_v34, %v12238_v53  ;;  %v12248_v53 = vld [vmem:[%s22782_s10 + $0x370] sm:$0xff] }
0x21b4   : > { %v12264_v34 = vld [vmem:[%s22782_s10 + $0x3f0] sm:$0xff] }
0x21b5   : > { %v14811_v22 = vpack.c.bf16 %v12264_v34, %v12248_v53  ;;  %v12300_v53 = vld [vmem:[%s22784_s12 + $0x8c0] sm:$0xff]  ;;  %v12301_v34 = vld [vmem:[%s22784_s12 + $0x8c8] sm:$0xff] }
0x223f   : > { %v6278_v26 = vpop.xlane.xlu1 %6277 }
0x2240   : > { %16166 = vrcp.f32 %v6278_v26 }
0x224a   : > { %v16167_v2 = vpop.eup %16166 }
0x224b   : > { %v6280_v5 = vmul.f32 %v16167_v2, %v16165_v20  ;;  %v14775_v20 = vpack.c.bf16 %v12224_v9, %v12208_v27  ;;  %v14769_v2 = vpack.c.bf16 %v12255_v7, %v12239_v6  ;;  %v12263_v27 = vld [vmem:[%s22782_s10 + $0x3e8] sm:$0xff]  ;;  %v12249_v9 = vld [vmem:[%s22782_s10 + $0x378] sm:$0xff] }
0x224c   : > { %v12265_v6 = vld [vmem:[%s22782_s10 + $0x3f8] sm:$0xff] }
0x224d   : > { %14100 = vmatmul.mubr.msk.f32.vlgmr.msra.gmra.mrb[56].mxu0 %vm1299_vm6, %v6280_v5 }
0x224e   : > { %6660 = vmatprep.mubr.f32.mxu0 %v16266_v54  ;;  %14752 = vmatpush1.bf16.msra.mxu0 %v14751_v16  ;;  %v12226_v16 = vld [vmem:[%s22782_s10 + $0x2c0] sm:$0xff] }
0x224f   : > { %14754 = vmatprep.subr.bf16.mxu0 %v14753_v37  ;;  %v14783_v37 = vpack.c.bf16 %v12226_v16, %v12210_v29  ;;  %v12308_v29 = vld [vmem:[%s22784_s12 + $0x900] sm:$0xff]  ;;  %v12309_v16 = vld [vmem:[%s22784_s12 + $0x908] sm:$0xff] }
0x2252   : > { %14756 = vmatpush1.bf16.msra.mxu0 %v14755_v21  ;;  %v14793_v21 = vpack.c.bf16 %v12261_v18, %v12245_v58  ;;  %v12327_v58 = vld [vmem:[%s22784_s12 + $0x998] sm:$0xff]  ;;  %v12278_v18 = vld [vmem:[%s22784_s12 + $0x810] sm:$0xff] }
0x2253   : > { %14766 = vmatprep.subr.bf16.mxu0 %v14765_v42  ;;  %v14787_v42 = vpack.c.bf16 %v12258_v47, %v12242_v39  ;;  %v12310_v47 = vld [vmem:[%s22784_s12 + $0x910] sm:$0xff] }
0x2320   : > { %v6353_v30 = vpop.f32.mrb[56].mxu0 }
0x2321   : > { %v14101_v33 = vpop.f32.mrb[57].mxu0  ;;  %14105 = vmatmul.mubr.msk.f32.vlgmr.msra.gmra.mrb[74].mxu1 %vm1209_vm3, %v6353_v30  ;;  %v12228_v30 = vld [vmem:[%s22782_s10 + $0x2d0] sm:$0xff] }
0x2322   : > { %14760 = vmatpush1.bf16.msra.mxu1 %v14759_v14  ;;  %6731 = vmatprep.mubr.f32.mxu1 %v16266_v54  ;;  %v12212_v14 = vld [vmem:[%s22782_s10 + $0x250] sm:$0xff]  ;;  %v12243_v33 = vld [vmem:[%s22782_s10 + $0x348] sm:$0xff] }
0x2323   : > { %14762 = vmatprep.subr.bf16.mxu1 %v14761_v40  ;;  %v14791_v38 = vpack.c.bf16 %v12228_v30, %v12212_v14  ;;  %v14785_v40 = vpack.c.bf16 %v12259_v36, %v12243_v33  ;;  %v12294_v14 = vld [vmem:[%s22784_s12 + $0x890] sm:$0xff]  ;;  %v12295_v30 = vld [vmem:[%s22784_s12 + $0x898] sm:$0xff] }
0x2324   : > { %v12326_v33 = vld [vmem:[%s22784_s12 + $0x990] sm:$0xff]  ;;  %v14817_v36 = vpack.c.bf16 %v12295_v30, %v12294_v14  ;;  %v12335_v14 = vld [vmem:[%s22784_s12 + $0x9d8] sm:$0xff] }
0x2325   : > { %v12286_v30 = vld [vmem:[%s22784_s12 + $0x850] sm:$0xff] }
0x2326   : > { %14764 = vmatpush1.bf16.msra.mxu1 %v14763_v43  ;;  %v12215_v43 = vld [vmem:[%s22782_s10 + $0x268] sm:$0xff] }
0x2327   : > { %14774 = vmatprep.subr.bf16.mxu1 %v14773_v8  ;;  %v12214_v8 = vld [vmem:[%s22782_s10 + $0x260] sm:$0xff] }
0x23f4   : > { %v6428_v4 = vpop.f32.mrb[74].mxu1 }
0x23f5   : > { %v6432_v1 = vadd.f32 %v6428_v4, %v18528_v0  ;;  %v14106_v3 = vpop.f32.mrb[75].mxu1  ;;  %v12241_v0 = vld [vmem:[%s22782_s10 + $0x338] sm:$0xff]  ;;  %v12230_v4 = vld [vmem:[%s22782_s10 + $0x2e0] sm:$0xff] }
0x23f6   : > { %v14777_v5 = vpack.c.bf16 %v12257_v12, %v12241_v0  ;;  %v12247_v3 = vld [vmem:[%s22782_s10 + $0x368] sm:$0xff]  ;;  %v14799_v7 = vpack.c.bf16 %v12230_v4, %v12214_v8  ;;  %v12246_v12 = vld [vmem:[%s22782_s10 + $0x360] sm:$0xff] }
0x23f7   : > { %v6433_v15 = vadd.f32 %v6432_v1, %v18238_v51  ;;  %v12256_v51 = vld [vmem:[%s22782_s10 + $0x3b0] sm:$0xff]  ;;  %v12312_v4 = vld [vmem:[%s22784_s12 + $0x920] sm:$0xff] }
0x23f8   : > { %v14779_v35 = vpack.c.bf16 %v12256_v51, %v12240_v13  ;;  %v12232_v1 = vld [vmem:[%s22782_s10 + $0x2f0] sm:$0xff]  ;;  %v12324_v13 = vld [vmem:[%s22784_s12 + $0x980] sm:$0xff]  ;;  %v12325_v51 = vld [vmem:[%s22784_s12 + $0x988] sm:$0xff] }
0x23f9   : > { %v18640_v26 = vadd.f32 %v12201_v62, %v6433_v15  ;;  %v14797_v62 = vpack.c.bf16 %v12231_v19, %v12215_v43  ;;  %v14807_v0 = vpack.c.bf16 %v12232_v1, %v12216_v17  ;;  %v12262_v15 = vld [vmem:[%s22782_s10 + $0x3e0] sm:$0xff]  ;;  %v14821_v19 = vpack.c.bf16 %v12297_v48, %v12296_v41  ;;  %v12298_v17 = vld [vmem:[%s22784_s12 + $0x8b0] sm:$0xff]  ;;  %v12299_v1 = vld [vmem:[%s22784_s12 + $0x8b8] sm:$0xff] }
0x23fa   : > { %v14803_v28 = vpack.c.bf16 %v12262_v15, %v12246_v12  ;;  %v12328_v43 = vld [vmem:[%s22784_s12 + $0x9a0] sm:$0xff]  ;;  %v12314_v15 = vld [vmem:[%s22784_s12 + $0x930] sm:$0xff]  ;;  %v12337_v41 = vld [vmem:[%s22784_s12 + $0x9e8] sm:$0xff] }
0x23fb   : > { %12268 = vmatmul.mubr.msk.f32.vlgmr.msra.gmra.mrb[58].mxu0 %vm987_vm2, %v18640_v26  ;;  %12269 = vmatmul.mubr.msk.f32.vlgmr.msra.gmra.mrb[76].mxu1 %vm987_vm2, %v18640_v26  ;;  %v12288_v48 = vld [vmem:[%s22784_s12 + $0x860] sm:$0xff] }
0x23fc   : > { %14768 = vmatpush1.bf16.msra.mxu0 %v14767_v25  ;;  %14776 = vmatpush1.bf16.msra.mxu1 %v14775_v20  ;;  %v14801_v25 = vpack.c.bf16 %v12263_v27, %v12247_v3  ;;  %v14809_v20 = vpack.c.bf16 %v12265_v6, %v12249_v9  ;;  %v12330_v3 = vld [vmem:[%s22784_s12 + $0x9b0] sm:$0xff]  ;;  %v14825_v27 = vpack.c.bf16 %v12299_v1, %v12298_v17  ;;  %v12331_v9 = vld [vmem:[%s22784_s12 + $0x9b8] sm:$0xff] }
0x23fd   : > { %14770 = vmatprep.subr.bf16.mxu0 %v14769_v2  ;;  %14778 = vmatprep.subr.bf16.mxu1 %v14777_v5  ;;  %v12292_v2 = vld [vmem:[%s22784_s12 + $0x880] sm:$0xff]  ;;  %v12293_v5 = vld [vmem:[%s22784_s12 + $0x888] sm:$0xff]  ;;  %v12282_v6 = vld [vmem:[%s22784_s12 + $0x830] sm:$0xff] }
0x23fe   : > { %6802 = vmatprep.mubr.f32.mxu0 %v16266_v54  ;;  %6873 = vmatprep.mubr.f32.mxu1 %v16266_v54  ;;  %v14813_v24 = vpack.c.bf16 %v12293_v5, %v12292_v2  ;;  %v12332_v2 = vld [vmem:[%s22784_s12 + $0x9c0] sm:$0xff]  ;;  %v14829_v5 = vpack.c.bf16 %v12301_v34, %v12300_v53  ;;  %v12339_v17 = vld [vmem:[%s22784_s12 + $0x9f8] sm:$0xff]  ;;  %v12290_v1 = vld [vmem:[%s22784_s12 + $0x870] sm:$0xff] }
0x23ff   : > { %v12389_v53 = vld [vmem:[%s22784_s12 + $0xb88] sm:$0xff] }
0x2400   : > { %14772 = vmatpush1.bf16.msra.mxu0 %v14771_v31  ;;  %14780 = vmatpush1.bf16.msra.mxu1 %v14779_v35  ;;  %v14845_v31 = vpack.c.bf16 %v12325_v51, %v12324_v13  ;;  %v12277_v35 = vld [vmem:[%s22784_s12 + $0x808] sm:$0xff]  ;;  %v12284_v51 = vld [vmem:[%s22784_s12 + $0x840] sm:$0xff] }
0x2401   : > { %14782 = vmatprep.subr.bf16.mxu0 %v14781_v45  ;;  %14790 = vmatprep.subr.bf16.mxu1 %v14789_v32  ;;  %v14815_v45 = vpack.c.bf16 %v12277_v35, %v12276_v23  ;;  %v14847_v32 = vpack.c.bf16 %v12309_v16, %v12308_v29  ;;  %v12333_v13 = vld [vmem:[%s22784_s12 + $0x9c8] sm:$0xff]  ;;  %v12302_v29 = vld [vmem:[%s22784_s12 + $0x8d0] sm:$0xff]  ;;  %v12303_v16 = vld [vmem:[%s22784_s12 + $0x8d8] sm:$0xff] }
0x2403   : > { %12270 = vmatmul.mubr.msk.f32.vlgmr.msra.gmra.mrb[60].mxu0 %vm987_vm2, %v18640_v26  ;;  %12271 = vmatmul.mubr.msk.f32.vlgmr.msra.gmra.mrb[78].mxu1 %vm987_vm2, %v18640_v26 }
0x2404   : > { %14784 = vmatpush1.bf16.msra.mxu0 %v14783_v37  ;;  %14792 = vmatpush1.bf16.msra.mxu1 %v14791_v38  ;;  %v12279_v37 = vld [vmem:[%s22784_s12 + $0x818] sm:$0xff]  ;;  %v14849_v38 = vpack.c.bf16 %v12327_v58, %v12326_v33 }
0x2405   : > { %14786 = vmatprep.subr.bf16.mxu0 %v14785_v40  ;;  %14794 = vmatprep.subr.bf16.mxu1 %v14793_v21  ;;  %v14819_v39 = vpack.c.bf16 %v12279_v37, %v12278_v18  ;;  %v12311_v40 = vld [vmem:[%s22784_s12 + $0x918] sm:$0xff]  ;;  %v12318_v18 = vld [vmem:[%s22784_s12 + $0x950] sm:$0xff] }
0x2406   : > { %6944 = vmatprep.mubr.f32.mxu0 %v16266_v54  ;;  %7015 = vmatprep.mubr.f32.mxu1 %v16266_v54  ;;  %v14851_v21 = vpack.c.bf16 %v12311_v40, %v12310_v47  ;;  %v12287_v33 = vld [vmem:[%s22784_s12 + $0x858] sm:$0xff]  ;;  %v12305_v47 = vld [vmem:[%s22784_s12 + $0x8e8] sm:$0xff]  ;;  %v12336_v40 = vld [vmem:[%s22784_s12 + $0x9e0] sm:$0xff] }
0x2407   : > { %v14835_v58 = vpack.c.bf16 %v12287_v33, %v12286_v30  ;;  %v12319_v37 = vld [vmem:[%s22784_s12 + $0x958] sm:$0xff] }
0x2408   : > { %14788 = vmatpush1.bf16.msra.mxu0 %v14787_v42  ;;  %14796 = vmatpush1.bf16.msra.mxu1 %v14795_v61  ;;  %v12281_v42 = vld [vmem:[%s22784_s12 + $0x828] sm:$0xff]  ;;  %v14853_v61 = vpack.c.bf16 %v12329_v49, %v12328_v43 }
0x2409   : > { %14798 = vmatprep.subr.bf16.mxu0 %v14797_v62  ;;  %14806 = vmatprep.subr.bf16.mxu1 %v14805_v63  ;;  %v14823_v8 = vpack.c.bf16 %v12281_v42, %v12280_v50  ;;  %v12313_v62 = vld [vmem:[%s22784_s12 + $0x928] sm:$0xff]  ;;  %v12320_v50 = vld [vmem:[%s22784_s12 + $0x960] sm:$0xff] }
0x240a   : > { %v14855_v63 = vpack.c.bf16 %v12313_v62, %v12312_v4  ;;  %v12289_v43 = vld [vmem:[%s22784_s12 + $0x868] sm:$0xff]  ;;  %v12307_v4 = vld [vmem:[%s22784_s12 + $0x8f8] sm:$0xff]  ;;  %v12338_v62 = vld [vmem:[%s22784_s12 + $0x9f0] sm:$0xff] }
0x240b   : > { %12272 = vmatmul.mubr.msk.f32.vlgmr.msra.gmra.mrb[62].mxu0 %vm987_vm2, %v18640_v26  ;;  %12273 = vmatmul.mubr.msk.f32.vlgmr.msra.gmra.mrb[80].mxu1 %vm987_vm2, %v18640_v26  ;;  %v14839_v49 = vpack.c.bf16 %v12289_v43, %v12288_v48  ;;  %v12321_v42 = vld [vmem:[%s22784_s12 + $0x968] sm:$0xff] }
0x240c   : > { %14800 = vmatpush1.bf16.msra.mxu0 %v14799_v7  ;;  %14808 = vmatpush1.bf16.msra.mxu1 %v14807_v0  ;;  %v12283_v7 = vld [vmem:[%s22784_s12 + $0x838] sm:$0xff]  ;;  %v14857_v0 = vpack.c.bf16 %v12331_v9, %v12330_v3 }
0x240d   : > { %14802 = vmatprep.subr.bf16.mxu0 %v14801_v25  ;;  %14810 = vmatprep.subr.bf16.mxu1 %v14809_v20  ;;  %v14827_v12 = vpack.c.bf16 %v12283_v7, %v12282_v6  ;;  %v12315_v25 = vld [vmem:[%s22784_s12 + $0x938] sm:$0xff]  ;;  %v12322_v6 = vld [vmem:[%s22784_s12 + $0x970] sm:$0xff] }
0x240e   : > { %7086 = vmatprep.mubr.f32.mxu0 %v16266_v54  ;;  %7157 = vmatprep.mubr.f32.mxu1 %v16266_v54  ;;  %v14859_v20 = vpack.c.bf16 %v12315_v25, %v12314_v15  ;;  %v12291_v3 = vld [vmem:[%s22784_s12 + $0x878] sm:$0xff]  ;;  %v12357_v15 = vld [vmem:[%s22784_s12 + $0xa88] sm:$0xff]  ;;  %v12388_v25 = vld [vmem:[%s22784_s12 + $0xb80] sm:$0xff] }
0x240f   : > { %v14843_v9 = vpack.c.bf16 %v12291_v3, %v12290_v1  ;;  %v12323_v7 = vld [vmem:[%s22784_s12 + $0x978] sm:$0xff]  ;;  %v14909_v34 = vpack.c.bf16 %v12389_v53, %v12388_v25 }
0x2410   : > { %14804 = vmatpush1.bf16.msra.mxu0 %v14803_v28  ;;  %14812 = vmatpush1.bf16.msra.mxu1 %v14811_v22  ;;  %v12285_v28 = vld [vmem:[%s22784_s12 + $0x848] sm:$0xff]  ;;  %v14861_v22 = vpack.c.bf16 %v12333_v13, %v12332_v2  ;;  %v18973_v2 = vld [vmem:[%s22783_s11 + $0x10] sm:$0xff] }
0x2411   : > { %14814 = vmatprep.subr.bf16.mxu0 %v14813_v24  ;;  %14846 = vmatprep.subr.bf16.mxu1 %v14845_v31  ;;  %v14831_v23 = vpack.c.bf16 %v12285_v28, %v12284_v51  ;;  %v12316_v24 = vld [vmem:[%s22784_s12 + $0x940] sm:$0xff]  ;;  %v12317_v31 = vld [vmem:[%s22784_s12 + $0x948] sm:$0xff]  ;;  %v6524_v13 = vrot.slane %v18973_v2, %v17475_v57  ;;  %v6520_v51 = vrot.slane %v18973_v2, %v17483_v59 }
0x2412   : > { %v14863_v35 = vpack.c.bf16 %v12317_v31, %v12316_v24  ;;  %v6528_v28 = vrot.slane %v18973_v2, %v17486_v60 }
0x2413   : > { %12274 = vmatmul.mubr.msk.f32.vlgmr.msra.gmra.mrb[64].mxu0 %vm987_vm2, %v18640_v26  ;;  %12275 = vmatmul.mubr.msk.f32.vlgmr.msra.gmra.mrb[82].mxu1 %vm987_vm2, %v18640_v26 }
0x2414   : > { %14816 = vmatpush3.bf16.msra.mxu0 %v14815_v45  ;;  %14848 = vmatpush3.bf16.msra.mxu1 %v14847_v32  ;;  %v12334_v45 = vld [vmem:[%s22784_s12 + $0x9d0] sm:$0xff]  ;;  %v14833_v32 = vpack.c.bf16 %v12303_v16, %v12302_v29 }
0x2415   : > { %14818 = vmatprep.subr.bf16.mxu0 %v14817_v36  ;;  %14850 = vmatprep.subr.bf16.mxu1 %v14849_v38  ;;  %v14865_v36 = vpack.c.bf16 %v12335_v14, %v12334_v45  ;;  %v14867_v38 = vpack.c.bf16 %v12319_v37, %v12318_v18 }
0x2418   : > { %14820 = vmatpush3.bf16.msra.mxu0 %v14819_v39  ;;  %14852 = vmatpush3.bf16.msra.mxu1 %v14851_v21  ;;  %v12304_v39 = vld [vmem:[%s22784_s12 + $0x8e0] sm:$0xff] }
0x2419   : > { %14822 = vmatprep.subr.bf16.mxu0 %v14821_v19  ;;  %14854 = vmatprep.subr.bf16.mxu1 %v14853_v61  ;;  %v14837_v21 = vpack.c.bf16 %v12305_v47, %v12304_v39  ;;  %v14869_v19 = vpack.c.bf16 %v12337_v41, %v12336_v40  ;;  %v14871_v61 = vpack.c.bf16 %v12321_v42, %v12320_v50 }
0x241a   : > { %v6544_v39 = vrot.slane %v18973_v2, %v17508_v11 }
0x241c   : > { %14824 = vmatpush3.bf16.msra.mxu0 %v14823_v8  ;;  %14856 = vmatpush3.bf16.msra.mxu1 %v14855_v63  ;;  %v12306_v8 = vld [vmem:[%s22784_s12 + $0x8f0] sm:$0xff] }
0x241d   : > { %14826 = vmatprep.subr.bf16.mxu0 %v14825_v27  ;;  %14858 = vmatprep.subr.bf16.mxu1 %v14857_v0  ;;  %v14841_v63 = vpack.c.bf16 %v12307_v4, %v12306_v8  ;;  %v14873_v27 = vpack.c.bf16 %v12339_v17, %v12338_v62  ;;  %v14875_v0 = vpack.c.bf16 %v12323_v7, %v12322_v6 }
0x2420   : > { %14828 = vmatpush3.bf16.msra.mxu0 %v14827_v12  ;;  %14860 = vmatpush3.bf16.msra.mxu1 %v14859_v20  ;;  %v12356_v12 = vld [vmem:[%s22784_s12 + $0xa80] sm:$0xff] }
0x2421   : > { %14830 = vmatprep.subr.bf16.mxu0 %v14829_v5  ;;  %14862 = vmatprep.subr.bf16.mxu1 %v14861_v22  ;;  %v14877_v20 = vpack.c.bf16 %v12357_v15, %v12356_v12  ;;  %v6516_v5 = vrot.slane %v18973_v2, %v17472_v56 }
0x2424   : > { %14832 = vmatpush3.bf16.msra.mxu0 %v14831_v23  ;;  %14864 = vmatpush3.bf16.msra.mxu1 %v14863_v35 }
0x2425   : > { %14834 = vmatprep.subr.bf16.mxu0 %v14833_v32  ;;  %14866 = vmatprep.subr.bf16.mxu1 %v14865_v36 }
0x2428   : > { %14836 = vmatpush3.bf16.msra.mxu0 %v14835_v58  ;;  %14868 = vmatpush3.bf16.msra.mxu1 %v14867_v38  ;;  %v6536_v38 = vrot.slane %v18973_v2, %v17505_v10 }
0x2429   : > { %14838 = vmatprep.subr.bf16.mxu0 %v14837_v21  ;;  %14870 = vmatprep.subr.bf16.mxu1 %v14869_v19 }
0x242c   : > { %14840 = vmatpush3.bf16.msra.mxu0 %v14839_v49  ;;  %14872 = vmatpush3.bf16.msra.mxu1 %v14871_v61 }
0x242d   : > { %14842 = vmatprep.subr.bf16.mxu0 %v14841_v63  ;;  %14874 = vmatprep.subr.bf16.mxu1 %v14873_v27 }
0x2430   : > { %14844 = vmatpush3.bf16.msra.mxu0 %v14843_v9  ;;  %14876 = vmatpush3.bf16.msra.mxu1 %v14875_v0 }
0x2431   : > { %14878 = vmatprep.subr.bf16.mxu0 %v14877_v20  ;;  %14910 = vmatprep.subr.bf16.mxu1 %v14909_v34  ;;  %v19028_v34 = vld [vmem:[%s22783_s11 + $0x18] sm:$0xff] }
0x24ce   : > { %v6662_v22 = vpop.f32.mrb[58].mxu0  ;;  %v6733_v23 = vpop.f32.mrb[76].mxu1 }
0x24cf   : > { %v18983_v24 = vadd.f32 %v6662_v22, %v6516_v5  ;;  %v18985_v31 = vadd.f32 %v6733_v23, %v6524_v13  ;;  %v6664_v35 = vpop.f32.mrb[59].mxu0  ;;  %v6735_v29 = vpop.f32.mrb[77].mxu1  ;;  %v6552_v23 = vrot.slane %v19028_v34, %v17483_v59 }
0x24d0   : > { %v18987_v16 = vadd.f32 %v6664_v35, %v6520_v51  ;;  %v18989_v45 = vadd.f32 %v6735_v29, %v6528_v28  ;;  %v6532_v51 = vrot.slane %v18973_v2, %v17541_v44  ;;  %v6572_v35 = vrot.slane %v19028_v34, %v17548_v52 }
0x24d1   : > { %v7180_v32 = vmul.f32 %v18983_v24, %v18983_v24  ;;  %v7182_v14 = vmul.f32 %v18985_v31, %v18985_v31  ;;  %v6540_v29 = vrot.slane %v18973_v2, %v17548_v52 }
0x24d2   : > { %v7181_v30 = vmul.f32 %v18987_v16, %v18987_v16  ;;  %v7183_v33 = vmul.f32 %v18989_v45, %v18989_v45 }
0x24d3   : > { %v7196_v36 = vmul.f32 %v7180_v32, %v18983_v24  ;;  %v7198_v58 = vmul.f32 %v7182_v14, %v18985_v31  ;;  %v6560_v32 = vrot.slane %v19028_v34, %v17486_v60 }
0x24d4   : > { %v7197_v18 = vmul.f32 %v7181_v30, %v18987_v16  ;;  %v7199_v37 = vmul.f32 %v7183_v33, %v18989_v45 }
0x24d5   : > { %v7212_v47 = vmul.f32 0.044715, %v7196_v36  ;;  %v7214_v40 = vmul.f32 0.044715, %v7198_v58 }
0x24d6   : > { %v7213_v21 = vmul.f32 0.044715, %v7197_v18  ;;  %v7215_v41 = vmul.f32 0.044715, %v7199_v37  ;;  %v6804_v48 = vpop.f32.mrb[60].mxu0  ;;  %v6875_v43 = vpop.f32.mrb[78].mxu1 }
0x24d7   : > { %v7228_v19 = vadd.f32 %v7212_v47, %v18983_v24  ;;  %v6806_v49 = vpop.f32.mrb[61].mxu0  ;;  %v6877_v50 = vpop.f32.mrb[79].mxu1  ;;  %v7230_v63 = vadd.f32 %v7214_v40, %v18985_v31  ;;  %v19042_v14 = vadd.f32 %v6804_v48, %v6532_v51  ;;  %v19054_v2 = vadd.f32 %v6875_v43, %v6540_v29  ;;  %v12340_v40 = vld [vmem:[%s22784_s12 + $0xa00] sm:$0xff]  ;;  %v12373_v43 = vld [vmem:[%s22784_s12 + $0xb08] sm:$0xff] }
0x24d8   : > { %v7229_v42 = vadd.f32 %v7213_v21, %v18987_v16  ;;  %v19009_v61 = vadd.f32 %v6806_v49, %v6536_v38  ;;  %v19011_v8 = vadd.f32 %v6877_v50, %v6544_v39  ;;  %v7231_v4 = vadd.f32 %v7215_v41, %v18989_v45  ;;  %v12341_v21 = vld [vmem:[%s22784_s12 + $0xa08] sm:$0xff]  ;;  %v12372_v41 = vld [vmem:[%s22784_s12 + $0xb00] sm:$0xff]  ;;  %v12359_v49 = vld [vmem:[%s22784_s12 + $0xa98] sm:$0xff] }
0x24d9   : > { %v7244_v62 = vmul.f32 0.7978846, %v7228_v19  ;;  %v7246_v7 = vmul.f32 0.7978846, %v7230_v63  ;;  %v7184_v48 = vmul.f32 %v19042_v14, %v19042_v14  ;;  %v12358_v19 = vld [vmem:[%s22784_s12 + $0xa90] sm:$0xff]  ;;  %v7186_v63 = vmul.f32 %v19054_v2, %v19054_v2 }
0x24da   : > { %v7245_v17 = vmul.f32 0.7978846, %v7229_v42  ;;  %v7185_v1 = vmul.f32 %v19009_v61, %v19009_v61  ;;  %v7187_v3 = vmul.f32 %v19011_v8, %v19011_v8  ;;  %v7247_v27 = vmul.f32 0.7978846, %v7231_v4 }
0x24db   : > { %16168 = vtanh.f32 %v7244_v62  ;;  %v7202_v29 = vmul.f32 %v7186_v63, %v19054_v2 }
0x24dc   : > { %v7201_v9 = vmul.f32 %v7185_v1, %v19009_v61  ;;  %v7203_v6 = vmul.f32 %v7187_v3, %v19011_v8  ;;  %16170 = vtanh.f32 %v7245_v17  ;;  %v7165_v17 = vmul.f32 0.5, %v18987_v16  ;;  %v12391_v16 = vld [vmem:[%s22784_s12 + $0xb98] sm:$0xff] }
0x24dd   : > { %16172 = vtanh.f32 %v7247_v27  ;;  %v14879_v3 = vpack.c.bf16 %v12341_v21, %v12340_v40  ;;  %v7164_v27 = vmul.f32 0.5, %v18983_v24  ;;  %v12342_v24 = vld [vmem:[%s22784_s12 + $0xa10] sm:$0xff] }
0x24de   : > { %v19021_v0 = vpop.f32.mrb[62].mxu0  ;;  %v19023_v12 = vpop.f32.mrb[80].mxu1  ;;  %v7217_v15 = vmul.f32 0.044715, %v7201_v9  ;;  %v7219_v25 = vmul.f32 0.044715, %v7203_v6  ;;  %16174 = vtanh.f32 %v7246_v7  ;;  %v14911_v6 = vpack.c.bf16 %v12373_v43, %v12372_v41 }
0x24df   : > { %v6948_v20 = vpop.f32.mrb[63].mxu0  ;;  %v7019_v53 = vpop.f32.mrb[81].mxu1  ;;  %v14881_v7 = vpack.c.bf16 %v12359_v49, %v12358_v19  ;;  %v12374_v43 = vld [vmem:[%s22784_s12 + $0xb10] sm:$0xff] }
0x24e0   : > { %v7233_v5 = vadd.f32 %v7217_v15, %v19009_v61  ;;  %v7235_v13 = vadd.f32 %v7219_v25, %v19011_v8  ;;  %v19046_v36 = vadd.f32 %v6948_v20, %v6552_v23  ;;  %v19056_v47 = vadd.f32 %v7019_v53, %v6560_v32  ;;  %v12390_v15 = vld [vmem:[%s22784_s12 + $0xb90] sm:$0xff] }
0x24e1   : > { %v7200_v25 = vmul.f32 %v7184_v48, %v19042_v14  ;;  %v7167_v53 = vmul.f32 0.5, %v18989_v45  ;;  %v14913_v41 = vpack.c.bf16 %v12391_v16, %v12390_v15  ;;  %v12362_v15 = vld [vmem:[%s22784_s12 + $0xab0] sm:$0xff] }
0x24e2   : > { %v7249_v28 = vmul.f32 0.7978846, %v7233_v5  ;;  %v7251_v22 = vmul.f32 0.7978846, %v7235_v13  ;;  %v7189_v42 = vmul.f32 %v19046_v36, %v19046_v36  ;;  %v7191_v9 = vmul.f32 %v19056_v47, %v19056_v47  ;;  %v12343_v13 = vld [vmem:[%s22784_s12 + $0xa18] sm:$0xff] }
0x24e3   : > { %v14883_v48 = vpack.c.bf16 %v12343_v13, %v12342_v24  ;;  %v7216_v19 = vmul.f32 0.044715, %v7200_v25  ;;  %v12394_v24 = vld [vmem:[%s22784_s12 + $0xbb0] sm:$0xff]  ;;  %v12395_v13 = vld [vmem:[%s22784_s12 + $0xbb8] sm:$0xff] }
0x24e4   : > { %16176 = vtanh.f32 %v7249_v28  ;;  %v7166_v28 = vmul.f32 0.5, %v18985_v31  ;;  %v12361_v31 = vld [vmem:[%s22784_s12 + $0xaa8] sm:$0xff]  ;;  %v7207_v40 = vmul.f32 %v7191_v9, %v19056_v47 }
0x24e5   : > { %16178 = vtanh.f32 %v7251_v22  ;;  %v16169_v38 = vpop.eup %16168  ;;  %v7205_v22 = vmul.f32 %v7189_v42, %v19046_v36 }
0x24e6   : > { %v19044_v30 = vpop.f32.mrb[64].mxu0  ;;  %v7159_v33 = vpop.f32.mrb[82].mxu1  ;;  %v7276_v4 = vadd.f32 1.0, %v16169_v38  ;;  %v7223_v25 = vmul.f32 0.044715, %v7207_v40 }
0x24e7   : > { %v19048_v58 = vadd.f32 %v7159_v33, %v6572_v35  ;;  %v19050_v18 = vpop.f32.mrb[65].mxu0  ;;  %v19052_v37 = vpop.f32.mrb[83].mxu1  ;;  %v7169_v33 = vmul.f32 0.5, %v19009_v61  ;;  %v12375_v61 = vld [vmem:[%s22784_s12 + $0xb18] sm:$0xff]  ;;  %v7221_v63 = vmul.f32 0.044715, %v7205_v22 }
0x24e8   : > { %v16171_v39 = vpop.eup %16170  ;;  %v7292_v23 = vmul.f32 %v7276_v4, %v7164_v27  ;;  %v12392_v4 = vld [vmem:[%s22784_s12 + $0xba0] sm:$0xff]  ;;  %v14915_v27 = vpack.c.bf16 %v12375_v61, %v12374_v43  ;;  %v12346_v22 = vld [vmem:[%s22784_s12 + $0xa30] sm:$0xff] }
0x24e9   : > { %v16173_v50 = vpop.eup %16172  ;;  %v7277_v1 = vadd.f32 1.0, %v16171_v39  ;;  %v12360_v39 = vld [vmem:[%s22784_s12 + $0xaa0] sm:$0xff] }
0x24ea   : > { %v16175_v62 = vpop.eup %16174  ;;  %v7279_v5 = vadd.f32 1.0, %v16173_v50  ;;  %v7171_v50 = vmul.f32 0.5, %v19011_v8  ;;  %v12345_v8 = vld [vmem:[%s22784_s12 + $0xa28] sm:$0xff] }
0x24eb   : > { %v7293_v20 = vmul.f32 %v7277_v1, %v7165_v17  ;;  %v7278_v45 = vadd.f32 1.0, %v16175_v62  ;;  %v12393_v62 = vld [vmem:[%s22784_s12 + $0xba8] sm:$0xff]  ;;  %v14885_v17 = vpack.c.bf16 %v12361_v31, %v12360_v39  ;;  %v12344_v1 = vld [vmem:[%s22784_s12 + $0xa20] sm:$0xff]  ;;  %v12378_v39 = vld [vmem:[%s22784_s12 + $0xb30] sm:$0xff] }
0x24ec   : > { %v7295_v32 = vmul.f32 %v7279_v5, %v7167_v53  ;;  %v12376_v53 = vld [vmem:[%s22784_s12 + $0xb20] sm:$0xff]  ;;  %v7232_v5 = vadd.f32 %v7216_v19, %v19042_v14  ;;  %v14887_v16 = vpack.c.bf16 %v12345_v8, %v12344_v1  ;;  %v12379_v31 = vld [vmem:[%s22784_s12 + $0xb38] sm:$0xff]  ;;  %v12381_v8 = vld [vmem:[%s22784_s12 + $0xb48] sm:$0xff] }
0x24ed   : > { %7637 = vmatprep.mubr.f32.mxu0 %v7293_v20  ;;  %v7294_v21 = vmul.f32 %v7278_v45, %v7166_v28  ;;  %v14917_v20 = vpack.c.bf16 %v12393_v62, %v12392_v4  ;;  %v12348_v19 = vld [vmem:[%s22784_s12 + $0xa40] sm:$0xff]  ;;  %v12366_v4 = vld [vmem:[%s22784_s12 + $0xad0] sm:$0xff]  ;;  %v12367_v62 = vld [vmem:[%s22784_s12 + $0xad8] sm:$0xff] }
0x24ee   : > { %v16177_v51 = vpop.eup %16176  ;;  %7638 = vmatmul.mubr.f32.vlgmr.msra.gmra.mrb[66].mxu0 %v7292_v23  ;;  %7707 = vmatprep.mubr.f32.mxu1 %v7295_v32  ;;  %v12347_v23 = vld [vmem:[%s22784_s12 + $0xa38] sm:$0xff]  ;;  %v12365_v32 = vld [vmem:[%s22784_s12 + $0xac8] sm:$0xff]  ;;  %v7248_v40 = vmul.f32 0.7978846, %v7232_v5  ;;  %v12380_v1 = vld [vmem:[%s22784_s12 + $0xb40] sm:$0xff] }
0x24ef   : > { %v16179_v35 = vpop.eup %16178  ;;  %v7281_v38 = vadd.f32 1.0, %v16177_v51  ;;  %14880 = vmatpush3.bf16.msra.mxu0 %v14879_v3  ;;  %7708 = vmatmul.mubr.f32.vlgmr.msra.gmra.mrb[84].mxu1 %v7294_v21  ;;  %v7218_v3 = vmul.f32 0.044715, %v7202_v29  ;;  %v7237_v51 = vadd.f32 %v7221_v63, %v19046_v36  ;;  %v12364_v29 = vld [vmem:[%s22784_s12 + $0xac0] sm:$0xff]  ;;  %v14891_v21 = vpack.c.bf16 %v12347_v23, %v12346_v22  ;;  %v12401_v22 = vld [vmem:[%s22784_s12 + $0xbe8] sm:$0xff] }
0x24f0   : > { %v7283_v42 = vadd.f32 1.0, %v16179_v35  ;;  %14882 = vmatprep.subr.bf16.mxu0 %v14881_v7  ;;  %14912 = vmatpush3.bf16.msra.mxu1 %v14911_v6  ;;  %v12363_v7 = vld [vmem:[%s22784_s12 + $0xab8] sm:$0xff]  ;;  %v12377_v6 = vld [vmem:[%s22784_s12 + $0xb28] sm:$0xff]  ;;  %v14893_v61 = vpack.c.bf16 %v12365_v32, %v12364_v29  ;;  %16180 = vtanh.f32 %v7248_v40  ;;  %v6568_v23 = vrot.slane %v19028_v34, %v17505_v10 }
0x24f1   : > { %v7297_v49 = vmul.f32 %v7281_v38, %v7169_v33  ;;  %14914 = vmatprep.subr.bf16.mxu1 %v14913_v41  ;;  %v14889_v28 = vpack.c.bf16 %v12363_v7, %v12362_v15  ;;  %v7234_v45 = vadd.f32 %v7218_v3, %v19054_v2  ;;  %v14919_v35 = vpack.c.bf16 %v12377_v6, %v12376_v53  ;;  %v12396_v41 = vld [vmem:[%s22784_s12 + $0xbc0] sm:$0xff]  ;;  %v12350_v7 = vld [vmem:[%s22784_s12 + $0xa50] sm:$0xff]  ;;  %v12369_v6 = vld [vmem:[%s22784_s12 + $0xae8] sm:$0xff] }
0x24f2   : > { %v7299_v9 = vmul.f32 %v7283_v42, %v7171_v50  ;;  %v7239_v33 = vadd.f32 %v7223_v25, %v19056_v47  ;;  %v14921_v38 = vpack.c.bf16 %v12395_v13, %v12394_v24  ;;  %v7253_v43 = vmul.f32 0.7978846, %v7237_v51  ;;  %v12351_v25 = vld [vmem:[%s22784_s12 + $0xa58] sm:$0xff]  ;;  %v12368_v53 = vld [vmem:[%s22784_s12 + $0xae0] sm:$0xff]  ;;  %v12353_v29 = vld [vmem:[%s22784_s12 + $0xa68] sm:$0xff] }
0x24f3   : > { %7777 = vmatprep.mubr.f32.mxu0 %v7297_v49  ;;  %14884 = vmatpush3.bf16.msra.mxu0 %v14883_v48  ;;  %v12397_v48 = vld [vmem:[%s22784_s12 + $0xbc8] sm:$0xff]  ;;  %v7250_v50 = vmul.f32 0.7978846, %v7234_v45  ;;  %v14923_v42 = vpack.c.bf16 %v12379_v31, %v12378_v39  ;;  %v14897_v15 = vpack.c.bf16 %v12367_v62, %v12366_v4  ;;  %v12383_v24 = vld [vmem:[%s22784_s12 + $0xb58] sm:$0xff]  ;;  %v6548_v13 = vrot.slane %v19028_v34, %v17472_v56 }
0x24f4   : > { %7847 = vmatprep.mubr.f32.mxu1 %v7299_v9  ;;  %14886 = vmatprep.subr.bf16.mxu0 %v14885_v17  ;;  %v12349_v49 = vld [vmem:[%s22784_s12 + $0xa48] sm:$0xff]  ;;  %v7255_v63 = vmul.f32 0.7978846, %v7239_v33  ;;  %v14925_v17 = vpack.c.bf16 %v12397_v48, %v12396_v41  ;;  %v12399_v9 = vld [vmem:[%s22784_s12 + $0xbd8] sm:$0xff]  ;;  %16182 = vtanh.f32 %v7253_v43  ;;  %v14899_v51 = vpack.c.bf16 %v12351_v25, %v12350_v7 }
0x24f5   : > { %14916 = vmatpush3.bf16.msra.mxu1 %v14915_v27  ;;  %v14895_v3 = vpack.c.bf16 %v12349_v49, %v12348_v19  ;;  %v12398_v27 = vld [vmem:[%s22784_s12 + $0xbd0] sm:$0xff]  ;;  %16184 = vtanh.f32 %v7250_v50  ;;  %v14901_v45 = vpack.c.bf16 %v12369_v6, %v12368_v53  ;;  %v6556_v32 = vrot.slane %v19028_v34, %v17475_v57  ;;  %v12371_v39 = vld [vmem:[%s22784_s12 + $0xaf8] sm:$0xff]  ;;  %v12385_v41 = vld [vmem:[%s22784_s12 + $0xb68] sm:$0xff] }
0x24f6   : > { %14918 = vmatprep.subr.bf16.mxu1 %v14917_v20  ;;  %v14927_v20 = vpack.c.bf16 %v12381_v8, %v12380_v1  ;;  %v14929_v5 = vpack.c.bf16 %v12399_v9, %v12398_v27  ;;  %16186 = vtanh.f32 %v7255_v63  ;;  %v6576_v31 = vrot.slane %v19028_v34, %v17508_v11  ;;  %v12403_v11 = vld [vmem:[%s22784_s12 + $0xbf8] sm:$0xff]  ;;  %v12421_v63 = vld [vmem:[%s22784_s12 + $0xc88] sm:$0xff] }
0x24f7   : > { %14888 = vmatpush3.bf16.msra.mxu0 %v14887_v16  ;;  %v12382_v16 = vld [vmem:[%s22784_s12 + $0xb50] sm:$0xff]  ;;  %v19251_v48 = vadd.f32 %v19021_v0, %v6548_v13  ;;  %v19260_v19 = vadd.f32 %v19050_v18, %v6568_v23  ;;  %v12355_v50 = vld [vmem:[%s22784_s12 + $0xa78] sm:$0xff]  ;;  %v19269_v4 = vadd.f32 %v19023_v12, %v6556_v32  ;;  %v12420_v18 = vld [vmem:[%s22784_s12 + $0xc80] sm:$0xff]  ;;  %v7168_v23 = vmul.f32 0.5, %v19042_v14 }
0x24f8   : > { %14890 = vmatprep.subr.bf16.mxu0 %v14889_v28  ;;  %v12400_v28 = vld [vmem:[%s22784_s12 + $0xbe0] sm:$0xff]  ;;  %v14931_v33 = vpack.c.bf16 %v12383_v24, %v12382_v16  ;;  %v12354_v0 = vld [vmem:[%s22784_s12 + $0xa70] sm:$0xff]  ;;  %v19278_v1 = vadd.f32 %v19052_v37, %v6576_v31  ;;  %v12453_v7 = vld [vmem:[%s22784_s12 + $0xd88] sm:$0xff]  ;;  %v14941_v6 = vpack.c.bf16 %v12421_v63, %v12420_v18  ;;  %v7173_v14 = vmul.f32 0.5, %v19046_v36 }
0x24f9   : > { %14920 = vmatpush3.bf16.msra.mxu1 %v14919_v35  ;;  %v12352_v35 = vld [vmem:[%s22784_s12 + $0xa60] sm:$0xff]  ;;  %v14933_v40 = vpack.c.bf16 %v12401_v22, %v12400_v28  ;;  %v12386_v12 = vld [vmem:[%s22784_s12 + $0xb70] sm:$0xff]  ;;  %v7188_v9 = vmul.f32 %v19251_v48, %v19251_v48  ;;  %v12405_v16 = vld [vmem:[%s22784_s12 + $0xc08] sm:$0xff]  ;;  %v7190_v24 = vmul.f32 %v19269_v4, %v19269_v4 }
0x24fa   : > { %14922 = vmatprep.subr.bf16.mxu1 %v14921_v38  ;;  %v12370_v38 = vld [vmem:[%s22784_s12 + $0xaf0] sm:$0xff]  ;;  %v14903_v43 = vpack.c.bf16 %v12353_v29, %v12352_v35  ;;  %v12452_v37 = vld [vmem:[%s22784_s12 + $0xd80] sm:$0xff]  ;;  %v12423_v22 = vld [vmem:[%s22784_s12 + $0xc98] sm:$0xff] }
0x24fb   : > { %14892 = vmatpush3.bf16.msra.mxu0 %v14891_v21  ;;  %v12384_v21 = vld [vmem:[%s22784_s12 + $0xb60] sm:$0xff]  ;;  %v14905_v49 = vpack.c.bf16 %v12371_v39, %v12370_v38  ;;  %v12422_v28 = vld [vmem:[%s22784_s12 + $0xc90] sm:$0xff]  ;;  %v14973_v29 = vpack.c.bf16 %v12453_v7, %v12452_v37  ;;  %v7204_v38 = vmul.f32 %v7188_v9, %v19251_v48  ;;  %v12425_v18 = vld [vmem:[%s22784_s12 + $0xca8] sm:$0xff] }
0x24fc   : > { %14894 = vmatprep.subr.bf16.mxu0 %v14893_v61  ;;  %v12402_v61 = vld [vmem:[%s22784_s12 + $0xbf0] sm:$0xff]  ;;  %v14935_v62 = vpack.c.bf16 %v12385_v41, %v12384_v21  ;;  %v12436_v32 = vld [vmem:[%s22784_s12 + $0xd00] sm:$0xff]  ;;  %v12455_v21 = vld [vmem:[%s22784_s12 + $0xd98] sm:$0xff]  ;;  %v7170_v41 = vmul.f32 0.5, %v19054_v2  ;;  %v7175_v2 = vmul.f32 0.5, %v19056_v47 }
0x24fd   : > { %14924 = vmatpush3.bf16.msra.mxu1 %v14923_v42  ;;  %v16181_v42 = vpop.eup %16180  ;;  %v14937_v8 = vpack.c.bf16 %v12403_v11, %v12402_v61  ;;  %v14945_v11 = vpack.c.bf16 %v12423_v22, %v12422_v28  ;;  %v12406_v36 = vld [vmem:[%s22784_s12 + $0xc10] sm:$0xff]  ;;  %v12439_v47 = vld [vmem:[%s22784_s12 + $0xd18] sm:$0xff]  ;;  %v12457_v37 = vld [vmem:[%s22784_s12 + $0xda8] sm:$0xff] }
0x24fe   : > { %14926 = vmatprep.subr.bf16.mxu1 %v14925_v17  ;;  %v16183_v17 = vpop.eup %16182  ;;  %v7280_v53 = vadd.f32 1.0, %v16181_v42  ;;  %v12440_v28 = vld [vmem:[%s22784_s12 + $0xd20] sm:$0xff]  ;;  %v12441_v22 = vld [vmem:[%s22784_s12 + $0xd28] sm:$0xff] }
0x24ff   : > { %14896 = vmatpush3.bf16.msra.mxu0 %v14895_v3  ;;  %v12387_v3 = vld [vmem:[%s22784_s12 + $0xb78] sm:$0xff]  ;;  %v16185_v27 = vpop.eup %16184 }
0x2500   : > { %14898 = vmatprep.subr.bf16.mxu0 %v14897_v15  ;;  %v14907_v15 = vpack.c.bf16 %v12355_v50, %v12354_v0  ;;  %v16187_v25 = vpop.eup %16186  ;;  %v14939_v13 = vpack.c.bf16 %v12387_v3, %v12386_v12  ;;  %v7282_v35 = vadd.f32 1.0, %v16185_v27  ;;  %v7296_v61 = vmul.f32 %v7280_v53, %v7168_v23  ;;  %v12438_v12 = vld [vmem:[%s22784_s12 + $0xd10] sm:$0xff]  ;;  %v12409_v53 = vld [vmem:[%s22784_s12 + $0xc28] sm:$0xff] }
0x2501   : > { %14928 = vmatpush3.bf16.msra.mxu1 %v14927_v20  ;;  %v7193_v20 = vmul.f32 %v19260_v19, %v19260_v19  ;;  %v7287_v31 = vadd.f32 1.0, %v16187_v25  ;;  %v7206_v0 = vmul.f32 %v7190_v24, %v19269_v4  ;;  %v7220_v3 = vmul.f32 0.044715, %v7204_v38  ;;  %v12427_v24 = vld [vmem:[%s22784_s12 + $0xcb8] sm:$0xff]  ;;  %v12410_v38 = vld [vmem:[%s22784_s12 + $0xc30] sm:$0xff] }
0x2502   : > { %14930 = vmatprep.subr.bf16.mxu1 %v14929_v5  ;;  %v12404_v5 = vld [vmem:[%s22784_s12 + $0xc00] sm:$0xff] }
0x2503   : > { %14900 = vmatpush3.bf16.msra.mxu0 %v14899_v51  ;;  %v7285_v51 = vadd.f32 1.0, %v16183_v17  ;;  %v14943_v39 = vpack.c.bf16 %v12405_v16, %v12404_v5  ;;  %v7298_v17 = vmul.f32 %v7282_v35, %v7170_v41  ;;  %v7303_v27 = vmul.f32 %v7287_v31, %v7175_v2  ;;  %v12426_v16 = vld [vmem:[%s22784_s12 + $0xcb0] sm:$0xff] }
0x2504   : > { %14902 = vmatprep.subr.bf16.mxu0 %v14901_v45  ;;  %v7195_v45 = vmul.f32 %v19278_v1, %v19278_v1  ;;  %v14979_v5 = vpack.c.bf16 %v12439_v47, %v12438_v12  ;;  %v7236_v23 = vadd.f32 %v7220_v3, %v19251_v48  ;;  %v12458_v35 = vld [vmem:[%s22784_s12 + $0xdb0] sm:$0xff]  ;;  %v14983_v31 = vpack.c.bf16 %v12441_v22, %v12440_v28  ;;  %v12431_v12 = vld [vmem:[%s22784_s12 + $0xcd8] sm:$0xff] }
0x2505   : > { %14932 = vmatpush3.bf16.msra.mxu1 %v14931_v33  ;;  %v12437_v33 = vld [vmem:[%s22784_s12 + $0xd08] sm:$0xff]  ;;  %v7301_v50 = vmul.f32 %v7285_v51, %v7173_v14  ;;  %v6564_v28 = vrot.slane %v19028_v34, %v17541_v44 }
0x2506   : > { %14934 = vmatprep.subr.bf16.mxu1 %v14933_v40  ;;  %v12454_v40 = vld [vmem:[%s22784_s12 + $0xd90] sm:$0xff]  ;;  %v14975_v42 = vpack.c.bf16 %v12437_v33, %v12436_v32  ;;  %v7211_v63 = vmul.f32 %v7195_v45, %v19278_v1  ;;  %v14953_v33 = vpack.c.bf16 %v12427_v24, %v12426_v16  ;;  %v12433_v16 = vld [vmem:[%s22784_s12 + $0xce8] sm:$0xff] }
0x2507   : > { %14904 = vmatpush3.bf16.msra.mxu0 %v14903_v43  ;;  %v7209_v43 = vmul.f32 %v7193_v20, %v19260_v19  ;;  %v12408_v20 = vld [vmem:[%s22784_s12 + $0xc20] sm:$0xff]  ;;  %v12417_v34 = vld [vmem:[%s22784_s12 + $0xc68] sm:$0xff] }
0x2508   : > { %14906 = vmatprep.subr.bf16.mxu0 %v14905_v49  ;;  %v12407_v49 = vld [vmem:[%s22784_s12 + $0xc18] sm:$0xff]  ;;  %v14951_v45 = vpack.c.bf16 %v12409_v53, %v12408_v20  ;;  %v12414_v20 = vld [vmem:[%s22784_s12 + $0xc50] sm:$0xff] }
0x2509   : > { %14936 = vmatpush3.bf16.msra.mxu1 %v14935_v62  ;;  %v12424_v62 = vld [vmem:[%s22784_s12 + $0xca0] sm:$0xff]  ;;  %v14947_v9 = vpack.c.bf16 %v12407_v49, %v12406_v36  ;;  %v7225_v7 = vmul.f32 0.044715, %v7209_v43  ;;  %v7252_v36 = vmul.f32 0.7978846, %v7236_v23  ;;  %v12415_v53 = vld [vmem:[%s22784_s12 + $0xc58] sm:$0xff] }
0x250a   : > { %14938 = vmatprep.subr.bf16.mxu1 %v14937_v8  ;;  %v14977_v8 = vpack.c.bf16 %v12455_v21, %v12454_v40  ;;  %v14949_v25 = vpack.c.bf16 %v12425_v18, %v12424_v62  ;;  %v12428_v40 = vld [vmem:[%s22784_s12 + $0xcc0] sm:$0xff]  ;;  %v12429_v21 = vld [vmem:[%s22784_s12 + $0xcc8] sm:$0xff]  ;;  %v14963_v22 = vpack.c.bf16 %v12415_v53, %v12414_v20  ;;  %v12486_v53 = vld [vmem:[%s22784_s12 + $0xe90] sm:$0xff] }
0x250b   : > { %14908 = vmatpush3.bf16.msra.mxu0 %v14907_v15  ;;  %v12456_v15 = vld [vmem:[%s22784_s12 + $0xda0] sm:$0xff]  ;;  %v7241_v32 = vadd.f32 %v7225_v7, %v19260_v19  ;;  %v14957_v2 = vpack.c.bf16 %v12429_v21, %v12428_v40  ;;  %v12413_v18 = vld [vmem:[%s22784_s12 + $0xc48] sm:$0xff]  ;;  %16188 = vtanh.f32 %v7252_v36  ;;  %v12463_v7 = vld [vmem:[%s22784_s12 + $0xdd8] sm:$0xff]  ;;  %v19477_v40 = vadd.f32 %v19044_v30, %v6564_v28 }
0x250c   : > { %14942 = vmatprep.subr.bf16.mxu0 %v14941_v6  ;;  %v7222_v6 = vmul.f32 0.044715, %v7206_v0  ;;  %v14981_v51 = vpack.c.bf16 %v12457_v37, %v12456_v15  ;;  %v12460_v0 = vld [vmem:[%s22784_s12 + $0xdc0] sm:$0xff]  ;;  %v12462_v37 = vld [vmem:[%s22784_s12 + $0xdd0] sm:$0xff]  ;;  %v12419_v30 = vld [vmem:[%s22784_s12 + $0xc78] sm:$0xff] }
0x250d   : > { %14940 = vmatpush3.bf16.msra.mxu1 %v14939_v13  ;;  %v7227_v13 = vmul.f32 0.044715, %v7211_v63  ;;  %v12412_v62 = vld [vmem:[%s22784_s12 + $0xc40] sm:$0xff]  ;;  %v14993_v24 = vpack.c.bf16 %v12463_v7, %v12462_v37  ;;  %v12469_v37 = vld [vmem:[%s22784_s12 + $0xe08] sm:$0xff]  ;;  %v7194_v7 = vmul.f32 %v19048_v58, %v19048_v58 }
0x250e   : > { %7778 = vmatmul.mubr.f32.vlgmr.msra.gmra.mrb[68].mxu0 %v7296_v61  ;;  %14974 = vmatprep.subr.bf16.mxu1 %v14973_v29  ;;  %v12459_v29 = vld [vmem:[%s22784_s12 + $0xdb8] sm:$0xff]  ;;  %v7238_v14 = vadd.f32 %v7222_v6, %v19269_v4  ;;  %v12442_v61 = vld [vmem:[%s22784_s12 + $0xd30] sm:$0xff]  ;;  %v14959_v15 = vpack.c.bf16 %v12413_v18, %v12412_v62  ;;  %v12464_v23 = vld [vmem:[%s22784_s12 + $0xde0] sm:$0xff] }
0x250f   : > { %14944 = vmatpush3.bf16.msra.mxu0 %v14943_v39  ;;  %7917 = vmatprep.mubr.f32.mxu0 %v7301_v50  ;;  %v12411_v39 = vld [vmem:[%s22784_s12 + $0xc38] sm:$0xff]  ;;  %v7243_v41 = vadd.f32 %v7227_v13, %v19278_v1  ;;  %v14985_v43 = vpack.c.bf16 %v12459_v29, %v12458_v35  ;;  %v12461_v50 = vld [vmem:[%s22784_s12 + $0xdc8] sm:$0xff]  ;;  %v12446_v13 = vld [vmem:[%s22784_s12 + $0xd50] sm:$0xff] }
0x2510   : > { %7848 = vmatmul.mubr.f32.vlgmr.msra.gmra.mrb[86].mxu1 %v7298_v17  ;;  %14946 = vmatprep.subr.bf16.mxu0 %v14945_v11  ;;  %v12443_v11 = vld [vmem:[%s22784_s12 + $0xd38] sm:$0xff]  ;;  %v14955_v49 = vpack.c.bf16 %v12411_v39, %v12410_v38  ;;  %v7254_v63 = vmul.f32 0.7978846, %v7238_v14  ;;  %v14989_v3 = vpack.c.bf16 %v12461_v50, %v12460_v0  ;;  %v12416_v29 = vld [vmem:[%s22784_s12 + $0xc60] sm:$0xff]  ;;  %v12485_v50 = vld [vmem:[%s22784_s12 + $0xe88] sm:$0xff] }
0x2511   : > { %14976 = vmatpush3.bf16.msra.mxu1 %v14975_v42  ;;  %7987 = vmatprep.mubr.f32.mxu1 %v7303_v27  ;;  %v7257_v42 = vmul.f32 0.7978846, %v7241_v32  ;;  %v14987_v17 = vpack.c.bf16 %v12443_v11, %v12442_v61  ;;  %v7259_v47 = vmul.f32 0.7978846, %v7243_v41  ;;  %v12444_v27 = vld [vmem:[%s22784_s12 + $0xd40] sm:$0xff]  ;;  %v12435_v38 = vld [vmem:[%s22784_s12 + $0xcf8] sm:$0xff]  ;;  %v14967_v21 = vpack.c.bf16 %v12417_v34, %v12416_v29 }
0x2512   : > { %14978 = vmatprep.subr.bf16.mxu1 %v14977_v8  ;;  %v12430_v8 = vld [vmem:[%s22784_s12 + $0xcd0] sm:$0xff]  ;;  %v12448_v14 = vld [vmem:[%s22784_s12 + $0xd60] sm:$0xff]  ;;  %v12451_v18 = vld [vmem:[%s22784_s12 + $0xd78] sm:$0xff]  ;;  %v7174_v29 = vmul.f32 0.5, %v19269_v4 }
0x2513   : > { %14948 = vmatpush3.bf16.msra.mxu0 %v14947_v9  ;;  %v12445_v9 = vld [vmem:[%s22784_s12 + $0xd48] sm:$0xff]  ;;  %16190 = vtanh.f32 %v7257_v42  ;;  %v12466_v41 = vld [vmem:[%s22784_s12 + $0xdf0] sm:$0xff]  ;;  %v12484_v0 = vld [vmem:[%s22784_s12 + $0xe80] sm:$0xff] }
0x2514   : > { %14950 = vmatprep.subr.bf16.mxu0 %v14949_v25  ;;  %v14961_v25 = vpack.c.bf16 %v12431_v12, %v12430_v8  ;;  %16192 = vtanh.f32 %v7254_v63  ;;  %v14991_v6 = vpack.c.bf16 %v12445_v9, %v12444_v27  ;;  %v12418_v11 = vld [vmem:[%s22784_s12 + $0xc70] sm:$0xff]  ;;  %v12516_v12 = vld [vmem:[%s22784_s12 + $0xf80] sm:$0xff]  ;;  %v15005_v9 = vpack.c.bf16 %v12485_v50, %v12484_v0  ;;  %v12521_v0 = vld [vmem:[%s22784_s12 + $0xfa8] sm:$0xff] }
0x2515   : > { %14980 = vmatpush3.bf16.msra.mxu1 %v14979_v5  ;;  %v12432_v5 = vld [vmem:[%s22784_s12 + $0xce0] sm:$0xff]  ;;  %16194 = vtanh.f32 %v7259_v47  ;;  %v16189_v36 = vpop.eup %16188  ;;  %v12450_v62 = vld [vmem:[%s22784_s12 + $0xd70] sm:$0xff]  ;;  %v14971_v8 = vpack.c.bf16 %v12419_v30, %v12418_v11  ;;  %v12517_v47 = vld [vmem:[%s22784_s12 + $0xf88] sm:$0xff] }
0x2516   : > { %14982 = vmatprep.subr.bf16.mxu1 %v14981_v51  ;;  %v12447_v51 = vld [vmem:[%s22784_s12 + $0xd58] sm:$0xff]  ;;  %v14965_v35 = vpack.c.bf16 %v12433_v16, %v12432_v5  ;;  %v7284_v27 = vadd.f32 1.0, %v16189_v36  ;;  %v7172_v5 = vmul.f32 0.5, %v19251_v48  ;;  %v12518_v48 = vld [vmem:[%s22784_s12 + $0xf90] sm:$0xff]  ;;  %v12488_v4 = vld [vmem:[%s22784_s12 + $0xea0] sm:$0xff] }
0x2517   : > { %14952 = vmatpush3.bf16.msra.mxu0 %v14951_v45  ;;  %v12465_v45 = vld [vmem:[%s22784_s12 + $0xde8] sm:$0xff]  ;;  %v14995_v32 = vpack.c.bf16 %v12447_v51, %v12446_v13  ;;  %v12500_v13 = vld [vmem:[%s22784_s12 + $0xf00] sm:$0xff] }
0x2518   : > { %14954 = vmatprep.subr.bf16.mxu0 %v14953_v33  ;;  %v12434_v33 = vld [vmem:[%s22784_s12 + $0xcf0] sm:$0xff]  ;;  %v14997_v39 = vpack.c.bf16 %v12465_v45, %v12464_v23  ;;  %v12501_v51 = vld [vmem:[%s22784_s12 + $0xf08] sm:$0xff]  ;;  %v7177_v23 = vmul.f32 0.5, %v19260_v19  ;;  %v7300_v34 = vmul.f32 %v7284_v27, %v7172_v5  ;;  %v12471_v19 = vld [vmem:[%s22784_s12 + $0xe18] sm:$0xff] }
0x2519   : > { %14984 = vmatpush3.bf16.msra.mxu1 %v14983_v31  ;;  %v12449_v31 = vld [vmem:[%s22784_s12 + $0xd68] sm:$0xff]  ;;  %v14969_v61 = vpack.c.bf16 %v12435_v38, %v12434_v33  ;;  %v12470_v33 = vld [vmem:[%s22784_s12 + $0xe10] sm:$0xff]  ;;  %v7210_v38 = vmul.f32 %v7194_v7, %v19048_v58 }
0x251a   : > { %14986 = vmatprep.subr.bf16.mxu1 %v14985_v43  ;;  %v12467_v43 = vld [vmem:[%s22784_s12 + $0xdf8] sm:$0xff]  ;;  %v15011_v36 = vpack.c.bf16 %v12471_v19, %v12470_v33  ;;  %v12474_v7 = vld [vmem:[%s22784_s12 + $0xe30] sm:$0xff]  ;;  %v12493_v5 = vld [vmem:[%s22784_s12 + $0xec8] sm:$0xff] }
0x251b   : > { %14956 = vmatpush3.bf16.msra.mxu0 %v14955_v49  ;;  %v14999_v49 = vpack.c.bf16 %v12449_v31, %v12448_v14  ;;  %v15039_v14 = vpack.c.bf16 %v12501_v51, %v12500_v13  ;;  %v7179_v31 = vmul.f32 0.5, %v19278_v1  ;;  %v12503_v1 = vld [vmem:[%s22784_s12 + $0xf18] sm:$0xff] }
0x251c   : > { %14958 = vmatprep.subr.bf16.mxu0 %v14957_v2  ;;  %v15001_v2 = vpack.c.bf16 %v12467_v43, %v12466_v41  ;;  %v12507_v13 = vld [vmem:[%s22784_s12 + $0xf38] sm:$0xff] }
0x251d   : > { %14988 = vmatpush3.bf16.msra.mxu1 %v14987_v17  ;;  %v16191_v42 = vpop.eup %16190  ;;  %v7192_v17 = vmul.f32 %v19477_v40, %v19477_v40  ;;  %v12495_v33 = vld [vmem:[%s22784_s12 + $0xed8] sm:$0xff] }
0x251e   : > { %14990 = vmatprep.subr.bf16.mxu1 %v14989_v3  ;;  %v16193_v63 = vpop.eup %16192  ;;  %v7289_v20 = vadd.f32 1.0, %v16191_v42  ;;  %v12472_v42 = vld [vmem:[%s22784_s12 + $0xe20] sm:$0xff] }
0x251f   : > { %14960 = vmatpush3.bf16.msra.mxu0 %v14959_v15  ;;  %v16195_v3 = vpop.eup %16194  ;;  %v12468_v15 = vld [vmem:[%s22784_s12 + $0xe00] sm:$0xff]  ;;  %v7286_v16 = vadd.f32 1.0, %v16193_v63  ;;  %v7208_v28 = vmul.f32 %v7192_v17, %v19477_v40  ;;  %v12490_v63 = vld [vmem:[%s22784_s12 + $0xeb0] sm:$0xff]  ;;  %v12491_v17 = vld [vmem:[%s22784_s12 + $0xeb8] sm:$0xff] }
0x2520   : > { %14962 = vmatprep.subr.bf16.mxu0 %v14961_v25  ;;  %v15003_v25 = vpack.c.bf16 %v12451_v18, %v12450_v62  ;;  %v7291_v45 = vadd.f32 1.0, %v16195_v3  ;;  %v7226_v62 = vmul.f32 0.044715, %v7210_v38  ;;  %v12508_v38 = vld [vmem:[%s22784_s12 + $0xf40] sm:$0xff] }
0x2521   : > { %14992 = vmatpush3.bf16.msra.mxu1 %v14991_v6  ;;  %v12487_v6 = vld [vmem:[%s22784_s12 + $0xe98] sm:$0xff]  ;;  %v7302_v41 = vmul.f32 %v7286_v16, %v7174_v29  ;;  %v7224_v11 = vmul.f32 0.044715, %v7208_v28 }
0x2522   : > { %14994 = vmatprep.subr.bf16.mxu1 %v14993_v24  ;;  %v15037_v24 = vpack.c.bf16 %v12517_v47, %v12516_v12  ;;  %v7307_v30 = vmul.f32 %v7291_v45, %v7179_v31  ;;  %v12504_v12 = vld [vmem:[%s22784_s12 + $0xf20] sm:$0xff]  ;;  %v12505_v47 = vld [vmem:[%s22784_s12 + $0xf28] sm:$0xff]  ;;  %v12526_v31 = vld [vmem:[%s22784_s12 + $0xfd0] sm:$0xff] }
0x2523   : > { %14964 = vmatpush3.bf16.msra.mxu0 %v14963_v22  ;;  %v15007_v22 = vpack.c.bf16 %v12469_v37, %v12468_v15  ;;  %v7240_v3 = vadd.f32 %v7224_v11, %v19477_v40  ;;  %v12523_v15 = vld [vmem:[%s22784_s12 + $0xfb8] sm:$0xff]  ;;  %v15017_v37 = vpack.c.bf16 %v12491_v17, %v12490_v63  ;;  %v12497_v11 = vld [vmem:[%s22784_s12 + $0xee8] sm:$0xff]  ;;  %v12498_v17 = vld [vmem:[%s22784_s12 + $0xef0] sm:$0xff] }
0x2524   : > { %14966 = vmatprep.subr.bf16.mxu0 %v14965_v35  ;;  %v12519_v35 = vld [vmem:[%s22784_s12 + $0xf98] sm:$0xff] }
0x2525   : > { %14996 = vmatpush3.bf16.msra.mxu1 %v14995_v32  ;;  %v15009_v32 = vpack.c.bf16 %v12487_v6, %v12486_v53  ;;  %v15041_v43 = vpack.c.bf16 %v12519_v35, %v12518_v48  ;;  %v15047_v53 = vpack.c.bf16 %v12505_v47, %v12504_v12  ;;  %v12492_v6 = vld [vmem:[%s22784_s12 + $0xec0] sm:$0xff]  ;;  %v7256_v51 = vmul.f32 0.7978846, %v7240_v3  ;;  %v12477_v35 = vld [vmem:[%s22784_s12 + $0xe48] sm:$0xff] }
0x2526   : > { %14998 = vmatprep.subr.bf16.mxu1 %v14997_v39  ;;  %v7305_v39 = vmul.f32 %v7289_v20, %v7177_v23  ;;  %v7242_v20 = vadd.f32 %v7226_v62, %v19048_v58  ;;  %v12525_v23 = vld [vmem:[%s22784_s12 + $0xfc8] sm:$0xff]  ;;  %v15021_v45 = vpack.c.bf16 %v12493_v5, %v12492_v6  ;;  %v12476_v48 = vld [vmem:[%s22784_s12 + $0xe40] sm:$0xff]  ;;  %v12514_v5 = vld [vmem:[%s22784_s12 + $0xf70] sm:$0xff] }
0x2527   : > { %14968 = vmatpush3.bf16.msra.mxu0 %v14967_v21  ;;  %v12489_v21 = vld [vmem:[%s22784_s12 + $0xea8] sm:$0xff]  ;;  %16196 = vtanh.f32 %v7256_v51  ;;  %v12480_v62 = vld [vmem:[%s22784_s12 + $0xe60] sm:$0xff] }
0x2528   : > { %14970 = vmatprep.subr.bf16.mxu0 %v14969_v61  ;;  %v12502_v61 = vld [vmem:[%s22784_s12 + $0xf10] sm:$0xff]  ;;  %v15013_v50 = vpack.c.bf16 %v12489_v21, %v12488_v4  ;;  %v7258_v29 = vmul.f32 0.7978846, %v7242_v20  ;;  %v12527_v4 = vld [vmem:[%s22784_s12 + $0xfd8] sm:$0xff]  ;;  %v12512_v47 = vld [vmem:[%s22784_s12 + $0xf60] sm:$0xff] }
0x2529   : > { %15000 = vmatpush3.bf16.msra.mxu1 %v14999_v49  ;;  %v12520_v49 = vld [vmem:[%s22784_s12 + $0xfa0] sm:$0xff]  ;;  %v15043_v18 = vpack.c.bf16 %v12503_v1, %v12502_v61  ;;  %v12513_v3 = vld [vmem:[%s22784_s12 + $0xf68] sm:$0xff] }
0x252a   : > { %15002 = vmatprep.subr.bf16.mxu1 %v15001_v2  ;;  %v12473_v2 = vld [vmem:[%s22784_s12 + $0xe28] sm:$0xff]  ;;  %16198 = vtanh.f32 %v7258_v29  ;;  %v12496_v1 = vld [vmem:[%s22784_s12 + $0xee0] sm:$0xff] }
0x252b   : > { %14972 = vmatpush3.bf16.msra.mxu0 %v14971_v8  ;;  %v15045_v8 = vpack.c.bf16 %v12521_v0, %v12520_v49  ;;  %v15015_v27 = vpack.c.bf16 %v12473_v2, %v12472_v42  ;;  %v12511_v49 = vld [vmem:[%s22784_s12 + $0xf58] sm:$0xff]  ;;  %v12529_v42 = vld [vmem:[%s22784_s12 + $0xfe8] sm:$0xff]  ;;  %v15029_v2 = vpack.c.bf16 %v12497_v11, %v12496_v1  ;;  %v8159_v1 = vld [vmem:[%s22786_s14 + $0xc0] sm:$0xff] }
0x252c   : > { %15006 = vmatprep.subr.bf16.mxu0 %v15005_v9  ;;  %v12522_v9 = vld [vmem:[%s22784_s12 + $0xfb0] sm:$0xff]  ;;  %v8136_v29 = vld [vmem:[%s22786_s14 + $0x8] sm:$0xff] }
0x252d   : > { %15004 = vmatpush3.bf16.msra.mxu1 %v15003_v25  ;;  %v12475_v25 = vld [vmem:[%s22784_s12 + $0xe38] sm:$0xff]  ;;  %v15049_v16 = vpack.c.bf16 %v12523_v15, %v12522_v9  ;;  %v12530_v9 = vld [vmem:[%s22784_s12 + $0xff0] sm:$0xff] }
0x252e   : > { %7918 = vmatmul.mubr.f32.vlgmr.msra.gmra.mrb[70].mxu0 %v7300_v34  ;;  %15038 = vmatprep.subr.bf16.mxu1 %v15037_v24  ;;  %v12506_v24 = vld [vmem:[%s22784_s12 + $0xf30] sm:$0xff]  ;;  %v15019_v28 = vpack.c.bf16 %v12475_v25, %v12474_v7  ;;  %v12531_v15 = vld [vmem:[%s22784_s12 + $0xff8] sm:$0xff] }
0x252f   : > { %15008 = vmatpush3.bf16.msra.mxu0 %v15007_v22  ;;  %8057 = vmatprep.mubr.f32.mxu0 %v7305_v39  ;;  %v12524_v22 = vld [vmem:[%s22784_s12 + $0xfc0] sm:$0xff]  ;;  %v15051_v34 = vpack.c.bf16 %v12507_v13, %v12506_v24  ;;  %v12509_v39 = vld [vmem:[%s22784_s12 + $0xf48] sm:$0xff]  ;;  %v12482_v7 = vld [vmem:[%s22784_s12 + $0xe70] sm:$0xff]  ;;  %v15065_v6 = vpack.c.bf16 %v12531_v15, %v12530_v9 }
0x2530   : > { %7988 = vmatmul.mubr.f32.vlgmr.msra.gmra.mrb[88].mxu1 %v7302_v41  ;;  %15010 = vmatprep.subr.bf16.mxu0 %v15009_v32  ;;  %v12494_v32 = vld [vmem:[%s22784_s12 + $0xed0] sm:$0xff]  ;;  %v15053_v19 = vpack.c.bf16 %v12525_v23, %v12524_v22  ;;  %v15055_v61 = vpack.c.bf16 %v12509_v39, %v12508_v38  ;;  %v12483_v25 = vld [vmem:[%s22784_s12 + $0xe78] sm:$0xff]  ;;  %v7176_v22 = vmul.f32 0.5, %v19477_v40  ;;  %v8143_v40 = vld [vmem:[%s22786_s14 + $0x40] sm:$0xff] }
0x2531   : > { %15040 = vmatpush3.bf16.msra.mxu1 %v15039_v14  ;;  %8127 = vmatprep.mubr.f32.mxu1 %v7307_v30  ;;  %v15023_v14 = vpack.c.bf16 %v12477_v35, %v12476_v48  ;;  %v15025_v21 = vpack.c.bf16 %v12495_v33, %v12494_v32  ;;  %v12478_v41 = vld [vmem:[%s22784_s12 + $0xe50] sm:$0xff]  ;;  %v15057_v30 = vpack.c.bf16 %v12527_v4, %v12526_v31  ;;  %v16197_v20 = vpop.eup %16196  ;;  %v8135_v33 = vld [vmem:[%s22786_s14] sm:$0xff]  ;;  %v8144_v31 = vld [vmem:[%s22786_s14 + $0x48] sm:$0xff] }
0x2532   : > { %15042 = vmatprep.subr.bf16.mxu1 %v15041_v43  ;;  %v12479_v43 = vld [vmem:[%s22784_s12 + $0xe58] sm:$0xff]  ;;  %v15035_v13 = vpack.c.bf16 %v12483_v25, %v12482_v7  ;;  %v7288_v51 = vadd.f32 1.0, %v16197_v20  ;;  %v8145_v32 = vld [vmem:[%s22786_s14 + $0x50] sm:$0xff] }
0x2533   : > { %15012 = vmatpush3.bf16.msra.mxu0 %v15011_v36  ;;  %v12510_v36 = vld [vmem:[%s22784_s12 + $0xf50] sm:$0xff]  ;;  %v15027_v0 = vpack.c.bf16 %v12479_v43, %v12478_v41  ;;  %v8152_v43 = vld [vmem:[%s22786_s14 + $0x88] sm:$0xff] }
0x2534   : > { %15014 = vmatprep.subr.bf16.mxu0 %v15013_v50  ;;  %v12528_v50 = vld [vmem:[%s22784_s12 + $0xfe0] sm:$0xff]  ;;  %v15059_v63 = vpack.c.bf16 %v12511_v49, %v12510_v36  ;;  %v16199_v24 = vpop.eup %16198  ;;  %v7304_v48 = vmul.f32 %v7288_v51, %v7176_v22  ;;  %v8157_v41 = vld [vmem:[%s22786_s14 + $0xb0] sm:$0xff]  ;;  %v15081_v36 = vpack.c.bf16 %v8159_v1, %v8152_v43  ;;  %v8160_v1 = vld [vmem:[%s22786_s14 + $0xc8] sm:$0xff] }
0x2535   : > { %15044 = vmatpush3.bf16.msra.mxu1 %v15043_v18  ;;  %v12481_v18 = vld [vmem:[%s22784_s12 + $0xe68] sm:$0xff]  ;;  %v15061_v12 = vpack.c.bf16 %v12529_v42, %v12528_v50  ;;  %v7290_v23 = vadd.f32 1.0, %v16199_v24  ;;  %v8149_v11 = vld [vmem:[%s22786_s14 + $0x70] sm:$0xff]  ;;  %v8158_v50 = vld [vmem:[%s22786_s14 + $0xb8] sm:$0xff] }
0x2536   : > { %15046 = vmatprep.subr.bf16.mxu1 %v15045_v8  ;;  %v12499_v8 = vld [vmem:[%s22784_s12 + $0xef8] sm:$0xff]  ;;  %v8140_v42 = vld [vmem:[%s22786_s14 + $0x28] sm:$0xff] }
0x2537   : > { %15016 = vmatpush3.bf16.msra.mxu0 %v15015_v27  ;;  %v15031_v27 = vpack.c.bf16 %v12481_v18, %v12480_v62  ;;  %v8147_v62 = vld [vmem:[%s22786_s14 + $0x60] sm:$0xff] }
0x2538   : > { %15018 = vmatprep.subr.bf16.mxu0 %v15017_v37  ;;  %v15033_v37 = vpack.c.bf16 %v12499_v8, %v12498_v17  ;;  %v15085_v18 = vpack.c.bf16 %v8147_v62, %v8140_v42  ;;  %v12533_v17 = vld [vmem:[%s22785_s13 + $0x1] ss:$0 sm:$0xff]  ;;  %v12548_v42 = vld [vmem:[%s22786_s14 + $0x130] sm:$0xff] }
0x2539   : > { %15048 = vmatpush3.bf16.msra.mxu1 %v15047_v53  ;;  %v15063_v53 = vpack.c.bf16 %v12513_v3, %v12512_v47 }
0x253a   : > { %15050 = vmatprep.subr.bf16.mxu1 %v15049_v16  ;;  %v12515_v16 = vld [vmem:[%s22784_s12 + $0xf78] sm:$0xff] }
0x253b   : > { %15020 = vmatpush3.bf16.msra.mxu0 %v15019_v28  ;;  %v15067_v28 = vpack.c.bf16 %v12515_v16, %v12514_v5 }
0x253c   : > { %15022 = vmatprep.subr.bf16.mxu0 %v15021_v45  ;;  %v7178_v45 = vmul.f32 0.5, %v19048_v58  ;;  %v8138_v58 = vld [vmem:[%s22786_s14 + $0x18] sm:$0xff] }
0x253d   : > { %15052 = vmatpush3.bf16.msra.mxu1 %v15051_v34  ;;  %v15069_v34 = vpack.c.bf16 %v8143_v40, %v8136_v29  ;;  %v15077_v38 = vpack.c.bf16 %v8145_v32, %v8138_v58  ;;  %v8139_v32 = vld [vmem:[%s22786_s14 + $0x20] sm:$0xff] }
0x253e   : > { %15054 = vmatprep.subr.bf16.mxu1 %v15053_v19  ;;  %v7306_v35 = vmul.f32 %v7290_v23, %v7178_v45  ;;  %v8142_v19 = vld [vmem:[%s22786_s14 + $0x38] sm:$0xff] }
0x253f   : > { %15024 = vmatpush3.bf16.msra.mxu0 %v15023_v14  ;;  %v15071_v39 = vpack.c.bf16 %v8142_v19, %v8135_v33  ;;  %v8137_v14 = vld [vmem:[%s22786_s14 + $0x10] sm:$0xff] }
0x2540   : > { %15026 = vmatprep.subr.bf16.mxu0 %v15025_v21  ;;  %v15079_v4 = vpack.c.bf16 %v8144_v31, %v8137_v14  ;;  %v8150_v21 = vld [vmem:[%s22786_s14 + $0x78] sm:$0xff]  ;;  %v8148_v14 = vld [vmem:[%s22786_s14 + $0x68] sm:$0xff] }
0x2541   : > { %15056 = vmatpush3.bf16.msra.mxu1 %v15055_v61  ;;  %v15073_v61 = vpack.c.bf16 %v8157_v41, %v8150_v21  ;;  %v8154_v31 = vld [vmem:[%s22786_s14 + $0x98] sm:$0xff] }
0x2542   : > { %15058 = vmatprep.subr.bf16.mxu1 %v15057_v30  ;;  %v8156_v30 = vld [vmem:[%s22786_s14 + $0xa8] sm:$0xff] }
0x2543   : > { %15028 = vmatpush3.bf16.msra.mxu0 %v15027_v0  ;;  %v15075_v49 = vpack.c.bf16 %v8156_v30, %v8149_v11  ;;  %v8151_v0 = vld [vmem:[%s22786_s14 + $0x80] sm:$0xff] }
0x2544   : > { %15030 = vmatprep.subr.bf16.mxu0 %v15029_v2  ;;  %v15083_v2 = vpack.c.bf16 %v8158_v50, %v8151_v0  ;;  %v12539_v0 = vld [vmem:[%s22786_s14 + $0xe8] sm:$0xff]  ;;  %v12546_v50 = vld [vmem:[%s22786_s14 + $0x120] sm:$0xff] }
0x2545   : > { %15060 = vmatpush3.bf16.msra.mxu1 %v15059_v63 }
0x2546   : > { %15062 = vmatprep.subr.bf16.mxu1 %v15061_v12 }
0x2547   : > { %15032 = vmatpush3.bf16.msra.mxu0 %v15031_v27 }
0x2548   : > { %15034 = vmatprep.subr.bf16.mxu0 %v15033_v37 }
0x2549   : > { %15064 = vmatpush3.bf16.msra.mxu1 %v15063_v53 }
0x254a   : > { %15066 = vmatprep.subr.bf16.mxu1 %v15065_v6 }
0x254b   : > { %15036 = vmatpush3.bf16.msra.mxu0 %v15035_v13 }
0x254c   : > { %15070 = vmatprep.subr.bf16.mxu0 %v15069_v34 }
0x254d   : > { %15068 = vmatpush3.bf16.msra.mxu1 %v15067_v28 }
0x254e   : > { %8058 = vmatmul.mubr.f32.vlgmr.msra.gmra.mrb[72].mxu0 %v7304_v48  ;;  %15078 = vmatprep.subr.bf16.mxu1 %v15077_v38  ;;  %v8146_v38 = vld [vmem:[%s22786_s14 + $0x58] sm:$0xff] }
0x254f   : > { %8230 = vmatprep.mubr.f32.mxu0 %v16266_v54  ;;  %15072 = vmatpush1.bf16.msra.mxu0 %v15071_v39  ;;  %v8141_v39 = vld [vmem:[%s22786_s14 + $0x30] sm:$0xff]  ;;  %v15087_v41 = vpack.c.bf16 %v8146_v38, %v8139_v32 }
0x2550   : > { %8128 = vmatmul.mubr.f32.vlgmr.msra.gmra.mrb[90].mxu1 %v7306_v35  ;;  %15074 = vmatprep.subr.bf16.mxu0 %v15073_v61  ;;  %v15094_v43 = vpack.c.bf16 %v8148_v14, %v8141_v39  ;;  %v8153_v61 = vld [vmem:[%s22786_s14 + $0x90] sm:$0xff]  ;;  %v12558_v39 = vld [vmem:[%s22786_s14 + $0x180] sm:$0xff]  ;;  %v12565_v14 = vld [vmem:[%s22786_s14 + $0x1b8] sm:$0xff] }
0x2551   : > { %8301 = vmatprep.mubr.f32.mxu1 %v16266_v54  ;;  %15080 = vmatpush1.bf16.msra.mxu1 %v15079_v4  ;;  %v8161_v4 = vld [vmem:[%s22786_s14 + $0xd0] sm:$0xff] }
0x2552   : > { %15082 = vmatprep.subr.bf16.mxu1 %v15081_v36  ;;  %v15089_v30 = vpack.c.bf16 %v8161_v4, %v8154_v31  ;;  %v8155_v36 = vld [vmem:[%s22786_s14 + $0xa0] sm:$0xff]  ;;  %v12556_v32 = vld [vmem:[%s22786_s14 + $0x170] sm:$0xff]  ;;  %v12571_v31 = vld [vmem:[%s22786_s14 + $0x1c8] sm:$0xff] }
0x2553   : > { %15076 = vmatpush1.bf16.msra.mxu0 %v15075_v49  ;;  %v8162_v49 = vld [vmem:[%s22786_s14 + $0xd8] sm:$0xff]  ;;  %v12578_v4 = vld [vmem:[%s22786_s14 + $0x200] sm:$0xff] }
0x2554   : > { %15086 = vmatprep.subr.bf16.mxu0 %v15085_v18  ;;  %v15097_v62 = vpack.c.bf16 %v8162_v49, %v8155_v36  ;;  %v12538_v18 = vld [vmem:[%s22786_s14 + $0xe0] sm:$0xff]  ;;  %v15129_v36 = vpack.c.bf16 %v12578_v4, %v12571_v31  ;;  %v12604_v31 = vld [vmem:[%s22786_s14 + $0x2b0] sm:$0xff]  ;;  %v12611_v4 = vld [vmem:[%s22786_s14 + $0x2e8] sm:$0xff] }
0x2555   : > { %15084 = vmatpush1.bf16.msra.mxu1 %v15083_v2  ;;  %v15091_v2 = vpack.c.bf16 %v8160_v1, %v8153_v61  ;;  %v15127_v61 = vpack.c.bf16 %v12565_v14, %v12558_v39  ;;  %v12570_v1 = vld [vmem:[%s22786_s14 + $0x1c0] sm:$0xff] }
0x2556   : > { %15093 = vmatprep.subr.bf16.mxu1 %v16264_v46 }
0x25c1   : > { %v13227_v63 = vpop.f32.mrb[66].mxu0 }
0x25c2   : > { %v13228_v8 = vpop.f32.mrb[67].mxu0  ;;  %v13262_v12 = vpop.f32.mrb[84].mxu1 }
0x25c3   : > { %v13229_v47 = vadd.f32 %v13228_v8, %v13227_v63  ;;  %v13263_v3 = vpop.f32.mrb[85].mxu1  ;;  %v12545_v63 = vld [vmem:[%s22786_s14 + $0x118] sm:$0xff] }
0x25c4   : > { %v13264_v9 = vadd.f32 %v13263_v3, %v13262_v12  ;;  %v12540_v12 = vld [vmem:[%s22786_s14 + $0xf0] sm:$0xff]  ;;  %v12553_v3 = vld [vmem:[%s22786_s14 + $0x158] sm:$0xff] }
0x25c5   : > { %v7640_v27 = vadd.f32 %v13229_v47, %v12533_v17  ;;  %v15099_v17 = vpack.c.bf16 %v12546_v50, %v12539_v0  ;;  %v12547_v47 = vld [vmem:[%s22786_s14 + $0x128] sm:$0xff]  ;;  %v12572_v0 = vld [vmem:[%s22786_s14 + $0x1d0] sm:$0xff] }
0x25c6   : > { %v12579_v50 = vld [vmem:[%s22786_s14 + $0x208] sm:$0xff] }
0x25c7   : > { %v7710_v15 = vadd.f32 %v13264_v9, %v7640_v27  ;;  %v12560_v27 = vld [vmem:[%s22786_s14 + $0x190] sm:$0xff]  ;;  %v12555_v9 = vld [vmem:[%s22786_s14 + $0x168] sm:$0xff] }
0x25e1   : > { %v13297_v37 = vpop.f32.mrb[68].mxu0 }
0x25e2   : > { %v13298_v7 = vpop.f32.mrb[69].mxu0 }
0x25e3   : > { %v13332_v25 = vpop.f32.mrb[86].mxu1  ;;  %v13299_v20 = vadd.f32 %v13298_v7, %v13297_v37  ;;  %v15101_v37 = vpack.c.bf16 %v12545_v63, %v12538_v18  ;;  %v15109_v7 = vpack.c.bf16 %v12547_v47, %v12540_v12  ;;  %v15139_v63 = vpack.c.bf16 %v12579_v50, %v12572_v0  ;;  %v12591_v47 = vld [vmem:[%s22786_s14 + $0x268] sm:$0xff] }
0x25e4   : > { %v13333_v53 = vpop.f32.mrb[87].mxu1  ;;  %v12623_v50 = vld [vmem:[%s22786_s14 + $0x348] sm:$0xff] }
0x25e5   : > { %v7780_v6 = vadd.f32 %v13299_v20, %v7710_v15  ;;  %v13334_v5 = vadd.f32 %v13333_v53, %v13332_v25  ;;  %v12562_v15 = vld [vmem:[%s22786_s14 + $0x1a0] sm:$0xff]  ;;  %v12552_v25 = vld [vmem:[%s22786_s14 + $0x150] sm:$0xff]  ;;  %v15103_v20 = vpack.c.bf16 %v12560_v27, %v12553_v3  ;;  %v12593_v27 = vld [vmem:[%s22786_s14 + $0x278] sm:$0xff] }
0x25e6   : > { %v15111_v53 = vpack.c.bf16 %v12562_v15, %v12555_v9  ;;  %v12586_v3 = vld [vmem:[%s22786_s14 + $0x240] sm:$0xff]  ;;  %v12575_v9 = vld [vmem:[%s22786_s14 + $0x1e8] sm:$0xff] }
0x25e7   : > { %v7850_v16 = vadd.f32 %v13334_v5, %v7780_v6  ;;  %v12559_v6 = vld [vmem:[%s22786_s14 + $0x188] sm:$0xff]  ;;  %v12554_v5 = vld [vmem:[%s22786_s14 + $0x160] sm:$0xff] }
0x25e8   : > { %v12582_v15 = vld [vmem:[%s22786_s14 + $0x220] sm:$0xff] }
0x2601   : > { %v13367_v24 = vpop.f32.mrb[70].mxu0 }
0x2602   : > { %v13368_v13 = vpop.f32.mrb[71].mxu0 }
0x2603   : > { %v13402_v51 = vpop.f32.mrb[88].mxu1  ;;  %v13369_v28 = vadd.f32 %v13368_v13, %v13367_v24  ;;  %v12543_v24 = vld [vmem:[%s22786_s14 + $0x108] sm:$0xff]  ;;  %v12550_v13 = vld [vmem:[%s22786_s14 + $0x140] sm:$0xff] }
0x2604   : > { %v13403_v22 = vpop.f32.mrb[89].mxu1 }
0x2605   : > { %v7920_v23 = vadd.f32 %v13369_v28, %v7850_v16  ;;  %v13404_v45 = vadd.f32 %v13403_v22, %v13402_v51  ;;  %v12561_v16 = vld [vmem:[%s22786_s14 + $0x198] sm:$0xff]  ;;  %v15105_v51 = vpack.c.bf16 %v12559_v6, %v12552_v25  ;;  %v12542_v22 = vld [vmem:[%s22786_s14 + $0x100] sm:$0xff]  ;;  %v12576_v6 = vld [vmem:[%s22786_s14 + $0x1f0] sm:$0xff] }
0x2606   : > { %v15113_v28 = vpack.c.bf16 %v12561_v16, %v12554_v5  ;;  %v12574_v25 = vld [vmem:[%s22786_s14 + $0x1e0] sm:$0xff]  ;;  %v12583_v5 = vld [vmem:[%s22786_s14 + $0x228] sm:$0xff]  ;;  %v12589_v16 = vld [vmem:[%s22786_s14 + $0x258] sm:$0xff] }
0x2607   : > { %v7990_v48 = vadd.f32 %v13404_v45, %v7920_v23  ;;  %v15115_v23 = vpack.c.bf16 %v12550_v13, %v12543_v24  ;;  %v12549_v45 = vld [vmem:[%s22786_s14 + $0x138] sm:$0xff]  ;;  %v12596_v24 = vld [vmem:[%s22786_s14 + $0x290] sm:$0xff] }
0x2621   : > { %v13437_v35 = vpop.f32.mrb[72].mxu0 }
0x2622   : > { %v13438_v29 = vpop.f32.mrb[73].mxu0 }
0x2623   : > { %v13472_v40 = vpop.f32.mrb[90].mxu1  ;;  %v13439_v58 = vadd.f32 %v13438_v29, %v13437_v35  ;;  %v12551_v35 = vld [vmem:[%s22786_s14 + $0x148] sm:$0xff]  ;;  %v12557_v29 = vld [vmem:[%s22786_s14 + $0x178] sm:$0xff] }
0x2624   : > { %v13473_v34 = vpop.f32.mrb[91].mxu1 }
0x2625   : > { %v8060_v33 = vadd.f32 %v13439_v58, %v7990_v48  ;;  %v13474_v19 = vadd.f32 %v13473_v34, %v13472_v40  ;;  %v12544_v48 = vld [vmem:[%s22786_s14 + $0x110] sm:$0xff]  ;;  %v15117_v58 = vpack.c.bf16 %v12549_v45, %v12542_v22  ;;  %v12595_v22 = vld [vmem:[%s22786_s14 + $0x288] sm:$0xff]  ;;  %v15149_v45 = vpack.c.bf16 %v12596_v24, %v12589_v16 }
0x2626   : > { %v12564_v40 = vld [vmem:[%s22786_s14 + $0x1b0] sm:$0xff]  ;;  %v15124_v34 = vpack.c.bf16 %v12551_v35, %v12544_v48  ;;  %v12590_v48 = vld [vmem:[%s22786_s14 + $0x260] sm:$0xff]  ;;  %v12597_v35 = vld [vmem:[%s22786_s14 + $0x298] sm:$0xff] }
0x2627   : > { %v8130_v21 = vadd.f32 %v13474_v19, %v8060_v33  ;;  %v12563_v33 = vld [vmem:[%s22786_s14 + $0x1a8] sm:$0xff]  ;;  %v15119_v38 = vpack.c.bf16 %v12564_v40, %v12557_v29  ;;  %v12610_v40 = vld [vmem:[%s22786_s14 + $0x2e0] sm:$0xff] }
0x2628   : > { %v12603_v29 = vld [vmem:[%s22786_s14 + $0x2a8] sm:$0xff] }
0x2629   : > { %v19788_v11 = vadd.f32 %v8130_v21, %v18640_v26  ;;  %v12541_v26 = vld [vmem:[%s22786_s14 + $0xf8] sm:$0xff]  ;;  %v15159_v39 = vpack.c.bf16 %v12610_v40, %v12603_v29  ;;  %v9624_v24 = vld [vmem:[%s22788_s16 + $0x8] sm:$0xff]  ;;  %v9625_v29 = vld [vmem:[%s22788_s16 + $0x10] sm:$0xff] }
0x262a   : > { %v15107_v8 = vpack.c.bf16 %v12548_v42, %v12541_v26  ;;  %v12573_v21 = vld [vmem:[%s22786_s14 + $0x1d8] sm:$0xff]  ;;  %v12592_v42 = vld [vmem:[%s22786_s14 + $0x270] sm:$0xff]  ;;  %v9632_v40 = vld [vmem:[%s22788_s16 + $0x48] sm:$0xff] }
0x262b   : > { %12534 = vmatmul.mubr.msk.f32.vlgmr.msra.gmra.mrb[74].mxu0 %vm987_vm2, %v19788_v11  ;;  %12535 = vmatmul.mubr.msk.f32.vlgmr.msra.gmra.mrb[92].mxu1 %vm987_vm2, %v19788_v11  ;;  %v8535_v19 = vrot.slane %v19788_v11, 1  ;;  %v12585_v26 = vld [vmem:[%s22786_s14 + $0x238] sm:$0xff] }
0x262c   : > { %15088 = vmatpush1.bf16.msra.mxu0 %v15087_v41  ;;  %15095 = vmatpush3.bf16.msra.mxu1 %v15094_v43  ;;  %v12580_v41 = vld [vmem:[%s22786_s14 + $0x210] sm:$0xff]  ;;  %v15121_v43 = vpack.c.bf16 %v12563_v33, %v12556_v32  ;;  %v15157_v33 = vpack.c.bf16 %v12597_v35, %v12590_v48 }
0x262d   : > { %15090 = vmatprep.subr.bf16.mxu0 %v15089_v30  ;;  %15096 = vmatprep.subr.bf16.mxu1 %v16264_v46  ;;  %v12577_v30 = vld [vmem:[%s22786_s14 + $0x1f8] sm:$0xff]  ;;  %v15137_v49 = vpack.c.bf16 %v12580_v41, %v12573_v21  ;;  %v12624_v41 = vld [vmem:[%s22786_s14 + $0x350] sm:$0xff] }
0x262e   : > { %8372 = vmatprep.mubr.f32.mxu0 %v16266_v54  ;;  %14115 = vmatprep.mubr.msk.f32.mxu1 %vm16265_vm1, %v16266_v54  ;;  %v15131_v18 = vpack.c.bf16 %v12577_v30, %v12570_v1  ;;  %v12617_v21 = vld [vmem:[%s22786_s14 + $0x318] sm:$0xff]  ;;  %v15169_v30 = vpack.c.bf16 %v12611_v4, %v12604_v31 }
0x2630   : > { %15092 = vmatpush1.bf16.msra.mxu0 %v15091_v2  ;;  %15098 = vmatpush3.bf16.msra.mxu1 %v15097_v62  ;;  %v12587_v2 = vld [vmem:[%s22786_s14 + $0x248] sm:$0xff]  ;;  %v12594_v62 = vld [vmem:[%s22786_s14 + $0x280] sm:$0xff] }
0x2631   : > { %15100 = vmatprep.subr.bf16.mxu0 %v15099_v17  ;;  %15108 = vmatprep.subr.bf16.mxu1 %v15107_v8  ;;  %v12584_v17 = vld [vmem:[%s22786_s14 + $0x230] sm:$0xff]  ;;  %v15133_v8 = vpack.c.bf16 %v12592_v42, %v12585_v26  ;;  %v15141_v12 = vpack.c.bf16 %v12594_v62, %v12587_v2  ;;  %v12618_v26 = vld [vmem:[%s22786_s14 + $0x320] sm:$0xff]  ;;  %v12625_v42 = vld [vmem:[%s22786_s14 + $0x358] sm:$0xff] }
0x2632   : > { %v12607_v2 = vld [vmem:[%s22786_s14 + $0x2c8] sm:$0xff]  ;;  %v12614_v62 = vld [vmem:[%s22786_s14 + $0x300] sm:$0xff] }
0x2633   : > { %12536 = vmatmul.mubr.msk.f32.vlgmr.msra.gmra.mrb[76].mxu0 %vm987_vm2, %v19788_v11  ;;  %14116 = vmatmul.mubr.msk.f32.vlgmr.msra.gmra.mrb[94].mxu1 %vm987_vm2, %v19788_v11 }
0x2634   : > { %15102 = vmatpush1.bf16.msra.mxu0 %v15101_v37  ;;  %15110 = vmatpush1.bf16.msra.mxu1 %v15109_v7  ;;  %v15135_v37 = vpack.c.bf16 %v12591_v47, %v12584_v17  ;;  %v15143_v7 = vpack.c.bf16 %v12593_v27, %v12586_v3  ;;  %v12606_v17 = vld [vmem:[%s22786_s14 + $0x2c0] sm:$0xff]  ;;  %v12608_v47 = vld [vmem:[%s22786_s14 + $0x2d0] sm:$0xff]  ;;  %v12615_v3 = vld [vmem:[%s22786_s14 + $0x308] sm:$0xff] }
0x2635   : > { %15104 = vmatprep.subr.bf16.mxu0 %v15103_v20  ;;  %15112 = vmatprep.subr.bf16.mxu1 %v15111_v53  ;;  %v15145_v20 = vpack.c.bf16 %v12582_v15, %v12575_v9  ;;  %v12581_v53 = vld [vmem:[%s22786_s14 + $0x218] sm:$0xff]  ;;  %v12628_v9 = vld [vmem:[%s22786_s14 + $0x370] sm:$0xff] }
0x2636   : > { %8602 = vmatprep.mubr.f32.mxu0 %v16266_v54  ;;  %8673 = vmatprep.mubr.f32.mxu1 %v16266_v54  ;;  %v15147_v13 = vpack.c.bf16 %v12581_v53, %v12574_v25  ;;  %v12621_v27 = vld [vmem:[%s22786_s14 + $0x338] sm:$0xff]  ;;  %v9279_v25 = vrot.slane %v19788_v11, 3  ;;  %v12627_v53 = vld [vmem:[%s22786_s14 + $0x368] sm:$0xff] }
0x2638   : > { %15106 = vmatpush1.bf16.msra.mxu0 %v15105_v51  ;;  %15114 = vmatpush1.bf16.msra.mxu1 %v15113_v28  ;;  %v15154_v51 = vpack.c.bf16 %v12583_v5, %v12576_v6  ;;  %v12588_v28 = vld [vmem:[%s22786_s14 + $0x250] sm:$0xff]  ;;  %v12622_v6 = vld [vmem:[%s22786_s14 + $0x340] sm:$0xff]  ;;  %v12629_v5 = vld [vmem:[%s22786_s14 + $0x378] sm:$0xff] }
0x2639   : > { %15116 = vmatprep.subr.bf16.mxu0 %v15115_v23  ;;  %15123 = vmatprep.subr.bf16.mxu1 %v16264_v46  ;;  %v8907_v23 = vrot.slane %v19788_v11, 2  ;;  %v15151_v32 = vpack.c.bf16 %v12595_v22, %v12588_v28  ;;  %v15187_v16 = vpack.c.bf16 %v12629_v5, %v12622_v6  ;;  %v9633_v22 = vld [vmem:[%s22788_s16 + $0x50] sm:$0xff]  ;;  %v9682_v6 = vld [vmem:[%s22788_s16 + $0x1d8] sm:$0xff] }
0x263b   : > { %12566 = vmatmul.mubr.msk.f32.vlgmr.msra.gmra.mrb[78].mxu0 %vm987_vm2, %v8535_v19  ;;  %12567 = vmatmul.mubr.msk.f32.vlgmr.msra.gmra.mrb[96].mxu1 %vm987_vm2, %v8535_v19 }
0x263c   : > { %15118 = vmatpush1.bf16.msra.mxu0 %v15117_v58  ;;  %15125 = vmatpush3.bf16.msra.mxu1 %v15124_v34  ;;  %v12605_v58 = vld [vmem:[%s22786_s14 + $0x2b8] sm:$0xff]  ;;  %v12612_v34 = vld [vmem:[%s22786_s14 + $0x2f0] sm:$0xff] }
0x263d   : > { %15120 = vmatprep.subr.bf16.mxu0 %v15119_v38  ;;  %15126 = vmatprep.subr.bf16.mxu1 %v16264_v46  ;;  %v12609_v38 = vld [vmem:[%s22786_s14 + $0x2d8] sm:$0xff]  ;;  %v15167_v14 = vpack.c.bf16 %v12612_v34, %v12605_v58  ;;  %v15399_v58 = vpack.c.bf16 %v9632_v40, %v9625_v29  ;;  %v9703_v40 = vld [vmem:[%s22788_s16 + $0x280] sm:$0xff] }
0x263e   : > { %8744 = vmatprep.mubr.f32.mxu0 %v16266_v54  ;;  %14126 = vmatprep.mubr.msk.f32.mxu1 %vm16265_vm1, %v16266_v54  ;;  %v9638_v34 = vld [vmem:[%s22788_s16 + $0x78] sm:$0xff] }
0x2640   : > { %15122 = vmatpush1.bf16.msra.mxu0 %v15121_v43  ;;  %15128 = vmatpush3.bf16.msra.mxu1 %v15127_v61  ;;  %v12619_v43 = vld [vmem:[%s22786_s14 + $0x328] sm:$0xff]  ;;  %v12626_v61 = vld [vmem:[%s22786_s14 + $0x360] sm:$0xff] }
0x2641   : > { %15130 = vmatprep.subr.bf16.mxu0 %v15129_v36  ;;  %15138 = vmatprep.subr.bf16.mxu1 %v15137_v49  ;;  %v12616_v36 = vld [vmem:[%s22786_s14 + $0x310] sm:$0xff]  ;;  %v15163_v49 = vpack.c.bf16 %v12624_v41, %v12617_v21  ;;  %v15171_v0 = vpack.c.bf16 %v12626_v61, %v12619_v43  ;;  %v9639_v21 = vld [vmem:[%s22788_s16 + $0x80] sm:$0xff]  ;;  %v9646_v41 = vld [vmem:[%s22788_s16 + $0xb8] sm:$0xff] }
0x2642   : > { %v15403_v43 = vpack.c.bf16 %v9646_v41, %v9639_v21  ;;  %v9652_v61 = vld [vmem:[%s22788_s16 + $0xe8] sm:$0xff]  ;;  %v9717_v41 = vld [vmem:[%s22788_s16 + $0x2f0] sm:$0xff] }
0x2643   : > { %12568 = vmatmul.mubr.msk.f32.vlgmr.msra.gmra.mrb[80].mxu0 %vm987_vm2, %v8535_v19  ;;  %14127 = vmatmul.mubr.msk.f32.vlgmr.msra.gmra.mrb[98].mxu1 %vm987_vm2, %v8535_v19  ;;  %v12602_v19 = vld [vmem:[%s22786_s14 + $0x2a0] sm:$0xff] }
0x2644   : > { %15132 = vmatpush1.bf16.msra.mxu0 %v15131_v18  ;;  %15140 = vmatpush1.bf16.msra.mxu1 %v15139_v63  ;;  %v15161_v1 = vpack.c.bf16 %v12609_v38, %v12602_v19  ;;  %v15165_v18 = vpack.c.bf16 %v12623_v50, %v12616_v36  ;;  %v15173_v63 = vpack.c.bf16 %v12625_v42, %v12618_v26  ;;  %v9647_v38 = vld [vmem:[%s22788_s16 + $0xc0] sm:$0xff]  ;;  %v9658_v50 = vld [vmem:[%s22788_s16 + $0x118] sm:$0xff] }
0x2645   : > { %15134 = vmatprep.subr.bf16.mxu0 %v15133_v8  ;;  %15142 = vmatprep.subr.bf16.mxu1 %v15141_v12  ;;  %v15175_v8 = vpack.c.bf16 %v12614_v62, %v12607_v2  ;;  %v12613_v12 = vld [vmem:[%s22786_s14 + $0x2f8] sm:$0xff]  ;;  %v9653_v2 = vld [vmem:[%s22788_s16 + $0xf0] sm:$0xff]  ;;  %v9660_v62 = vld [vmem:[%s22788_s16 + $0x128] sm:$0xff] }
0x2646   : > { %8974 = vmatprep.mubr.f32.mxu0 %v16266_v54  ;;  %9045 = vmatprep.mubr.f32.mxu1 %v16266_v54  ;;  %v15177_v15 = vpack.c.bf16 %v12613_v12, %v12606_v17  ;;  %v9673_v17 = vld [vmem:[%s22788_s16 + $0x190] sm:$0xff] }
0x2648   : > { %15136 = vmatpush1.bf16.msra.mxu0 %v15135_v37  ;;  %15144 = vmatpush1.bf16.msra.mxu1 %v15143_v7  ;;  %v15184_v37 = vpack.c.bf16 %v12615_v3, %v12608_v47  ;;  %v12620_v7 = vld [vmem:[%s22786_s14 + $0x330] sm:$0xff]  ;;  %v9675_v47 = vld [vmem:[%s22788_s16 + $0x1a0] sm:$0xff] }
0x2649   : > { %15146 = vmatprep.subr.bf16.mxu0 %v15145_v20  ;;  %15153 = vmatprep.subr.bf16.mxu1 %v16264_v46  ;;  %v15179_v20 = vpack.c.bf16 %v12628_v9, %v12621_v27  ;;  %v15181_v11 = vpack.c.bf16 %v12627_v53, %v12620_v7  ;;  %v9665_v3 = vld [vmem:[%s22788_s16 + $0x150] sm:$0xff]  ;;  %v9672_v27 = vld [vmem:[%s22788_s16 + $0x188] sm:$0xff]  ;;  %v9674_v7 = vld [vmem:[%s22788_s16 + $0x198] sm:$0xff] }
0x264a   : > { %v9687_v53 = vld [vmem:[%s22788_s16 + $0x200] sm:$0xff] }
0x264b   : > { %12598 = vmatmul.mubr.msk.f32.vlgmr.msra.gmra.mrb[82].mxu0 %vm987_vm2, %v8907_v23  ;;  %12599 = vmatmul.mubr.msk.f32.vlgmr.msra.gmra.mrb[100].mxu1 %vm987_vm2, %v8907_v23 }
0x264c   : > { %15148 = vmatpush1.bf16.msra.mxu0 %v15147_v13  ;;  %15155 = vmatpush3.bf16.msra.mxu1 %v15154_v51  ;;  %v9631_v13 = vld [vmem:[%s22788_s16 + $0x40] sm:$0xff]  ;;  %v9626_v51 = vld [vmem:[%s22788_s16 + $0x18] sm:$0xff] }
0x264d   : > { %15150 = vmatprep.subr.bf16.mxu0 %v15149_v45  ;;  %15156 = vmatprep.subr.bf16.mxu1 %v16264_v46  ;;  %v15189_v28 = vpack.c.bf16 %v9631_v13, %v9624_v24  ;;  %v9630_v45 = vld [vmem:[%s22788_s16 + $0x38] sm:$0xff]  ;;  %v15397_v48 = vpack.c.bf16 %v9633_v22, %v9626_v51  ;;  %v9688_v22 = vld [vmem:[%s22788_s16 + $0x208] sm:$0xff] }
0x264e   : > { %9116 = vmatprep.mubr.f32.mxu0 %v16266_v54  ;;  %14137 = vmatprep.mubr.msk.f32.mxu1 %vm16265_vm1, %v16266_v54  ;;  %v9686_v24 = vld [vmem:[%s22788_s16 + $0x1f8] sm:$0xff] }
0x2650   : > { %15152 = vmatpush1.bf16.msra.mxu0 %v15151_v32  ;;  %15158 = vmatpush3.bf16.msra.mxu1 %v15157_v33  ;;  %v9645_v32 = vld [vmem:[%s22788_s16 + $0xb0] sm:$0xff]  ;;  %v9640_v33 = vld [vmem:[%s22788_s16 + $0x88] sm:$0xff] }
0x2651   : > { %15160 = vmatprep.subr.bf16.mxu0 %v15159_v39  ;;  %15168 = vmatprep.subr.bf16.mxu1 %v15167_v14  ;;  %v15193_v19 = vpack.c.bf16 %v9645_v32, %v9638_v34  ;;  %v9637_v39 = vld [vmem:[%s22788_s16 + $0x70] sm:$0xff]  ;;  %v9644_v14 = vld [vmem:[%s22788_s16 + $0xa8] sm:$0xff]  ;;  %v15401_v31 = vpack.c.bf16 %v9647_v38, %v9640_v33  ;;  %v9702_v38 = vld [vmem:[%s22788_s16 + $0x278] sm:$0xff] }
0x2652   : > { %v15195_v4 = vpack.c.bf16 %v9644_v14, %v9637_v39  ;;  %v9700_v34 = vld [vmem:[%s22788_s16 + $0x268] sm:$0xff] }
0x2653   : > { %12600 = vmatmul.mubr.msk.f32.vlgmr.msra.gmra.mrb[84].mxu0 %vm987_vm2, %v8907_v23  ;;  %14138 = vmatmul.mubr.msk.f32.vlgmr.msra.gmra.mrb[102].mxu1 %vm987_vm2, %v8907_v23  ;;  %v9623_v23 = vld [vmem:[%s22788_s16] sm:$0xff]  ;;  %v9708_v14 = vld [vmem:[%s22788_s16 + $0x2a8] sm:$0xff] }
0x2654   : > { %15162 = vmatpush1.bf16.msra.mxu0 %v15161_v1  ;;  %15170 = vmatpush1.bf16.msra.mxu1 %v15169_v30  ;;  %v15191_v35 = vpack.c.bf16 %v9630_v45, %v9623_v23  ;;  %v9659_v1 = vld [vmem:[%s22788_s16 + $0x120] sm:$0xff]  ;;  %v9654_v30 = vld [vmem:[%s22788_s16 + $0xf8] sm:$0xff] }
0x2655   : > { %15164 = vmatprep.subr.bf16.mxu0 %v15163_v49  ;;  %15172 = vmatprep.subr.bf16.mxu1 %v15171_v0  ;;  %v15197_v36 = vpack.c.bf16 %v9659_v1, %v9652_v61  ;;  %v9661_v49 = vld [vmem:[%s22788_s16 + $0x130] sm:$0xff]  ;;  %v9651_v0 = vld [vmem:[%s22788_s16 + $0xe0] sm:$0xff]  ;;  %v9694_v45 = vld [vmem:[%s22788_s16 + $0x238] sm:$0xff] }
0x2656   : > { %9346 = vmatprep.mubr.f32.mxu0 %v16266_v54  ;;  %9417 = vmatprep.mubr.f32.mxu1 %v16266_v54  ;;  %v15405_v26 = vpack.c.bf16 %v9661_v49, %v9654_v30  ;;  %v15199_v42 = vpack.c.bf16 %v9658_v50, %v9651_v0  ;;  %v9714_v61 = vld [vmem:[%s22788_s16 + $0x2d8] sm:$0xff]  ;;  %v9716_v49 = vld [vmem:[%s22788_s16 + $0x2e8] sm:$0xff] }
0x2657   : > { %v9722_v50 = vld [vmem:[%s22788_s16 + $0x318] sm:$0xff] }
0x2658   : > { %15166 = vmatpush1.bf16.msra.mxu0 %v15165_v18  ;;  %15174 = vmatpush1.bf16.msra.mxu1 %v15173_v63  ;;  %v15407_v18 = vpack.c.bf16 %v9660_v62, %v9653_v2  ;;  %v9666_v63 = vld [vmem:[%s22788_s16 + $0x158] sm:$0xff]  ;;  %v9731_v62 = vld [vmem:[%s22788_s16 + $0x360] sm:$0xff] }
0x2659   : > { %15176 = vmatprep.subr.bf16.mxu0 %v15175_v8  ;;  %15183 = vmatprep.subr.bf16.mxu1 %v16264_v46  ;;  %v9668_v8 = vld [vmem:[%s22788_s16 + $0x168] sm:$0xff]  ;;  %v15201_v12 = vpack.c.bf16 %v9673_v17, %v9666_v63 }
0x265a   : > { %v15409_v9 = vpack.c.bf16 %v9675_v47, %v9668_v8  ;;  %v9728_v63 = vld [vmem:[%s22788_s16 + $0x348] sm:$0xff]  ;;  %v9730_v47 = vld [vmem:[%s22788_s16 + $0x358] sm:$0xff] }
0x265b   : > { %12630 = vmatmul.mubr.msk.f32.vlgmr.msra.gmra.mrb[86].mxu0 %vm987_vm2, %v9279_v25  ;;  %12631 = vmatmul.mubr.msk.f32.vlgmr.msra.gmra.mrb[104].mxu1 %vm987_vm2, %v9279_v25 }
0x265c   : > { %15178 = vmatpush1.bf16.msra.mxu0 %v15177_v15  ;;  %15185 = vmatpush3.bf16.msra.mxu1 %v15184_v37  ;;  %v15203_v15 = vpack.c.bf16 %v9672_v27, %v9665_v3  ;;  %v9667_v37 = vld [vmem:[%s22788_s16 + $0x160] sm:$0xff]  ;;  %v9736_v27 = vld [vmem:[%s22788_s16 + $0x388] sm:$0xff] }
0x265d   : > { %15180 = vmatprep.subr.bf16.mxu0 %v15179_v20  ;;  %15186 = vmatprep.subr.bf16.mxu1 %v16264_v46  ;;  %v9680_v20 = vld [vmem:[%s22788_s16 + $0x1c8] sm:$0xff] }
0x265e   : > { %9488 = vmatprep.mubr.f32.mxu0 %v16266_v54  ;;  %14148 = vmatprep.mubr.msk.f32.mxu1 %vm16265_vm1, %v16266_v54  ;;  %v15205_v5 = vpack.c.bf16 %v9687_v53, %v9680_v20  ;;  %v9742_v20 = vld [vmem:[%s22788_s16 + $0x3b8] sm:$0xff] }
0x2660   : > { %15182 = vmatpush1.bf16.msra.mxu0 %v15181_v11  ;;  %15188 = vmatpush3.bf16.msra.mxu1 %v15187_v16  ;;  %v9689_v11 = vld [vmem:[%s22788_s16 + $0x210] sm:$0xff]  ;;  %v9679_v16 = vld [vmem:[%s22788_s16 + $0x1c0] sm:$0xff] }
0x2661   : > { %15190 = vmatprep.subr.bf16.mxu0 %v15189_v28  ;;  %15398 = vmatprep.subr.bf16.mxu1 %v15397_v48  ;;  %v15413_v13 = vpack.c.bf16 %v9689_v11, %v9682_v6  ;;  %v15207_v51 = vpack.c.bf16 %v9686_v24, %v9679_v16  ;;  %v9681_v28 = vld [vmem:[%s22788_s16 + $0x1d0] sm:$0xff]  ;;  %v9744_v11 = vld [vmem:[%s22788_s16 + $0x3c8] sm:$0xff]  ;;  %v9750_v24 = vld [vmem:[%s22788_s16 + $0x3f8] sm:$0xff] }
0x2662   : > { %v15415_v23 = vpack.c.bf16 %v9688_v22, %v9681_v28  ;;  %v9701_v48 = vld [vmem:[%s22788_s16 + $0x270] sm:$0xff]  ;;  %v9759_v22 = vld [vmem:[%s22788_s16 + $0x440] sm:$0xff] }
0x2663   : > { %12632 = vmatmul.mubr.msk.f32.vlgmr.msra.gmra.mrb[88].mxu0 %vm987_vm2, %v9279_v25  ;;  %14149 = vmatmul.mubr.msk.f32.vlgmr.msra.gmra.mrb[106].mxu1 %vm987_vm2, %v9279_v25  ;;  %v15411_v25 = vpack.c.bf16 %v9674_v7, %v9667_v37  ;;  %v15209_v29 = vpack.c.bf16 %v9701_v48, %v9694_v45  ;;  %v9745_v7 = vld [vmem:[%s22788_s16 + $0x3d0] sm:$0xff]  ;;  %v9756_v45 = vld [vmem:[%s22788_s16 + $0x428] sm:$0xff] }
0x2664   : > { %15192 = vmatpush1.bf16.msra.mxu0 %v15191_v35  ;;  %15400 = vmatpush1.bf16.msra.mxu1 %v15399_v58  ;;  %v9696_v35 = vld [vmem:[%s22788_s16 + $0x248] sm:$0xff]  ;;  %v9693_v58 = vld [vmem:[%s22788_s16 + $0x230] sm:$0xff] }
0x2665   : > { %15194 = vmatprep.subr.bf16.mxu0 %v15193_v19  ;;  %15402 = vmatprep.subr.bf16.mxu1 %v15401_v31  ;;  %v15417_v32 = vpack.c.bf16 %v9703_v40, %v9696_v35  ;;  %v15211_v33 = vpack.c.bf16 %v9700_v34, %v9693_v58  ;;  %v9695_v19 = vld [vmem:[%s22788_s16 + $0x240] sm:$0xff]  ;;  %v9758_v40 = vld [vmem:[%s22788_s16 + $0x438] sm:$0xff]  ;;  %v9764_v34 = vld [vmem:[%s22788_s16 + $0x468] sm:$0xff] }
0x2666   : > { %v15419_v39 = vpack.c.bf16 %v9702_v38, %v9695_v19  ;;  %v9715_v31 = vld [vmem:[%s22788_s16 + $0x2e0] sm:$0xff]  ;;  %v9773_v38 = vld [vmem:[%s22788_s16 + $0x4b0] sm:$0xff] }
0x2667   : > { %v15213_v21 = vpack.c.bf16 %v9715_v31, %v9708_v14  ;;  %v9770_v14 = vld [vmem:[%s22788_s16 + $0x498] sm:$0xff] }
0x2668   : > { %15196 = vmatpush1.bf16.msra.mxu0 %v15195_v4  ;;  %15404 = vmatpush1.bf16.msra.mxu1 %v15403_v43  ;;  %v9710_v4 = vld [vmem:[%s22788_s16 + $0x2b8] sm:$0xff]  ;;  %v9707_v43 = vld [vmem:[%s22788_s16 + $0x2a0] sm:$0xff] }
0x2669   : > { %15198 = vmatprep.subr.bf16.mxu0 %v15197_v36  ;;  %15406 = vmatprep.subr.bf16.mxu1 %v15405_v26  ;;  %v15421_v1 = vpack.c.bf16 %v9717_v41, %v9710_v4  ;;  %v15215_v30 = vpack.c.bf16 %v9714_v61, %v9707_v43  ;;  %v9709_v36 = vld [vmem:[%s22788_s16 + $0x2b0] sm:$0xff]  ;;  %v9772_v41 = vld [vmem:[%s22788_s16 + $0x4a8] sm:$0xff]  ;;  %v9778_v61 = vld [vmem:[%s22788_s16 + $0x4d8] sm:$0xff] }
0x266a   : > { %v15423_v0 = vpack.c.bf16 %v9716_v49, %v9709_v36  ;;  %v9729_v26 = vld [vmem:[%s22788_s16 + $0x350] sm:$0xff]  ;;  %v9787_v49 = vld [vmem:[%s22788_s16 + $0x520] sm:$0xff] }
0x266b   : > { %v15217_v2 = vpack.c.bf16 %v9729_v26, %v9722_v50  ;;  %v9784_v50 = vld [vmem:[%s22788_s16 + $0x508] sm:$0xff] }
0x266c   : > { %15200 = vmatpush1.bf16.msra.mxu0 %v15199_v42  ;;  %15408 = vmatpush1.bf16.msra.mxu1 %v15407_v18  ;;  %v9724_v42 = vld [vmem:[%s22788_s16 + $0x328] sm:$0xff]  ;;  %v9721_v18 = vld [vmem:[%s22788_s16 + $0x310] sm:$0xff] }
0x266d   : > { %15202 = vmatprep.subr.bf16.mxu0 %v15201_v12  ;;  %15410 = vmatprep.subr.bf16.mxu1 %v15409_v9  ;;  %v15425_v17 = vpack.c.bf16 %v9731_v62, %v9724_v42  ;;  %v15219_v8 = vpack.c.bf16 %v9728_v63, %v9721_v18  ;;  %v9723_v12 = vld [vmem:[%s22788_s16 + $0x320] sm:$0xff]  ;;  %v9786_v62 = vld [vmem:[%s22788_s16 + $0x518] sm:$0xff]  ;;  %v9792_v63 = vld [vmem:[%s22788_s16 + $0x548] sm:$0xff] }
0x266e   : > { %v15427_v3 = vpack.c.bf16 %v9730_v47, %v9723_v12  ;;  %v9743_v9 = vld [vmem:[%s22788_s16 + $0x3c0] sm:$0xff]  ;;  %v9801_v47 = vld [vmem:[%s22788_s16 + $0x590] sm:$0xff] }
0x266f   : > { %v15221_v37 = vpack.c.bf16 %v9743_v9, %v9736_v27  ;;  %v9798_v27 = vld [vmem:[%s22788_s16 + $0x578] sm:$0xff] }
0x2670   : > { %15204 = vmatpush1.bf16.msra.mxu0 %v15203_v15  ;;  %15412 = vmatpush1.bf16.msra.mxu1 %v15411_v25  ;;  %v9738_v15 = vld [vmem:[%s22788_s16 + $0x398] sm:$0xff]  ;;  %v9735_v25 = vld [vmem:[%s22788_s16 + $0x380] sm:$0xff] }
0x2671   : > { %15206 = vmatprep.subr.bf16.mxu0 %v15205_v5  ;;  %15414 = vmatprep.subr.bf16.mxu1 %v15413_v13  ;;  %v15429_v53 = vpack.c.bf16 %v9745_v7, %v9738_v15  ;;  %v15223_v6 = vpack.c.bf16 %v9742_v20, %v9735_v25  ;;  %v9737_v5 = vld [vmem:[%s22788_s16 + $0x390] sm:$0xff]  ;;  %v9800_v7 = vld [vmem:[%s22788_s16 + $0x588] sm:$0xff]  ;;  %v9806_v20 = vld [vmem:[%s22788_s16 + $0x5b8] sm:$0xff] }
0x2672   : > { %v15431_v16 = vpack.c.bf16 %v9744_v11, %v9737_v5  ;;  %v9757_v13 = vld [vmem:[%s22788_s16 + $0x430] sm:$0xff]  ;;  %v9815_v11 = vld [vmem:[%s22788_s16 + $0x600] sm:$0xff] }
0x2673   : > { %v15225_v28 = vpack.c.bf16 %v9757_v13, %v9750_v24  ;;  %v9812_v24 = vld [vmem:[%s22788_s16 + $0x5e8] sm:$0xff] }
0x2674   : > { %15208 = vmatpush1.bf16.msra.mxu0 %v15207_v51  ;;  %15416 = vmatpush1.bf16.msra.mxu1 %v15415_v23  ;;  %v9752_v51 = vld [vmem:[%s22788_s16 + $0x408] sm:$0xff]  ;;  %v9749_v23 = vld [vmem:[%s22788_s16 + $0x3f0] sm:$0xff] }
0x2675   : > { %15210 = vmatprep.subr.bf16.mxu0 %v15209_v29  ;;  %15418 = vmatprep.subr.bf16.mxu1 %v15417_v32  ;;  %v15433_v48 = vpack.c.bf16 %v9759_v22, %v9752_v51  ;;  %v15227_v35 = vpack.c.bf16 %v9756_v45, %v9749_v23  ;;  %v9751_v29 = vld [vmem:[%s22788_s16 + $0x400] sm:$0xff]  ;;  %v9814_v22 = vld [vmem:[%s22788_s16 + $0x5f8] sm:$0xff]  ;;  %v9820_v45 = vld [vmem:[%s22788_s16 + $0x628] sm:$0xff] }
0x2676   : > { %v15435_v58 = vpack.c.bf16 %v9758_v40, %v9751_v29  ;;  %v9771_v32 = vld [vmem:[%s22788_s16 + $0x4a0] sm:$0xff]  ;;  %v9829_v40 = vld [vmem:[%s22788_s16 + $0x670] sm:$0xff] }
0x2677   : > { %v15229_v19 = vpack.c.bf16 %v9771_v32, %v9764_v34  ;;  %v9826_v34 = vld [vmem:[%s22788_s16 + $0x658] sm:$0xff] }
0x2678   : > { %15212 = vmatpush1.bf16.msra.mxu0 %v15211_v33  ;;  %15420 = vmatpush1.bf16.msra.mxu1 %v15419_v39  ;;  %v9766_v33 = vld [vmem:[%s22788_s16 + $0x478] sm:$0xff]  ;;  %v9763_v39 = vld [vmem:[%s22788_s16 + $0x460] sm:$0xff] }
0x2679   : > { %15214 = vmatprep.subr.bf16.mxu0 %v15213_v21  ;;  %15422 = vmatprep.subr.bf16.mxu1 %v15421_v1  ;;  %v15437_v31 = vpack.c.bf16 %v9773_v38, %v9766_v33  ;;  %v15231_v4 = vpack.c.bf16 %v9770_v14, %v9763_v39  ;;  %v9765_v21 = vld [vmem:[%s22788_s16 + $0x470] sm:$0xff]  ;;  %v9828_v38 = vld [vmem:[%s22788_s16 + $0x668] sm:$0xff]  ;;  %v9834_v14 = vld [vmem:[%s22788_s16 + $0x698] sm:$0xff] }
0x267a   : > { %v15439_v43 = vpack.c.bf16 %v9772_v41, %v9765_v21  ;;  %v9785_v1 = vld [vmem:[%s22788_s16 + $0x510] sm:$0xff]  ;;  %v9843_v41 = vld [vmem:[%s22788_s16 + $0x6e0] sm:$0xff] }
0x267b   : > { %v15233_v36 = vpack.c.bf16 %v9785_v1, %v9778_v61  ;;  %v9840_v61 = vld [vmem:[%s22788_s16 + $0x6c8] sm:$0xff] }
0x267c   : > { %15216 = vmatpush1.bf16.msra.mxu0 %v15215_v30  ;;  %15424 = vmatpush1.bf16.msra.mxu1 %v15423_v0  ;;  %v9780_v30 = vld [vmem:[%s22788_s16 + $0x4e8] sm:$0xff]  ;;  %v9777_v0 = vld [vmem:[%s22788_s16 + $0x4d0] sm:$0xff] }
0x267d   : > { %15218 = vmatprep.subr.bf16.mxu0 %v15217_v2  ;;  %15426 = vmatprep.subr.bf16.mxu1 %v15425_v17  ;;  %v15441_v26 = vpack.c.bf16 %v9787_v49, %v9780_v30  ;;  %v15235_v42 = vpack.c.bf16 %v9784_v50, %v9777_v0  ;;  %v9779_v2 = vld [vmem:[%s22788_s16 + $0x4e0] sm:$0xff]  ;;  %v9842_v49 = vld [vmem:[%s22788_s16 + $0x6d8] sm:$0xff]  ;;  %v9848_v50 = vld [vmem:[%s22788_s16 + $0x708] sm:$0xff] }
0x267e   : > { %v15443_v18 = vpack.c.bf16 %v9786_v62, %v9779_v2  ;;  %v9799_v17 = vld [vmem:[%s22788_s16 + $0x580] sm:$0xff]  ;;  %v9857_v62 = vld [vmem:[%s22788_s16 + $0x750] sm:$0xff] }
0x267f   : > { %v15237_v12 = vpack.c.bf16 %v9799_v17, %v9792_v63  ;;  %v16267_v63 = vmov 1966171168  }
0x2680   : > { %15220 = vmatpush1.bf16.msra.mxu0 %v15219_v8  ;;  %15428 = vmatpush1.bf16.msra.mxu1 %v15427_v3  ;;  %v9794_v8 = vld [vmem:[%s22788_s16 + $0x558] sm:$0xff]  ;;  %v9791_v3 = vld [vmem:[%s22788_s16 + $0x540] sm:$0xff]  ;;  %v8460_v17 = vunpack.c.l.s4 %v16267_v63 }
0x2681   : > { %15222 = vmatprep.subr.bf16.mxu0 %v15221_v37  ;;  %15430 = vmatprep.subr.bf16.mxu1 %v15429_v53  ;;  %v15445_v9 = vpack.c.bf16 %v9801_v47, %v9794_v8  ;;  %v15239_v15 = vpack.c.bf16 %v9798_v27, %v9791_v3  ;;  %v9793_v37 = vld [vmem:[%s22788_s16 + $0x550] sm:$0xff] }
0x2682   : > { %v15447_v25 = vpack.c.bf16 %v9800_v7, %v9793_v37  ;;  %v9813_v53 = vld [vmem:[%s22788_s16 + $0x5f0] sm:$0xff]  ;;  %v8461_v8 = vunpack.c.0.s8 %v8460_v17 }
0x2683   : > { %v15241_v5 = vpack.c.bf16 %v9813_v53, %v9806_v20 }
0x2684   : > { %15224 = vmatpush1.bf16.msra.mxu0 %v15223_v6  ;;  %15432 = vmatpush1.bf16.msra.mxu1 %v15431_v16  ;;  %v9808_v6 = vld [vmem:[%s22788_s16 + $0x5c8] sm:$0xff]  ;;  %v9805_v16 = vld [vmem:[%s22788_s16 + $0x5b0] sm:$0xff] }
0x2685   : > { %15226 = vmatprep.subr.bf16.mxu0 %v15225_v28  ;;  %15434 = vmatprep.subr.bf16.mxu1 %v15433_v48  ;;  %v15449_v13 = vpack.c.bf16 %v9815_v11, %v9808_v6  ;;  %v15243_v51 = vpack.c.bf16 %v9812_v24, %v9805_v16  ;;  %v9807_v28 = vld [vmem:[%s22788_s16 + $0x5c0] sm:$0xff] }
0x2686   : > { %v15451_v23 = vpack.c.bf16 %v9814_v22, %v9807_v28  ;;  %v9827_v48 = vld [vmem:[%s22788_s16 + $0x660] sm:$0xff] }
0x2687   : > { %v15245_v29 = vpack.c.bf16 %v9827_v48, %v9820_v45 }
0x2688   : > { %15228 = vmatpush1.bf16.msra.mxu0 %v15227_v35  ;;  %15436 = vmatpush1.bf16.msra.mxu1 %v15435_v58  ;;  %v9822_v35 = vld [vmem:[%s22788_s16 + $0x638] sm:$0xff]  ;;  %v9819_v58 = vld [vmem:[%s22788_s16 + $0x620] sm:$0xff] }
0x2689   : > { %15230 = vmatprep.subr.bf16.mxu0 %v15229_v19  ;;  %15438 = vmatprep.subr.bf16.mxu1 %v15437_v31  ;;  %v15453_v32 = vpack.c.bf16 %v9829_v40, %v9822_v35  ;;  %v15247_v33 = vpack.c.bf16 %v9826_v34, %v9819_v58  ;;  %v9821_v19 = vld [vmem:[%s22788_s16 + $0x630] sm:$0xff] }
0x268a   : > { %v15455_v39 = vpack.c.bf16 %v9828_v38, %v9821_v19  ;;  %v9841_v31 = vld [vmem:[%s22788_s16 + $0x6d0] sm:$0xff] }
0x268b   : > { %v15249_v21 = vpack.c.bf16 %v9841_v31, %v9834_v14 }
0x268c   : > { %15232 = vmatpush1.bf16.msra.mxu0 %v15231_v4  ;;  %15440 = vmatpush1.bf16.msra.mxu1 %v15439_v43  ;;  %v9836_v4 = vld [vmem:[%s22788_s16 + $0x6a8] sm:$0xff]  ;;  %v9833_v43 = vld [vmem:[%s22788_s16 + $0x690] sm:$0xff] }
0x268d   : > { %15234 = vmatprep.subr.bf16.mxu0 %v15233_v36  ;;  %15442 = vmatprep.subr.bf16.mxu1 %v15441_v26  ;;  %v15457_v1 = vpack.c.bf16 %v9843_v41, %v9836_v4  ;;  %v15251_v30 = vpack.c.bf16 %v9840_v61, %v9833_v43  ;;  %v9835_v36 = vld [vmem:[%s22788_s16 + $0x6a0] sm:$0xff] }
0x268e   : > { %v15459_v0 = vpack.c.bf16 %v9842_v49, %v9835_v36  ;;  %v9855_v26 = vld [vmem:[%s22788_s16 + $0x740] sm:$0xff] }
0x268f   : > { %v15253_v2 = vpack.c.bf16 %v9855_v26, %v9848_v50  ;;  %v8134_v41 = vld [vmem:[%s22787_s15] sm:$0x7f] }
0x2690   : > { %15236 = vmatpush1.bf16.msra.mxu0 %v15235_v42  ;;  %15444 = vmatpush1.bf16.msra.mxu1 %v15443_v18  ;;  %v9850_v42 = vld [vmem:[%s22788_s16 + $0x718] sm:$0xff] }
0x2691   : > { %15238 = vmatprep.subr.bf16.mxu0 %v15237_v12  ;;  %15446 = vmatprep.subr.bf16.mxu1 %v15445_v9  ;;  %v15461_v18 = vpack.c.bf16 %v9857_v62, %v9850_v42  ;;  %v20493_v12 = vsub.s32 %v8461_v8, %v17469_v55 }
0x2694   : > { %15240 = vmatpush1.bf16.msra.mxu0 %v15239_v15  ;;  %15448 = vmatpush1.bf16.msra.mxu1 %v15447_v25 }
0x2695   : > { %15242 = vmatprep.subr.bf16.mxu0 %v15241_v5  ;;  %15450 = vmatprep.subr.bf16.mxu1 %v15449_v13 }
0x2698   : > { %15244 = vmatpush1.bf16.msra.mxu0 %v15243_v51  ;;  %15452 = vmatpush1.bf16.msra.mxu1 %v15451_v23 }
0x2699   : > { %15246 = vmatprep.subr.bf16.mxu0 %v15245_v29  ;;  %15454 = vmatprep.subr.bf16.mxu1 %v15453_v32 }
0x269c   : > { %15248 = vmatpush1.bf16.msra.mxu0 %v15247_v33  ;;  %15456 = vmatpush1.bf16.msra.mxu1 %v15455_v39 }
0x269d   : > { %15250 = vmatprep.subr.bf16.mxu0 %v15249_v21  ;;  %15458 = vmatprep.subr.bf16.mxu1 %v15457_v1 }
0x26a0   : > { %15252 = vmatpush1.bf16.msra.mxu0 %v15251_v30  ;;  %15460 = vmatpush1.bf16.msra.mxu1 %v15459_v0 }
0x26a1   : > { %15254 = vmatprep.subr.bf16.mxu0 %v15253_v2  ;;  %15462 = vmatprep.subr.bf16.mxu1 %v15461_v18 }
0x26fe   : > { %v8232_v47 = vpop.f32.mrb[74].mxu0  ;;  %v8303_v3 = vpop.f32.mrb[92].mxu1 }
0x26ff   : > { %v8234_v27 = vpop.f32.mrb[75].mxu0  ;;  %v8305_v9 = vpop.f32.mrb[93].mxu1 }
0x2700   : > { %v8456_v15 = vcombine.low %v8232_v47, %v8234_v27  ;;  %v8457_v37 = vcombine.low %v8303_v3, %v8305_v9 }
0x2702   : > { %v8465_v7 = vrot.slane %v8456_v15, %v20493_v12  ;;  %v8472_v25 = vrot.slane %v8457_v37, %v20493_v12 }
0x2704   : > { %v8487_v20 = vcombine.low %v8465_v7, %v8472_v25 }
0x2706   : > { %v8374_v53 = vpop.f32.mrb[76].mxu0  ;;  %v8445_v6 = vpop.f32.mrb[94].mxu1  ;;  %v8495_v51 = vrot.slane %v8487_v20, %v20493_v12 }
0x2707   : > { %v8376_v5 = vpop.f32.mrb[77].mxu0  ;;  %v14117_v11 = vpop.f32.mrb[95].mxu1  ;;  %v8486_v24 = vrot.slane %v8445_v6, %v20493_v12 }
0x2708   : > { %v8458_v16 = vcombine.low %v8374_v53, %v8376_v5 }
0x270a   : > { %v8479_v55 = vrot.slane %v8458_v16, %v20493_v12 }
0x270c   : > { %v8488_v13 = vcombine.low %v8479_v55, %v8486_v24 }
0x270e   : > { %v8502_v28 = vrot.slane %v8488_v13, %v20493_v12  ;;  %v8604_v22 = vpop.f32.mrb[78].mxu0  ;;  %v8675_v23 = vpop.f32.mrb[96].mxu1 }
0x270f   : > { %v8606_v45 = vpop.f32.mrb[79].mxu0  ;;  %v8677_v48 = vpop.f32.mrb[97].mxu1 }
0x2710   : > { %v8503_v35 = vcombine.low %v8495_v51, %v8502_v28  ;;  %v8828_v29 = vcombine.low %v8604_v22, %v8606_v45  ;;  %v8829_v40 = vcombine.low %v8675_v23, %v8677_v48 }
0x2712   : > { %v8837_v58 = vrot.slane %v8828_v29, %v20493_v12  ;;  %v8844_v34 = vrot.slane %v8829_v40, %v20493_v12  ;;  %v8505_v0 = vadd.f32 %v8503_v35, %v8134_v41  ;;  %v9864_v41 = vld [vmem:[%s22788_s16 + $0x788] sm:$0xff] }
0x2714   : > { %v8859_v32 = vcombine.low %v8837_v58, %v8844_v34 }
0x2716   : > { %v8746_v33 = vpop.f32.mrb[80].mxu0  ;;  %v8817_v19 = vpop.f32.mrb[98].mxu1  ;;  %v8867_v43 = vrot.slane %v8859_v32, %v20493_v12 }
0x2717   : > { %v8748_v38 = vpop.f32.mrb[81].mxu0  ;;  %v14128_v39 = vpop.f32.mrb[99].mxu1  ;;  %v8858_v31 = vrot.slane %v8817_v19, %v20493_v12 }
0x2718   : > { %v8830_v14 = vcombine.low %v8746_v33, %v8748_v38  ;;  %v9847_v38 = vld [vmem:[%s22788_s16 + $0x700] sm:$0xff]  ;;  %v9854_v39 = vld [vmem:[%s22788_s16 + $0x738] sm:$0xff] }
0x271a   : > { %v8851_v4 = vrot.slane %v8830_v14, %v20493_v12  ;;  %v9849_v14 = vld [vmem:[%s22788_s16 + $0x710] sm:$0xff] }
0x271c   : > { %v8860_v21 = vcombine.low %v8851_v4, %v8858_v31  ;;  %v9856_v31 = vld [vmem:[%s22788_s16 + $0x748] sm:$0xff] }
0x271e   : > { %v8874_v61 = vrot.slane %v8860_v21, %v20493_v12  ;;  %v8976_v1 = vpop.f32.mrb[82].mxu0  ;;  %v9047_v30 = vpop.f32.mrb[100].mxu1  ;;  %v9869_v21 = vld [vmem:[%s22788_s16 + $0x7b0] sm:$0xff] }
0x271f   : > { %v8978_v36 = vpop.f32.mrb[83].mxu0  ;;  %v9049_v49 = vpop.f32.mrb[101].mxu1 }
0x2720   : > { %v8875_v50 = vcombine.low %v8867_v43, %v8874_v61  ;;  %v9200_v26 = vcombine.low %v8976_v1, %v8978_v36  ;;  %v9201_v42 = vcombine.low %v9047_v30, %v9049_v49  ;;  %v9871_v43 = vld [vmem:[%s22788_s16 + $0x7c0] sm:$0xff]  ;;  %v15255_v30 = vpack.c.bf16 %v9854_v39, %v9847_v38  ;;  %v9861_v49 = vld [vmem:[%s22788_s16 + $0x770] sm:$0xff]  ;;  %v9912_v38 = vld [vmem:[%s22788_s16 + $0x908] sm:$0xff] }
0x2721   : > { %v15463_v36 = vpack.c.bf16 %v9856_v31, %v9849_v14  ;;  %v9918_v39 = vld [vmem:[%s22788_s16 + $0x938] sm:$0xff]  ;;  %v9925_v14 = vld [vmem:[%s22788_s16 + $0x970] sm:$0xff]  ;;  %v9920_v31 = vld [vmem:[%s22788_s16 + $0x948] sm:$0xff] }
0x2722   : > { %v8877_v2 = vadd.f32 %v8875_v50, %v8505_v0  ;;  %v9209_v62 = vrot.slane %v9200_v26, %v20493_v12  ;;  %v9216_v18 = vrot.slane %v9201_v42, %v20493_v12  ;;  %v9868_v0 = vld [vmem:[%s22788_s16 + $0x7a8] sm:$0xff]  ;;  %v9863_v50 = vld [vmem:[%s22788_s16 + $0x780] sm:$0xff]  ;;  %v9870_v26 = vld [vmem:[%s22788_s16 + $0x7b8] sm:$0xff] }
0x2723   : > { %v9876_v42 = vld [vmem:[%s22788_s16 + $0x7e8] sm:$0xff] }
0x2724   : > { %v9231_v63 = vcombine.low %v9209_v62, %v9216_v18  ;;  %v15465_v62 = vpack.c.bf16 %v9871_v43, %v9864_v41  ;;  %v9883_v18 = vld [vmem:[%s22788_s16 + $0x820] sm:$0xff]  ;;  %v9917_v43 = vld [vmem:[%s22788_s16 + $0x930] sm:$0xff] }
0x2726   : > { %v9118_v17 = vpop.f32.mrb[84].mxu0  ;;  %v9189_v8 = vpop.f32.mrb[102].mxu1  ;;  %v9239_v7 = vrot.slane %v9231_v63, %v20493_v12  ;;  %v9878_v63 = vld [vmem:[%s22788_s16 + $0x7f8] sm:$0xff] }
0x2727   : > { %v9120_v47 = vpop.f32.mrb[85].mxu0  ;;  %v14139_v3 = vpop.f32.mrb[103].mxu1  ;;  %v9230_v9 = vrot.slane %v9189_v8, %v20493_v12 }
0x2728   : > { %v9202_v27 = vcombine.low %v9118_v17, %v9120_v47  ;;  %v9885_v17 = vld [vmem:[%s22788_s16 + $0x830] sm:$0xff]  ;;  %v15259_v47 = vpack.c.bf16 %v9868_v0, %v9861_v49  ;;  %v15467_v3 = vpack.c.bf16 %v9870_v26, %v9863_v50  ;;  %v9919_v0 = vld [vmem:[%s22788_s16 + $0x940] sm:$0xff]  ;;  %v9926_v50 = vld [vmem:[%s22788_s16 + $0x978] sm:$0xff] }
0x2729   : > { %v9932_v26 = vld [vmem:[%s22788_s16 + $0x9a8] sm:$0xff] }
0x272a   : > { %v9223_v15 = vrot.slane %v9202_v27, %v20493_v12  ;;  %v9875_v27 = vld [vmem:[%s22788_s16 + $0x7e0] sm:$0xff] }
0x272c   : > { %v9232_v37 = vcombine.low %v9223_v15, %v9230_v9  ;;  %v9882_v9 = vld [vmem:[%s22788_s16 + $0x818] sm:$0xff]  ;;  %v15261_v15 = vpack.c.bf16 %v9883_v18, %v9876_v42  ;;  %v9939_v42 = vld [vmem:[%s22788_s16 + $0x9e0] sm:$0xff] }
0x272e   : > { %v9246_v25 = vrot.slane %v9232_v37, %v20493_v12  ;;  %v9348_v20 = vpop.f32.mrb[86].mxu0  ;;  %v9419_v53 = vpop.f32.mrb[104].mxu1  ;;  %v15469_v37 = vpack.c.bf16 %v9885_v17, %v9878_v63  ;;  %v15483_v63 = vpack.c.bf16 %v9926_v50, %v9919_v0  ;;  %v9931_v17 = vld [vmem:[%s22788_s16 + $0x9a0] sm:$0xff]  ;;  %v9990_v50 = vld [vmem:[%s22788_s16 + $0xb78] sm:$0xff] }
0x272f   : > { %v9350_v6 = vpop.f32.mrb[87].mxu0  ;;  %v9421_v5 = vpop.f32.mrb[105].mxu1  ;;  %v9995_v0 = vld [vmem:[%s22788_s16 + $0xba0] sm:$0xff] }
0x2730   : > { %v9247_v11 = vcombine.low %v9239_v7, %v9246_v25  ;;  %v9572_v16 = vcombine.low %v9348_v20, %v9350_v6  ;;  %v9573_v24 = vcombine.low %v9419_v53, %v9421_v5  ;;  %v9877_v7 = vld [vmem:[%s22788_s16 + $0x7f0] sm:$0xff]  ;;  %v9884_v25 = vld [vmem:[%s22788_s16 + $0x828] sm:$0xff]  ;;  %v9890_v20 = vld [vmem:[%s22788_s16 + $0x858] sm:$0xff] }
0x2731   : > { %v9897_v53 = vld [vmem:[%s22788_s16 + $0x890] sm:$0xff]  ;;  %v9892_v6 = vld [vmem:[%s22788_s16 + $0x868] sm:$0xff]  ;;  %v9899_v5 = vld [vmem:[%s22788_s16 + $0x8a0] sm:$0xff] }
0x2732   : > { %v9249_v55 = vadd.f32 %v9247_v11, %v8877_v2  ;;  %v9581_v13 = vrot.slane %v9572_v16, %v20493_v12  ;;  %v9588_v51 = vrot.slane %v9573_v24, %v20493_v12  ;;  %v15263_v11 = vpack.c.bf16 %v9882_v9, %v9875_v27  ;;  %v9889_v24 = vld [vmem:[%s22788_s16 + $0x850] sm:$0xff] }
0x2733   : > { %v15471_v16 = vpack.c.bf16 %v9884_v25, %v9877_v7  ;;  %v9933_v9 = vld [vmem:[%s22788_s16 + $0x9b0] sm:$0xff]  ;;  %v9948_v25 = vld [vmem:[%s22788_s16 + $0xa28] sm:$0xff] }
0x2734   : > { %v9603_v28 = vcombine.low %v9581_v13, %v9588_v51  ;;  %v15265_v13 = vpack.c.bf16 %v9897_v53, %v9890_v20  ;;  %v15473_v51 = vpack.c.bf16 %v9899_v5, %v9892_v6  ;;  %v9953_v7 = vld [vmem:[%s22788_s16 + $0xa50] sm:$0xff]  ;;  %v9955_v20 = vld [vmem:[%s22788_s16 + $0xa60] sm:$0xff] }
0x2735   : > { %v9945_v5 = vld [vmem:[%s22788_s16 + $0xa10] sm:$0xff] }
0x2736   : > { %v9490_v22 = vpop.f32.mrb[88].mxu0  ;;  %v9561_v23 = vpop.f32.mrb[106].mxu1  ;;  %v9611_v34 = vrot.slane %v9603_v28, %v20493_v12  ;;  %v9891_v28 = vld [vmem:[%s22788_s16 + $0x860] sm:$0xff] }
0x2737   : > { %v9492_v45 = vpop.f32.mrb[89].mxu0  ;;  %v14150_v48 = vpop.f32.mrb[107].mxu1  ;;  %v9602_v29 = vrot.slane %v9561_v23, %v20493_v12  ;;  %v9904_v23 = vld [vmem:[%s22788_s16 + $0x8c8] sm:$0xff] }
0x2738   : > { %v9574_v35 = vcombine.low %v9490_v22, %v9492_v45  ;;  %v9898_v22 = vld [vmem:[%s22788_s16 + $0x898] sm:$0xff]  ;;  %v9911_v45 = vld [vmem:[%s22788_s16 + $0x900] sm:$0xff] }
0x2739   : > { %v9906_v48 = vld [vmem:[%s22788_s16 + $0x8d8] sm:$0xff] }
0x273a   : > { %v9595_v40 = vrot.slane %v9574_v35, %v20493_v12  ;;  %v9913_v35 = vld [vmem:[%s22788_s16 + $0x910] sm:$0xff] }
0x273c   : > { %v9604_v58 = vcombine.low %v9595_v40, %v9602_v29  ;;  %v15475_v40 = vpack.c.bf16 %v9898_v22, %v9891_v28  ;;  %v9967_v28 = vld [vmem:[%s22788_s16 + $0xac0] sm:$0xff]  ;;  %v9962_v22 = vld [vmem:[%s22788_s16 + $0xa98] sm:$0xff] }
0x273e   : > { %v9618_v32 = vrot.slane %v9604_v58, %v20493_v12  ;;  %v9862_v12 = vld [vmem:[%s22788_s16 + $0x778] sm:$0xff]  ;;  %v9903_v58 = vld [vmem:[%s22788_s16 + $0x8c0] sm:$0xff] }
0x273f   : > { %v15257_v2 = vpack.c.bf16 %v9869_v21, %v9862_v12  ;;  %v9927_v12 = vld [vmem:[%s22788_s16 + $0x980] sm:$0xff] }
0x2740   : > { %v9619_v33 = vcombine.low %v9611_v34, %v9618_v32  ;;  %v9910_v34 = vld [vmem:[%s22788_s16 + $0x8f8] sm:$0xff]  ;;  %v15269_v32 = vpack.c.bf16 %v9911_v45, %v9904_v23  ;;  %v15481_v49 = vpack.c.bf16 %v9927_v12, %v9920_v31  ;;  %v9969_v23 = vld [vmem:[%s22788_s16 + $0xad0] sm:$0xff] }
0x2741   : > { %v15271_v21 = vpack.c.bf16 %v9910_v34, %v9903_v58  ;;  %v15493_v58 = vpack.c.bf16 %v9969_v23, %v9962_v22  ;;  %v9961_v34 = vld [vmem:[%s22788_s16 + $0xa90] sm:$0xff]  ;;  %v10015_v23 = vld [vmem:[%s22788_s16 + $0xc40] sm:$0xff] }
0x2742   : > { %v9621_v19 = vadd.f32 %v9619_v33, %v9249_v55  ;;  %v9896_v55 = vld [vmem:[%s22788_s16 + $0x888] sm:$0xff]  ;;  %v15477_v33 = vpack.c.bf16 %v9913_v35, %v9906_v48  ;;  %v9959_v35 = vld [vmem:[%s22788_s16 + $0xa80] sm:$0xff]  ;;  %v9973_v12 = vld [vmem:[%s22788_s16 + $0xaf0] sm:$0xff] }
0x2743   : > { %v15267_v29 = vpack.c.bf16 %v9896_v55, %v9889_v24  ;;  %v15489_v24 = vpack.c.bf16 %v9955_v20, %v9948_v25  ;;  %v9947_v55 = vld [vmem:[%s22788_s16 + $0xa20] sm:$0xff]  ;;  %v10001_v20 = vld [vmem:[%s22788_s16 + $0xbd0] sm:$0xff] }
0x2744   : > { %v20534_v4 = vmax.f32 %v9621_v19, 0.0  ;;  %v9905_v19 = vld [vmem:[%s22788_s16 + $0x8d0] sm:$0xff] }
0x2745   : > { %v15479_v41 = vpack.c.bf16 %v9912_v38, %v9905_v19  ;;  %v9981_v19 = vld [vmem:[%s22788_s16 + $0xb30] sm:$0xff]  ;;  %v9976_v38 = vld [vmem:[%s22788_s16 + $0xb08] sm:$0xff] }
0x2746   : > { %v20550_v61 = vrot.slane %v20534_v4, %v17483_v59  ;;  %v20554_v1 = vrot.slane %v20534_v4, %v17472_v56  ;;  %v20586_v8 = vrot.slane %v20534_v4, %v17486_v60 }
0x2748   : > { %10490 = vmatprep.mubr.f32.mxu0 %v20550_v61  ;;  %10774 = vmatprep.mubr.f32.mxu1 %v20550_v61 }
0x2749   : > { %10491 = vmatmul.mubr.f32.vlgmr.msra.gmra.mrb[90].mxu0 %v20554_v1  ;;  %10775 = vmatmul.mubr.f32.vlgmr.msra.gmra.mrb[108].mxu1 %v20554_v1 }
0x274a   : > { %15256 = vmatpush1.bf16.msra.mxu0 %v15255_v30  ;;  %15464 = vmatpush1.bf16.msra.mxu1 %v15463_v36  ;;  %v9924_v30 = vld [vmem:[%s22788_s16 + $0x968] sm:$0xff]  ;;  %v15273_v36 = vpack.c.bf16 %v9925_v14, %v9918_v39  ;;  %v9983_v39 = vld [vmem:[%s22788_s16 + $0xb40] sm:$0xff] }
0x274b   : > { %10561 = vmatprep.mubr.f32.mxu0 %v20586_v8  ;;  %10845 = vmatprep.mubr.f32.mxu1 %v20586_v8  ;;  %v15275_v18 = vpack.c.bf16 %v9924_v30, %v9917_v43  ;;  %v15497_v43 = vpack.c.bf16 %v9983_v39, %v9976_v38  ;;  %v9975_v30 = vld [vmem:[%s22788_s16 + $0xb00] sm:$0xff]  ;;  %v10029_v39 = vld [vmem:[%s22788_s16 + $0xcb0] sm:$0xff] }
0x274c   : > { %15258 = vmatprep.subr.bf16.mxu0 %v15257_v2  ;;  %15466 = vmatprep.subr.bf16.mxu1 %v15465_v62  ;;  %v9934_v2 = vld [vmem:[%s22788_s16 + $0x9b8] sm:$0xff]  ;;  %v9941_v62 = vld [vmem:[%s22788_s16 + $0x9f0] sm:$0xff] }
0x274d   : > { %v15485_v27 = vpack.c.bf16 %v9941_v62, %v9934_v2  ;;  %v9987_v62 = vld [vmem:[%s22788_s16 + $0xb60] sm:$0xff] }
0x274e   : > { %15260 = vmatpush1.bf16.msra.mxu0 %v15259_v47  ;;  %15468 = vmatpush1.bf16.msra.mxu1 %v15467_v3  ;;  %v9938_v47 = vld [vmem:[%s22788_s16 + $0x9d8] sm:$0xff]  ;;  %v15277_v3 = vpack.c.bf16 %v9939_v42, %v9932_v26  ;;  %v9997_v26 = vld [vmem:[%s22788_s16 + $0xbb0] sm:$0xff] }
0x274f   : > { %15262 = vmatprep.subr.bf16.mxu0 %v15261_v15  ;;  %15470 = vmatprep.subr.bf16.mxu1 %v15469_v37  ;;  %v9940_v15 = vld [vmem:[%s22788_s16 + $0x9e8] sm:$0xff]  ;;  %v9946_v37 = vld [vmem:[%s22788_s16 + $0xa18] sm:$0xff]  ;;  %v15279_v53 = vpack.c.bf16 %v9938_v47, %v9931_v17  ;;  %v15501_v17 = vpack.c.bf16 %v9997_v26, %v9990_v50  ;;  %v9989_v47 = vld [vmem:[%s22788_s16 + $0xb70] sm:$0xff] }
0x2750   : > { %v15487_v6 = vpack.c.bf16 %v9940_v15, %v9933_v9  ;;  %v10009_v9 = vld [vmem:[%s22788_s16 + $0xc10] sm:$0xff]  ;;  %v10004_v15 = vld [vmem:[%s22788_s16 + $0xbe8] sm:$0xff]  ;;  %v10043_v26 = vld [vmem:[%s22788_s16 + $0xd20] sm:$0xff] }
0x2752   : > { %15264 = vmatpush1.bf16.msra.mxu0 %v15263_v11  ;;  %15472 = vmatpush1.bf16.msra.mxu1 %v15471_v16  ;;  %v9952_v11 = vld [vmem:[%s22788_s16 + $0xa48] sm:$0xff]  ;;  %v15281_v16 = vpack.c.bf16 %v9953_v7, %v9946_v37  ;;  %v10011_v37 = vld [vmem:[%s22788_s16 + $0xc20] sm:$0xff] }
0x2753   : > { %15266 = vmatprep.subr.bf16.mxu0 %v15265_v13  ;;  %15474 = vmatprep.subr.bf16.mxu1 %v15473_v51  ;;  %v9954_v13 = vld [vmem:[%s22788_s16 + $0xa58] sm:$0xff]  ;;  %v9960_v51 = vld [vmem:[%s22788_s16 + $0xa88] sm:$0xff]  ;;  %v15283_v45 = vpack.c.bf16 %v9952_v11, %v9945_v5  ;;  %v15505_v5 = vpack.c.bf16 %v10011_v37, %v10004_v15  ;;  %v10003_v11 = vld [vmem:[%s22788_s16 + $0xbe0] sm:$0xff] }
0x2754   : > { %v15491_v48 = vpack.c.bf16 %v9954_v13, %v9947_v55  ;;  %v10023_v55 = vld [vmem:[%s22788_s16 + $0xc80] sm:$0xff]  ;;  %v10018_v13 = vld [vmem:[%s22788_s16 + $0xc58] sm:$0xff]  ;;  %v10057_v37 = vld [vmem:[%s22788_s16 + $0xd90] sm:$0xff] }
0x2756   : > { %15268 = vmatpush1.bf16.msra.mxu0 %v15267_v29  ;;  %15476 = vmatpush1.bf16.msra.mxu1 %v15475_v40  ;;  %v9966_v29 = vld [vmem:[%s22788_s16 + $0xab8] sm:$0xff]  ;;  %v15285_v40 = vpack.c.bf16 %v9967_v28, %v9960_v51  ;;  %v10025_v51 = vld [vmem:[%s22788_s16 + $0xc90] sm:$0xff] }
0x2757   : > { %15270 = vmatprep.subr.bf16.mxu0 %v15269_v32  ;;  %15478 = vmatprep.subr.bf16.mxu1 %v15477_v33  ;;  %v9968_v32 = vld [vmem:[%s22788_s16 + $0xac8] sm:$0xff]  ;;  %v9974_v33 = vld [vmem:[%s22788_s16 + $0xaf8] sm:$0xff]  ;;  %v15287_v14 = vpack.c.bf16 %v9966_v29, %v9959_v35  ;;  %v15509_v35 = vpack.c.bf16 %v10025_v51, %v10018_v13  ;;  %v10017_v29 = vld [vmem:[%s22788_s16 + $0xc50] sm:$0xff] }
0x2758   : > { %v15495_v31 = vpack.c.bf16 %v9968_v32, %v9961_v34  ;;  %v10037_v34 = vld [vmem:[%s22788_s16 + $0xcf0] sm:$0xff]  ;;  %v10032_v32 = vld [vmem:[%s22788_s16 + $0xcc8] sm:$0xff] }
0x275a   : > { %15272 = vmatpush1.bf16.msra.mxu0 %v15271_v21  ;;  %15480 = vmatpush1.bf16.msra.mxu1 %v15479_v41  ;;  %v9980_v21 = vld [vmem:[%s22788_s16 + $0xb28] sm:$0xff]  ;;  %v15289_v41 = vpack.c.bf16 %v9981_v19, %v9974_v33  ;;  %v10039_v33 = vld [vmem:[%s22788_s16 + $0xd00] sm:$0xff] }
0x275b   : > { %15274 = vmatprep.subr.bf16.mxu0 %v15273_v36  ;;  %15482 = vmatprep.subr.bf16.mxu1 %v15481_v49  ;;  %v9982_v36 = vld [vmem:[%s22788_s16 + $0xb38] sm:$0xff]  ;;  %v9988_v49 = vld [vmem:[%s22788_s16 + $0xb68] sm:$0xff]  ;;  %v15291_v42 = vpack.c.bf16 %v9980_v21, %v9973_v12  ;;  %v15513_v12 = vpack.c.bf16 %v10039_v33, %v10032_v32  ;;  %v10031_v21 = vld [vmem:[%s22788_s16 + $0xcc0] sm:$0xff]  ;;  %v20952_v32 = vrot.slane %v20534_v4, %v17475_v57 }
0x275c   : > { %v15499_v2 = vpack.c.bf16 %v9982_v36, %v9975_v30  ;;  %v10051_v30 = vld [vmem:[%s22788_s16 + $0xd60] sm:$0xff]  ;;  %v10046_v36 = vld [vmem:[%s22788_s16 + $0xd38] sm:$0xff] }
0x275e   : > { %15276 = vmatpush1.bf16.msra.mxu0 %v15275_v18  ;;  %15484 = vmatpush1.bf16.msra.mxu1 %v15483_v63  ;;  %v9994_v18 = vld [vmem:[%s22788_s16 + $0xb98] sm:$0xff]  ;;  %v15293_v63 = vpack.c.bf16 %v9995_v0, %v9988_v49  ;;  %v10053_v49 = vld [vmem:[%s22788_s16 + $0xd70] sm:$0xff] }
0x275f   : > { %15278 = vmatprep.subr.bf16.mxu0 %v15277_v3  ;;  %15486 = vmatprep.subr.bf16.mxu1 %v15485_v27  ;;  %v9996_v3 = vld [vmem:[%s22788_s16 + $0xba8] sm:$0xff]  ;;  %v10002_v27 = vld [vmem:[%s22788_s16 + $0xbd8] sm:$0xff]  ;;  %v15295_v7 = vpack.c.bf16 %v9994_v18, %v9987_v62  ;;  %v15517_v62 = vpack.c.bf16 %v10053_v49, %v10046_v36  ;;  %v10045_v18 = vld [vmem:[%s22788_s16 + $0xd30] sm:$0xff] }
0x2760   : > { %v15503_v25 = vpack.c.bf16 %v9996_v3, %v9989_v47  ;;  %v10065_v47 = vld [vmem:[%s22788_s16 + $0xdd0] sm:$0xff]  ;;  %v10060_v3 = vld [vmem:[%s22788_s16 + $0xda8] sm:$0xff] }
0x2761   : > { %v10109_v36 = vld [vmem:[%s22788_s16 + $0xf30] sm:$0xff] }
0x2762   : > { %15280 = vmatpush1.bf16.msra.mxu0 %v15279_v53  ;;  %15488 = vmatpush1.bf16.msra.mxu1 %v15487_v6  ;;  %v10008_v53 = vld [vmem:[%s22788_s16 + $0xc08] sm:$0xff]  ;;  %v15297_v6 = vpack.c.bf16 %v10009_v9, %v10002_v27  ;;  %v10067_v27 = vld [vmem:[%s22788_s16 + $0xde0] sm:$0xff] }
0x2763   : > { %15282 = vmatprep.subr.bf16.mxu0 %v15281_v16  ;;  %15490 = vmatprep.subr.bf16.mxu1 %v15489_v24  ;;  %v10010_v16 = vld [vmem:[%s22788_s16 + $0xc18] sm:$0xff]  ;;  %v10016_v24 = vld [vmem:[%s22788_s16 + $0xc48] sm:$0xff]  ;;  %v15299_v28 = vpack.c.bf16 %v10008_v53, %v10001_v20  ;;  %v15521_v20 = vpack.c.bf16 %v10067_v27, %v10060_v3  ;;  %v10059_v53 = vld [vmem:[%s22788_s16 + $0xda0] sm:$0xff] }
0x2764   : > { %v15507_v22 = vpack.c.bf16 %v10010_v16, %v10003_v11  ;;  %v10079_v11 = vld [vmem:[%s22788_s16 + $0xe40] sm:$0xff]  ;;  %v10074_v16 = vld [vmem:[%s22788_s16 + $0xe18] sm:$0xff] }
0x2765   : > { %v10123_v3 = vld [vmem:[%s22788_s16 + $0xfa0] sm:$0xff] }
0x2766   : > { %15284 = vmatpush1.bf16.msra.mxu0 %v15283_v45  ;;  %15492 = vmatpush1.bf16.msra.mxu1 %v15491_v48  ;;  %v10022_v45 = vld [vmem:[%s22788_s16 + $0xc78] sm:$0xff]  ;;  %v15301_v48 = vpack.c.bf16 %v10023_v55, %v10016_v24  ;;  %v10081_v24 = vld [vmem:[%s22788_s16 + $0xe50] sm:$0xff] }
0x2767   : > { %15286 = vmatprep.subr.bf16.mxu0 %v15285_v40  ;;  %15494 = vmatprep.subr.bf16.mxu1 %v15493_v58  ;;  %v10024_v40 = vld [vmem:[%s22788_s16 + $0xc88] sm:$0xff]  ;;  %v10030_v58 = vld [vmem:[%s22788_s16 + $0xcb8] sm:$0xff]  ;;  %v15303_v19 = vpack.c.bf16 %v10022_v45, %v10015_v23  ;;  %v10073_v45 = vld [vmem:[%s22788_s16 + $0xe10] sm:$0xff] }
0x2768   : > { %v15511_v38 = vpack.c.bf16 %v10024_v40, %v10017_v29  ;;  %v10078_v23 = vld [vmem:[%s22788_s16 + $0xe38] sm:$0xff]  ;;  %v10093_v29 = vld [vmem:[%s22788_s16 + $0xeb0] sm:$0xff]  ;;  %v10088_v40 = vld [vmem:[%s22788_s16 + $0xe88] sm:$0xff] }
0x276a   : > { %15288 = vmatpush1.bf16.msra.mxu0 %v15287_v14  ;;  %15496 = vmatpush1.bf16.msra.mxu1 %v15495_v31  ;;  %v10036_v14 = vld [vmem:[%s22788_s16 + $0xce8] sm:$0xff]  ;;  %v15305_v31 = vpack.c.bf16 %v10037_v34, %v10030_v58  ;;  %v10095_v58 = vld [vmem:[%s22788_s16 + $0xec0] sm:$0xff] }
0x276b   : > { %15290 = vmatprep.subr.bf16.mxu0 %v15289_v41  ;;  %15498 = vmatprep.subr.bf16.mxu1 %v15497_v43  ;;  %v10038_v41 = vld [vmem:[%s22788_s16 + $0xcf8] sm:$0xff]  ;;  %v10044_v43 = vld [vmem:[%s22788_s16 + $0xd28] sm:$0xff]  ;;  %v15307_v0 = vpack.c.bf16 %v10036_v14, %v10029_v39  ;;  %v10087_v39 = vld [vmem:[%s22788_s16 + $0xe80] sm:$0xff]  ;;  %v20965_v14 = vrot.slane %v20534_v4, %v17505_v10 }
0x276c   : > { %v15515_v50 = vpack.c.bf16 %v10038_v41, %v10031_v21  ;;  %v10094_v21 = vld [vmem:[%s22788_s16 + $0xeb8] sm:$0xff]  ;;  %v10100_v41 = vld [vmem:[%s22788_s16 + $0xee8] sm:$0xff] }
0x276e   : > { %15292 = vmatpush1.bf16.msra.mxu0 %v15291_v42  ;;  %15500 = vmatpush1.bf16.msra.mxu1 %v15499_v2  ;;  %v10050_v42 = vld [vmem:[%s22788_s16 + $0xd58] sm:$0xff]  ;;  %v15309_v2 = vpack.c.bf16 %v10051_v30, %v10044_v43  ;;  %v10107_v43 = vld [vmem:[%s22788_s16 + $0xf20] sm:$0xff] }
0x276f   : > { %15294 = vmatprep.subr.bf16.mxu0 %v15293_v63  ;;  %15502 = vmatprep.subr.bf16.mxu1 %v15501_v17  ;;  %v10052_v63 = vld [vmem:[%s22788_s16 + $0xd68] sm:$0xff]  ;;  %v10058_v17 = vld [vmem:[%s22788_s16 + $0xd98] sm:$0xff]  ;;  %v15311_v9 = vpack.c.bf16 %v10050_v42, %v10043_v26  ;;  %v10099_v26 = vld [vmem:[%s22788_s16 + $0xee0] sm:$0xff] }
0x2770   : > { %v15519_v15 = vpack.c.bf16 %v10052_v63, %v10045_v18  ;;  %v10102_v30 = vld [vmem:[%s22788_s16 + $0xef8] sm:$0xff]  ;;  %v10108_v18 = vld [vmem:[%s22788_s16 + $0xf28] sm:$0xff] }
0x2771   : > { %v10106_v42 = vld [vmem:[%s22788_s16 + $0xf18] sm:$0xff] }
0x2772   : > { %15296 = vmatpush1.bf16.msra.mxu0 %v15295_v7  ;;  %15504 = vmatpush1.bf16.msra.mxu1 %v15503_v25  ;;  %v10064_v7 = vld [vmem:[%s22788_s16 + $0xdc8] sm:$0xff]  ;;  %v15313_v25 = vpack.c.bf16 %v10065_v47, %v10058_v17  ;;  %v10114_v63 = vld [vmem:[%s22788_s16 + $0xf58] sm:$0xff]  ;;  %v10121_v17 = vld [vmem:[%s22788_s16 + $0xf90] sm:$0xff]  ;;  %v15327_v27 = vpack.c.bf16 %v10106_v42, %v10099_v26 }
0x2773   : > { %15298 = vmatprep.subr.bf16.mxu0 %v15297_v6  ;;  %15506 = vmatprep.subr.bf16.mxu1 %v15505_v5  ;;  %v10066_v6 = vld [vmem:[%s22788_s16 + $0xdd8] sm:$0xff]  ;;  %v10072_v5 = vld [vmem:[%s22788_s16 + $0xe08] sm:$0xff]  ;;  %v15315_v55 = vpack.c.bf16 %v10064_v7, %v10057_v37  ;;  %v10113_v37 = vld [vmem:[%s22788_s16 + $0xf50] sm:$0xff] }
0x2774   : > { %v15523_v13 = vpack.c.bf16 %v10066_v6, %v10059_v53  ;;  %v15317_v51 = vpack.c.bf16 %v10079_v11, %v10072_v5  ;;  %v10116_v47 = vld [vmem:[%s22788_s16 + $0xf68] sm:$0xff]  ;;  %v10122_v53 = vld [vmem:[%s22788_s16 + $0xf98] sm:$0xff]  ;;  %v10135_v5 = vld [vmem:[%s22788_s16 + $0x1000] sm:$0xff] }
0x2775   : > { %v10120_v7 = vld [vmem:[%s22788_s16 + $0xf88] sm:$0xff]  ;;  %v10130_v11 = vld [vmem:[%s22788_s16 + $0xfd8] sm:$0xff]  ;;  %v10157_v42 = vld [vmem:[%s22788_s16 + $0x10b0] sm:$0xff] }
0x2776   : > { %15300 = vmatpush1.bf16.msra.mxu0 %v15299_v28  ;;  %15508 = vmatpush1.bf16.msra.mxu1 %v15507_v22  ;;  %v15525_v28 = vpack.c.bf16 %v10081_v24, %v10074_v16  ;;  %v10071_v22 = vld [vmem:[%s22788_s16 + $0xe00] sm:$0xff]  ;;  %v10128_v6 = vld [vmem:[%s22788_s16 + $0xfc8] sm:$0xff]  ;;  %v10137_v16 = vld [vmem:[%s22788_s16 + $0x1010] sm:$0xff]  ;;  %v15331_v24 = vpack.c.bf16 %v10120_v7, %v10113_v37 }
0x2777   : > { %15302 = vmatprep.subr.bf16.mxu0 %v15301_v48  ;;  %15510 = vmatprep.subr.bf16.mxu1 %v15509_v35  ;;  %v10080_v48 = vld [vmem:[%s22788_s16 + $0xe48] sm:$0xff]  ;;  %v10086_v35 = vld [vmem:[%s22788_s16 + $0xe78] sm:$0xff]  ;;  %v15319_v34 = vpack.c.bf16 %v10078_v23, %v10071_v22  ;;  %v10129_v22 = vld [vmem:[%s22788_s16 + $0xfd0] sm:$0xff]  ;;  %v15541_v23 = vpack.c.bf16 %v10137_v16, %v10130_v11 }
0x2778   : > { %v15527_v33 = vpack.c.bf16 %v10080_v48, %v10073_v45  ;;  %v10136_v45 = vld [vmem:[%s22788_s16 + $0x1008] sm:$0xff]  ;;  %v10142_v48 = vld [vmem:[%s22788_s16 + $0x1038] sm:$0xff]  ;;  %v10171_v7 = vld [vmem:[%s22788_s16 + $0x1120] sm:$0xff] }
0x2779   : > { %v10162_v26 = vld [vmem:[%s22788_s16 + $0x10d8] sm:$0xff]  ;;  %v10176_v37 = vld [vmem:[%s22788_s16 + $0x1148] sm:$0xff]  ;;  %v10193_v11 = vld [vmem:[%s22788_s16 + $0x11d0] sm:$0xff] }
0x277a   : > { %15304 = vmatpush1.bf16.msra.mxu0 %v15303_v19  ;;  %15512 = vmatpush1.bf16.msra.mxu1 %v15511_v38  ;;  %v10085_v19 = vld [vmem:[%s22788_s16 + $0xe70] sm:$0xff]  ;;  %v10092_v38 = vld [vmem:[%s22788_s16 + $0xea8] sm:$0xff] }
0x277b   : > { %15306 = vmatprep.subr.bf16.mxu0 %v15305_v31  ;;  %15514 = vmatprep.subr.bf16.mxu1 %v15513_v12  ;;  %v15321_v31 = vpack.c.bf16 %v10093_v29, %v10086_v35  ;;  %v15529_v12 = vpack.c.bf16 %v10095_v58, %v10088_v40  ;;  %v15323_v49 = vpack.c.bf16 %v10092_v38, %v10085_v19  ;;  %v10149_v35 = vld [vmem:[%s22788_s16 + $0x1070] sm:$0xff]  ;;  %v10144_v29 = vld [vmem:[%s22788_s16 + $0x1048] sm:$0xff]  ;;  %v10151_v40 = vld [vmem:[%s22788_s16 + $0x1080] sm:$0xff] }
0x277c   : > { %v10141_v19 = vld [vmem:[%s22788_s16 + $0x1030] sm:$0xff]  ;;  %v10148_v38 = vld [vmem:[%s22788_s16 + $0x1068] sm:$0xff] }
0x277e   : > { %15308 = vmatpush1.bf16.msra.mxu0 %v15307_v0  ;;  %15516 = vmatpush1.bf16.msra.mxu1 %v15515_v50  ;;  %v15531_v0 = vpack.c.bf16 %v10094_v21, %v10087_v39  ;;  %v15325_v50 = vpack.c.bf16 %v10107_v43, %v10100_v41  ;;  %v10143_v39 = vld [vmem:[%s22788_s16 + $0x1040] sm:$0xff]  ;;  %v10156_v21 = vld [vmem:[%s22788_s16 + $0x10a8] sm:$0xff]  ;;  %v10158_v43 = vld [vmem:[%s22788_s16 + $0x10b8] sm:$0xff] }
0x277f   : > { %15310 = vmatprep.subr.bf16.mxu0 %v15309_v2  ;;  %15518 = vmatprep.subr.bf16.mxu1 %v15517_v62  ;;  %v10101_v2 = vld [vmem:[%s22788_s16 + $0xef0] sm:$0xff]  ;;  %v15533_v62 = vpack.c.bf16 %v10109_v36, %v10102_v30  ;;  %v10163_v41 = vld [vmem:[%s22788_s16 + $0x10e0] sm:$0xff]  ;;  %v15339_v36 = vpack.c.bf16 %v10148_v38, %v10141_v19  ;;  %v10204_v19 = vld [vmem:[%s22788_s16 + $0x1228] sm:$0xff] }
0x2780   : > { %v10165_v30 = vld [vmem:[%s22788_s16 + $0x10f0] sm:$0xff]  ;;  %v10199_v38 = vld [vmem:[%s22788_s16 + $0x1200] sm:$0xff] }
0x2782   : > { %15312 = vmatpush1.bf16.msra.mxu0 %v15311_v9  ;;  %15520 = vmatpush1.bf16.msra.mxu1 %v15519_v15  ;;  %v15535_v9 = vpack.c.bf16 %v10108_v18, %v10101_v2  ;;  %v15329_v15 = vpack.c.bf16 %v10121_v17, %v10114_v63  ;;  %v15549_v2 = vpack.c.bf16 %v10165_v30, %v10158_v43  ;;  %v10170_v18 = vld [vmem:[%s22788_s16 + $0x1118] sm:$0xff]  ;;  %v10177_v63 = vld [vmem:[%s22788_s16 + $0x1150] sm:$0xff]  ;;  %v10172_v17 = vld [vmem:[%s22788_s16 + $0x1128] sm:$0xff] }
0x2783   : > { %15314 = vmatprep.subr.bf16.mxu0 %v15313_v25  ;;  %15522 = vmatprep.subr.bf16.mxu1 %v15521_v20  ;;  %v10115_v25 = vld [vmem:[%s22788_s16 + $0xf60] sm:$0xff]  ;;  %v15537_v20 = vpack.c.bf16 %v10123_v3, %v10116_v47  ;;  %v10221_v43 = vld [vmem:[%s22788_s16 + $0x12b0] sm:$0xff] }
0x2784   : > { %v10179_v47 = vld [vmem:[%s22788_s16 + $0x1160] sm:$0xff] }
0x2786   : > { %15316 = vmatpush1.bf16.msra.mxu0 %v15315_v55  ;;  %15524 = vmatpush1.bf16.msra.mxu1 %v15523_v13  ;;  %v15539_v55 = vpack.c.bf16 %v10122_v53, %v10115_v25  ;;  %v15333_v13 = vpack.c.bf16 %v10135_v5, %v10128_v6  ;;  %v15553_v25 = vpack.c.bf16 %v10179_v47, %v10172_v17  ;;  %v10184_v53 = vld [vmem:[%s22788_s16 + $0x1188] sm:$0xff]  ;;  %v10191_v6 = vld [vmem:[%s22788_s16 + $0x11c0] sm:$0xff]  ;;  %v10186_v5 = vld [vmem:[%s22788_s16 + $0x1198] sm:$0xff] }
0x2787   : > { %15318 = vmatprep.subr.bf16.mxu0 %v15317_v51  ;;  %15526 = vmatprep.subr.bf16.mxu1 %v15525_v28  ;;  %v10127_v51 = vld [vmem:[%s22788_s16 + $0xfc0] sm:$0xff]  ;;  %v10134_v28 = vld [vmem:[%s22788_s16 + $0xff8] sm:$0xff] }
0x2788   : > { %v15335_v58 = vpack.c.bf16 %v10134_v28, %v10127_v51  ;;  %v10190_v51 = vld [vmem:[%s22788_s16 + $0x11b8] sm:$0xff]  ;;  %v10185_v28 = vld [vmem:[%s22788_s16 + $0x1190] sm:$0xff]  ;;  %v10235_v17 = vld [vmem:[%s22788_s16 + $0x1320] sm:$0xff] }
0x2789   : > { %10562 = vmatmul.mubr.f32.vlgmr.msra.gmra.mrb[90].mxu0 %v20952_v32  ;;  %10846 = vmatmul.mubr.f32.vlgmr.msra.gmra.mrb[108].mxu1 %v20952_v32 }
0x278a   : > { %15320 = vmatpush1.bf16.msra.mxu0 %v15319_v34  ;;  %10632 = vmatprep.mubr.f32.mxu0 %v20965_v14  ;;  %v15543_v34 = vpack.c.bf16 %v10136_v45, %v10129_v22  ;;  %v15557_v22 = vpack.c.bf16 %v10193_v11, %v10186_v5  ;;  %v10198_v45 = vld [vmem:[%s22788_s16 + $0x11f8] sm:$0xff]  ;;  %v10249_v5 = vld [vmem:[%s22788_s16 + $0x1390] sm:$0xff] }
0x278b   : > { %15528 = vmatpush1.bf16.msra.mxu1 %v15527_v33  ;;  %10916 = vmatprep.mubr.f32.mxu1 %v20965_v14  ;;  %v15337_v33 = vpack.c.bf16 %v10149_v35, %v10142_v48  ;;  %v10205_v48 = vld [vmem:[%s22788_s16 + $0x1230] sm:$0xff]  ;;  %v10200_v35 = vld [vmem:[%s22788_s16 + $0x1208] sm:$0xff] }
0x278c   : > { %15322 = vmatprep.subr.bf16.mxu0 %v15321_v31  ;;  %15530 = vmatprep.subr.bf16.mxu1 %v15529_v12  ;;  %v15545_v31 = vpack.c.bf16 %v10151_v40, %v10144_v29  ;;  %v10150_v12 = vld [vmem:[%s22788_s16 + $0x1078] sm:$0xff]  ;;  %v10207_v29 = vld [vmem:[%s22788_s16 + $0x1240] sm:$0xff] }
0x278e   : > { %15324 = vmatpush1.bf16.msra.mxu0 %v15323_v49  ;;  %v15547_v49 = vpack.c.bf16 %v10150_v12, %v10143_v39  ;;  %v15561_v39 = vpack.c.bf16 %v10207_v29, %v10200_v35  ;;  %v10212_v12 = vld [vmem:[%s22788_s16 + $0x1268] sm:$0xff]  ;;  %v10263_v35 = vld [vmem:[%s22788_s16 + $0x1400] sm:$0xff] }
0x278f   : > { %15532 = vmatpush1.bf16.msra.mxu1 %v15531_v0  ;;  %15326 = vmatprep.subr.bf16.mxu0 %v15325_v50  ;;  %v15341_v0 = vpack.c.bf16 %v10163_v41, %v10156_v21  ;;  %v10155_v50 = vld [vmem:[%s22788_s16 + $0x10a0] sm:$0xff]  ;;  %v10214_v41 = vld [vmem:[%s22788_s16 + $0x1278] sm:$0xff] }
0x2790   : > { %15534 = vmatprep.subr.bf16.mxu1 %v15533_v62  ;;  %v10164_v62 = vld [vmem:[%s22788_s16 + $0x10e8] sm:$0xff]  ;;  %v15343_v3 = vpack.c.bf16 %v10162_v26, %v10155_v50  ;;  %v10219_v21 = vld [vmem:[%s22788_s16 + $0x12a0] sm:$0xff]  ;;  %v10218_v50 = vld [vmem:[%s22788_s16 + $0x1298] sm:$0xff] }
0x2791   : > { %v10213_v26 = vld [vmem:[%s22788_s16 + $0x1270] sm:$0xff] }
0x2792   : > { %15328 = vmatpush1.bf16.msra.mxu0 %v15327_v27  ;;  %v15551_v27 = vpack.c.bf16 %v10164_v62, %v10157_v42  ;;  %v15565_v42 = vpack.c.bf16 %v10221_v43, %v10214_v41  ;;  %v10226_v62 = vld [vmem:[%s22788_s16 + $0x12d8] sm:$0xff]  ;;  %v10277_v41 = vld [vmem:[%s22788_s16 + $0x1470] sm:$0xff] }
0x2793   : > { %15536 = vmatpush1.bf16.msra.mxu1 %v15535_v9  ;;  %15330 = vmatprep.subr.bf16.mxu0 %v15329_v15  ;;  %v15345_v9 = vpack.c.bf16 %v10177_v63, %v10170_v18  ;;  %v10169_v15 = vld [vmem:[%s22788_s16 + $0x1110] sm:$0xff]  ;;  %v10228_v63 = vld [vmem:[%s22788_s16 + $0x12e8] sm:$0xff] }
0x2794   : > { %15538 = vmatprep.subr.bf16.mxu1 %v15537_v20  ;;  %v10178_v20 = vld [vmem:[%s22788_s16 + $0x1158] sm:$0xff]  ;;  %v15347_v16 = vpack.c.bf16 %v10176_v37, %v10169_v15  ;;  %v10233_v18 = vld [vmem:[%s22788_s16 + $0x1310] sm:$0xff]  ;;  %v10232_v15 = vld [vmem:[%s22788_s16 + $0x1308] sm:$0xff] }
0x2795   : > { %v10227_v37 = vld [vmem:[%s22788_s16 + $0x12e0] sm:$0xff] }
0x2796   : > { %15332 = vmatpush1.bf16.msra.mxu0 %v15331_v24  ;;  %v15555_v24 = vpack.c.bf16 %v10178_v20, %v10171_v7  ;;  %v15569_v7 = vpack.c.bf16 %v10235_v17, %v10228_v63  ;;  %v10240_v20 = vld [vmem:[%s22788_s16 + $0x1348] sm:$0xff]  ;;  %v10291_v63 = vld [vmem:[%s22788_s16 + $0x14e0] sm:$0xff] }
0x2797   : > { %15540 = vmatpush1.bf16.msra.mxu1 %v15539_v55  ;;  %15334 = vmatprep.subr.bf16.mxu0 %v15333_v13  ;;  %v15349_v55 = vpack.c.bf16 %v10191_v6, %v10184_v53  ;;  %v10183_v13 = vld [vmem:[%s22788_s16 + $0x1180] sm:$0xff]  ;;  %v10242_v6 = vld [vmem:[%s22788_s16 + $0x1358] sm:$0xff] }
0x2798   : > { %15542 = vmatprep.subr.bf16.mxu1 %v15541_v23  ;;  %v10192_v23 = vld [vmem:[%s22788_s16 + $0x11c8] sm:$0xff]  ;;  %v15351_v40 = vpack.c.bf16 %v10190_v51, %v10183_v13  ;;  %v10247_v53 = vld [vmem:[%s22788_s16 + $0x1380] sm:$0xff]  ;;  %v10246_v13 = vld [vmem:[%s22788_s16 + $0x1378] sm:$0xff] }
0x2799   : > { %v10241_v51 = vld [vmem:[%s22788_s16 + $0x1350] sm:$0xff] }
0x279a   : > { %15336 = vmatpush1.bf16.msra.mxu0 %v15335_v58  ;;  %v15559_v58 = vpack.c.bf16 %v10192_v23, %v10185_v28  ;;  %v15573_v28 = vpack.c.bf16 %v10249_v5, %v10242_v6  ;;  %v10254_v23 = vld [vmem:[%s22788_s16 + $0x13b8] sm:$0xff]  ;;  %v10305_v6 = vld [vmem:[%s22788_s16 + $0x1550] sm:$0xff] }
0x279b   : > { %15544 = vmatpush1.bf16.msra.mxu1 %v15543_v34  ;;  %15338 = vmatprep.subr.bf16.mxu0 %v15337_v33  ;;  %v15353_v34 = vpack.c.bf16 %v10205_v48, %v10198_v45  ;;  %v10197_v33 = vld [vmem:[%s22788_s16 + $0x11f0] sm:$0xff]  ;;  %v10256_v48 = vld [vmem:[%s22788_s16 + $0x13c8] sm:$0xff] }
0x279c   : > { %15546 = vmatprep.subr.bf16.mxu1 %v15545_v31  ;;  %v10206_v31 = vld [vmem:[%s22788_s16 + $0x1238] sm:$0xff]  ;;  %v15355_v30 = vpack.c.bf16 %v10204_v19, %v10197_v33  ;;  %v10261_v45 = vld [vmem:[%s22788_s16 + $0x13f0] sm:$0xff]  ;;  %v10260_v33 = vld [vmem:[%s22788_s16 + $0x13e8] sm:$0xff] }
0x279d   : > { %v10255_v19 = vld [vmem:[%s22788_s16 + $0x13c0] sm:$0xff] }
0x279e   : > { %15340 = vmatpush1.bf16.msra.mxu0 %v15339_v36  ;;  %v15563_v36 = vpack.c.bf16 %v10206_v31, %v10199_v38  ;;  %v15577_v38 = vpack.c.bf16 %v10263_v35, %v10256_v48  ;;  %v10268_v31 = vld [vmem:[%s22788_s16 + $0x1428] sm:$0xff]  ;;  %v10319_v48 = vld [vmem:[%s22788_s16 + $0x15c0] sm:$0xff] }
0x279f   : > { %15548 = vmatpush1.bf16.msra.mxu1 %v15547_v49  ;;  %15342 = vmatprep.subr.bf16.mxu0 %v15341_v0  ;;  %v15357_v49 = vpack.c.bf16 %v10219_v21, %v10212_v12  ;;  %v10211_v0 = vld [vmem:[%s22788_s16 + $0x1260] sm:$0xff]  ;;  %v10270_v21 = vld [vmem:[%s22788_s16 + $0x1438] sm:$0xff] }
0x27a0   : > { %15550 = vmatprep.subr.bf16.mxu1 %v15549_v2  ;;  %v10220_v2 = vld [vmem:[%s22788_s16 + $0x12a8] sm:$0xff]  ;;  %v15359_v47 = vpack.c.bf16 %v10218_v50, %v10211_v0  ;;  %v10275_v12 = vld [vmem:[%s22788_s16 + $0x1460] sm:$0xff]  ;;  %v10274_v0 = vld [vmem:[%s22788_s16 + $0x1458] sm:$0xff] }
0x27a1   : > { %v10269_v50 = vld [vmem:[%s22788_s16 + $0x1430] sm:$0xff] }
0x27a2   : > { %15344 = vmatpush1.bf16.msra.mxu0 %v15343_v3  ;;  %v15567_v3 = vpack.c.bf16 %v10220_v2, %v10213_v26  ;;  %v15581_v26 = vpack.c.bf16 %v10277_v41, %v10270_v21  ;;  %v10282_v2 = vld [vmem:[%s22788_s16 + $0x1498] sm:$0xff]  ;;  %v10333_v41 = vld [vmem:[%s22788_s16 + $0x1630] sm:$0xff] }
0x27a3   : > { %15552 = vmatpush1.bf16.msra.mxu1 %v15551_v27  ;;  %15346 = vmatprep.subr.bf16.mxu0 %v15345_v9  ;;  %v15361_v27 = vpack.c.bf16 %v10233_v18, %v10226_v62  ;;  %v10225_v9 = vld [vmem:[%s22788_s16 + $0x12d0] sm:$0xff]  ;;  %v10284_v18 = vld [vmem:[%s22788_s16 + $0x14a8] sm:$0xff]  ;;  %v10326_v21 = vld [vmem:[%s22788_s16 + $0x15f8] sm:$0xff] }
0x27a4   : > { %15554 = vmatprep.subr.bf16.mxu1 %v15553_v25  ;;  %v10234_v25 = vld [vmem:[%s22788_s16 + $0x1318] sm:$0xff]  ;;  %v15363_v11 = vpack.c.bf16 %v10232_v15, %v10225_v9  ;;  %v10289_v62 = vld [vmem:[%s22788_s16 + $0x14d0] sm:$0xff]  ;;  %v10288_v9 = vld [vmem:[%s22788_s16 + $0x14c8] sm:$0xff] }
0x27a5   : > { %v10283_v15 = vld [vmem:[%s22788_s16 + $0x14a0] sm:$0xff] }
0x27a6   : > { %15348 = vmatpush1.bf16.msra.mxu0 %v15347_v16  ;;  %v15571_v16 = vpack.c.bf16 %v10234_v25, %v10227_v37  ;;  %v15585_v37 = vpack.c.bf16 %v10291_v63, %v10284_v18  ;;  %v10296_v25 = vld [vmem:[%s22788_s16 + $0x1508] sm:$0xff]  ;;  %v10347_v63 = vld [vmem:[%s22788_s16 + $0x16a0] sm:$0xff] }
0x27a7   : > { %15556 = vmatpush1.bf16.msra.mxu1 %v15555_v24  ;;  %15350 = vmatprep.subr.bf16.mxu0 %v15349_v55  ;;  %v15365_v24 = vpack.c.bf16 %v10247_v53, %v10240_v20  ;;  %v10239_v55 = vld [vmem:[%s22788_s16 + $0x1340] sm:$0xff]  ;;  %v10298_v53 = vld [vmem:[%s22788_s16 + $0x1518] sm:$0xff]  ;;  %v10340_v18 = vld [vmem:[%s22788_s16 + $0x1668] sm:$0xff] }
0x27a8   : > { %15558 = vmatprep.subr.bf16.mxu1 %v15557_v22  ;;  %v10248_v22 = vld [vmem:[%s22788_s16 + $0x1388] sm:$0xff]  ;;  %v15367_v29 = vpack.c.bf16 %v10246_v13, %v10239_v55  ;;  %v10303_v20 = vld [vmem:[%s22788_s16 + $0x1540] sm:$0xff]  ;;  %v10302_v55 = vld [vmem:[%s22788_s16 + $0x1538] sm:$0xff] }
0x27a9   : > { %v10297_v13 = vld [vmem:[%s22788_s16 + $0x1510] sm:$0xff] }
0x27aa   : > { %15352 = vmatpush1.bf16.msra.mxu0 %v15351_v40  ;;  %v15575_v40 = vpack.c.bf16 %v10248_v22, %v10241_v51  ;;  %v15589_v51 = vpack.c.bf16 %v10305_v6, %v10298_v53  ;;  %v10310_v22 = vld [vmem:[%s22788_s16 + $0x1578] sm:$0xff]  ;;  %v9741_v53 = vld [vmem:[%s22788_s16 + $0x3b0] sm:$0xff]  ;;  %v9748_v6 = vld [vmem:[%s22788_s16 + $0x3e8] sm:$0xff] }
0x27ab   : > { %15560 = vmatpush1.bf16.msra.mxu1 %v15559_v58  ;;  %15354 = vmatprep.subr.bf16.mxu0 %v15353_v34  ;;  %v15369_v58 = vpack.c.bf16 %v10261_v45, %v10254_v23  ;;  %v10253_v34 = vld [vmem:[%s22788_s16 + $0x13b0] sm:$0xff]  ;;  %v10312_v45 = vld [vmem:[%s22788_s16 + $0x1588] sm:$0xff] }
0x27ac   : > { %15562 = vmatprep.subr.bf16.mxu1 %v15561_v39  ;;  %v10262_v39 = vld [vmem:[%s22788_s16 + $0x13f8] sm:$0xff]  ;;  %v15371_v43 = vpack.c.bf16 %v10260_v33, %v10253_v34  ;;  %v10317_v23 = vld [vmem:[%s22788_s16 + $0x15b0] sm:$0xff]  ;;  %v10316_v33 = vld [vmem:[%s22788_s16 + $0x15a8] sm:$0xff] }
0x27ad   : > { %v10309_v34 = vld [vmem:[%s22788_s16 + $0x1570] sm:$0xff] }
0x27ae   : > { %15356 = vmatpush1.bf16.msra.mxu0 %v15355_v30  ;;  %v15579_v30 = vpack.c.bf16 %v10262_v39, %v10255_v19  ;;  %v10311_v19 = vld [vmem:[%s22788_s16 + $0x1580] sm:$0xff]  ;;  %v10318_v39 = vld [vmem:[%s22788_s16 + $0x15b8] sm:$0xff] }
0x27af   : > { %15564 = vmatpush1.bf16.msra.mxu1 %v15563_v36  ;;  %15358 = vmatprep.subr.bf16.mxu0 %v15357_v49  ;;  %v15373_v36 = vpack.c.bf16 %v10275_v12, %v10268_v31  ;;  %v10267_v49 = vld [vmem:[%s22788_s16 + $0x1420] sm:$0xff]  ;;  %v10324_v31 = vld [vmem:[%s22788_s16 + $0x15e8] sm:$0xff] }
0x27b0   : > { %15566 = vmatprep.subr.bf16.mxu1 %v15565_v42  ;;  %v10276_v42 = vld [vmem:[%s22788_s16 + $0x1468] sm:$0xff]  ;;  %v15375_v17 = vpack.c.bf16 %v10274_v0, %v10267_v49  ;;  %v10331_v12 = vld [vmem:[%s22788_s16 + $0x1620] sm:$0xff]  ;;  %v10330_v0 = vld [vmem:[%s22788_s16 + $0x1618] sm:$0xff] }
0x27b1   : > { %v10323_v49 = vld [vmem:[%s22788_s16 + $0x15e0] sm:$0xff] }
0x27b2   : > { %15360 = vmatpush1.bf16.msra.mxu0 %v15359_v47  ;;  %v15583_v47 = vpack.c.bf16 %v10276_v42, %v10269_v50  ;;  %v10325_v50 = vld [vmem:[%s22788_s16 + $0x15f0] sm:$0xff]  ;;  %v10332_v42 = vld [vmem:[%s22788_s16 + $0x1628] sm:$0xff] }
0x27b3   : > { %15568 = vmatpush1.bf16.msra.mxu1 %v15567_v3  ;;  %15362 = vmatprep.subr.bf16.mxu0 %v15361_v27  ;;  %v15377_v3 = vpack.c.bf16 %v10289_v62, %v10282_v2  ;;  %v10281_v27 = vld [vmem:[%s22788_s16 + $0x1490] sm:$0xff]  ;;  %v10338_v2 = vld [vmem:[%s22788_s16 + $0x1658] sm:$0xff] }
0x27b4   : > { %15570 = vmatprep.subr.bf16.mxu1 %v15569_v7  ;;  %v10290_v7 = vld [vmem:[%s22788_s16 + $0x14d8] sm:$0xff]  ;;  %v15379_v5 = vpack.c.bf16 %v10288_v9, %v10281_v27  ;;  %v10345_v62 = vld [vmem:[%s22788_s16 + $0x1690] sm:$0xff]  ;;  %v10344_v9 = vld [vmem:[%s22788_s16 + $0x1688] sm:$0xff] }
0x27b5   : > { %v10337_v27 = vld [vmem:[%s22788_s16 + $0x1650] sm:$0xff] }
0x27b6   : > { %15364 = vmatpush1.bf16.msra.mxu0 %v15363_v11  ;;  %v15587_v11 = vpack.c.bf16 %v10290_v7, %v10283_v15  ;;  %v10339_v15 = vld [vmem:[%s22788_s16 + $0x1660] sm:$0xff]  ;;  %v10346_v7 = vld [vmem:[%s22788_s16 + $0x1698] sm:$0xff] }
0x27b7   : > { %15572 = vmatpush1.bf16.msra.mxu1 %v15571_v16  ;;  %15366 = vmatprep.subr.bf16.mxu0 %v15365_v24  ;;  %v15381_v16 = vpack.c.bf16 %v10303_v20, %v10296_v25  ;;  %v10295_v24 = vld [vmem:[%s22788_s16 + $0x1500] sm:$0xff]  ;;  %v9628_v25 = vld [vmem:[%s22788_s16 + $0x28] sm:$0xff] }
0x27b8   : > { %15574 = vmatprep.subr.bf16.mxu1 %v15573_v28  ;;  %v10304_v28 = vld [vmem:[%s22788_s16 + $0x1548] sm:$0xff]  ;;  %v15383_v35 = vpack.c.bf16 %v10302_v55, %v10295_v24  ;;  %v9635_v20 = vld [vmem:[%s22788_s16 + $0x60] sm:$0xff]  ;;  %v9634_v55 = vld [vmem:[%s22788_s16 + $0x58] sm:$0xff] }
0x27b9   : > { %v9627_v24 = vld [vmem:[%s22788_s16 + $0x20] sm:$0xff] }
0x27ba   : > { %15368 = vmatpush1.bf16.msra.mxu0 %v15367_v29  ;;  %v21348_v29 = vrot.slane %v20534_v4, %v17541_v44 }
0x27bb   : > { %15576 = vmatpush1.bf16.msra.mxu1 %v15575_v40  ;;  %15370 = vmatprep.subr.bf16.mxu0 %v15369_v58  ;;  %v15591_v40 = vpack.c.bf16 %v10304_v28, %v10297_v13  ;;  %v15385_v58 = vpack.c.bf16 %v10317_v23, %v10310_v22  ;;  %v15813_v13 = vpack.c.bf16 %v9748_v6, %v9741_v53  ;;  %v9636_v28 = vld [vmem:[%s22788_s16 + $0x68] sm:$0xff]  ;;  %v9642_v22 = vld [vmem:[%s22788_s16 + $0x98] sm:$0xff]  ;;  %v9649_v23 = vld [vmem:[%s22788_s16 + $0xd0] sm:$0xff] }
0x27bc   : > { %15578 = vmatprep.subr.bf16.mxu1 %v15577_v38  ;;  %v15593_v38 = vpack.c.bf16 %v10319_v48, %v10312_v45  ;;  %v15607_v45 = vpack.c.bf16 %v9634_v55, %v9627_v24  ;;  %v9755_v48 = vld [vmem:[%s22788_s16 + $0x420] sm:$0xff]  ;;  %v9804_v53 = vld [vmem:[%s22788_s16 + $0x5a8] sm:$0xff]  ;;  %v9690_v24 = vld [vmem:[%s22788_s16 + $0x218] sm:$0xff] }
0x27bd   : > { %v9685_v55 = vld [vmem:[%s22788_s16 + $0x1f0] sm:$0xff] }
0x27be   : > { %15372 = vmatpush1.bf16.msra.mxu0 %v15371_v43  ;;  %v15387_v43 = vpack.c.bf16 %v10316_v33, %v10309_v34  ;;  %v9641_v34 = vld [vmem:[%s22788_s16 + $0x90] sm:$0xff]  ;;  %v9648_v33 = vld [vmem:[%s22788_s16 + $0xc8] sm:$0xff] }
0x27bf   : > { %15580 = vmatpush1.bf16.msra.mxu1 %v15579_v30  ;;  %15374 = vmatprep.subr.bf16.mxu0 %v15373_v36  ;;  %v15595_v30 = vpack.c.bf16 %v10318_v39, %v10311_v19  ;;  %v15389_v36 = vpack.c.bf16 %v10331_v12, %v10324_v31  ;;  %v9643_v19 = vld [vmem:[%s22788_s16 + $0xa0] sm:$0xff]  ;;  %v9656_v39 = vld [vmem:[%s22788_s16 + $0x108] sm:$0xff] }
0x27c0   : > { %15582 = vmatprep.subr.bf16.mxu1 %v15581_v26  ;;  %v15597_v26 = vpack.c.bf16 %v10333_v41, %v10326_v21  ;;  %v9663_v31 = vld [vmem:[%s22788_s16 + $0x140] sm:$0xff]  ;;  %v9769_v21 = vld [vmem:[%s22788_s16 + $0x490] sm:$0xff]  ;;  %v9776_v41 = vld [vmem:[%s22788_s16 + $0x4c8] sm:$0xff] }
0x27c2   : > { %15376 = vmatpush1.bf16.msra.mxu0 %v15375_v17  ;;  %v15391_v17 = vpack.c.bf16 %v10330_v0, %v10323_v49  ;;  %v9655_v49 = vld [vmem:[%s22788_s16 + $0x100] sm:$0xff]  ;;  %v9662_v0 = vld [vmem:[%s22788_s16 + $0x138] sm:$0xff] }
0x27c3   : > { %15584 = vmatpush1.bf16.msra.mxu1 %v15583_v47  ;;  %15378 = vmatprep.subr.bf16.mxu0 %v15377_v3  ;;  %v15599_v47 = vpack.c.bf16 %v10332_v42, %v10325_v50  ;;  %v15393_v3 = vpack.c.bf16 %v10345_v62, %v10338_v2  ;;  %v9657_v50 = vld [vmem:[%s22788_s16 + $0x110] sm:$0xff]  ;;  %v9664_v42 = vld [vmem:[%s22788_s16 + $0x148] sm:$0xff]  ;;  %v9670_v2 = vld [vmem:[%s22788_s16 + $0x178] sm:$0xff] }
0x27c4   : > { %15586 = vmatprep.subr.bf16.mxu1 %v15585_v37  ;;  %v15601_v37 = vpack.c.bf16 %v10347_v63, %v10340_v18  ;;  %v9677_v62 = vld [vmem:[%s22788_s16 + $0x1b0] sm:$0xff]  ;;  %v9783_v18 = vld [vmem:[%s22788_s16 + $0x500] sm:$0xff]  ;;  %v15615_v63 = vpack.c.bf16 %v9662_v0, %v9655_v49  ;;  %v9718_v49 = vld [vmem:[%s22788_s16 + $0x2f8] sm:$0xff] }
0x27c5   : > { %v9713_v0 = vld [vmem:[%s22788_s16 + $0x2d0] sm:$0xff] }
0x27c6   : > { %15380 = vmatpush1.bf16.msra.mxu0 %v15379_v5  ;;  %v15395_v5 = vpack.c.bf16 %v10344_v9, %v10337_v27  ;;  %v9676_v27 = vld [vmem:[%s22788_s16 + $0x1a8] sm:$0xff]  ;;  %v9671_v9 = vld [vmem:[%s22788_s16 + $0x180] sm:$0xff] }
0x27c7   : > { %15588 = vmatpush1.bf16.msra.mxu1 %v15587_v11  ;;  %15382 = vmatprep.subr.bf16.mxu0 %v15381_v16  ;;  %v15603_v11 = vpack.c.bf16 %v10346_v7, %v10339_v15  ;;  %v15605_v16 = vpack.c.bf16 %v9635_v20, %v9628_v25  ;;  %v9684_v7 = vld [vmem:[%s22788_s16 + $0x1e8] sm:$0xff]  ;;  %v9691_v25 = vld [vmem:[%s22788_s16 + $0x220] sm:$0xff]  ;;  %v9797_v20 = vld [vmem:[%s22788_s16 + $0x570] sm:$0xff] }
0x27c8   : > { %15590 = vmatprep.subr.bf16.mxu1 %v15589_v51  ;;  %v9629_v51 = vld [vmem:[%s22788_s16 + $0x30] sm:$0xff] }
0x27c9   : > { %10633 = vmatmul.mubr.f32.vlgmr.msra.gmra.mrb[90].mxu0 %v21348_v29 }
0x27ca   : > { %10917 = vmatmul.mubr.f32.vlgmr.msra.gmra.mrb[108].mxu1 %v21348_v29  ;;  %15384 = vmatpush1.bf16.msra.mxu0 %v15383_v35  ;;  %v9762_v35 = vld [vmem:[%s22788_s16 + $0x458] sm:$0xff] }
0x27cb   : > { %15592 = vmatpush1.bf16.msra.mxu1 %v15591_v40  ;;  %15386 = vmatprep.subr.bf16.mxu0 %v15385_v58  ;;  %v21452_v40 = vrot.slane %v20534_v4, %v17548_v52  ;;  %v15815_v58 = vpack.c.bf16 %v9636_v28, %v9629_v51  ;;  %v9650_v4 = vld [vmem:[%s22788_s16 + $0xd8] sm:$0xff]  ;;  %v15817_v12 = vpack.c.bf16 %v9762_v35, %v9755_v48  ;;  %v9692_v51 = vld [vmem:[%s22788_s16 + $0x228] sm:$0xff] }
0x27cc   : > { %15594 = vmatprep.subr.bf16.mxu1 %v15593_v38  ;;  %10703 = vmatprep.mubr.f32.mxu0 %v16266_v54  ;;  %v15609_v38 = vpack.c.bf16 %v9649_v23, %v9642_v22  ;;  %v9698_v28 = vld [vmem:[%s22788_s16 + $0x258] sm:$0xff]  ;;  %v9705_v22 = vld [vmem:[%s22788_s16 + $0x290] sm:$0xff]  ;;  %v9811_v23 = vld [vmem:[%s22788_s16 + $0x5e0] sm:$0xff]  ;;  %v15831_v35 = vpack.c.bf16 %v9692_v51, %v9685_v55 }
0x27cd   : > { %10987 = vmatprep.mubr.f32.mxu1 %v16266_v54  ;;  %v9853_v55 = vld [vmem:[%s22788_s16 + $0x730] sm:$0xff]  ;;  %v9754_v51 = vld [vmem:[%s22788_s16 + $0x418] sm:$0xff] }
0x27ce   : > { %15388 = vmatpush1.bf16.msra.mxu0 %v15387_v43  ;;  %v15611_v43 = vpack.c.bf16 %v9648_v33, %v9641_v34  ;;  %v9697_v34 = vld [vmem:[%s22788_s16 + $0x250] sm:$0xff]  ;;  %v9704_v33 = vld [vmem:[%s22788_s16 + $0x288] sm:$0xff] }
0x27cf   : > { %15596 = vmatpush1.bf16.msra.mxu1 %v15595_v30  ;;  %15390 = vmatprep.subr.bf16.mxu0 %v15389_v36  ;;  %v15819_v30 = vpack.c.bf16 %v9650_v4, %v9643_v19  ;;  %v15613_v36 = vpack.c.bf16 %v9663_v31, %v9656_v39  ;;  %v9699_v19 = vld [vmem:[%s22788_s16 + $0x260] sm:$0xff]  ;;  %v9706_v4 = vld [vmem:[%s22788_s16 + $0x298] sm:$0xff]  ;;  %v9712_v39 = vld [vmem:[%s22788_s16 + $0x2c8] sm:$0xff] }
0x27d0   : > { %15598 = vmatprep.subr.bf16.mxu1 %v15597_v26  ;;  %v15821_v26 = vpack.c.bf16 %v9776_v41, %v9769_v21  ;;  %v9719_v31 = vld [vmem:[%s22788_s16 + $0x300] sm:$0xff]  ;;  %v9832_v21 = vld [vmem:[%s22788_s16 + $0x688] sm:$0xff]  ;;  %v15627_v41 = vpack.c.bf16 %v9704_v33, %v9697_v34 }
0x27d1   : > { %v9867_v34 = vld [vmem:[%s22788_s16 + $0x7a0] sm:$0xff] }
0x27d2   : > { %15392 = vmatpush1.bf16.msra.mxu0 %v15391_v17  ;;  %v15823_v17 = vpack.c.bf16 %v9664_v42, %v9657_v50  ;;  %v9726_v42 = vld [vmem:[%s22788_s16 + $0x338] sm:$0xff] }
0x27d3   : > { %15600 = vmatpush1.bf16.msra.mxu1 %v15599_v47  ;;  %15394 = vmatprep.subr.bf16.mxu0 %v15393_v3  ;;  %v15617_v47 = vpack.c.bf16 %v9677_v62, %v9670_v2  ;;  %v9669_v3 = vld [vmem:[%s22788_s16 + $0x170] sm:$0xff]  ;;  %v9839_v62 = vld [vmem:[%s22788_s16 + $0x6c0] sm:$0xff] }
0x27d4   : > { %15602 = vmatprep.subr.bf16.mxu1 %v15601_v37  ;;  %v9678_v37 = vld [vmem:[%s22788_s16 + $0x1b8] sm:$0xff]  ;;  %v15619_v6 = vpack.c.bf16 %v9676_v27, %v9669_v3  ;;  %v9733_v2 = vld [vmem:[%s22788_s16 + $0x370] sm:$0xff]  ;;  %v9732_v3 = vld [vmem:[%s22788_s16 + $0x368] sm:$0xff] }
0x27d5   : > { %v9727_v27 = vld [vmem:[%s22788_s16 + $0x340] sm:$0xff] }
0x27d6   : > { %15396 = vmatpush1.bf16.msra.mxu0 %v15395_v5  ;;  %v15827_v5 = vpack.c.bf16 %v9678_v37, %v9671_v9  ;;  %v9740_v37 = vld [vmem:[%s22788_s16 + $0x3a8] sm:$0xff] }
0x27d7   : > { %15604 = vmatpush1.bf16.msra.mxu1 %v15603_v11  ;;  %15606 = vmatprep.subr.bf16.mxu0 %v15605_v16  ;;  %v15621_v11 = vpack.c.bf16 %v9691_v25, %v9684_v7  ;;  %v9683_v16 = vld [vmem:[%s22788_s16 + $0x1e0] sm:$0xff]  ;;  %v9965_v25 = vld [vmem:[%s22788_s16 + $0xab0] sm:$0xff] }
0x27d8   : > { %15814 = vmatprep.subr.bf16.mxu1 %v15813_v13  ;;  %v15829_v13 = vpack.c.bf16 %v9804_v53, %v9797_v20  ;;  %v15623_v48 = vpack.c.bf16 %v9690_v24, %v9683_v16  ;;  %v9747_v7 = vld [vmem:[%s22788_s16 + $0x3e0] sm:$0xff]  ;;  %v9972_v20 = vld [vmem:[%s22788_s16 + $0xae8] sm:$0xff]  ;;  %v9746_v16 = vld [vmem:[%s22788_s16 + $0x3d8] sm:$0xff] }
0x27d9   : > { %12634 = vmatmul.mubr.msk.f32.vlgmr.msra.gmra.mrb[90].mxu0 %vm10423_vm7, %v21452_v40  ;;  %v15845_v24 = vpack.c.bf16 %v9972_v20, %v9965_v25  ;;  %v10028_v25 = vld [vmem:[%s22788_s16 + $0xca8] sm:$0xff] }
0x27da   : > { %12635 = vmatmul.mubr.msk.f32.vlgmr.msra.gmra.mrb[108].mxu1 %vm10423_vm7, %v21452_v40  ;;  %15608 = vmatpush1.bf16.msra.mxu0 %v15607_v45  ;;  %v9818_v45 = vld [vmem:[%s22788_s16 + $0x618] sm:$0xff] }
0x27db   : > { %11058 = vmatprep.mubr.f32.mxu0 %v20550_v61  ;;  %15816 = vmatpush3.bf16.msra.mxu1 %v15815_v58  ;;  %v15625_v58 = vpack.c.bf16 %v9705_v22, %v9698_v28  ;;  %v9761_v28 = vld [vmem:[%s22788_s16 + $0x450] sm:$0xff]  ;;  %v9979_v22 = vld [vmem:[%s22788_s16 + $0xb20] sm:$0xff] }
0x27dc   : > { %11342 = vmatprep.mubr.f32.mxu1 %v20550_v61  ;;  %15610 = vmatprep.subr.bf16.mxu0 %v15609_v38  ;;  %v9790_v61 = vld [vmem:[%s22788_s16 + $0x538] sm:$0xff]  ;;  %v15833_v38 = vpack.c.bf16 %v9818_v45, %v9811_v23  ;;  %v15641_v33 = vpack.c.bf16 %v9761_v28, %v9754_v51  ;;  %v9817_v51 = vld [vmem:[%s22788_s16 + $0x610] sm:$0xff]  ;;  %v10035_v28 = vld [vmem:[%s22788_s16 + $0xce0] sm:$0xff] }
0x27dd   : > { %15818 = vmatprep.subr.bf16.mxu1 %v15817_v12  ;;  %v15825_v15 = vpack.c.bf16 %v9790_v61, %v9783_v18  ;;  %v9825_v12 = vld [vmem:[%s22788_s16 + $0x650] sm:$0xff]  ;;  %v9846_v18 = vld [vmem:[%s22788_s16 + $0x6f8] sm:$0xff] }
0x27de   : > { %15612 = vmatpush1.bf16.msra.mxu0 %v15611_v43  ;;  %v15835_v43 = vpack.c.bf16 %v9706_v4, %v9699_v19  ;;  %v15837_v50 = vpack.c.bf16 %v9832_v21, %v9825_v12  ;;  %v15841_v9 = vpack.c.bf16 %v9846_v18, %v9839_v62  ;;  %v9986_v23 = vld [vmem:[%s22788_s16 + $0xb58] sm:$0xff]  ;;  %v9768_v4 = vld [vmem:[%s22788_s16 + $0x488] sm:$0xff] }
0x27df   : > { %15820 = vmatpush3.bf16.msra.mxu1 %v15819_v30  ;;  %15614 = vmatprep.subr.bf16.mxu0 %v15613_v36  ;;  %v15629_v30 = vpack.c.bf16 %v9719_v31, %v9712_v39  ;;  %v9711_v36 = vld [vmem:[%s22788_s16 + $0x2c0] sm:$0xff]  ;;  %v15849_v19 = vpack.c.bf16 %v9986_v23, %v9979_v22  ;;  %v9993_v31 = vld [vmem:[%s22788_s16 + $0xb90] sm:$0xff]  ;;  %v10000_v12 = vld [vmem:[%s22788_s16 + $0xbc8] sm:$0xff] }
0x27e0   : > { %15822 = vmatprep.subr.bf16.mxu1 %v15821_v26  ;;  %v9720_v26 = vld [vmem:[%s22788_s16 + $0x308] sm:$0xff]  ;;  %v15631_v61 = vpack.c.bf16 %v9718_v49, %v9711_v36  ;;  %v9775_v39 = vld [vmem:[%s22788_s16 + $0x4c0] sm:$0xff]  ;;  %v9774_v36 = vld [vmem:[%s22788_s16 + $0x4b8] sm:$0xff] }
0x27e1   : > { %v9881_v49 = vld [vmem:[%s22788_s16 + $0x810] sm:$0xff]  ;;  %v10014_v62 = vld [vmem:[%s22788_s16 + $0xc38] sm:$0xff] }
0x27e2   : > { %15616 = vmatpush1.bf16.msra.mxu0 %v15615_v63  ;;  %v15839_v63 = vpack.c.bf16 %v9720_v26, %v9713_v0  ;;  %v15853_v0 = vpack.c.bf16 %v10000_v12, %v9993_v31  ;;  %v9782_v26 = vld [vmem:[%s22788_s16 + $0x4f8] sm:$0xff]  ;;  %v10056_v31 = vld [vmem:[%s22788_s16 + $0xd88] sm:$0xff] }
0x27e3   : > { %15824 = vmatpush3.bf16.msra.mxu1 %v15823_v17  ;;  %15618 = vmatprep.subr.bf16.mxu0 %v15617_v47  ;;  %v15633_v17 = vpack.c.bf16 %v9733_v2, %v9726_v42  ;;  %v9725_v47 = vld [vmem:[%s22788_s16 + $0x330] sm:$0xff]  ;;  %v10007_v2 = vld [vmem:[%s22788_s16 + $0xc00] sm:$0xff]  ;;  %v10042_v22 = vld [vmem:[%s22788_s16 + $0xd18] sm:$0xff] }
0x27e4   : > { %15826 = vmatprep.subr.bf16.mxu1 %v15825_v15  ;;  %v9734_v15 = vld [vmem:[%s22788_s16 + $0x378] sm:$0xff]  ;;  %v15635_v53 = vpack.c.bf16 %v9732_v3, %v9725_v47  ;;  %v9789_v42 = vld [vmem:[%s22788_s16 + $0x530] sm:$0xff]  ;;  %v9788_v47 = vld [vmem:[%s22788_s16 + $0x528] sm:$0xff] }
0x27e5   : > { %v9895_v3 = vld [vmem:[%s22788_s16 + $0x880] sm:$0xff] }
0x27e6   : > { %15620 = vmatpush1.bf16.msra.mxu0 %v15619_v6  ;;  %v15843_v6 = vpack.c.bf16 %v9734_v15, %v9727_v27  ;;  %v15857_v27 = vpack.c.bf16 %v10014_v62, %v10007_v2  ;;  %v9796_v15 = vld [vmem:[%s22788_s16 + $0x568] sm:$0xff]  ;;  %v10070_v2 = vld [vmem:[%s22788_s16 + $0xdf8] sm:$0xff] }
0x27e7   : > { %15828 = vmatpush3.bf16.msra.mxu1 %v15827_v5  ;;  %15622 = vmatprep.subr.bf16.mxu0 %v15621_v11  ;;  %v15637_v5 = vpack.c.bf16 %v9747_v7, %v9740_v37  ;;  %v9739_v11 = vld [vmem:[%s22788_s16 + $0x3a0] sm:$0xff]  ;;  %v10021_v7 = vld [vmem:[%s22788_s16 + $0xc70] sm:$0xff] }
0x27e8   : > { %15830 = vmatprep.subr.bf16.mxu1 %v15829_v13  ;;  %v9860_v13 = vld [vmem:[%s22788_s16 + $0x768] sm:$0xff]  ;;  %v15639_v45 = vpack.c.bf16 %v9746_v16, %v9739_v11  ;;  %v9803_v37 = vld [vmem:[%s22788_s16 + $0x5a0] sm:$0xff]  ;;  %v9802_v11 = vld [vmem:[%s22788_s16 + $0x598] sm:$0xff] }
0x27e9   : > { %v9909_v16 = vld [vmem:[%s22788_s16 + $0x8f0] sm:$0xff] }
0x27ea   : > { %15624 = vmatpush1.bf16.msra.mxu0 %v15623_v48  ;;  %v15847_v48 = vpack.c.bf16 %v9860_v13, %v9853_v55  ;;  %v9916_v55 = vld [vmem:[%s22788_s16 + $0x928] sm:$0xff]  ;;  %v9810_v13 = vld [vmem:[%s22788_s16 + $0x5d8] sm:$0xff] }
0x27eb   : > { %15832 = vmatpush3.bf16.msra.mxu1 %v15831_v35  ;;  %15626 = vmatprep.subr.bf16.mxu0 %v15625_v58  ;;  %v9753_v35 = vld [vmem:[%s22788_s16 + $0x410] sm:$0xff]  ;;  %v9760_v58 = vld [vmem:[%s22788_s16 + $0x448] sm:$0xff] }
0x27ec   : > { %15834 = vmatprep.subr.bf16.mxu1 %v15833_v38  ;;  %v9874_v38 = vld [vmem:[%s22788_s16 + $0x7d8] sm:$0xff]  ;;  %v15643_v21 = vpack.c.bf16 %v9760_v58, %v9753_v35  ;;  %v9809_v35 = vld [vmem:[%s22788_s16 + $0x5d0] sm:$0xff]  ;;  %v9816_v58 = vld [vmem:[%s22788_s16 + $0x608] sm:$0xff] }
0x27ed   : > { %v15659_v12 = vpack.c.bf16 %v9816_v58, %v9809_v35  ;;  %v10091_v35 = vld [vmem:[%s22788_s16 + $0xea0] sm:$0xff] }
0x27ee   : > { %15628 = vmatpush1.bf16.msra.mxu0 %v15627_v41  ;;  %v15851_v41 = vpack.c.bf16 %v9874_v38, %v9867_v34  ;;  %v9923_v34 = vld [vmem:[%s22788_s16 + $0x960] sm:$0xff]  ;;  %v9824_v38 = vld [vmem:[%s22788_s16 + $0x648] sm:$0xff] }
0x27ef   : > { %15836 = vmatpush3.bf16.msra.mxu1 %v15835_v43  ;;  %15630 = vmatprep.subr.bf16.mxu0 %v15629_v30  ;;  %v15645_v43 = vpack.c.bf16 %v9775_v39, %v9768_v4  ;;  %v9767_v30 = vld [vmem:[%s22788_s16 + $0x480] sm:$0xff]  ;;  %v10049_v39 = vld [vmem:[%s22788_s16 + $0xd50] sm:$0xff] }
0x27f0   : > { %15838 = vmatprep.subr.bf16.mxu1 %v15837_v50  ;;  %v9888_v50 = vld [vmem:[%s22788_s16 + $0x848] sm:$0xff]  ;;  %v15647_v18 = vpack.c.bf16 %v9774_v36, %v9767_v30  ;;  %v9831_v4 = vld [vmem:[%s22788_s16 + $0x680] sm:$0xff]  ;;  %v9830_v30 = vld [vmem:[%s22788_s16 + $0x678] sm:$0xff] }
0x27f1   : > { %v9937_v36 = vld [vmem:[%s22788_s16 + $0x9d0] sm:$0xff] }
0x27f2   : > { %15632 = vmatpush1.bf16.msra.mxu0 %v15631_v61  ;;  %v15855_v61 = vpack.c.bf16 %v9888_v50, %v9881_v49  ;;  %v15869_v49 = vpack.c.bf16 %v10056_v31, %v10049_v39  ;;  %v9838_v50 = vld [vmem:[%s22788_s16 + $0x6b8] sm:$0xff]  ;;  %v10224_v39 = vld [vmem:[%s22788_s16 + $0x12c8] sm:$0xff] }
0x27f3   : > { %15840 = vmatpush3.bf16.msra.mxu1 %v15839_v63  ;;  %15634 = vmatprep.subr.bf16.mxu0 %v15633_v17  ;;  %v15649_v63 = vpack.c.bf16 %v9789_v42, %v9782_v26  ;;  %v9781_v17 = vld [vmem:[%s22788_s16 + $0x4f0] sm:$0xff]  ;;  %v10063_v42 = vld [vmem:[%s22788_s16 + $0xdc0] sm:$0xff] }
0x27f4   : > { %15842 = vmatprep.subr.bf16.mxu1 %v15841_v9  ;;  %v9902_v9 = vld [vmem:[%s22788_s16 + $0x8b8] sm:$0xff]  ;;  %v15651_v20 = vpack.c.bf16 %v9788_v47, %v9781_v17  ;;  %v9845_v26 = vld [vmem:[%s22788_s16 + $0x6f0] sm:$0xff]  ;;  %v9844_v17 = vld [vmem:[%s22788_s16 + $0x6e8] sm:$0xff] }
0x27f5   : > { %v9951_v47 = vld [vmem:[%s22788_s16 + $0xa40] sm:$0xff] }
0x27f6   : > { %15636 = vmatpush1.bf16.msra.mxu0 %v15635_v53  ;;  %v15859_v53 = vpack.c.bf16 %v9902_v9, %v9895_v3  ;;  %v15873_v3 = vpack.c.bf16 %v10070_v2, %v10063_v42  ;;  %v9852_v9 = vld [vmem:[%s22788_s16 + $0x728] sm:$0xff] }
0x27f7   : > { %15844 = vmatpush3.bf16.msra.mxu1 %v15843_v6  ;;  %15638 = vmatprep.subr.bf16.mxu0 %v15637_v5  ;;  %v15653_v6 = vpack.c.bf16 %v9803_v37, %v9796_v15  ;;  %v9795_v5 = vld [vmem:[%s22788_s16 + $0x560] sm:$0xff]  ;;  %v10189_v37 = vld [vmem:[%s22788_s16 + $0x11b0] sm:$0xff] }
0x27f8   : > { %15846 = vmatprep.subr.bf16.mxu1 %v15845_v24  ;;  %v15861_v24 = vpack.c.bf16 %v10028_v25, %v10021_v7  ;;  %v15655_v23 = vpack.c.bf16 %v9802_v11, %v9795_v5  ;;  %v9859_v15 = vld [vmem:[%s22788_s16 + $0x760] sm:$0xff]  ;;  %v10196_v7 = vld [vmem:[%s22788_s16 + $0x11e8] sm:$0xff]  ;;  %v9858_v5 = vld [vmem:[%s22788_s16 + $0x758] sm:$0xff] }
0x27f9   : > { %v15877_v11 = vpack.c.bf16 %v10196_v7, %v10189_v37 }
0x27fa   : > { %11343 = vmatmul.mubr.f32.vlgmr.msra.gmra.mrb[110].mxu1 %v20554_v1  ;;  %15640 = vmatpush1.bf16.msra.mxu0 %v15639_v45  ;;  %v15863_v45 = vpack.c.bf16 %v9916_v55, %v9909_v16  ;;  %v10077_v16 = vld [vmem:[%s22788_s16 + $0xe30] sm:$0xff]  ;;  %v9866_v55 = vld [vmem:[%s22788_s16 + $0x798] sm:$0xff] }
0x27fb   : > { %15848 = vmatpush3.bf16.msra.mxu1 %v15847_v48  ;;  %11412 = vmatprep.mubr.f32.mxu1 %v20586_v8  ;;  %v15657_v48 = vpack.c.bf16 %v9817_v51, %v9810_v13  ;;  %v9873_v13 = vld [vmem:[%s22788_s16 + $0x7d0] sm:$0xff] }
0x27fc   : > { %15642 = vmatprep.subr.bf16.mxu0 %v15641_v33  ;;  %15850 = vmatprep.subr.bf16.mxu1 %v15849_v19  ;;  %v15865_v33 = vpack.c.bf16 %v10042_v22, %v10035_v28  ;;  %v9930_v19 = vld [vmem:[%s22788_s16 + $0x998] sm:$0xff]  ;;  %v10203_v28 = vld [vmem:[%s22788_s16 + $0x1220] sm:$0xff]  ;;  %v15673_v58 = vpack.c.bf16 %v9873_v13, %v9866_v55 }
0x27fd   : > { %v10210_v22 = vld [vmem:[%s22788_s16 + $0x1258] sm:$0xff] }
0x27fe   : > { %15644 = vmatpush1.bf16.msra.mxu0 %v15643_v21  ;;  %v15867_v21 = vpack.c.bf16 %v9930_v19, %v9923_v34  ;;  %v10098_v34 = vld [vmem:[%s22788_s16 + $0xed8] sm:$0xff]  ;;  %v9887_v19 = vld [vmem:[%s22788_s16 + $0x840] sm:$0xff] }
0x27ff   : > { %15852 = vmatpush3.bf16.msra.mxu1 %v15851_v41  ;;  %15646 = vmatprep.subr.bf16.mxu0 %v15645_v43  ;;  %v15661_v41 = vpack.c.bf16 %v9831_v4, %v9824_v38  ;;  %v9823_v43 = vld [vmem:[%s22788_s16 + $0x640] sm:$0xff]  ;;  %v15881_v38 = vpack.c.bf16 %v10210_v22, %v10203_v28  ;;  %v10217_v4 = vld [vmem:[%s22788_s16 + $0x1290] sm:$0xff]  ;;  %v10266_v55 = vld [vmem:[%s22788_s16 + $0x1418] sm:$0xff] }
0x2800   : > { %15854 = vmatprep.subr.bf16.mxu1 %v15853_v0  ;;  %v9944_v0 = vld [vmem:[%s22788_s16 + $0xa08] sm:$0xff]  ;;  %v15663_v62 = vpack.c.bf16 %v9830_v30, %v9823_v43  ;;  %v10105_v43 = vld [vmem:[%s22788_s16 + $0xf10] sm:$0xff]  ;;  %v15885_v30 = vpack.c.bf16 %v10224_v39, %v10217_v4 }
0x2801   : > { %v9921_v22 = vld [vmem:[%s22788_s16 + $0x950] sm:$0xff] }
0x2802   : > { %15648 = vmatpush1.bf16.msra.mxu0 %v15647_v18  ;;  %v15871_v18 = vpack.c.bf16 %v9944_v0, %v9937_v36  ;;  %v9894_v36 = vld [vmem:[%s22788_s16 + $0x878] sm:$0xff]  ;;  %v10231_v0 = vld [vmem:[%s22788_s16 + $0x1300] sm:$0xff] }
0x2803   : > { %15856 = vmatpush3.bf16.msra.mxu1 %v15855_v61  ;;  %15650 = vmatprep.subr.bf16.mxu0 %v15649_v63  ;;  %v15665_v61 = vpack.c.bf16 %v9845_v26, %v9838_v50  ;;  %v9837_v63 = vld [vmem:[%s22788_s16 + $0x6b0] sm:$0xff]  ;;  %v10238_v50 = vld [vmem:[%s22788_s16 + $0x1338] sm:$0xff] }
0x2804   : > { %15858 = vmatprep.subr.bf16.mxu1 %v15857_v27  ;;  %v9958_v27 = vld [vmem:[%s22788_s16 + $0xa78] sm:$0xff]  ;;  %v15667_v25 = vpack.c.bf16 %v9844_v17, %v9837_v63  ;;  %v15889_v63 = vpack.c.bf16 %v10238_v50, %v10231_v0 }
0x2805   : > { %v10126_v17 = vld [vmem:[%s22788_s16 + $0xfb8] sm:$0xff] }
0x2806   : > { %15652 = vmatpush1.bf16.msra.mxu0 %v15651_v20  ;;  %v15875_v20 = vpack.c.bf16 %v9958_v27, %v9951_v47  ;;  %v9908_v47 = vld [vmem:[%s22788_s16 + $0x8e8] sm:$0xff]  ;;  %v10245_v27 = vld [vmem:[%s22788_s16 + $0x1370] sm:$0xff] }
0x2807   : > { %15860 = vmatpush3.bf16.msra.mxu1 %v15859_v53  ;;  %15654 = vmatprep.subr.bf16.mxu0 %v15653_v6  ;;  %v15669_v53 = vpack.c.bf16 %v9859_v15, %v9852_v9  ;;  %v9851_v6 = vld [vmem:[%s22788_s16 + $0x720] sm:$0xff]  ;;  %v10252_v9 = vld [vmem:[%s22788_s16 + $0x13a8] sm:$0xff] }
0x2808   : > { %15862 = vmatprep.subr.bf16.mxu1 %v15861_v24  ;;  %v10084_v24 = vld [vmem:[%s22788_s16 + $0xe68] sm:$0xff]  ;;  %v15671_v51 = vpack.c.bf16 %v9858_v5, %v9851_v6  ;;  %v15893_v6 = vpack.c.bf16 %v10252_v9, %v10245_v27  ;;  %v9963_v27 = vld [vmem:[%s22788_s16 + $0xaa0] sm:$0xff]  ;;  %v9970_v9 = vld [vmem:[%s22788_s16 + $0xad8] sm:$0xff] }
0x2809   : > { %v10140_v5 = vld [vmem:[%s22788_s16 + $0x1028] sm:$0xff] }
0x280a   : > { %15656 = vmatpush1.bf16.msra.mxu0 %v15655_v23  ;;  %v15879_v23 = vpack.c.bf16 %v10084_v24, %v10077_v16  ;;  %v9929_v16 = vld [vmem:[%s22788_s16 + $0x990] sm:$0xff]  ;;  %v10259_v24 = vld [vmem:[%s22788_s16 + $0x13e0] sm:$0xff] }
0x280b   : > { %15864 = vmatpush3.bf16.msra.mxu1 %v15863_v45  ;;  %15658 = vmatprep.subr.bf16.mxu0 %v15657_v48  ;;  %v9865_v45 = vld [vmem:[%s22788_s16 + $0x790] sm:$0xff]  ;;  %v9872_v48 = vld [vmem:[%s22788_s16 + $0x7c8] sm:$0xff] }
0x280c   : > { %15866 = vmatprep.subr.bf16.mxu1 %v15865_v33  ;;  %v9880_v33 = vld [vmem:[%s22788_s16 + $0x808] sm:$0xff]  ;;  %v15675_v31 = vpack.c.bf16 %v9872_v48, %v9865_v45  ;;  %v10147_v45 = vld [vmem:[%s22788_s16 + $0x1060] sm:$0xff]  ;;  %v15897_v48 = vpack.c.bf16 %v10266_v55, %v10259_v24  ;;  %v10322_v24 = vld [vmem:[%s22788_s16 + $0x15d8] sm:$0xff] }
0x280d   : > { %v9992_v55 = vld [vmem:[%s22788_s16 + $0xb88] sm:$0xff] }
0x280e   : > { %15660 = vmatpush1.bf16.msra.mxu0 %v15659_v12  ;;  %v15883_v12 = vpack.c.bf16 %v10098_v34, %v10091_v35  ;;  %v10154_v35 = vld [vmem:[%s22788_s16 + $0x1098] sm:$0xff]  ;;  %v9943_v34 = vld [vmem:[%s22788_s16 + $0xa00] sm:$0xff] }
0x280f   : > { %15868 = vmatpush3.bf16.msra.mxu1 %v15867_v21  ;;  %15662 = vmatprep.subr.bf16.mxu0 %v15661_v41  ;;  %v15677_v21 = vpack.c.bf16 %v9887_v19, %v9880_v33  ;;  %v9886_v41 = vld [vmem:[%s22788_s16 + $0x838] sm:$0xff]  ;;  %v10273_v33 = vld [vmem:[%s22788_s16 + $0x1450] sm:$0xff]  ;;  %v10280_v19 = vld [vmem:[%s22788_s16 + $0x1488] sm:$0xff]  ;;  %v15899_v4 = vpack.c.bf16 %v10154_v35, %v10147_v45 }
0x2810   : > { %15870 = vmatprep.subr.bf16.mxu1 %v15869_v49  ;;  %v9901_v49 = vld [vmem:[%s22788_s16 + $0x8b0] sm:$0xff]  ;;  %v9998_v45 = vld [vmem:[%s22788_s16 + $0xbb8] sm:$0xff]  ;;  %v10336_v35 = vld [vmem:[%s22788_s16 + $0x1648] sm:$0xff] }
0x2811   : > { %v15681_v2 = vpack.c.bf16 %v9901_v49, %v9894_v36  ;;  %v10294_v36 = vld [vmem:[%s22788_s16 + $0x14f8] sm:$0xff] }
0x2812   : > { %15664 = vmatpush1.bf16.msra.mxu0 %v15663_v62  ;;  %v9893_v62 = vld [vmem:[%s22788_s16 + $0x870] sm:$0xff] }
0x2813   : > { %15872 = vmatpush3.bf16.msra.mxu1 %v15871_v18  ;;  %15666 = vmatprep.subr.bf16.mxu0 %v15665_v61  ;;  %v9900_v18 = vld [vmem:[%s22788_s16 + $0x8a8] sm:$0xff]  ;;  %v10119_v61 = vld [vmem:[%s22788_s16 + $0xf80] sm:$0xff] }
0x2814   : > { %15874 = vmatprep.subr.bf16.mxu1 %v15873_v3  ;;  %v9915_v3 = vld [vmem:[%s22788_s16 + $0x920] sm:$0xff]  ;;  %v15683_v15 = vpack.c.bf16 %v9900_v18, %v9893_v62  ;;  %v15891_v37 = vpack.c.bf16 %v10126_v17, %v10119_v61  ;;  %v10182_v18 = vld [vmem:[%s22788_s16 + $0x1178] sm:$0xff]  ;;  %v9964_v61 = vld [vmem:[%s22788_s16 + $0xaa8] sm:$0xff] }
0x2815   : > { %v15685_v7 = vpack.c.bf16 %v9915_v3, %v9908_v47 }
0x2816   : > { %15668 = vmatpush1.bf16.msra.mxu0 %v15667_v25  ;;  %v9907_v25 = vld [vmem:[%s22788_s16 + $0x8e0] sm:$0xff] }
0x2817   : > { %15876 = vmatpush3.bf16.msra.mxu1 %v15875_v20  ;;  %15670 = vmatprep.subr.bf16.mxu0 %v15669_v53  ;;  %v9914_v20 = vld [vmem:[%s22788_s16 + $0x918] sm:$0xff]  ;;  %v10133_v53 = vld [vmem:[%s22788_s16 + $0xff0] sm:$0xff] }
0x2818   : > { %15878 = vmatprep.subr.bf16.mxu1 %v15877_v11  ;;  %v9922_v11 = vld [vmem:[%s22788_s16 + $0x958] sm:$0xff]  ;;  %v15687_v13 = vpack.c.bf16 %v9914_v20, %v9907_v25  ;;  %v9985_v25 = vld [vmem:[%s22788_s16 + $0xb50] sm:$0xff]  ;;  %v15703_v20 = vpack.c.bf16 %v9970_v9, %v9963_v27  ;;  %v10048_v27 = vld [vmem:[%s22788_s16 + $0xd48] sm:$0xff] }
0x2819   : > { %11059 = vmatmul.mubr.f32.vlgmr.msra.gmra.mrb[92].mxu0 %v20554_v1  ;;  %v9879_v1 = vld [vmem:[%s22788_s16 + $0x800] sm:$0xff]  ;;  %v15689_v28 = vpack.c.bf16 %v9929_v16, %v9922_v11  ;;  %v9984_v11 = vld [vmem:[%s22788_s16 + $0xb48] sm:$0xff] }
0x281a   : > { %11413 = vmatmul.mubr.f32.vlgmr.msra.gmra.mrb[112].mxu1 %v20952_v32  ;;  %15672 = vmatpush1.bf16.msra.mxu0 %v15671_v51  ;;  %v15679_v26 = vpack.c.bf16 %v9886_v41, %v9879_v1  ;;  %v15895_v51 = vpack.c.bf16 %v10140_v5, %v10133_v53  ;;  %v15901_v1 = vpack.c.bf16 %v10280_v19, %v10273_v33  ;;  %v10168_v41 = vld [vmem:[%s22788_s16 + $0x1108] sm:$0xff]  ;;  %v9977_v5 = vld [vmem:[%s22788_s16 + $0xb10] sm:$0xff]  ;;  %v10315_v16 = vld [vmem:[%s22788_s16 + $0x15a0] sm:$0xff] }
0x281b   : > { %11129 = vmatprep.mubr.f32.mxu0 %v20586_v8  ;;  %15880 = vmatpush3.bf16.msra.mxu1 %v15879_v23  ;;  %v10112_v8 = vld [vmem:[%s22788_s16 + $0xf48] sm:$0xff] }
0x281c   : > { %11482 = vmatprep.mubr.f32.mxu1 %v20965_v14  ;;  %15674 = vmatprep.subr.bf16.mxu0 %v15673_v58  ;;  %v15887_v42 = vpack.c.bf16 %v10112_v8, %v10105_v43  ;;  %v9928_v23 = vld [vmem:[%s22788_s16 + $0x988] sm:$0xff]  ;;  %v9950_v43 = vld [vmem:[%s22788_s16 + $0xa38] sm:$0xff]  ;;  %v10287_v8 = vld [vmem:[%s22788_s16 + $0x14c0] sm:$0xff] }
0x281d   : > { %15882 = vmatprep.subr.bf16.mxu1 %v15881_v38  ;;  %v9936_v58 = vld [vmem:[%s22788_s16 + $0x9c8] sm:$0xff]  ;;  %v15691_v38 = vpack.c.bf16 %v9928_v23, %v9921_v22  ;;  %v15905_v62 = vpack.c.bf16 %v10294_v36, %v10287_v8  ;;  %v9991_v23 = vld [vmem:[%s22788_s16 + $0xb80] sm:$0xff] }
0x281e   : > { %15676 = vmatpush1.bf16.msra.mxu0 %v15675_v31  ;;  %v15693_v39 = vpack.c.bf16 %v9943_v34, %v9936_v58  ;;  %v9935_v31 = vld [vmem:[%s22788_s16 + $0x9c0] sm:$0xff]  ;;  %v10006_v58 = vld [vmem:[%s22788_s16 + $0xbf8] sm:$0xff]  ;;  %v10013_v34 = vld [vmem:[%s22788_s16 + $0xc30] sm:$0xff]  ;;  %v15711_v33 = vpack.c.bf16 %v9998_v45, %v9991_v23 }
0x281f   : > { %15884 = vmatpush3.bf16.msra.mxu1 %v15883_v12  ;;  %15678 = vmatprep.subr.bf16.mxu0 %v15677_v21  ;;  %v9942_v12 = vld [vmem:[%s22788_s16 + $0x9f8] sm:$0xff]  ;;  %v10161_v21 = vld [vmem:[%s22788_s16 + $0x10d0] sm:$0xff] }
0x2820   : > { %15886 = vmatprep.subr.bf16.mxu1 %v15885_v30  ;;  %v9957_v30 = vld [vmem:[%s22788_s16 + $0xa70] sm:$0xff]  ;;  %v15695_v49 = vpack.c.bf16 %v9942_v12, %v9935_v31  ;;  %v15903_v0 = vpack.c.bf16 %v10168_v41, %v10161_v21  ;;  %v10343_v31 = vld [vmem:[%s22788_s16 + $0x1680] sm:$0xff]  ;;  %v10350_v12 = vld [vmem:[%s22788_s16 + $0x16b8] sm:$0xff] }
0x2821   : > { %v15697_v50 = vpack.c.bf16 %v9957_v30, %v9950_v43  ;;  %v10020_v21 = vld [vmem:[%s22788_s16 + $0xc68] sm:$0xff]  ;;  %v11581_v41 = vld [vmem:[%s22790_s18 + $0x80] sm:$0xff]  ;;  %v15919_v8 = vpack.c.bf16 %v10350_v12, %v10343_v31  ;;  %v11587_v23 = vld [vmem:[%s22790_s18 + $0xb0] sm:$0xff] }
0x2822   : > { %15680 = vmatpush1.bf16.msra.mxu0 %v15679_v26  ;;  %v9949_v26 = vld [vmem:[%s22788_s16 + $0xa30] sm:$0xff]  ;;  %v11582_v43 = vld [vmem:[%s22790_s18 + $0x88] sm:$0xff]  ;;  %v11588_v45 = vld [vmem:[%s22790_s18 + $0xb8] sm:$0xff] }
0x2823   : > { %15888 = vmatpush3.bf16.msra.mxu1 %v15887_v42  ;;  %15682 = vmatprep.subr.bf16.mxu0 %v15681_v2  ;;  %v9956_v42 = vld [vmem:[%s22788_s16 + $0xa68] sm:$0xff]  ;;  %v10175_v2 = vld [vmem:[%s22788_s16 + $0x1140] sm:$0xff]  ;;  %v11572_v31 = vld [vmem:[%s22790_s18 + $0x38] sm:$0xff] }
0x2824   : > { %15890 = vmatprep.subr.bf16.mxu1 %v15889_v63  ;;  %v9971_v63 = vld [vmem:[%s22788_s16 + $0xae0] sm:$0xff]  ;;  %v15699_v17 = vpack.c.bf16 %v9956_v42, %v9949_v26  ;;  %v15907_v47 = vpack.c.bf16 %v10182_v18, %v10175_v2  ;;  %v10041_v26 = vld [vmem:[%s22788_s16 + $0xd10] sm:$0xff]  ;;  %v15921_v42 = vpack.c.bf16 %v11582_v43, %v11581_v41 }
0x2825   : > { %v15701_v3 = vpack.c.bf16 %v9971_v63, %v9964_v61  ;;  %v11565_v2 = vld [vmem:[%s22790_s18] sm:$0xff]  ;;  %v11583_v18 = vld [vmem:[%s22790_s18 + $0x90] sm:$0xff]  ;;  %v11584_v61 = vld [vmem:[%s22790_s18 + $0x98] sm:$0xff] }
0x2826   : > { %15684 = vmatpush1.bf16.msra.mxu0 %v15683_v15  ;;  %v10301_v15 = vld [vmem:[%s22788_s16 + $0x1530] sm:$0xff]  ;;  %v11589_v12 = vld [vmem:[%s22790_s18 + $0xc0] sm:$0xff] }
0x2827   : > { %15892 = vmatpush3.bf16.msra.mxu1 %v15891_v37  ;;  %15686 = vmatprep.subr.bf16.mxu0 %v15685_v7  ;;  %v10308_v37 = vld [vmem:[%s22788_s16 + $0x1568] sm:$0xff]  ;;  %v9978_v7 = vld [vmem:[%s22788_s16 + $0xb18] sm:$0xff]  ;;  %v10075_v43 = vld [vmem:[%s22788_s16 + $0xe20] sm:$0xff] }
0x2828   : > { %15894 = vmatprep.subr.bf16.mxu1 %v15893_v6  ;;  %v15910_v53 = vpack.c.bf16 %v10308_v37, %v10301_v15  ;;  %v15705_v6 = vpack.c.bf16 %v9985_v25, %v9978_v7  ;;  %v10055_v15 = vld [vmem:[%s22788_s16 + $0xd80] sm:$0xff]  ;;  %v15925_v37 = vpack.c.bf16 %v11584_v61, %v11583_v18  ;;  %v11567_v7 = vld [vmem:[%s22790_s18 + $0x10] sm:$0xff]  ;;  %v11568_v25 = vld [vmem:[%s22790_s18 + $0x18] sm:$0xff] }
0x2829   : > { %v10089_v61 = vld [vmem:[%s22788_s16 + $0xe90] sm:$0xff] }
0x282a   : > { %15688 = vmatpush1.bf16.msra.mxu0 %v15687_v13  ;;  %v9999_v13 = vld [vmem:[%s22788_s16 + $0xbc0] sm:$0xff] }
0x282b   : > { %15896 = vmatpush3.bf16.msra.mxu1 %v15895_v51  ;;  %15690 = vmatprep.subr.bf16.mxu0 %v15689_v28  ;;  %v15707_v51 = vpack.c.bf16 %v9984_v11, %v9977_v5  ;;  %v15913_v28 = vpack.c.bf16 %v10322_v24, %v10315_v16  ;;  %v15709_v22 = vpack.c.bf16 %v9999_v13, %v9992_v55  ;;  %v10047_v11 = vld [vmem:[%s22788_s16 + $0xd40] sm:$0xff]  ;;  %v10054_v16 = vld [vmem:[%s22788_s16 + $0xd78] sm:$0xff]  ;;  %v10069_v13 = vld [vmem:[%s22788_s16 + $0xdf0] sm:$0xff] }
0x282c   : > { %15898 = vmatprep.subr.bf16.mxu1 %v15897_v48  ;;  %v10329_v48 = vld [vmem:[%s22788_s16 + $0x1610] sm:$0xff]  ;;  %v15725_v5 = vpack.c.bf16 %v10055_v15, %v10048_v27  ;;  %v10062_v24 = vld [vmem:[%s22788_s16 + $0xdb8] sm:$0xff]  ;;  %v15927_v55 = vpack.c.bf16 %v11568_v25, %v11567_v7  ;;  %v11594_v7 = vld [vmem:[%s22790_s18 + $0xe8] sm:$0xff] }
0x282d   : > { %v15916_v19 = vpack.c.bf16 %v10336_v35, %v10329_v48  ;;  %v15727_v48 = vpack.c.bf16 %v10054_v16, %v10047_v11  ;;  %v15729_v35 = vpack.c.bf16 %v10069_v13, %v10062_v24  ;;  %v11576_v15 = vld [vmem:[%s22790_s18 + $0x58] sm:$0xff]  ;;  %v11577_v16 = vld [vmem:[%s22790_s18 + $0x60] sm:$0xff]  ;;  %v11578_v24 = vld [vmem:[%s22790_s18 + $0x68] sm:$0xff] }
0x282e   : > { %15692 = vmatpush1.bf16.msra.mxu0 %v15691_v38  ;;  %v15713_v38 = vpack.c.bf16 %v10013_v34, %v10006_v58  ;;  %v10061_v58 = vld [vmem:[%s22788_s16 + $0xdb0] sm:$0xff]  ;;  %v10068_v34 = vld [vmem:[%s22788_s16 + $0xde8] sm:$0xff]  ;;  %v11596_v13 = vld [vmem:[%s22790_s18 + $0xf8] sm:$0xff] }
0x282f   : > { %15900 = vmatpush3.bf16.msra.mxu1 %v15899_v4  ;;  %15694 = vmatprep.subr.bf16.mxu0 %v15693_v39  ;;  %v10005_v4 = vld [vmem:[%s22788_s16 + $0xbf0] sm:$0xff]  ;;  %v10012_v39 = vld [vmem:[%s22788_s16 + $0xc28] sm:$0xff] }
0x2830   : > { %15902 = vmatprep.subr.bf16.mxu1 %v15901_v1  ;;  %v10027_v1 = vld [vmem:[%s22788_s16 + $0xca0] sm:$0xff]  ;;  %v15715_v30 = vpack.c.bf16 %v10012_v39, %v10005_v4  ;;  %v15933_v4 = vpack.c.bf16 %v11588_v45, %v11587_v23  ;;  %v11571_v39 = vld [vmem:[%s22790_s18 + $0x30] sm:$0xff]  ;;  %v10124_v23 = vld [vmem:[%s22788_s16 + $0xfa8] sm:$0xff] }
0x2831   : > { %v15717_v36 = vpack.c.bf16 %v10027_v1, %v10020_v21  ;;  %v11590_v21 = vld [vmem:[%s22790_s18 + $0xc8] sm:$0xff]  ;;  %v15731_v1 = vpack.c.bf16 %v10068_v34, %v10061_v58  ;;  %v11579_v34 = vld [vmem:[%s22790_s18 + $0x70] sm:$0xff] }
0x2832   : > { %15696 = vmatpush1.bf16.msra.mxu0 %v15695_v49  ;;  %v10019_v49 = vld [vmem:[%s22788_s16 + $0xc60] sm:$0xff]  ;;  %v10132_v45 = vld [vmem:[%s22788_s16 + $0xfe8] sm:$0xff] }
0x2833   : > { %15904 = vmatpush3.bf16.msra.mxu1 %v15903_v0  ;;  %15698 = vmatprep.subr.bf16.mxu0 %v15697_v50  ;;  %v10026_v0 = vld [vmem:[%s22788_s16 + $0xc98] sm:$0xff] }
0x2834   : > { %15906 = vmatprep.subr.bf16.mxu1 %v15905_v62  ;;  %v10034_v50 = vld [vmem:[%s22788_s16 + $0xcd8] sm:$0xff]  ;;  %v11566_v62 = vld [vmem:[%s22790_s18 + $0x8] sm:$0xff]  ;;  %v15719_v63 = vpack.c.bf16 %v10026_v0, %v10019_v49  ;;  %v10097_v49 = vld [vmem:[%s22788_s16 + $0xed0] sm:$0xff]  ;;  %v15937_v0 = vpack.c.bf16 %v11590_v21, %v11589_v12 }
0x2835   : > { %v15923_v9 = vpack.c.bf16 %v11566_v62, %v11565_v2  ;;  %v11592_v2 = vld [vmem:[%s22790_s18 + $0xd8] sm:$0xff] }
0x2836   : > { %15700 = vmatpush1.bf16.msra.mxu0 %v15699_v17  ;;  %v15721_v17 = vpack.c.bf16 %v10041_v26, %v10034_v50  ;;  %v11573_v50 = vld [vmem:[%s22790_s18 + $0x40] sm:$0xff]  ;;  %v11574_v26 = vld [vmem:[%s22790_s18 + $0x48] sm:$0xff]  ;;  %v10138_v12 = vld [vmem:[%s22788_s16 + $0x1018] sm:$0xff] }
0x2837   : > { %15908 = vmatpush3.bf16.msra.mxu1 %v15907_v47  ;;  %15702 = vmatprep.subr.bf16.mxu0 %v15701_v3  ;;  %v10033_v47 = vld [vmem:[%s22788_s16 + $0xcd0] sm:$0xff]  ;;  %v10040_v3 = vld [vmem:[%s22788_s16 + $0xd08] sm:$0xff] }
0x2838   : > { %15909 = vmatprep.subr.bf16.mxu1 %v16264_v46 }
0x283a   : > { %11483 = vmatmul.mubr.f32.vlgmr.msra.gmra.mrb[114].mxu1 %v21348_v29  ;;  %15704 = vmatpush1.bf16.msra.mxu0 %v15703_v20  ;;  %v11585_v20 = vld [vmem:[%s22790_s18 + $0xa0] sm:$0xff] }
0x283b   : > { %15911 = vmatpush3.bf16.msra.mxu1 %v15910_v53  ;;  %15706 = vmatprep.subr.bf16.mxu0 %v15705_v6  ;;  %v11586_v53 = vld [vmem:[%s22790_s18 + $0xa8] sm:$0xff]  ;;  %v15723_v6 = vpack.c.bf16 %v10040_v3, %v10033_v47  ;;  %v15939_v47 = vpack.c.bf16 %v11574_v26, %v11573_v50  ;;  %v10111_v3 = vld [vmem:[%s22788_s16 + $0xf40] sm:$0xff] }
0x283c   : > { %15912 = vmatprep.subr.bf16.mxu1 %v16264_v46  ;;  %14167 = vmatprep.mubr.msk.f32.mxu1 %vm16265_vm1, %v16266_v54  ;;  %v10167_v50 = vld [vmem:[%s22788_s16 + $0x1100] sm:$0xff] }
0x283e   : > { %15708 = vmatpush1.bf16.msra.mxu0 %v15707_v51  ;;  %v15929_v51 = vpack.c.bf16 %v11586_v53, %v11585_v20  ;;  %v10103_v53 = vld [vmem:[%s22788_s16 + $0xf00] sm:$0xff] }
0x283f   : > { %15914 = vmatpush3.bf16.msra.mxu1 %v15913_v28  ;;  %15710 = vmatprep.subr.bf16.mxu0 %v15709_v22  ;;  %v11569_v28 = vld [vmem:[%s22790_s18 + $0x20] sm:$0xff]  ;;  %v11570_v22 = vld [vmem:[%s22790_s18 + $0x28] sm:$0xff] }
0x2840   : > { %15915 = vmatprep.subr.bf16.mxu1 %v16264_v46 }
0x2842   : > { %15712 = vmatpush1.bf16.msra.mxu0 %v15711_v33  ;;  %v10076_v33 = vld [vmem:[%s22788_s16 + $0xe28] sm:$0xff] }
0x2843   : > { %15917 = vmatpush3.bf16.msra.mxu1 %v15916_v19  ;;  %15714 = vmatprep.subr.bf16.mxu0 %v15713_v38  ;;  %v15931_v19 = vpack.c.bf16 %v11570_v22, %v11569_v28  ;;  %v10083_v38 = vld [vmem:[%s22788_s16 + $0xe60] sm:$0xff]  ;;  %v10117_v22 = vld [vmem:[%s22788_s16 + $0xf70] sm:$0xff] }
0x2844   : > { %15918 = vmatprep.subr.bf16.mxu1 %v16264_v46  ;;  %v15733_v41 = vpack.c.bf16 %v10083_v38, %v10076_v33  ;;  %v11580_v33 = vld [vmem:[%s22790_s18 + $0x78] sm:$0xff]  ;;  %v11614_v38 = vld [vmem:[%s22790_s18 + $0x188] sm:$0xff] }
0x2845   : > { %v15951_v21 = vpack.c.bf16 %v11580_v33, %v11579_v34  ;;  %v10251_v34 = vld [vmem:[%s22788_s16 + $0x13a0] sm:$0xff] }
0x2846   : > { %15716 = vmatpush1.bf16.msra.mxu0 %v15715_v30  ;;  %v10082_v30 = vld [vmem:[%s22788_s16 + $0xe58] sm:$0xff] }
0x2847   : > { %15920 = vmatpush3.bf16.msra.mxu1 %v15919_v8  ;;  %15718 = vmatprep.subr.bf16.mxu0 %v15717_v36  ;;  %v10090_v8 = vld [vmem:[%s22788_s16 + $0xe98] sm:$0xff]  ;;  %v15935_v36 = vpack.c.bf16 %v11572_v31, %v11571_v39  ;;  %v15735_v62 = vpack.c.bf16 %v10082_v30, %v10075_v43  ;;  %v10131_v31 = vld [vmem:[%s22788_s16 + $0xfe0] sm:$0xff] }
0x2848   : > { %15922 = vmatprep.subr.bf16.mxu1 %v15921_v42  ;;  %v11591_v42 = vld [vmem:[%s22790_s18 + $0xd0] sm:$0xff]  ;;  %v15737_v18 = vpack.c.bf16 %v10097_v49, %v10090_v8  ;;  %v15751_v30 = vpack.c.bf16 %v10138_v12, %v10131_v31  ;;  %v10152_v49 = vld [vmem:[%s22788_s16 + $0x1088] sm:$0xff] }
0x2849   : > { %v15941_v27 = vpack.c.bf16 %v11592_v2, %v11591_v42  ;;  %v10159_v2 = vld [vmem:[%s22788_s16 + $0x10c0] sm:$0xff]  ;;  %v10265_v31 = vld [vmem:[%s22788_s16 + $0x1410] sm:$0xff] }
0x284a   : > { %14168 = vmatmul.mubr.msk.f32.vlgmr.msra.gmra.mrb[116].mxu1 %vm10423_vm7, %v21452_v40  ;;  %15720 = vmatpush1.bf16.msra.mxu0 %v15719_v63  ;;  %v10096_v63 = vld [vmem:[%s22788_s16 + $0xec8] sm:$0xff] }
0x284b   : > { %15722 = vmatprep.subr.bf16.mxu0 %v15721_v17  ;;  %15924 = vmatpush3.bf16.msra.mxu1 %v15923_v9  ;;  %v10104_v17 = vld [vmem:[%s22788_s16 + $0xf08] sm:$0xff]  ;;  %v11575_v9 = vld [vmem:[%s22790_s18 + $0x50] sm:$0xff]  ;;  %v15739_v25 = vpack.c.bf16 %v10096_v63, %v10089_v61 }
0x284c   : > { %15926 = vmatprep.subr.bf16.mxu1 %v15925_v37  ;;  %v11593_v37 = vld [vmem:[%s22790_s18 + $0xe0] sm:$0xff]  ;;  %v15741_v20 = vpack.c.bf16 %v10111_v3, %v10104_v17  ;;  %v10181_v61 = vld [vmem:[%s22788_s16 + $0x1170] sm:$0xff]  ;;  %v10180_v3 = vld [vmem:[%s22788_s16 + $0x1168] sm:$0xff] }
0x284d   : > { %v15945_v11 = vpack.c.bf16 %v11594_v7, %v11593_v37  ;;  %v10187_v7 = vld [vmem:[%s22788_s16 + $0x11a0] sm:$0xff] }
0x284e   : > { %15724 = vmatpush1.bf16.msra.mxu0 %v15723_v6  ;;  %v10118_v6 = vld [vmem:[%s22788_s16 + $0xf78] sm:$0xff] }
0x284f   : > { %15726 = vmatprep.subr.bf16.mxu0 %v15725_v5  ;;  %15928 = vmatpush3.bf16.msra.mxu1 %v15927_v55  ;;  %v15943_v5 = vpack.c.bf16 %v11576_v15, %v11575_v9  ;;  %v11595_v55 = vld [vmem:[%s22790_s18 + $0xf0] sm:$0xff]  ;;  %v10195_v9 = vld [vmem:[%s22788_s16 + $0x11e0] sm:$0xff] }
0x2850   : > { %15930 = vmatprep.subr.bf16.mxu1 %v15929_v51  ;;  %v15949_v58 = vpack.c.bf16 %v11596_v13, %v11595_v55  ;;  %v10215_v13 = vld [vmem:[%s22788_s16 + $0x1280] sm:$0xff] }
0x2852   : > { %15728 = vmatpush1.bf16.msra.mxu0 %v15727_v48  ;;  %v15947_v48 = vpack.c.bf16 %v11578_v24, %v11577_v16  ;;  %v10223_v16 = vld [vmem:[%s22788_s16 + $0x12c0] sm:$0xff] }
0x2853   : > { %15730 = vmatprep.subr.bf16.mxu0 %v15729_v35  ;;  %15932 = vmatpush3.bf16.msra.mxu1 %v15931_v19  ;;  %v10139_v35 = vld [vmem:[%s22788_s16 + $0x1020] sm:$0xff] }
0x2854   : > { %15934 = vmatprep.subr.bf16.mxu1 %v15933_v4  ;;  %v11613_v19 = vld [vmem:[%s22790_s18 + $0x180] sm:$0xff]  ;;  %v15747_v4 = vpack.c.bf16 %v10124_v23, %v10117_v22  ;;  %v15749_v39 = vpack.c.bf16 %v10139_v35, %v10132_v45  ;;  %v10237_v22 = vld [vmem:[%s22788_s16 + $0x1330] sm:$0xff]  ;;  %v10236_v35 = vld [vmem:[%s22788_s16 + $0x1328] sm:$0xff] }
0x2855   : > { %v15953_v43 = vpack.c.bf16 %v11614_v38, %v11613_v19  ;;  %v10243_v38 = vld [vmem:[%s22788_s16 + $0x1360] sm:$0xff] }
0x2856   : > { %15732 = vmatpush1.bf16.msra.mxu0 %v15731_v1  ;;  %v10146_v1 = vld [vmem:[%s22788_s16 + $0x1058] sm:$0xff] }
0x2857   : > { %15734 = vmatprep.subr.bf16.mxu0 %v15733_v41  ;;  %15936 = vmatpush3.bf16.msra.mxu1 %v15935_v36  ;;  %v10153_v41 = vld [vmem:[%s22788_s16 + $0x1090] sm:$0xff] }
0x2858   : > { %15938 = vmatprep.subr.bf16.mxu1 %v15937_v0  ;;  %v15753_v8 = vpack.c.bf16 %v10153_v41, %v10146_v1  ;;  %v10145_v36 = vld [vmem:[%s22788_s16 + $0x1050] sm:$0xff]  ;;  %v10160_v0 = vld [vmem:[%s22788_s16 + $0x10c8] sm:$0xff] }
0x2859   : > { %11130 = vmatmul.mubr.f32.vlgmr.msra.gmra.mrb[92].mxu0 %v20952_v32  ;;  %v10110_v32 = vld [vmem:[%s22788_s16 + $0xf38] sm:$0xff]  ;;  %v15755_v26 = vpack.c.bf16 %v10152_v49, %v10145_v36  ;;  %v15757_v42 = vpack.c.bf16 %v10167_v50, %v10160_v0  ;;  %v10257_v1 = vld [vmem:[%s22788_s16 + $0x13d0] sm:$0xff]  ;;  %v10264_v41 = vld [vmem:[%s22788_s16 + $0x1408] sm:$0xff] }
0x285a   : > { %15736 = vmatpush1.bf16.msra.mxu0 %v15735_v62  ;;  %11200 = vmatprep.mubr.f32.mxu0 %v20965_v14  ;;  %v10125_v14 = vld [vmem:[%s22788_s16 + $0xfb0] sm:$0xff]  ;;  %v15743_v51 = vpack.c.bf16 %v10110_v32, %v10103_v53  ;;  %v10166_v62 = vld [vmem:[%s22788_s16 + $0x10f8] sm:$0xff]  ;;  %v10271_v49 = vld [vmem:[%s22788_s16 + $0x1440] sm:$0xff] }
0x285b   : > { %15738 = vmatprep.subr.bf16.mxu0 %v15737_v18  ;;  %15940 = vmatpush3.bf16.msra.mxu1 %v15939_v47  ;;  %v15745_v28 = vpack.c.bf16 %v10125_v14, %v10118_v6  ;;  %v10174_v18 = vld [vmem:[%s22788_s16 + $0x1138] sm:$0xff]  ;;  %v15759_v63 = vpack.c.bf16 %v10166_v62, %v10159_v2  ;;  %v10173_v47 = vld [vmem:[%s22788_s16 + $0x1130] sm:$0xff]  ;;  %v10208_v14 = vld [vmem:[%s22788_s16 + $0x1248] sm:$0xff] }
0x285c   : > { %15942 = vmatprep.subr.bf16.mxu1 %v15941_v27  ;;  %v15761_v17 = vpack.c.bf16 %v10181_v61, %v10174_v18  ;;  %v10188_v27 = vld [vmem:[%s22788_s16 + $0x11a8] sm:$0xff]  ;;  %v15763_v15 = vpack.c.bf16 %v10180_v3, %v10173_v47  ;;  %v10209_v53 = vld [vmem:[%s22788_s16 + $0x1250] sm:$0xff]  ;;  %v10278_v0 = vld [vmem:[%s22788_s16 + $0x1478] sm:$0xff] }
0x285d   : > { %v15765_v37 = vpack.c.bf16 %v10195_v9, %v10188_v27  ;;  %v10286_v50 = vld [vmem:[%s22788_s16 + $0x14b8] sm:$0xff]  ;;  %v10285_v62 = vld [vmem:[%s22788_s16 + $0x14b0] sm:$0xff]  ;;  %v10292_v18 = vld [vmem:[%s22788_s16 + $0x14e8] sm:$0xff] }
0x285e   : > { %15740 = vmatpush1.bf16.msra.mxu0 %v15739_v25  ;;  %v10194_v25 = vld [vmem:[%s22788_s16 + $0x11d8] sm:$0xff]  ;;  %v10300_v61 = vld [vmem:[%s22788_s16 + $0x1528] sm:$0xff]  ;;  %v10299_v3 = vld [vmem:[%s22788_s16 + $0x1520] sm:$0xff] }
0x285f   : > { %15742 = vmatprep.subr.bf16.mxu0 %v15741_v20  ;;  %15944 = vmatpush3.bf16.msra.mxu1 %v15943_v5  ;;  %v10202_v20 = vld [vmem:[%s22788_s16 + $0x1218] sm:$0xff]  ;;  %v15767_v32 = vpack.c.bf16 %v10194_v25, %v10187_v7  ;;  %v10201_v5 = vld [vmem:[%s22788_s16 + $0x1210] sm:$0xff] }
0x2860   : > { %15946 = vmatprep.subr.bf16.mxu1 %v15945_v11  ;;  %v15769_v6 = vpack.c.bf16 %v10209_v53, %v10202_v20  ;;  %v10216_v11 = vld [vmem:[%s22788_s16 + $0x1288] sm:$0xff]  ;;  %v15771_v24 = vpack.c.bf16 %v10208_v14, %v10201_v5  ;;  %v10306_v27 = vld [vmem:[%s22788_s16 + $0x1558] sm:$0xff]  ;;  %v10313_v25 = vld [vmem:[%s22788_s16 + $0x1590] sm:$0xff] }
0x2861   : > { %v15773_v55 = vpack.c.bf16 %v10223_v16, %v10216_v11  ;;  %v10314_v9 = vld [vmem:[%s22788_s16 + $0x1598] sm:$0xff]  ;;  %v10320_v20 = vld [vmem:[%s22788_s16 + $0x15c8] sm:$0xff]  ;;  %v10327_v14 = vld [vmem:[%s22788_s16 + $0x1600] sm:$0xff] }
0x2862   : > { %15744 = vmatpush1.bf16.msra.mxu0 %v15743_v51  ;;  %v10222_v51 = vld [vmem:[%s22788_s16 + $0x12b8] sm:$0xff]  ;;  %v10328_v53 = vld [vmem:[%s22788_s16 + $0x1608] sm:$0xff] }
0x2863   : > { %15746 = vmatprep.subr.bf16.mxu0 %v15745_v28  ;;  %15948 = vmatpush3.bf16.msra.mxu1 %v15947_v48  ;;  %v10230_v28 = vld [vmem:[%s22788_s16 + $0x12f8] sm:$0xff]  ;;  %v15775_v23 = vpack.c.bf16 %v10222_v51, %v10215_v13  ;;  %v10229_v48 = vld [vmem:[%s22788_s16 + $0x12f0] sm:$0xff]  ;;  %v10348_v51 = vld [vmem:[%s22788_s16 + $0x16a8] sm:$0xff] }
0x2864   : > { %15950 = vmatprep.subr.bf16.mxu1 %v15949_v58  ;;  %v15777_v45 = vpack.c.bf16 %v10237_v22, %v10230_v28  ;;  %v10244_v58 = vld [vmem:[%s22788_s16 + $0x1368] sm:$0xff]  ;;  %v15779_v33 = vpack.c.bf16 %v10236_v35, %v10229_v48  ;;  %v10334_v11 = vld [vmem:[%s22788_s16 + $0x1638] sm:$0xff]  ;;  %v10341_v13 = vld [vmem:[%s22788_s16 + $0x1670] sm:$0xff] }
0x2865   : > { %v15781_v19 = vpack.c.bf16 %v10251_v34, %v10244_v58  ;;  %v10342_v16 = vld [vmem:[%s22788_s16 + $0x1678] sm:$0xff]  ;;  %v15811_v28 = vpack.c.bf16 %v10348_v51, %v10341_v13  ;;  %v11661_v22 = vld [vmem:[%s22790_s18 + $0x300] sm:$0xff]  ;;  %v11663_v35 = vld [vmem:[%s22790_s18 + $0x310] sm:$0xff] }
0x2866   : > { %15748 = vmatpush1.bf16.msra.mxu0 %v15747_v4  ;;  %v10250_v4 = vld [vmem:[%s22788_s16 + $0x1398] sm:$0xff]  ;;  %v11625_v51 = vld [vmem:[%s22790_s18 + $0x1e0] sm:$0xff] }
0x2867   : > { %15750 = vmatprep.subr.bf16.mxu0 %v15749_v39  ;;  %15952 = vmatpush3.bf16.msra.mxu1 %v15951_v21  ;;  %v10258_v39 = vld [vmem:[%s22788_s16 + $0x13d8] sm:$0xff]  ;;  %v15783_v12 = vpack.c.bf16 %v10250_v4, %v10243_v38 }
0x2868   : > { %15954 = vmatprep.subr.bf16.mxu1 %v15953_v43  ;;  %v15785_v21 = vpack.c.bf16 %v10265_v31, %v10258_v39  ;;  %v10272_v43 = vld [vmem:[%s22788_s16 + $0x1448] sm:$0xff]  ;;  %v11664_v58 = vld [vmem:[%s22790_s18 + $0x318] sm:$0xff] }
0x2869   : > { %v11608_v13 = vld [vmem:[%s22790_s18 + $0x158] sm:$0xff] }
0x286a   : > { %15752 = vmatpush1.bf16.msra.mxu0 %v15751_v30  ;;  %v10279_v30 = vld [vmem:[%s22788_s16 + $0x1480] sm:$0xff] }
0x286b   : > { %15754 = vmatprep.subr.bf16.mxu0 %v15753_v8  ;;  %v15787_v8 = vpack.c.bf16 %v10264_v41, %v10257_v1  ;;  %v15789_v36 = vpack.c.bf16 %v10279_v30, %v10272_v43  ;;  %v11615_v1 = vld [vmem:[%s22790_s18 + $0x190] sm:$0xff]  ;;  %v11616_v41 = vld [vmem:[%s22790_s18 + $0x198] sm:$0xff] }
0x286e   : > { %15756 = vmatpush1.bf16.msra.mxu0 %v15755_v26  ;;  %v10293_v26 = vld [vmem:[%s22788_s16 + $0x14f0] sm:$0xff] }
0x286f   : > { %15758 = vmatprep.subr.bf16.mxu0 %v15757_v42  ;;  %v15791_v42 = vpack.c.bf16 %v10278_v0, %v10271_v49  ;;  %v15793_v2 = vpack.c.bf16 %v10293_v26, %v10286_v50  ;;  %v15957_v26 = vpack.c.bf16 %v11616_v41, %v11615_v1  ;;  %v11647_v41 = vld [vmem:[%s22790_s18 + $0x290] sm:$0xff] }
0x2872   : > { %15760 = vmatpush1.bf16.msra.mxu0 %v15759_v63  ;;  %v10307_v63 = vld [vmem:[%s22788_s16 + $0x1560] sm:$0xff] }
0x2873   : > { %15762 = vmatprep.subr.bf16.mxu0 %v15761_v17  ;;  %v15795_v17 = vpack.c.bf16 %v10292_v18, %v10285_v62  ;;  %v15797_v47 = vpack.c.bf16 %v10307_v63, %v10300_v61  ;;  %v11617_v18 = vld [vmem:[%s22790_s18 + $0x1a0] sm:$0xff]  ;;  %v11618_v61 = vld [vmem:[%s22790_s18 + $0x1a8] sm:$0xff] }
0x2876   : > { %15764 = vmatpush1.bf16.msra.mxu0 %v15763_v15  ;;  %v10321_v15 = vld [vmem:[%s22788_s16 + $0x15d0] sm:$0xff] }
0x2877   : > { %15766 = vmatprep.subr.bf16.mxu0 %v15765_v37  ;;  %v15799_v37 = vpack.c.bf16 %v10306_v27, %v10299_v3  ;;  %v15801_v7 = vpack.c.bf16 %v10321_v15, %v10314_v9  ;;  %v11601_v3 = vld [vmem:[%s22790_s18 + $0x120] sm:$0xff]  ;;  %v11602_v27 = vld [vmem:[%s22790_s18 + $0x128] sm:$0xff]  ;;  %v11619_v9 = vld [vmem:[%s22790_s18 + $0x1b0] sm:$0xff] }
0x2878   : > { %v15963_v15 = vpack.c.bf16 %v11602_v27, %v11601_v3  ;;  %v11635_v3 = vld [vmem:[%s22790_s18 + $0x230] sm:$0xff]  ;;  %v11636_v27 = vld [vmem:[%s22790_s18 + $0x238] sm:$0xff] }
0x287a   : > { %15768 = vmatpush1.bf16.msra.mxu0 %v15767_v32  ;;  %v10335_v32 = vld [vmem:[%s22788_s16 + $0x1640] sm:$0xff] }
0x287b   : > { %15770 = vmatprep.subr.bf16.mxu0 %v15769_v6  ;;  %v15803_v6 = vpack.c.bf16 %v10320_v20, %v10313_v25  ;;  %v15805_v5 = vpack.c.bf16 %v10335_v32, %v10328_v53  ;;  %v11604_v25 = vld [vmem:[%s22790_s18 + $0x138] sm:$0xff]  ;;  %v11621_v20 = vld [vmem:[%s22790_s18 + $0x1c0] sm:$0xff]  ;;  %v11622_v53 = vld [vmem:[%s22790_s18 + $0x1c8] sm:$0xff] }
0x287e   : > { %15772 = vmatpush1.bf16.msra.mxu0 %v15771_v24  ;;  %v15807_v24 = vpack.c.bf16 %v10334_v11, %v10327_v14  ;;  %v11606_v14 = vld [vmem:[%s22790_s18 + $0x148] sm:$0xff]  ;;  %v11623_v11 = vld [vmem:[%s22790_s18 + $0x1d0] sm:$0xff] }
0x287f   : > { %15774 = vmatprep.subr.bf16.mxu0 %v15773_v55 }
0x2882   : > { %15776 = vmatpush1.bf16.msra.mxu0 %v15775_v23  ;;  %v11662_v23 = vld [vmem:[%s22790_s18 + $0x308] sm:$0xff] }
0x2883   : > { %15778 = vmatprep.subr.bf16.mxu0 %v15777_v45  ;;  %v22490_v45 = vld [vmem:[%s22789_s17] sm:$0x7f]  ;;  %v16018_v48 = vpack.c.bf16 %v11662_v23, %v11661_v22 }
0x2884   : > { %v10391_v34 = vrot.slane %v22490_v45, %v17472_v56  ;;  %v10403_v38 = vrot.slane %v22490_v45, %v17486_v60  ;;  %v11666_v56 = vld [vmem:[%s22790_s18 + $0x328] sm:$0xff] }
0x2885   : > { %v11598_v60 = vld [vmem:[%s22790_s18 + $0x108] sm:$0xff] }
0x2886   : > { %15780 = vmatpush1.bf16.msra.mxu0 %v15779_v33  ;;  %v10395_v33 = vrot.slane %v22490_v45, %v17483_v59 }
0x2887   : > { %15782 = vmatprep.subr.bf16.mxu0 %v15781_v19  ;;  %v16021_v19 = vpack.c.bf16 %v11664_v58, %v11663_v35  ;;  %v11610_v35 = vld [vmem:[%s22790_s18 + $0x168] sm:$0xff]  ;;  %v11627_v58 = vld [vmem:[%s22790_s18 + $0x1f0] sm:$0xff] }
0x288a   : > { %15784 = vmatpush1.bf16.msra.mxu0 %v15783_v12 }
0x288b   : > { %15786 = vmatprep.subr.bf16.mxu0 %v15785_v21 }
0x288e   : > { %15788 = vmatpush1.bf16.msra.mxu0 %v15787_v8  ;;  %v11667_v8 = vld [vmem:[%s22790_s18 + $0x330] sm:$0xff] }
0x288f   : > { %15790 = vmatprep.subr.bf16.mxu0 %v15789_v36  ;;  %v11668_v36 = vld [vmem:[%s22790_s18 + $0x338] sm:$0xff] }
0x2890   : > { %v16027_v63 = vpack.c.bf16 %v11668_v36, %v11667_v8 }
0x2892   : > { %15792 = vmatpush1.bf16.msra.mxu0 %v15791_v42  ;;  %v11599_v42 = vld [vmem:[%s22790_s18 + $0x110] sm:$0xff] }
0x2893   : > { %15794 = vmatprep.subr.bf16.mxu0 %v15793_v2  ;;  %v11600_v2 = vld [vmem:[%s22790_s18 + $0x118] sm:$0xff] }
0x2896   : > { %15796 = vmatpush1.bf16.msra.mxu0 %v15795_v17  ;;  %v15959_v17 = vpack.c.bf16 %v11600_v2, %v11599_v42 }
0x2897   : > { %15798 = vmatprep.subr.bf16.mxu0 %v15797_v47  ;;  %v15961_v47 = vpack.c.bf16 %v11618_v61, %v11617_v18  ;;  %v11634_v18 = vld [vmem:[%s22790_s18 + $0x228] sm:$0xff]  ;;  %v11651_v61 = vld [vmem:[%s22790_s18 + $0x2b0] sm:$0xff] }
0x2899   : > { %11201 = vmatmul.mubr.f32.vlgmr.msra.gmra.mrb[92].mxu0 %v21348_v29  ;;  %v10349_v29 = vld [vmem:[%s22788_s16 + $0x16b0] sm:$0xff] }
0x289a   : > { %15800 = vmatpush1.bf16.msra.mxu0 %v15799_v37  ;;  %11271 = vmatprep.mubr.f32.mxu0 %v16266_v54  ;;  %v15809_v55 = vpack.c.bf16 %v10349_v29, %v10342_v16  ;;  %v11624_v16 = vld [vmem:[%s22790_s18 + $0x1d8] sm:$0xff] }
0x289b   : > { %15802 = vmatprep.subr.bf16.mxu0 %v15801_v7  ;;  %v11603_v7 = vld [vmem:[%s22790_s18 + $0x130] sm:$0xff] }
0x289c   : > { %v15967_v32 = vpack.c.bf16 %v11604_v25, %v11603_v7  ;;  %v11637_v7 = vld [vmem:[%s22790_s18 + $0x240] sm:$0xff]  ;;  %v11638_v25 = vld [vmem:[%s22790_s18 + $0x248] sm:$0xff] }
0x289e   : > { %15804 = vmatpush1.bf16.msra.mxu0 %v15803_v6  ;;  %v15969_v6 = vpack.c.bf16 %v11622_v53, %v11621_v20  ;;  %v11655_v20 = vld [vmem:[%s22790_s18 + $0x2d0] sm:$0xff]  ;;  %v11656_v53 = vld [vmem:[%s22790_s18 + $0x2d8] sm:$0xff] }
0x289f   : > { %15806 = vmatprep.subr.bf16.mxu0 %v15805_v5  ;;  %v11605_v5 = vld [vmem:[%s22790_s18 + $0x140] sm:$0xff] }
0x28a0   : > { %v15971_v29 = vpack.c.bf16 %v11606_v14, %v11605_v5  ;;  %v11639_v5 = vld [vmem:[%s22790_s18 + $0x250] sm:$0xff]  ;;  %v11640_v14 = vld [vmem:[%s22790_s18 + $0x258] sm:$0xff] }
0x28a2   : > { %15808 = vmatpush1.bf16.msra.mxu0 %v15807_v24  ;;  %v15973_v24 = vpack.c.bf16 %v11624_v16, %v11623_v11  ;;  %v11657_v11 = vld [vmem:[%s22790_s18 + $0x2e0] sm:$0xff]  ;;  %v11658_v16 = vld [vmem:[%s22790_s18 + $0x2e8] sm:$0xff] }
0x28a3   : > { %15810 = vmatprep.subr.bf16.mxu0 %v15809_v55  ;;  %v11607_v55 = vld [vmem:[%s22790_s18 + $0x150] sm:$0xff] }
0x28a4   : > { %v15975_v22 = vpack.c.bf16 %v11608_v13, %v11607_v55  ;;  %v10415_v55 = vrot.slane %v22490_v45, %v17548_v52  ;;  %v11660_v52 = vld [vmem:[%s22790_s18 + $0x2f8] sm:$0xff] }
0x28a6   : > { %15812 = vmatpush1.bf16.msra.mxu0 %v15811_v28  ;;  %v11626_v28 = vld [vmem:[%s22790_s18 + $0x1e8] sm:$0xff] }
0x28a7   : > { %16017 = vmatprep.subr.bf16.mxu0 %v16264_v46  ;;  %v15977_v23 = vpack.c.bf16 %v11626_v28, %v11625_v51 }
0x28a9   : > { %12636 = vmatmul.mubr.msk.f32.vlgmr.msra.gmra.mrb[92].mxu0 %vm10423_vm7, %v21452_v40  ;;  %v11665_v40 = vld [vmem:[%s22790_s18 + $0x320] sm:$0xff] }
0x28aa   : > { %16019 = vmatpush3.bf16.msra.mxu0 %v16018_v48  ;;  %14186 = vmatprep.mubr.msk.f32.mxu0 %vm16265_vm1, %v16266_v54  ;;  %v11597_v54 = vld [vmem:[%s22790_s18 + $0x100] sm:$0xff]  ;;  %v16024_v43 = vpack.c.bf16 %v11666_v56, %v11665_v40  ;;  %v11611_v40 = vld [vmem:[%s22790_s18 + $0x170] sm:$0xff]  ;;  %v11612_v56 = vld [vmem:[%s22790_s18 + $0x178] sm:$0xff] }
0x28ab   : > { %16020 = vmatprep.subr.bf16.mxu0 %v16264_v46  ;;  %v15955_v0 = vpack.c.bf16 %v11598_v60, %v11597_v54  ;;  %v11609_v48 = vld [vmem:[%s22790_s18 + $0x160] sm:$0xff] }
0x28ac   : > { %v10705_v4 = vpop.f32.mrb[90].mxu0 }
0x28ad   : > { %v16029_v59 = vadd.f32 %v10705_v4, %v10391_v34  ;;  %v22516_v39 = vpop.f32.mrb[108].mxu1  ;;  %v10707_v31 = vpop.f32.mrb[91].mxu0  ;;  %v11628_v34 = vld [vmem:[%s22790_s18 + $0x1f8] sm:$0xff]  ;;  %v11645_v4 = vld [vmem:[%s22790_s18 + $0x280] sm:$0xff] }
0x28ae   : > { %v16030_v12 = vadd.f32 %v10707_v31, %v10395_v33  ;;  %v10991_v21 = vpop.f32.mrb[109].mxu1  ;;  %16022 = vmatpush3.bf16.msra.mxu0 %v16021_v19  ;;  %v15979_v33 = vpack.c.bf16 %v11610_v35, %v11609_v48  ;;  %v10399_v19 = vrot.slane %v22490_v45, %v17475_v57  ;;  %v15983_v57 = vpack.c.bf16 %v11612_v56, %v11611_v40  ;;  %v11641_v48 = vld [vmem:[%s22790_s18 + $0x260] sm:$0xff]  ;;  %v11642_v35 = vld [vmem:[%s22790_s18 + $0x268] sm:$0xff] }
0x28af   : > { %v16032_v30 = vadd.f32 %v10991_v21, %v10403_v38  ;;  %16023 = vmatprep.subr.bf16.mxu0 %v16264_v46  ;;  %v11558_v50 = vmax.f32 %v16029_v59, 0.0  ;;  %v15981_v38 = vpack.c.bf16 %v11628_v34, %v11627_v58  ;;  %v11646_v59 = vld [vmem:[%s22790_s18 + $0x288] sm:$0xff]  ;;  %v16011_v58 = vpack.c.bf16 %v11642_v35, %v11641_v48  ;;  %v11659_v34 = vld [vmem:[%s22790_s18 + $0x2f0] sm:$0xff] }
0x28b0   : > { %v11559_v49 = vmax.f32 %v16030_v12, 0.0  ;;  %v16031_v31 = vadd.f32 %v22516_v39, %v10399_v19  ;;  %v15985_v60 = vpack.c.bf16 %v11646_v59, %v11645_v4  ;;  %v11629_v12 = vld [vmem:[%s22790_s18 + $0x200] sm:$0xff]  ;;  %v11630_v21 = vld [vmem:[%s22790_s18 + $0x208] sm:$0xff]  ;;  %v11648_v39 = vld [vmem:[%s22790_s18 + $0x298] sm:$0xff] }
0x28b1   : > { %v11561_v62 = vmax.f32 %v16032_v30, 0.0  ;;  %v15987_v30 = vpack.c.bf16 %v11630_v21, %v11629_v12  ;;  %v15989_v36 = vpack.c.bf16 %v11648_v39, %v11647_v41  ;;  %v11643_v19 = vld [vmem:[%s22790_s18 + $0x270] sm:$0xff]  ;;  %v10407_v21 = vrot.slane %v22490_v45, %v17541_v44  ;;  %v11669_v44 = vld [vmem:[%s22791_s19] sm:$0x1] }
0x28b2   : > { %11737 = vmatprep.mubr.f32.mxu1 %v11559_v49  ;;  %16025 = vmatpush3.bf16.msra.mxu0 %v16024_v43  ;;  %v11560_v8 = vmax.f32 %v16031_v31, 0.0  ;;  %v11631_v49 = vld [vmem:[%s22790_s18 + $0x210] sm:$0xff] }
0x28b3   : > { %11738 = vmatmul.mubr.f32.vlgmr.msra.gmra.mrb[118].mxu1 %v11558_v50  ;;  %16026 = vmatprep.subr.bf16.mxu0 %v16264_v46  ;;  %v11620_v46 = vld [vmem:[%s22790_s18 + $0x1b8] sm:$0xff]  ;;  %v11649_v50 = vld [vmem:[%s22790_s18 + $0x2a0] sm:$0xff] }
0x28b4   : > { %15956 = vmatpush3.bf16.msra.mxu1 %v15955_v0  ;;  %11807 = vmatprep.mubr.f32.mxu1 %v11561_v62  ;;  %v15965_v37 = vpack.c.bf16 %v11620_v46, %v11619_v9  ;;  %v11632_v0 = vld [vmem:[%s22790_s18 + $0x218] sm:$0xff]  ;;  %v11633_v62 = vld [vmem:[%s22790_s18 + $0x220] sm:$0xff]  ;;  %v11654_v46 = vld [vmem:[%s22790_s18 + $0x2c8] sm:$0xff] }
0x28b5   : > { %15958 = vmatprep.subr.bf16.mxu1 %v15957_v26  ;;  %v11650_v26 = vld [vmem:[%s22790_s18 + $0x2a8] sm:$0xff]  ;;  %v15991_v42 = vpack.c.bf16 %v11632_v0, %v11631_v49  ;;  %v11653_v9 = vld [vmem:[%s22790_s18 + $0x2c0] sm:$0xff] }
0x28b6   : > { %16028 = vmatpush3.bf16.msra.mxu0 %v16027_v63  ;;  %v15993_v2 = vpack.c.bf16 %v11650_v26, %v11649_v50  ;;  %v11652_v63 = vld [vmem:[%s22790_s18 + $0x2b8] sm:$0xff] }
0x28b8   : > { %15960 = vmatpush3.bf16.msra.mxu1 %v15959_v17  ;;  %v15995_v17 = vpack.c.bf16 %v11634_v18, %v11633_v62 }
0x28b9   : > { %15962 = vmatprep.subr.bf16.mxu1 %v15961_v47  ;;  %v15997_v47 = vpack.c.bf16 %v11652_v63, %v11651_v61 }
0x28bc   : > { %15964 = vmatpush3.bf16.msra.mxu1 %v15963_v15  ;;  %v15999_v15 = vpack.c.bf16 %v11636_v27, %v11635_v3 }
0x28bd   : > { %15966 = vmatprep.subr.bf16.mxu1 %v15965_v37  ;;  %v16001_v37 = vpack.c.bf16 %v11654_v46, %v11653_v9 }
0x28c0   : > { %15968 = vmatpush3.bf16.msra.mxu1 %v15967_v32  ;;  %v16003_v32 = vpack.c.bf16 %v11638_v25, %v11637_v7 }
0x28c1   : > { %15970 = vmatprep.subr.bf16.mxu1 %v15969_v6  ;;  %v16005_v6 = vpack.c.bf16 %v11656_v53, %v11655_v20 }
0x28c4   : > { %15972 = vmatpush3.bf16.msra.mxu1 %v15971_v29  ;;  %v16007_v29 = vpack.c.bf16 %v11640_v14, %v11639_v5 }
0x28c5   : > { %15974 = vmatprep.subr.bf16.mxu1 %v15973_v24  ;;  %v16009_v24 = vpack.c.bf16 %v11658_v16, %v11657_v11 }
0x28c8   : > { %15976 = vmatpush3.bf16.msra.mxu1 %v15975_v22 }
0x28c9   : > { %15978 = vmatprep.subr.bf16.mxu1 %v15977_v23 }
0x28cc   : > { %15980 = vmatpush3.bf16.msra.mxu1 %v15979_v33  ;;  %v16013_v33 = vpack.c.bf16 %v11660_v52, %v11659_v34 }
0x28cd   : > { %v13527_v54 = vpop.f32.mrb[110].mxu1  ;;  %15982 = vmatprep.subr.bf16.mxu1 %v15981_v38  ;;  %v11644_v38 = vld [vmem:[%s22790_s18 + $0x278] sm:$0xff] }
0x28ce   : > { %v13528_v1 = vpop.f32.mrb[111].mxu1  ;;  %v16015_v40 = vpack.c.bf16 %v11644_v38, %v11643_v19 }
0x28cf   : > { %v13529_v43 = vadd.f32 %v13528_v1, %v13527_v54  ;;  %v10411_v1 = vrot.slane %v22490_v45, %v17505_v10 }
0x28d0   : > { %15984 = vmatpush3.bf16.msra.mxu1 %v15983_v57 }
0x28d1   : > { %15986 = vmatprep.subr.bf16.mxu1 %v15985_v60  ;;  %v11345_v28 = vadd.f32 %v13529_v43, %v10415_v55 }
0x28d3   : > { %11808 = vmatmul.mubr.f32.vlgmr.msra.gmra.mrb[120].mxu1 %v11560_v8 }
0x28d4   : > { %15988 = vmatpush3.bf16.msra.mxu1 %v15987_v30 }
0x28d5   : > { %15990 = vmatprep.subr.bf16.mxu1 %v15989_v36 }
0x28d8   : > { %15992 = vmatpush3.bf16.msra.mxu1 %v15991_v42 }
0x28d9   : > { %15994 = vmatprep.subr.bf16.mxu1 %v15993_v2 }
0x28dc   : > { %15996 = vmatpush3.bf16.msra.mxu1 %v15995_v17 }
0x28dd   : > { %15998 = vmatprep.subr.bf16.mxu1 %v15997_v47 }
0x28e0   : > { %16000 = vmatpush3.bf16.msra.mxu1 %v15999_v15 }
0x28e1   : > { %16002 = vmatprep.subr.bf16.mxu1 %v16001_v37 }
0x28e4   : > { %16004 = vmatpush3.bf16.msra.mxu1 %v16003_v32 }
0x28e5   : > { %16006 = vmatprep.subr.bf16.mxu1 %v16005_v6 }
0x28e8   : > { %16008 = vmatpush3.bf16.msra.mxu1 %v16007_v29 }
0x28e9   : > { %16010 = vmatprep.subr.bf16.mxu1 %v16009_v24 }
0x28ec   : > { %16012 = vmatpush3.bf16.msra.mxu1 %v16011_v58 }
0x28ed   : > { %v13562_v13 = vpop.f32.mrb[112].mxu1  ;;  %16014 = vmatprep.subr.bf16.mxu1 %v16013_v33 }
0x28ee   : > { %v13563_v51 = vpop.f32.mrb[113].mxu1 }
0x28ef   : > { %v13564_v22 = vadd.f32 %v13563_v51, %v13562_v13 }
0x28f0   : > { %16016 = vmatpush3.bf16.msra.mxu1 %v16015_v40 }
0x28f1   : > { %v11415_v23 = vadd.f32 %v13564_v22, %v11345_v28 }
0x290d   : > { %v13597_v56 = vpop.f32.mrb[114].mxu1 }
0x290e   : > { %v13598_v4 = vpop.f32.mrb[115].mxu1 }
0x290f   : > { %v13599_v59 = vadd.f32 %v13598_v4, %v13597_v56 }
0x2911   : > { %v11485_v57 = vadd.f32 %v13599_v59, %v11415_v23 }
0x291d   : > { %v11554_v31 = vpop.f32.mrb[116].mxu1 }
0x291e   : > { %v11555_v54 = vadd.f32 %v11554_v31, %v11485_v57  ;;  %v14169_v60 = vpop.f32.mrb[117].mxu1 }
0x2920   : > { %v11564_v12 = vmax.f32 %v11555_v54, 0.0 }
0x2922   : > { %14187 = vmatmul.mubr.msk.f32.vlgmr.msra.gmra.mrb[94].mxu0 %vm10423_vm7, %v11564_v12 }
0x297c   : > { %v11273_v41 = vpop.f32.mrb[92].mxu0 }
0x297d   : > { %v16033_v39 = vadd.f32 %v11273_v41, %v10407_v21  ;;  %v11275_v43 = vpop.f32.mrb[93].mxu0 }
0x297e   : > { %v16034_v30 = vadd.f32 %v11275_v43, %v10411_v1 }
0x297f   : > { %v11562_v36 = vmax.f32 %v16033_v39, 0.0 }
0x2980   : > { %v11563_v8 = vmax.f32 %v16034_v30, 0.0 }
0x2982   : > { %11877 = vmatprep.mubr.f32.mxu1 %v11563_v8 }
0x2983   : > { %11878 = vmatmul.mubr.f32.vlgmr.msra.gmra.mrb[122].mxu1 %v11562_v36 }
0x2986   : > { %v13641_v49 = vpop.f32.mrb[118].mxu1 }
0x2987   : > { %v13642_v0 = vpop.f32.mrb[119].mxu1 }
0x2988   : > { %v13643_v50 = vadd.f32 %v13642_v0, %v13641_v49 }
0x298a   : > { %v11740_v10 = vadd.f32 %v13643_v50, %v11669_v44 }
0x29a6   : > { %v13676_v26 = vpop.f32.mrb[120].mxu1 }
0x29a7   : > { %v13677_v42 = vpop.f32.mrb[121].mxu1 }
0x29a8   : > { %v13678_v45 = vadd.f32 %v13677_v42, %v13676_v26 }
0x29aa   : > { %v11810_v2 = vadd.f32 %v13678_v45, %v11740_v10 }
0x29f5   : > { %v11949_v62 = vpop.f32.mrb[94].mxu0 }
0x29f6   : > { %v14188_v18 = vpop.f32.mrb[95].mxu0 }
0x2a56   : > { %v13711_v61 = vpop.f32.mrb[122].mxu1 }
0x2a57   : > { %v13712_v63 = vpop.f32.mrb[123].mxu1 }
0x2a58   : > { %v13713_v17 = vadd.f32 %v13712_v63, %v13711_v61 }
0x2a5a   : > { %v11880_v47 = vadd.f32 %v13713_v17, %v11810_v2 }
0x2a5c   : > { %v11950_v3 = vadd.f32 %v11949_v62, %v11880_v47 }
0x2a5e   : > { %11954 = vst.msk [vmem:[%s621_s20] sm:$0x1] %vm11953_vm8, %v11950_v3 }
0x2a5f   : > { %16213 = shalt.err (!%p16210_p3)
}
0x2a60   : > { %s16214_s4 = scalar_lea.hbm %s22730_s1, 16  ;;  %s16218_s25 = scalar_lea.hbm %s22828_s3, 32 }
0x2a61   : > { %p16215_p4 = scmp.ne.s32.totalorder %s22730_s1, %s16214_s4  ;;  %p16219_p9 = scmp.lt.u32.totalorder %s22730_s1, %s22828_s3 }
0x2a62   : > { %p16220_p10 = scmp.lt.u32.totalorder %s16218_s25, %s16214_s4  ;;  %p16222_p12 = scmp.lt.u32.totalorder %s16214_s4, %s22730_s1 }
0x2a63   : > { %p16216_p7 = pnand %p16215_p4, %p16412_p5 }
0x2a64   : > { %p16221_p11 = por %p16220_p10, %p16219_p9 }
0x2a65   : > { %p16217_p8 = pneg %p16216_p7 }
0x2a66   : > { %p16223_p13 = por %p16222_p12, %p16221_p11 }
0x2a68   : > { %p16224_p0 = pnand %p16223_p13, %p16217_p8 }
0x2a6a   : > { %16227 = shalt.err (!%p16224_p0)
}
0x2a6b   : > { %16054 = dma.vmem_to_hbm [thread:$0]  (%p16412_p5), %s22732_s27, 16, %s22730_s1, %s11956_s29  }
0x2a6c PF: > { %s22829_s0 = sld [smem:[#allocation7_spill]]  ;;  %s22830_s28 = sld [smem:[#allocation5_spill]] }
0x2a72   : > { %p16060_p1 = scmp.ge.s32.totalorder %s22829_s0, 2  ;;  %s11980_s23 = sand.u32 1, %s22830_s28  }
0x2a73   : > { %s11981_s20 = scalar_lea.sflag [#allocation3], %s11980_s23 }
0x2a74   : > { %p16057_p2 = pnand %p16060_p1, %p16416_p6 }
0x2a76   : > { %16245 = dma.done.wait (!%p16057_p2), %s11981_s20, 16  }
0x2a77   : > { %16247 = vsyncadd (!%p16057_p2), %s11981_s20, 4294967280  ;;  %s22832_s24 = sld [smem:[#allocation8_spill]]  ;;  %s22833_s4 = sld [smem:[#allocation6_spill]] }
0x2a78   : > { %s22834_s23 = sld [smem:[#allocation9_spill]]  ;;  %s22835_s1 = smov %s16254_s22 }
0x2a7d   : > { %p30_p3 = scmp.ge.s32.totalorder %s22832_s24, 4   ;;  %s22836_s22 = smov %s22833_s4 }
0x2a7f   :  { %32 = sbr.rel (!%p30_p3) target bundleno = 10 (0xa), region = 173 }
0x2a86   :  { %11985 = vsyncpa [#allocation3], 1 }
0x2a87   :  { %11987 = vsyncpa [#allocation3 + $0x1], 1 }

</bundles_post_ra>
